<compile_context>
chip_gen: v7x
topology: tpu7x:2x2x1
jax: 0.10.0
libtpu: 0.0.40
codegen_flags: <defaults>
</compile_context>

<pallas_src>
import functools
import math

import jax
import jax.numpy as jnp
from jax.experimental import pallas as pl
from jax.experimental.pallas import tpu as pltpu


_USE_BF16_MXU = True   # bf16 MXU operands, f32 accumulation. False = exact f32.


def _mxu(x):
    return x.astype(jnp.bfloat16) if _USE_BF16_MXU else x


def _round_up(x, m):
    return (x + m - 1) // m * m


# ----------------------------------------------------------------------------
# Tiled matmul + bias (+ReLU): grid (M, N, K), f32 VMEM accumulator
# ----------------------------------------------------------------------------

def _matmul_kernel(x_ref, w_ref, b_ref, o_ref, acc_ref, *, activation):
    @pl.when(pl.program_id(2) == 0)
    def _():
        acc_ref[...] = jnp.zeros_like(acc_ref)

    acc_ref[...] += jnp.dot(_mxu(x_ref[...]), _mxu(w_ref[...]),
                            preferred_element_type=jnp.float32)

    @pl.when(pl.program_id(2) == pl.num_programs(2) - 1)
    def _():
        acc = acc_ref[...] + b_ref[...]          # epilogue in f32 (v5e-safe)
        if activation == "relu":
            acc = jnp.maximum(acc, 0.0)
        o_ref[...] = acc.astype(o_ref.dtype)


def pallas_linear(x, w, b, activation="none"):
    """x: (M, K) @ w: (K, N) + b: (N,), optional ReLU."""
    M, K = x.shape
    _, N = w.shape
    tm = min(128, _round_up(M, 8))
    tn = N if N <= 512 else 512
    tk = K if K <= 1024 else 1024
    Mp, Np, Kp = _round_up(M, tm), _round_up(N, tn), _round_up(K, tk)
    if (Mp, Kp) != (M, K):
        x = jnp.pad(x, ((0, Mp - M), (0, Kp - K)))
    if (Kp, Np) != (K, N):
        w = jnp.pad(w, ((0, Kp - K), (0, Np - N)))
    if Np != N:
        b = jnp.pad(b, (0, Np - N))
    out = pl.pallas_call(
        functools.partial(_matmul_kernel, activation=activation),
        out_shape=jax.ShapeDtypeStruct((Mp, Np), jnp.float32),
        grid=(Mp // tm, Np // tn, Kp // tk),
        in_specs=[
            pl.BlockSpec((tm, tk), lambda i, j, k: (i, k)),
            pl.BlockSpec((tk, tn), lambda i, j, k: (k, j)),
            pl.BlockSpec((1, tn), lambda i, j, k: (0, j)),
        ],
        out_specs=pl.BlockSpec((tm, tn), lambda i, j, k: (i, j)),
        scratch_shapes=[pltpu.VMEM((tm, tn), jnp.float32)],
        compiler_params=pltpu.CompilerParams(
            dimension_semantics=("parallel", "parallel", "arbitrary")),
    )(x, w, b.reshape(1, -1))
    return out[:M, :N]


# ----------------------------------------------------------------------------
# Fused encoder kernel: conv1+ReLU -> conv2+ReLU -> dense concat -> 1x1 proj,
# all per batch element, intermediates kept in VMEM / registers.
# The dense concat + 1x1 projection is expressed as two matmuls (proj_w split
# at the concat boundary) so no lane-axis concat is needed.
# ----------------------------------------------------------------------------

def _encoder_kernel(x_ref, w1_ref, b1_ref, w2_ref, b2_ref,
                    wp1_ref, wp2_ref, bp_ref, o_ref, buf_ref, *, H, W):
    c0 = w1_ref.shape[2]

    # conv1 (3x3, 1 -> c0): degenerate K=1 contraction done on the VPU
    acc1 = jnp.zeros((H, W, c0), jnp.float32)
    for dy in range(3):
        for dx in range(3):
            xs = x_ref[0, pl.ds(dy, H), pl.ds(dx, W), :]       # (H, W, 1)
            acc1 = acc1 + xs * w1_ref[3 * dy + dx, 0]          # bcast over c0
    acc1 = jnp.maximum(acc1 + b1_ref[0], 0.0)

    # zero-padded conv1 output lives in VMEM scratch for conv2's shifted taps
    buf_ref[...] = jnp.zeros_like(buf_ref)
    buf_ref[pl.ds(1, H), pl.ds(1, W), :] = acc1

    # conv2 (3x3, c0 -> growth_rate): contract channel axis directly
    gr = w2_ref.shape[2]
    acc2 = jnp.zeros((H, W, gr), jnp.float32)
    for dy in range(3):
        for dx in range(3):
            xs = buf_ref[pl.ds(dy, H), pl.ds(dx, W), :]        # (H, W, c0)
            acc2 = acc2 + jax.lax.dot_general(
                _mxu(xs), _mxu(w2_ref[3 * dy + dx]),
                (((2,), (0,)), ((), ())),
                preferred_element_type=jnp.float32)
    acc2 = jnp.maximum(acc2 + b2_ref[0], 0.0)

    # 1x1 projection of the dense concat [acc1 | acc2] to d_model
    proj = (jax.lax.dot_general(_mxu(acc1), _mxu(wp1_ref[...]),
                                (((2,), (0,)), ((), ())),
                                preferred_element_type=jnp.float32)
            + jax.lax.dot_general(_mxu(acc2), _mxu(wp2_ref[...]),
                                  (((2,), (0,)), ((), ())),
                                  preferred_element_type=jnp.float32)
            + bp_ref[0])
    o_ref[0] = proj.astype(o_ref.dtype)


def pallas_encoder(x_nhwc, p):
    """x: (B, H, W, 1) -> projected feature map (B, H, W, d_model)."""
    B, H, W, _ = x_nhwc.shape
    c0 = p["conv1_w"].shape[2]
    gr = p["conv2_w"].shape[2]
    D = p["proj_w1"].shape[1]
    xp = jnp.pad(x_nhwc, ((0, 0), (1, 1), (1, 1), (0, 0)))
    return pl.pallas_call(
        functools.partial(_encoder_kernel, H=H, W=W),
        out_shape=jax.ShapeDtypeStruct((B, H, W, D), jnp.float32),
        grid=(B,),
        in_specs=[
            pl.BlockSpec((1, H + 2, W + 2, 1), lambda i: (i, 0, 0, 0)),
            pl.BlockSpec((9, 1, c0), lambda i: (0, 0, 0)),
            pl.BlockSpec((1, c0), lambda i: (0, 0)),
            pl.BlockSpec((9, c0, gr), lambda i: (0, 0, 0)),
            pl.BlockSpec((1, gr), lambda i: (0, 0)),
            pl.BlockSpec((c0, D), lambda i: (0, 0)),
            pl.BlockSpec((gr, D), lambda i: (0, 0)),
            pl.BlockSpec((1, D), lambda i: (0, 0)),
        ],
        out_specs=pl.BlockSpec((1, H, W, D), lambda i: (i, 0, 0, 0)),
        scratch_shapes=[pltpu.VMEM((H + 2, W + 2, c0), jnp.float32)],
        compiler_params=pltpu.CompilerParams(
            dimension_semantics=("parallel",)),
    )(xp, p["conv1_w"], p["conv1_b"].reshape(1, -1),
      p["conv2_w"], p["conv2_b"].reshape(1, -1),
      p["proj_w1"], p["proj_w2"], p["proj_b"].reshape(1, -1))


def avg_pool2(x):
    B, H, W, C = x.shape
    return x.reshape(B, H // 2, 2, W // 2, 2, C).mean(axis=(2, 4))


# ----------------------------------------------------------------------------
# Flash-style multi-head attention: grid (B, Tk-blocks), online softmax,
# head-batched contractions, lane-dense (Tq, D) output store.
# ----------------------------------------------------------------------------

def _mha_kernel(q_ref, k_ref, v_ref, o_ref, m_sc, l_sc, acc_sc,
                *, nhead, causal, scale, kv_len, block_k):
    kv = pl.program_id(1)
    Tq, D = q_ref.shape[1], q_ref.shape[2]
    Tkb = k_ref.shape[1]
    dh = D // nhead

    @pl.when(kv == 0)
    def _():
        m_sc[...] = jnp.full_like(m_sc, -jnp.inf)
        l_sc[...] = jnp.zeros_like(l_sc)
        acc_sc[...] = jnp.zeros_like(acc_sc)

    q = q_ref[0].astype(jnp.float32) * scale      # fold 1/sqrt(dh) into Q (f32)
    k = k_ref[0].astype(jnp.float32)
    v = v_ref[0].astype(jnp.float32)
    # head-batched layout (nhead, T, dh) from lane slices
    qh = jnp.stack([q[:, h * dh:(h + 1) * dh] for h in range(nhead)], axis=0)
    kh = jnp.stack([k[:, h * dh:(h + 1) * dh] for h in range(nhead)], axis=0)
    vh = jnp.stack([v[:, h * dh:(h + 1) * dh] for h in range(nhead)], axis=0)

    s = jnp.einsum("hqd,hkd->hqk", _mxu(qh), _mxu(kh),
                   preferred_element_type=jnp.float32)          # (H, Tq, Tkb)

    allow = None
    if causal or (kv_len is not None):
        row = jax.lax.broadcasted_iota(jnp.int32, (Tq, Tkb), 0)
        col = jax.lax.broadcasted_iota(jnp.int32, (Tq, Tkb), 1) + kv * block_k
        if causal:
            allow = row >= col
        if kv_len is not None:
            kmask = col < kv_len
            allow = kmask if allow is None else jnp.logical_and(allow, kmask)
    if allow is not None:
        s = jnp.where(allow[None], s, jnp.float32(-1e9))        # mask in f32

    m_prev = m_sc[...]
    m_new = jnp.maximum(m_prev, s.max(axis=-1, keepdims=True))
    a = jnp.exp(m_prev - m_new)
    p = jnp.exp(s - m_new)
    l_sc[...] = a * l_sc[...] + p.sum(axis=-1, keepdims=True)
    acc_sc[...] = a * acc_sc[...] + jnp.einsum(
        "hqk,hkd->hqd", _mxu(p), _mxu(vh), preferred_element_type=jnp.float32)
    m_sc[...] = m_new

    @pl.when(kv == pl.num_programs(1) - 1)
    def _():
        o = acc_sc[...] * pl.reciprocal(l_sc[...], approx=True)  # EUP, not VALU
        o_ref[0] = jnp.concatenate([o[h] for h in range(nhead)],
                                   axis=-1).astype(o_ref.dtype)


def pallas_mha(q, k, v, *, nhead, causal):
    """q: (B, Tq, D), k/v: (B, Tk, D) -> (B, Tq, D)."""
    B, Tq, D = q.shape
    Tk = k.shape[1]
    dh = D // nhead
    scale = 1.0 / math.sqrt(dh)
    block_k = Tk if Tk <= 512 else 512
    Tkp = _round_up(Tk, block_k)
    kv_len = Tk if Tkp != Tk else None
    if Tkp != Tk:
        k = jnp.pad(k, ((0, 0), (0, Tkp - Tk), (0, 0)))
        v = jnp.pad(v, ((0, 0), (0, Tkp - Tk), (0, 0)))
    return pl.pallas_call(
        functools.partial(_mha_kernel, nhead=nhead, causal=causal, scale=scale,
                          kv_len=kv_len, block_k=block_k),
        out_shape=jax.ShapeDtypeStruct((B, Tq, D), jnp.float32),
        grid=(B, Tkp // block_k),
        in_specs=[
            pl.BlockSpec((1, Tq, D), lambda b, j: (b, 0, 0)),
            pl.BlockSpec((1, block_k, D), lambda b, j: (b, j, 0)),
            pl.BlockSpec((1, block_k, D), lambda b, j: (b, j, 0)),
        ],
        out_specs=pl.BlockSpec((1, Tq, D), lambda b, j: (b, 0, 0)),
        scratch_shapes=[pltpu.VMEM((nhead, Tq, 1), jnp.float32),
                        pltpu.VMEM((nhead, Tq, 1), jnp.float32),
                        pltpu.VMEM((nhead, Tq, dh), jnp.float32)],
        compiler_params=pltpu.CompilerParams(
            dimension_semantics=("parallel", "arbitrary")),
    )(q, k, v)


# ----------------------------------------------------------------------------
# Fused (attention output projection + residual + LayerNorm) and
# fused (FFN + residual + LayerNorm) kernels
# ----------------------------------------------------------------------------

def _proj_add_ln_kernel(x_ref, w_ref, b_ref, r_ref, g_ref, bb_ref, o_ref, *, eps):
    f = jnp.dot(_mxu(x_ref[...]), _mxu(w_ref[...]),
                preferred_element_type=jnp.float32) + b_ref[...]
    r = r_ref[...].astype(jnp.float32) + f
    mu = jnp.mean(r, axis=-1, keepdims=True)
    var = jnp.mean((r - mu) ** 2, axis=-1, keepdims=True)
    y = (r - mu) * jax.lax.rsqrt(var + eps)
    o_ref[...] = (y * g_ref[...] + bb_ref[...]).astype(o_ref.dtype)


def pallas_proj_add_layernorm(x, w, b, res, gamma, beta, eps=1e-5):
    """LayerNorm(res + x @ w + b)."""
    M, D = x.shape
    tm = min(128, _round_up(M, 8))
    Mp = _round_up(M, tm)
    if Mp != M:
        x = jnp.pad(x, ((0, Mp - M), (0, 0)))
        res = jnp.pad(res, ((0, Mp - M), (0, 0)))
    out = pl.pallas_call(
        functools.partial(_proj_add_ln_kernel, eps=eps),
        out_shape=jax.ShapeDtypeStruct((Mp, D), jnp.float32),
        grid=(Mp // tm,),
        in_specs=[
            pl.BlockSpec((tm, D), lambda i: (i, 0)),
            pl.BlockSpec((D, D), lambda i: (0, 0)),
            pl.BlockSpec((1, D), lambda i: (0, 0)),
            pl.BlockSpec((tm, D), lambda i: (i, 0)),
            pl.BlockSpec((1, D), lambda i: (0, 0)),
            pl.BlockSpec((1, D), lambda i: (0, 0)),
        ],
        out_specs=pl.BlockSpec((tm, D), lambda i: (i, 0)),
        compiler_params=pltpu.CompilerParams(
            dimension_semantics=("parallel",)),
    )(x, w, b.reshape(1, D), res, gamma.reshape(1, D), beta.reshape(1, D))
    return out[:M]


def _ffn_add_ln_kernel(x_ref, w1_ref, b1_ref, w2_ref, b2_ref, g_ref, bb_ref,
                       o_ref, *, eps, f_chunk):
    x = x_ref[...].astype(jnp.float32)
    F = w1_ref.shape[1]
    acc = jnp.zeros((x.shape[0], w2_ref.shape[1]), jnp.float32) + b2_ref[...]
    for f0 in range(0, F, f_chunk):              # dim_ff chunked on-chip
        h = jnp.dot(_mxu(x), _mxu(w1_ref[:, pl.ds(f0, f_chunk)]),
                    preferred_element_type=jnp.float32) + b1_ref[:, pl.ds(f0, f_chunk)]
        h = jnp.maximum(h, 0.0)
        acc = acc + jnp.dot(_mxu(h), _mxu(w2_ref[pl.ds(f0, f_chunk), :]),
                            preferred_element_type=jnp.float32)
    r = x + acc                                   # residual fused
    mu = jnp.mean(r, axis=-1, keepdims=True)
    var = jnp.mean((r - mu) ** 2, axis=-1, keepdims=True)
    y = (r - mu) * jax.lax.rsqrt(var + eps)
    o_ref[...] = (y * g_ref[...] + bb_ref[...]).astype(o_ref.dtype)


def pallas_ffn_add_layernorm(x, w1, b1, w2, b2, gamma, beta, eps=1e-5):
    M, D = x.shape
    F = w1.shape[1]
    f_chunk = F if (F <= 512 or F % 512 != 0) else 512
    tm = min(128, _round_up(M, 8))
    Mp = _round_up(M, tm)
    if Mp != M:
        x = jnp.pad(x, ((0, Mp - M), (0, 0)))
    out = pl.pallas_call(
        functools.partial(_ffn_add_ln_kernel, eps=eps, f_chunk=f_chunk),
        out_shape=jax.ShapeDtypeStruct((Mp, D), jnp.float32),
        grid=(Mp // tm,),
        in_specs=[
            pl.BlockSpec((tm, D), lambda i: (i, 0)),
            pl.BlockSpec((D, F), lambda i: (0, 0)),
            pl.BlockSpec((1, F), lambda i: (0, 0)),
            pl.BlockSpec((F, D), lambda i: (0, 0)),
            pl.BlockSpec((1, D), lambda i: (0, 0)),
            pl.BlockSpec((1, D), lambda i: (0, 0)),
            pl.BlockSpec((1, D), lambda i: (0, 0)),
        ],
        out_specs=pl.BlockSpec((tm, D), lambda i: (i, 0)),
        compiler_params=pltpu.CompilerParams(
            dimension_semantics=("parallel",)),
    )(x, w1, b1.reshape(1, F), w2, b2.reshape(1, D),
      gamma.reshape(1, D), beta.reshape(1, D))
    return out[:M]


# ----------------------------------------------------------------------------
# JAX glue: positional encodings, attention blocks
# ----------------------------------------------------------------------------

def sinusoid_pe(length, d_model):
    pos = jnp.arange(length, dtype=jnp.float32)[:, None]
    i = jnp.arange(d_model // 2, dtype=jnp.float32)[None, :]
    angle = pos / jnp.power(10000.0, 2.0 * i / d_model)
    return jnp.concatenate([jnp.sin(angle), jnp.cos(angle)], axis=-1)
    # TODO(synk): the BTTR paper uses a 2-D image positional encoding for the
    # encoder features; a 1-D sinusoidal PE over flattened positions is used.


def self_attention_block(y, p, nhead):
    B, T, D = y.shape
    y2 = y.reshape(B * T, D)
    qkv = pallas_linear(y2, p["w_qkv"], p["b_qkv"])              # fused QKV
    q = qkv[:, :D].reshape(B, T, D)
    k = qkv[:, D:2 * D].reshape(B, T, D)
    v = qkv[:, 2 * D:].reshape(B, T, D)
    o = pallas_mha(q, k, v, nhead=nhead, causal=True)
    return o.reshape(B * T, D)


def cross_attention_block(y, k, v, p, nhead):
    B, T, D = y.shape
    y2 = y.reshape(B * T, D)
    q = pallas_linear(y2, p["wq"], p["bq"]).reshape(B, T, D)
    o = pallas_mha(q, k, v, nhead=nhead, causal=False)           # no mask DMA
    return o.reshape(B * T, D)


# ----------------------------------------------------------------------------
# Parameters (deterministic synthetic init)
# ----------------------------------------------------------------------------

def init_params(key, growth_rate, d_model, nhead, dim_ff, vocab):
    ks = jax.random.split(key, 16)

    def w(k, shape, scale=0.02):
        return (jax.random.normal(k, shape) * scale).astype(jnp.float32)

    def zeros(n):
        return jnp.zeros((n,), jnp.float32)

    c0 = 2 * growth_rate
    vocab_p = _round_up(vocab, 128)               # lane-dense logits store
    p = {
        "conv1_w": w(ks[0], (9, 1, c0)), "conv1_b": zeros(c0),
        "conv2_w": w(ks[1], (9, c0, growth_rate)), "conv2_b": zeros(growth_rate),
        # 1x1 projection weight split at the dense-concat boundary
        "proj_w1": w(ks[2], (c0, d_model)),
        "proj_w2": w(ks[9], (growth_rate, d_model)),
        "proj_b": zeros(d_model),
        "embed": w(ks[3], (vocab, d_model), 1.0),
        "ff1_w": w(ks[6], (d_model, dim_ff)), "ff1_b": zeros(dim_ff),
        "ff2_w": w(ks[7], (dim_ff, d_model)), "ff2_b": zeros(d_model),
        # vocab projection pre-padded to a multiple of 128
        "out_w": jnp.pad(w(ks[8], (d_model, vocab)), ((0, 0), (0, vocab_p - vocab))),
        "out_b": zeros(vocab_p),
    }

    kk = jax.random.split(ks[4], 4)
    p["self_attn"] = {
        "w_qkv": jnp.concatenate([w(kk[0], (d_model, d_model)),
                                  w(kk[1], (d_model, d_model)),
                                  w(kk[2], (d_model, d_model))], axis=1),
        "b_qkv": zeros(3 * d_model),
        "wo": w(kk[3], (d_model, d_model)), "bo": zeros(d_model),
    }
    kk = jax.random.split(ks[5], 4)
    p["cross_attn"] = {
        "wq": w(kk[0], (d_model, d_model)), "bq": zeros(d_model),
        "w_kv": jnp.concatenate([w(kk[1], (d_model, d_model)),
                                 w(kk[2], (d_model, d_model))], axis=1),
        "b_kv": zeros(2 * d_model),
        "wo": w(kk[3], (d_model, d_model)), "bo": zeros(d_model),
    }
    for n in ("ln1", "ln2", "ln3"):
        p[n + "_g"] = jnp.ones((d_model,), jnp.float32)
        p[n + "_b"] = zeros(d_model)
    return p


# ----------------------------------------------------------------------------
# BTTR forward
# ----------------------------------------------------------------------------

@functools.partial(jax.jit, static_argnames=("nhead",))
def bttr_forward(params, img, tgt, nhead):
    vocab = params["embed"].shape[0]

    # ---- Encoder (DenseNet-style, simplified): one fused Pallas kernel ----
    x = jnp.transpose(img, (0, 2, 3, 1))                        # NCHW -> NHWC
    feat = pallas_encoder(x, params)                            # (B, H, W, D)
    # 2x2 avg-pool commutes with the (already applied) 1x1 linear projection.
    feat = avg_pool2(feat)                                      # (B, H/2, W/2, D)
    B, Hf, Wf, D = feat.shape
    L = Hf * Wf
    memory = feat.reshape(B, L, D) + sinusoid_pe(L, D)[None]

    # ---- Decoder (single transformer decoder layer, post-LN) ----
    T = tgt.shape[1]
    emb = jnp.take(params["embed"], tgt, axis=0) * jnp.sqrt(jnp.float32(D))
    y = emb + sinusoid_pe(T, D)[None]
    y2 = y.reshape(B * T, D)

    # self-attention + (out-proj + residual + LN) fused
    sa = self_attention_block(y, params["self_attn"], nhead)
    y2 = pallas_proj_add_layernorm(sa, params["self_attn"]["wo"],
                                   params["self_attn"]["bo"], y2,
                                   params["ln1_g"], params["ln1_b"])

    # cross-attention: fused K/V projection of the encoder memory
    cp = params["cross_attn"]
    kv = pallas_linear(memory.reshape(B * L, D), cp["w_kv"], cp["b_kv"])
    k = kv[:, :D].reshape(B, L, D)
    v = kv[:, D:].reshape(B, L, D)
    ca = cross_attention_block(y2.reshape(B, T, D), k, v, cp, nhead)
    y2 = pallas_proj_add_layernorm(ca, cp["wo"], cp["bo"], y2,
                                   params["ln2_g"], params["ln2_b"])

    # FFN + residual + LN fused (dim_ff chunked on-chip)
    y2 = pallas_ffn_add_layernorm(y2, params["ff1_w"], params["ff1_b"],
                                  params["ff2_w"], params["ff2_b"],
                                  params["ln3_g"], params["ln3_b"])

    # vocab projection (weights pre-padded to 128 lanes -> dense stores)
    logits = pallas_linear(y2, params["out_w"], params["out_b"])
    logits = logits[:, :vocab].reshape(B, T, vocab)
    # NOTE: the reference forward computes `out` and has no return statement;
    # we return the decoder logits here so the result can be inspected.
    return logits


# ----------------------------------------------------------------------------
# Demo
# ----------------------------------------------------------------------------

if __name__ == "__main__":
    growth_rate = 8
    d_model, nhead, dim_ff, vocab = 32, 4, 64, 20
    B, H, W, T = 2, 16, 16, 8

    key = jax.random.PRNGKey(0)
    k_param, k_img, k_tgt = jax.random.split(key, 3)

    params = init_params(k_param, growth_rate, d_model, nhead, dim_ff, vocab)
    img = jax.random.normal(k_img, (B, 1, H, W), dtype=jnp.float32)      # NCHW
    tgt = jax.random.randint(k_tgt, (B, T), 0, vocab, dtype=jnp.int32)

    out = bttr_forward(params, img, tgt, nhead=nhead)
    out = jax.block_until_ready(out)
    assert out.shape == (B, T, vocab) and bool(jnp.all(jnp.isfinite(out)))
    print("KERNEL_OK")
</pallas_src>

<mosaic_0001>
module attributes {stable_mosaic.version = 11 : i64} {
  func.func @_matmul_kernel(%arg0: i32, %arg1: i32, %arg2: i32, %arg3: memref<16x32xf32, #tpu.memory_space<vmem>>, %arg4: memref<32x96xf32, #tpu.memory_space<vmem>>, %arg5: memref<1x96xf32, #tpu.memory_space<vmem>>, %arg6: memref<16x96xf32, #tpu.memory_space<vmem>>, %arg7: memref<16x96xf32, #tpu.memory_space<vmem>>) attributes {dimension_semantics = [#tpu.dimension_semantics<parallel>, #tpu.dimension_semantics<parallel>, #tpu.dimension_semantics<arbitrary>], iteration_bounds = array<i64: 1, 1, 1>, scalar_prefetch = 0 : i64, scratch_operands = 1 : i64, tpu.core_type = #tpu.core_type<tc>, window_params = [{transform_indices = @transform_0, window_bounds = array<i64: 16, 32>}, {transform_indices = @transform_1, window_bounds = array<i64: 32, 96>}, {transform_indices = @transform_2, window_bounds = array<i64: 1, 96>}, {transform_indices = @transform_3, window_bounds = array<i64: 16, 96>}]} {
    %c0_i32 = arith.constant 0 : i32
    %0 = arith.cmpi eq, %arg2, %c0_i32 : i32
    %1 = arith.extui %0 : i1 to i32
    %c0_i32_0 = arith.constant 0 : i32
    %2 = arith.cmpi ne, %1, %c0_i32_0 : i32
    scf.if %2 {
      %cst_10 = arith.constant 0.000000e+00 : f32
      %14 = vector.broadcast %cst_10 : f32 to vector<16x96xf32>
      %c0_11 = arith.constant 0 : index
      %c0_12 = arith.constant 0 : index
      %15 = vector.load %arg7[%c0_11, %c0_12] : memref<16x96xf32, #tpu.memory_space<vmem>>, vector<16x96xf32>
      tpu.vector_store %arg7[%c0_11, %c0_12], %14 {strides = array<i32>} : memref<16x96xf32, #tpu.memory_space<vmem>>, vector<16x96xf32>,
    } else {
    }
    %c0 = arith.constant 0 : index
    %c0_1 = arith.constant 0 : index
    %3 = vector.load %arg7[%c0, %c0_1] : memref<16x96xf32, #tpu.memory_space<vmem>>, vector<16x96xf32>
    %c0_2 = arith.constant 0 : index
    %c0_3 = arith.constant 0 : index
    %4 = vector.load %arg3[%c0_2, %c0_3] : memref<16x32xf32, #tpu.memory_space<vmem>>, vector<16x32xf32>
    %5 = arith.truncf %4 : vector<16x32xf32> to vector<16x32xbf16>
    %c0_4 = arith.constant 0 : index
    %c0_5 = arith.constant 0 : index
    %6 = vector.load %arg4[%c0_4, %c0_5] : memref<32x96xf32, #tpu.memory_space<vmem>>, vector<32x96xf32>
    %7 = arith.truncf %6 : vector<32x96xf32> to vector<32x96xbf16>
    %cst = arith.constant dense<0.000000e+00> : vector<16x96xf32>
    %8 = tpu.matmul %5, %7, %cst {dimension_numbers = #tpu.dot_dimension_numbers<[1], [0], [0], [1], [0, 0, 1, 1], [], []>} : vector<16x32xbf16>, vector<32x96xbf16>, vector<16x96xf32> -> vector<16x96xf32>
    %9 = arith.addf %3, %8 : vector<16x96xf32>
    %c0_6 = arith.constant 0 : index
    %c0_7 = arith.constant 0 : index
    %10 = vector.load %arg7[%c0_6, %c0_7] : memref<16x96xf32, #tpu.memory_space<vmem>>, vector<16x96xf32>
    tpu.vector_store %arg7[%c0_6, %c0_7], %9 {strides = array<i32>} : memref<16x96xf32, #tpu.memory_space<vmem>>, vector<16x96xf32>,
    %c0_i32_8 = arith.constant 0 : i32
    %11 = arith.cmpi eq, %arg2, %c0_i32_8 : i32
    %12 = arith.extui %11 : i1 to i32
    %c0_i32_9 = arith.constant 0 : i32
    %13 = arith.cmpi ne, %12, %c0_i32_9 : i32
    scf.if %13 {
      %c0_10 = arith.constant 0 : index
      %c0_11 = arith.constant 0 : index
      %14 = vector.load %arg7[%c0_10, %c0_11] : memref<16x96xf32, #tpu.memory_space<vmem>>, vector<16x96xf32>
      %c0_12 = arith.constant 0 : index
      %c0_13 = arith.constant 0 : index
      %15 = vector.load %arg5[%c0_12, %c0_13] : memref<1x96xf32, #tpu.memory_space<vmem>>, vector<1x96xf32>
      %16 = vector.broadcast %15 : vector<1x96xf32> to vector<16x96xf32>
      %17 = arith.addf %14, %16 : vector<16x96xf32>
      %c0_14 = arith.constant 0 : index
      %c0_15 = arith.constant 0 : index
      %18 = vector.load %arg6[%c0_14, %c0_15] : memref<16x96xf32, #tpu.memory_space<vmem>>, vector<16x96xf32>
      tpu.vector_store %arg6[%c0_14, %c0_15], %17 {strides = array<i32>} : memref<16x96xf32, #tpu.memory_space<vmem>>, vector<16x96xf32>,
    } else {
    }
    return
  }
  func.func @transform_0(%arg0: i32, %arg1: i32, %arg2: i32) -> (i32, i32) {
    %c0_i32 = arith.constant 0 : i32
    return %arg0, %arg2 : i32, i32
  }
  func.func @transform_1(%arg0: i32, %arg1: i32, %arg2: i32) -> (i32, i32) {
    %c0_i32 = arith.constant 0 : i32
    return %arg2, %arg1 : i32, i32
  }
  func.func @transform_2(%arg0: i32, %arg1: i32, %arg2: i32) -> (i32, i32) {
    %c0_i32 = arith.constant 0 : i32
    %c0_i32_0 = arith.constant 0 : i32
    return %c0_i32, %arg1 : i32, i32
  }
  func.func @transform_3(%arg0: i32, %arg1: i32, %arg2: i32) -> (i32, i32) {
    %c0_i32 = arith.constant 0 : i32
    return %arg0, %arg1 : i32, i32
  }
}

module attributes {stable_mosaic.version = 11 : i64} {
  func.func @_matmul_kernel(%arg0: i32, %arg1: i32, %arg2: i32, %arg3: memref<16x32xf32, #tpu.memory_space<vmem>>, %arg4: memref<32x32xf32, #tpu.memory_space<vmem>>, %arg5: memref<1x32xf32, #tpu.memory_space<vmem>>, %arg6: memref<16x32xf32, #tpu.memory_space<vmem>>, %arg7: memref<16x32xf32, #tpu.memory_space<vmem>>) attributes {dimension_semantics = [#tpu.dimension_semantics<parallel>, #tpu.dimension_semantics<parallel>, #tpu.dimension_semantics<arbitrary>], iteration_bounds = array<i64: 1, 1, 1>, scalar_prefetch = 0 : i64, scratch_operands = 1 : i64, tpu.core_type = #tpu.core_type<tc>, window_params = [{transform_indices = @transform_0, window_bounds = array<i64: 16, 32>}, {transform_indices = @transform_1, window_bounds = array<i64: 32, 32>}, {transform_indices = @transform_2, window_bounds = array<i64: 1, 32>}, {transform_indices = @transform_3, window_bounds = array<i64: 16, 32>}]} {
    %c0_i32 = arith.constant 0 : i32
    %0 = arith.cmpi eq, %arg2, %c0_i32 : i32
    %1 = arith.extui %0 : i1 to i32
    %c0_i32_0 = arith.constant 0 : i32
    %2 = arith.cmpi ne, %1, %c0_i32_0 : i32
    scf.if %2 {
      %cst_10 = arith.constant 0.000000e+00 : f32
      %14 = vector.broadcast %cst_10 : f32 to vector<16x32xf32>
      %c0_11 = arith.constant 0 : index
      %c0_12 = arith.constant 0 : index
      %15 = vector.load %arg7[%c0_11, %c0_12] : memref<16x32xf32, #tpu.memory_space<vmem>>, vector<16x32xf32>
      tpu.vector_store %arg7[%c0_11, %c0_12], %14 {strides = array<i32>} : memref<16x32xf32, #tpu.memory_space<vmem>>, vector<16x32xf32>,
    } else {
    }
    %c0 = arith.constant 0 : index
    %c0_1 = arith.constant 0 : index
    %3 = vector.load %arg7[%c0, %c0_1] : memref<16x32xf32, #tpu.memory_space<vmem>>, vector<16x32xf32>
    %c0_2 = arith.constant 0 : index
    %c0_3 = arith.constant 0 : index
    %4 = vector.load %arg3[%c0_2, %c0_3] : memref<16x32xf32, #tpu.memory_space<vmem>>, vector<16x32xf32>
    %5 = arith.truncf %4 : vector<16x32xf32> to vector<16x32xbf16>
    %c0_4 = arith.constant 0 : index
    %c0_5 = arith.constant 0 : index
    %6 = vector.load %arg4[%c0_4, %c0_5] : memref<32x32xf32, #tpu.memory_space<vmem>>, vector<32x32xf32>
    %7 = arith.truncf %6 : vector<32x32xf32> to vector<32x32xbf16>
    %cst = arith.constant dense<0.000000e+00> : vector<16x32xf32>
    %8 = tpu.matmul %5, %7, %cst {dimension_numbers = #tpu.dot_dimension_numbers<[1], [0], [0], [1], [0, 0, 1, 1], [], []>} : vector<16x32xbf16>, vector<32x32xbf16>, vector<16x32xf32> -> vector<16x32xf32>
    %9 = arith.addf %3, %8 : vector<16x32xf32>
    %c0_6 = arith.constant 0 : index
    %c0_7 = arith.constant 0 : index
    %10 = vector.load %arg7[%c0_6, %c0_7] : memref<16x32xf32, #tpu.memory_space<vmem>>, vector<16x32xf32>
    tpu.vector_store %arg7[%c0_6, %c0_7], %9 {strides = array<i32>} : memref<16x32xf32, #tpu.memory_space<vmem>>, vector<16x32xf32>,
    %c0_i32_8 = arith.constant 0 : i32
    %11 = arith.cmpi eq, %arg2, %c0_i32_8 : i32
    %12 = arith.extui %11 : i1 to i32
    %c0_i32_9 = arith.constant 0 : i32
    %13 = arith.cmpi ne, %12, %c0_i32_9 : i32
    scf.if %13 {
      %c0_10 = arith.constant 0 : index
      %c0_11 = arith.constant 0 : index
      %14 = vector.load %arg7[%c0_10, %c0_11] : memref<16x32xf32, #tpu.memory_space<vmem>>, vector<16x32xf32>
      %c0_12 = arith.constant 0 : index
      %c0_13 = arith.constant 0 : index
      %15 = vector.load %arg5[%c0_12, %c0_13] : memref<1x32xf32, #tpu.memory_space<vmem>>, vector<1x32xf32>
      %16 = vector.broadcast %15 : vector<1x32xf32> to vector<16x32xf32>
      %17 = arith.addf %14, %16 : vector<16x32xf32>
      %c0_14 = arith.constant 0 : index
      %c0_15 = arith.constant 0 : index
      %18 = vector.load %arg6[%c0_14, %c0_15] : memref<16x32xf32, #tpu.memory_space<vmem>>, vector<16x32xf32>
      tpu.vector_store %arg6[%c0_14, %c0_15], %17 {strides = array<i32>} : memref<16x32xf32, #tpu.memory_space<vmem>>, vector<16x32xf32>,
    } else {
    }
    return
  }
  func.func @transform_0(%arg0: i32, %arg1: i32, %arg2: i32) -> (i32, i32) {
    %c0_i32 = arith.constant 0 : i32
    return %arg0, %arg2 : i32, i32
  }
  func.func @transform_1(%arg0: i32, %arg1: i32, %arg2: i32) -> (i32, i32) {
    %c0_i32 = arith.constant 0 : i32
    return %arg2, %arg1 : i32, i32
  }
  func.func @transform_2(%arg0: i32, %arg1: i32, %arg2: i32) -> (i32, i32) {
    %c0_i32 = arith.constant 0 : i32
    %c0_i32_0 = arith.constant 0 : i32
    return %c0_i32, %arg1 : i32, i32
  }
  func.func @transform_3(%arg0: i32, %arg1: i32, %arg2: i32) -> (i32, i32) {
    %c0_i32 = arith.constant 0 : i32
    return %arg0, %arg1 : i32, i32
  }
}

module attributes {stable_mosaic.version = 11 : i64} {
  func.func @_proj_add_ln_kernel(%arg0: i32, %arg1: memref<16x32xf32, #tpu.memory_space<vmem>>, %arg2: memref<32x32xf32, #tpu.memory_space<vmem>>, %arg3: memref<1x32xf32, #tpu.memory_space<vmem>>, %arg4: memref<16x32xf32, #tpu.memory_space<vmem>>, %arg5: memref<1x32xf32, #tpu.memory_space<vmem>>, %arg6: memref<1x32xf32, #tpu.memory_space<vmem>>, %arg7: memref<16x32xf32, #tpu.memory_space<vmem>>) attributes {dimension_semantics = [#tpu.dimension_semantics<parallel>], iteration_bounds = array<i64: 1>, scalar_prefetch = 0 : i64, scratch_operands = 0 : i64, tpu.core_type = #tpu.core_type<tc>, window_params = [{transform_indices = @transform_0, window_bounds = array<i64: 16, 32>}, {pipeline_mode = #tpu.pipeline_mode<synchronous>, transform_indices = @transform_1, window_bounds = array<i64: 32, 32>}, {pipeline_mode = #tpu.pipeline_mode<synchronous>, transform_indices = @transform_2, window_bounds = array<i64: 1, 32>}, {transform_indices = @transform_3, window_bounds = array<i64: 16, 32>}, {pipeline_mode = #tpu.pipeline_mode<synchronous>, transform_indices = @transform_4, window_bounds = array<i64: 1, 32>}, {pipeline_mode = #tpu.pipeline_mode<synchronous>, transform_indices = @transform_5, window_bounds = array<i64: 1, 32>}, {transform_indices = @transform_6, window_bounds = array<i64: 16, 32>}]} {
    %c0 = arith.constant 0 : index
    %c0_0 = arith.constant 0 : index
    %0 = vector.load %arg1[%c0, %c0_0] : memref<16x32xf32, #tpu.memory_space<vmem>>, vector<16x32xf32>
    %1 = arith.truncf %0 : vector<16x32xf32> to vector<16x32xbf16>
    %c0_1 = arith.constant 0 : index
    %c0_2 = arith.constant 0 : index
    %2 = vector.load %arg2[%c0_1, %c0_2] : memref<32x32xf32, #tpu.memory_space<vmem>>, vector<32x32xf32>
    %3 = arith.truncf %2 : vector<32x32xf32> to vector<32x32xbf16>
    %cst = arith.constant dense<0.000000e+00> : vector<16x32xf32>
    %4 = tpu.matmul %1, %3, %cst {dimension_numbers = #tpu.dot_dimension_numbers<[1], [0], [0], [1], [0, 0, 1, 1], [], []>} : vector<16x32xbf16>, vector<32x32xbf16>, vector<16x32xf32> -> vector<16x32xf32>
    %c0_3 = arith.constant 0 : index
    %c0_4 = arith.constant 0 : index
    %5 = vector.load %arg3[%c0_3, %c0_4] : memref<1x32xf32, #tpu.memory_space<vmem>>, vector<1x32xf32>
    %6 = vector.broadcast %5 : vector<1x32xf32> to vector<16x32xf32>
    %7 = arith.addf %4, %6 : vector<16x32xf32>
    %c0_5 = arith.constant 0 : index
    %c0_6 = arith.constant 0 : index
    %8 = vector.load %arg4[%c0_5, %c0_6] : memref<16x32xf32, #tpu.memory_space<vmem>>, vector<16x32xf32>
    %9 = arith.addf %8, %7 : vector<16x32xf32>
    %cst_7 = arith.constant dense<0.000000e+00> : vector<16xf32>
    %10 = vector.multi_reduction <add>, %9, %cst_7 [1] : vector<16x32xf32> to vector<16xf32>
    %11 = vector.shape_cast %10 : vector<16xf32> to vector<16x1xf32>
    %cst_8 = arith.constant 3.200000e+01 : f32
    %12 = vector.broadcast %cst_8 : f32 to vector<16x1xf32>
    %13 = arith.divf %11, %12 : vector<16x1xf32>
    %14 = vector.broadcast %13 : vector<16x1xf32> to vector<16x32xf32>
    %15 = arith.subf %9, %14 : vector<16x32xf32>
    %16 = arith.mulf %15, %15 : vector<16x32xf32>
    %cst_9 = arith.constant dense<0.000000e+00> : vector<16xf32>
    %17 = vector.multi_reduction <add>, %16, %cst_9 [1] : vector<16x32xf32> to vector<16xf32>
    %18 = vector.shape_cast %17 : vector<16xf32> to vector<16x1xf32>
    %cst_10 = arith.constant 3.200000e+01 : f32
    %19 = vector.broadcast %cst_10 : f32 to vector<16x1xf32>
    %20 = arith.divf %18, %19 : vector<16x1xf32>
    %21 = vector.broadcast %13 : vector<16x1xf32> to vector<16x32xf32>
    %22 = arith.subf %9, %21 : vector<16x32xf32>
    %cst_11 = arith.constant 9.99999974E-6 : f32
    %23 = vector.broadcast %cst_11 : f32 to vector<16x1xf32>
    %24 = arith.addf %20, %23 : vector<16x1xf32>
    %25 = math.rsqrt %24 : vector<16x1xf32>
    %26 = vector.broadcast %25 : vector<16x1xf32> to vector<16x32xf32>
    %27 = arith.mulf %22, %26 : vector<16x32xf32>
    %c0_12 = arith.constant 0 : index
    %c0_13 = arith.constant 0 : index
    %28 = vector.load %arg5[%c0_12, %c0_13] : memref<1x32xf32, #tpu.memory_space<vmem>>, vector<1x32xf32>
    %29 = vector.broadcast %28 : vector<1x32xf32> to vector<16x32xf32>
    %30 = arith.mulf %27, %29 : vector<16x32xf32>
    %c0_14 = arith.constant 0 : index
    %c0_15 = arith.constant 0 : index
    %31 = vector.load %arg6[%c0_14, %c0_15] : memref<1x32xf32, #tpu.memory_space<vmem>>, vector<1x32xf32>
    %32 = vector.broadcast %31 : vector<1x32xf32> to vector<16x32xf32>
    %33 = arith.addf %30, %32 : vector<16x32xf32>
    %c0_16 = arith.constant 0 : index
    %c0_17 = arith.constant 0 : index
    %34 = vector.load %arg7[%c0_16, %c0_17] : memref<16x32xf32, #tpu.memory_space<vmem>>, vector<16x32xf32>
    tpu.vector_store %arg7[%c0_16, %c0_17], %33 {strides = array<i32>} : memref<16x32xf32, #tpu.memory_space<vmem>>, vector<16x32xf32>,
    return
  }
  func.func @transform_0(%arg0: i32) -> (i32, i32) {
    %c0_i32 = arith.constant 0 : i32
    %c0_i32_0 = arith.constant 0 : i32
    return %arg0, %c0_i32 : i32, i32
  }
  func.func @transform_1(%arg0: i32) -> (i32, i32) {
    %c0_i32 = arith.constant 0 : i32
    %c0_i32_0 = arith.constant 0 : i32
    %c0_i32_1 = arith.constant 0 : i32
    return %c0_i32, %c0_i32_0 : i32, i32
  }
  func.func @transform_2(%arg0: i32) -> (i32, i32) {
    %c0_i32 = arith.constant 0 : i32
    %c0_i32_0 = arith.constant 0 : i32
    %c0_i32_1 = arith.constant 0 : i32
    return %c0_i32, %c0_i32_0 : i32, i32
  }
  func.func @transform_3(%arg0: i32) -> (i32, i32) {
    %c0_i32 = arith.constant 0 : i32
    %c0_i32_0 = arith.constant 0 : i32
    return %arg0, %c0_i32 : i32, i32
  }
  func.func @transform_4(%arg0: i32) -> (i32, i32) {
    %c0_i32 = arith.constant 0 : i32
    %c0_i32_0 = arith.constant 0 : i32
    %c0_i32_1 = arith.constant 0 : i32
    return %c0_i32, %c0_i32_0 : i32, i32
  }
  func.func @transform_5(%arg0: i32) -> (i32, i32) {
    %c0_i32 = arith.constant 0 : i32
    %c0_i32_0 = arith.constant 0 : i32
    %c0_i32_1 = arith.constant 0 : i32
    return %c0_i32, %c0_i32_0 : i32, i32
  }
  func.func @transform_6(%arg0: i32) -> (i32, i32) {
    %c0_i32 = arith.constant 0 : i32
    %c0_i32_0 = arith.constant 0 : i32
    return %arg0, %c0_i32 : i32, i32
  }
}

module attributes {stable_mosaic.version = 11 : i64} {
  func.func @_mha_kernel(%arg0: i32, %arg1: i32, %arg2: memref<1x8x32xf32, #tpu.memory_space<vmem>>, %arg3: memref<1x8x32xf32, #tpu.memory_space<vmem>>, %arg4: memref<1x8x32xf32, #tpu.memory_space<vmem>>, %arg5: memref<1x8x32xf32, #tpu.memory_space<vmem>>, %arg6: memref<4x8x1xf32, #tpu.memory_space<vmem>>, %arg7: memref<4x8x1xf32, #tpu.memory_space<vmem>>, %arg8: memref<4x8x8xf32, #tpu.memory_space<vmem>>) attributes {dimension_semantics = [#tpu.dimension_semantics<parallel>, #tpu.dimension_semantics<arbitrary>], iteration_bounds = array<i64: 2, 1>, scalar_prefetch = 0 : i64, scratch_operands = 3 : i64, tpu.core_type = #tpu.core_type<tc>, window_params = [{transform_indices = @transform_0, window_bounds = array<i64: 1, 8, 32>}, {transform_indices = @transform_1, window_bounds = array<i64: 1, 8, 32>}, {transform_indices = @transform_2, window_bounds = array<i64: 1, 8, 32>}, {transform_indices = @transform_3, window_bounds = array<i64: 1, 8, 32>}]} {
    %c0_i32 = arith.constant 0 : i32
    %0 = arith.cmpi eq, %arg1, %c0_i32 : i32
    %1 = arith.extui %0 : i1 to i32
    %c0_i32_0 = arith.constant 0 : i32
    %2 = arith.cmpi ne, %1, %c0_i32_0 : i32
    scf.if %2 {
      %cst_34 = arith.constant 0xFF800000 : f32
      %79 = vector.broadcast %cst_34 : f32 to vector<4x8x1xf32>
      %c0_35 = arith.constant 0 : index
      %c0_36 = arith.constant 0 : index
      %c0_37 = arith.constant 0 : index
      %80 = vector.load %arg6[%c0_35, %c0_36, %c0_37] : memref<4x8x1xf32, #tpu.memory_space<vmem>>, vector<4x8x1xf32>
      tpu.vector_store %arg6[%c0_35, %c0_36, %c0_37], %79 {strides = array<i32>} : memref<4x8x1xf32, #tpu.memory_space<vmem>>, vector<4x8x1xf32>,
      %cst_38 = arith.constant 0.000000e+00 : f32
      %81 = vector.broadcast %cst_38 : f32 to vector<4x8x1xf32>
      %c0_39 = arith.constant 0 : index
      %c0_40 = arith.constant 0 : index
      %c0_41 = arith.constant 0 : index
      %82 = vector.load %arg7[%c0_39, %c0_40, %c0_41] : memref<4x8x1xf32, #tpu.memory_space<vmem>>, vector<4x8x1xf32>
      tpu.vector_store %arg7[%c0_39, %c0_40, %c0_41], %81 {strides = array<i32>} : memref<4x8x1xf32, #tpu.memory_space<vmem>>, vector<4x8x1xf32>,
      %cst_42 = arith.constant 0.000000e+00 : f32
      %83 = vector.broadcast %cst_42 : f32 to vector<4x8x8xf32>
      %c0_43 = arith.constant 0 : index
      %c0_44 = arith.constant 0 : index
      %c0_45 = arith.constant 0 : index
      %84 = vector.load %arg8[%c0_43, %c0_44, %c0_45] : memref<4x8x8xf32, #tpu.memory_space<vmem>>, vector<4x8x8xf32>
      tpu.vector_store %arg8[%c0_43, %c0_44, %c0_45], %83 {strides = array<i32>} : memref<4x8x8xf32, #tpu.memory_space<vmem>>, vector<4x8x8xf32>,
    } else {
    }
    %c0 = arith.constant 0 : index
    %c0_1 = arith.constant 0 : index
    %c0_2 = arith.constant 0 : index
    %3 = vector.load %arg2[%c0, %c0_1, %c0_2] : memref<1x8x32xf32, #tpu.memory_space<vmem>>, vector<1x8x32xf32>
    %4 = vector.shape_cast %3 : vector<1x8x32xf32> to vector<8x32xf32>
    %cst = arith.constant 0.353553385 : f32
    %5 = vector.broadcast %cst : f32 to vector<8x32xf32>
    %6 = arith.mulf %4, %5 : vector<8x32xf32>
    %c0_3 = arith.constant 0 : index
    %c0_4 = arith.constant 0 : index
    %c0_5 = arith.constant 0 : index
    %7 = vector.load %arg3[%c0_3, %c0_4, %c0_5] : memref<1x8x32xf32, #tpu.memory_space<vmem>>, vector<1x8x32xf32>
    %8 = vector.shape_cast %7 : vector<1x8x32xf32> to vector<8x32xf32>
    %c0_6 = arith.constant 0 : index
    %c0_7 = arith.constant 0 : index
    %c0_8 = arith.constant 0 : index
    %9 = vector.load %arg4[%c0_6, %c0_7, %c0_8] : memref<1x8x32xf32, #tpu.memory_space<vmem>>, vector<1x8x32xf32>
    %10 = vector.shape_cast %9 : vector<1x8x32xf32> to vector<8x32xf32>
    %11 = vector.extract_strided_slice %6 {offsets = [0, 0], sizes = [8, 8], strides = [1, 1]} : vector<8x32xf32> to vector<8x8xf32>
    %12 = vector.extract_strided_slice %6 {offsets = [0, 8], sizes = [8, 8], strides = [1, 1]} : vector<8x32xf32> to vector<8x8xf32>
    %13 = vector.extract_strided_slice %6 {offsets = [0, 16], sizes = [8, 8], strides = [1, 1]} : vector<8x32xf32> to vector<8x8xf32>
    %14 = vector.extract_strided_slice %6 {offsets = [0, 24], sizes = [8, 8], strides = [1, 1]} : vector<8x32xf32> to vector<8x8xf32>
    %15 = vector.shape_cast %11 : vector<8x8xf32> to vector<1x8x8xf32>
    %16 = vector.shape_cast %12 : vector<8x8xf32> to vector<1x8x8xf32>
    %17 = vector.shape_cast %13 : vector<8x8xf32> to vector<1x8x8xf32>
    %18 = vector.shape_cast %14 : vector<8x8xf32> to vector<1x8x8xf32>
    %19 = tpu.concatenate %15, %16, %17, %18 in 0 : vector<1x8x8xf32>, vector<1x8x8xf32>, vector<1x8x8xf32>, vector<1x8x8xf32> -> vector<4x8x8xf32>
    %20 = vector.extract_strided_slice %8 {offsets = [0, 0], sizes = [8, 8], strides = [1, 1]} : vector<8x32xf32> to vector<8x8xf32>
    %21 = vector.extract_strided_slice %8 {offsets = [0, 8], sizes = [8, 8], strides = [1, 1]} : vector<8x32xf32> to vector<8x8xf32>
    %22 = vector.extract_strided_slice %8 {offsets = [0, 16], sizes = [8, 8], strides = [1, 1]} : vector<8x32xf32> to vector<8x8xf32>
    %23 = vector.extract_strided_slice %8 {offsets = [0, 24], sizes = [8, 8], strides = [1, 1]} : vector<8x32xf32> to vector<8x8xf32>
    %24 = vector.shape_cast %20 : vector<8x8xf32> to vector<1x8x8xf32>
    %25 = vector.shape_cast %21 : vector<8x8xf32> to vector<1x8x8xf32>
    %26 = vector.shape_cast %22 : vector<8x8xf32> to vector<1x8x8xf32>
    %27 = vector.shape_cast %23 : vector<8x8xf32> to vector<1x8x8xf32>
    %28 = tpu.concatenate %24, %25, %26, %27 in 0 : vector<1x8x8xf32>, vector<1x8x8xf32>, vector<1x8x8xf32>, vector<1x8x8xf32> -> vector<4x8x8xf32>
    %29 = vector.extract_strided_slice %10 {offsets = [0, 0], sizes = [8, 8], strides = [1, 1]} : vector<8x32xf32> to vector<8x8xf32>
    %30 = vector.extract_strided_slice %10 {offsets = [0, 8], sizes = [8, 8], strides = [1, 1]} : vector<8x32xf32> to vector<8x8xf32>
    %31 = vector.extract_strided_slice %10 {offsets = [0, 16], sizes = [8, 8], strides = [1, 1]} : vector<8x32xf32> to vector<8x8xf32>
    %32 = vector.extract_strided_slice %10 {offsets = [0, 24], sizes = [8, 8], strides = [1, 1]} : vector<8x32xf32> to vector<8x8xf32>
    %33 = vector.shape_cast %29 : vector<8x8xf32> to vector<1x8x8xf32>
    %34 = vector.shape_cast %30 : vector<8x8xf32> to vector<1x8x8xf32>
    %35 = vector.shape_cast %31 : vector<8x8xf32> to vector<1x8x8xf32>
    %36 = vector.shape_cast %32 : vector<8x8xf32> to vector<1x8x8xf32>
    %37 = tpu.concatenate %33, %34, %35, %36 in 0 : vector<1x8x8xf32>, vector<1x8x8xf32>, vector<1x8x8xf32>, vector<1x8x8xf32> -> vector<4x8x8xf32>
    %38 = arith.truncf %19 : vector<4x8x8xf32> to vector<4x8x8xbf16>
    %39 = arith.truncf %28 : vector<4x8x8xf32> to vector<4x8x8xbf16>
    "tpu.trace_start"() <{level = 10 : i32, message = "hqd,hkd->hqk"}> : () -> ()
    %cst_9 = arith.constant dense<0.000000e+00> : vector<4x8x8xf32>
    %40 = tpu.matmul %38, %39, %cst_9 {dimension_numbers = #tpu.dot_dimension_numbers<[2], [2], [1], [1], [0, 0, 0, 1, 1, 1], [0], [0]>} : vector<4x8x8xbf16>, vector<4x8x8xbf16>, vector<4x8x8xf32> -> vector<4x8x8xf32>
    "tpu.trace_stop"() : () -> ()
    %41 = tpu.iota {dimensions = array<i32: 0>} : vector<8x8xi32>
    %42 = tpu.iota {dimensions = array<i32: 1>} : vector<8x8xi32>
    %c8_i32 = arith.constant 8 : i32
    %43 = arith.muli %arg1, %c8_i32 : i32
    %44 = vector.broadcast %43 : i32 to vector<8x8xi32>
    %45 = arith.addi %42, %44 : vector<8x8xi32>
    %46 = arith.cmpi sge, %41, %45 : vector<8x8xi32>
    %47 = vector.shape_cast %46 : vector<8x8xi1> to vector<1x8x8xi1>
    %cst_10 = arith.constant -1.000000e+09 : f32
    %48 = vector.shape_cast %47 : vector<1x8x8xi1> to vector<1x8x8xi1>
    %49 = vector.broadcast %48 : vector<1x8x8xi1> to vector<4x8x8xi1>
    %50 = vector.broadcast %cst_10 : f32 to vector<4x8x8xf32>
    %51 = arith.select %49, %40, %50 : vector<4x8x8xi1>, vector<4x8x8xf32>
    %c0_11 = arith.constant 0 : index
    %c0_12 = arith.constant 0 : index
    %c0_13 = arith.constant 0 : index
    %52 = vector.load %arg6[%c0_11, %c0_12, %c0_13] : memref<4x8x1xf32, #tpu.memory_space<vmem>>, vector<4x8x1xf32>
    %cst_14 = arith.constant dense<0xFF800000> : vector<4x8xf32>
    %53 = vector.multi_reduction <maximumf>, %51, %cst_14 [2] : vector<4x8x8xf32> to vector<4x8xf32>
    %54 = vector.shape_cast %53 : vector<4x8xf32> to vector<4x8x1xf32>
    %55 = arith.maximumf %52, %54 : vector<4x8x1xf32>
    %56 = arith.subf %52, %55 : vector<4x8x1xf32>
    %57 = math.exp %56 : vector<4x8x1xf32>
    %58 = vector.broadcast %55 : vector<4x8x1xf32> to vector<4x8x8xf32>
    %59 = arith.subf %51, %58 : vector<4x8x8xf32>
    %60 = math.exp %59 : vector<4x8x8xf32>
    %c0_15 = arith.constant 0 : index
    %c0_16 = arith.constant 0 : index
    %c0_17 = arith.constant 0 : index
    %61 = vector.load %arg7[%c0_15, %c0_16, %c0_17] : memref<4x8x1xf32, #tpu.memory_space<vmem>>, vector<4x8x1xf32>
    %62 = arith.mulf %57, %61 : vector<4x8x1xf32>
    %cst_18 = arith.constant dense<0.000000e+00> : vector<4x8xf32>
    %63 = vector.multi_reduction <add>, %60, %cst_18 [2] : vector<4x8x8xf32> to vector<4x8xf32>
    %64 = vector.shape_cast %63 : vector<4x8xf32> to vector<4x8x1xf32>
    %65 = arith.addf %62, %64 : vector<4x8x1xf32>
    %c0_19 = arith.constant 0 : index
    %c0_20 = arith.constant 0 : index
    %c0_21 = arith.constant 0 : index
    %66 = vector.load %arg7[%c0_19, %c0_20, %c0_21] : memref<4x8x1xf32, #tpu.memory_space<vmem>>, vector<4x8x1xf32>
    tpu.vector_store %arg7[%c0_19, %c0_20, %c0_21], %65 {strides = array<i32>} : memref<4x8x1xf32, #tpu.memory_space<vmem>>, vector<4x8x1xf32>,
    %c0_22 = arith.constant 0 : index
    %c0_23 = arith.constant 0 : index
    %c0_24 = arith.constant 0 : index
    %67 = vector.load %arg8[%c0_22, %c0_23, %c0_24] : memref<4x8x8xf32, #tpu.memory_space<vmem>>, vector<4x8x8xf32>
    %68 = vector.broadcast %57 : vector<4x8x1xf32> to vector<4x8x8xf32>
    %69 = arith.mulf %68, %67 : vector<4x8x8xf32>
    %70 = arith.truncf %60 : vector<4x8x8xf32> to vector<4x8x8xbf16>
    %71 = arith.truncf %37 : vector<4x8x8xf32> to vector<4x8x8xbf16>
    "tpu.trace_start"() <{level = 10 : i32, message = "hqk,hkd->hqd"}> : () -> ()
    %cst_25 = arith.constant dense<0.000000e+00> : vector<4x8x8xf32>
    %72 = tpu.matmul %70, %71, %cst_25 {dimension_numbers = #tpu.dot_dimension_numbers<[2], [1], [1], [2], [0, 0, 0, 1, 1, 2], [0], [0]>} : vector<4x8x8xbf16>, vector<4x8x8xbf16>, vector<4x8x8xf32> -> vector<4x8x8xf32>
    "tpu.trace_stop"() : () -> ()
    %73 = arith.addf %69, %72 : vector<4x8x8xf32>
    %c0_26 = arith.constant 0 : index
    %c0_27 = arith.constant 0 : index
    %c0_28 = arith.constant 0 : index
    %74 = vector.load %arg8[%c0_26, %c0_27, %c0_28] : memref<4x8x8xf32, #tpu.memory_space<vmem>>, vector<4x8x8xf32>
    tpu.vector_store %arg8[%c0_26, %c0_27, %c0_28], %73 {strides = array<i32>} : memref<4x8x8xf32, #tpu.memory_space<vmem>>, vector<4x8x8xf32>,
    %c0_29 = arith.constant 0 : index
    %c0_30 = arith.constant 0 : index
    %c0_31 = arith.constant 0 : index
    %75 = vector.load %arg6[%c0_29, %c0_30, %c0_31] : memref<4x8x1xf32, #tpu.memory_space<vmem>>, vector<4x8x1xf32>
    tpu.vector_store %arg6[%c0_29, %c0_30, %c0_31], %55 {strides = array<i32>} : memref<4x8x1xf32, #tpu.memory_space<vmem>>, vector<4x8x1xf32>,
    %c0_i32_32 = arith.constant 0 : i32
    %76 = arith.cmpi eq, %arg1, %c0_i32_32 : i32
    %77 = arith.extui %76 : i1 to i32
    %c0_i32_33 = arith.constant 0 : i32
    %78 = arith.cmpi ne, %77, %c0_i32_33 : i32
    scf.if %78 {
      %c0_34 = arith.constant 0 : index
      %c0_35 = arith.constant 0 : index
      %c0_36 = arith.constant 0 : index
      %79 = vector.load %arg8[%c0_34, %c0_35, %c0_36] : memref<4x8x8xf32, #tpu.memory_space<vmem>>, vector<4x8x8xf32>
      %c0_37 = arith.constant 0 : index
      %c0_38 = arith.constant 0 : index
      %c0_39 = arith.constant 0 : index
      %80 = vector.load %arg7[%c0_37, %c0_38, %c0_39] : memref<4x8x1xf32, #tpu.memory_space<vmem>>, vector<4x8x1xf32>
      %81 = tpu.reciprocal %80 {approx = true} : vector<4x8x1xf32> -> vector<4x8x1xf32>
      %82 = vector.broadcast %81 : vector<4x8x1xf32> to vector<4x8x8xf32>
      %83 = arith.mulf %79, %82 : vector<4x8x8xf32>
      %84 = vector.extract_strided_slice %83 {offsets = [0, 0, 0], sizes = [1, 8, 8], strides = [1, 1, 1]} : vector<4x8x8xf32> to vector<1x8x8xf32>
      %85 = vector.shape_cast %84 : vector<1x8x8xf32> to vector<8x8xf32>
      %86 = vector.extract_strided_slice %83 {offsets = [1, 0, 0], sizes = [1, 8, 8], strides = [1, 1, 1]} : vector<4x8x8xf32> to vector<1x8x8xf32>
      %87 = vector.shape_cast %86 : vector<1x8x8xf32> to vector<8x8xf32>
      %88 = vector.extract_strided_slice %83 {offsets = [2, 0, 0], sizes = [1, 8, 8], strides = [1, 1, 1]} : vector<4x8x8xf32> to vector<1x8x8xf32>
      %89 = vector.shape_cast %88 : vector<1x8x8xf32> to vector<8x8xf32>
      %90 = vector.extract_strided_slice %83 {offsets = [3, 0, 0], sizes = [1, 8, 8], strides = [1, 1, 1]} : vector<4x8x8xf32> to vector<1x8x8xf32>
      %91 = vector.shape_cast %90 : vector<1x8x8xf32> to vector<8x8xf32>
      %92 = tpu.concatenate %85, %87, %89, %91 in 1 : vector<8x8xf32>, vector<8x8xf32>, vector<8x8xf32>, vector<8x8xf32> -> vector<8x32xf32>
      %c0_40 = arith.constant 0 : index
      %c0_41 = arith.constant 0 : index
      %c0_42 = arith.constant 0 : index
      %93 = vector.load %arg5[%c0_40, %c0_41, %c0_42] : memref<1x8x32xf32, #tpu.memory_space<vmem>>, vector<1x8x32xf32>
      %94 = vector.shape_cast %93 : vector<1x8x32xf32> to vector<8x32xf32>
      %95 = vector.shape_cast %92 : vector<8x32xf32> to vector<1x8x32xf32>
      tpu.vector_store %arg5[%c0_40, %c0_41, %c0_42], %95 {strides = array<i32>} : memref<1x8x32xf32, #tpu.memory_space<vmem>>, vector<1x8x32xf32>,
    } else {
    }
    return
  }
  func.func @transform_0(%arg0: i32, %arg1: i32) -> (i32, i32, i32) {
    %c0_i32 = arith.constant 0 : i32
    %c0_i32_0 = arith.constant 0 : i32
    %c0_i32_1 = arith.constant 0 : i32
    return %arg0, %c0_i32, %c0_i32_0 : i32, i32, i32
  }
  func.func @transform_1(%arg0: i32, %arg1: i32) -> (i32, i32, i32) {
    %c0_i32 = arith.constant 0 : i32
    %c0_i32_0 = arith.constant 0 : i32
    return %arg0, %arg1, %c0_i32 : i32, i32, i32
  }
  func.func @transform_2(%arg0: i32, %arg1: i32) -> (i32, i32, i32) {
    %c0_i32 = arith.constant 0 : i32
    %c0_i32_0 = arith.constant 0 : i32
    return %arg0, %arg1, %c0_i32 : i32, i32, i32
  }
  func.func @transform_3(%arg0: i32, %arg1: i32) -> (i32, i32, i32) {
    %c0_i32 = arith.constant 0 : i32
    %c0_i32_0 = arith.constant 0 : i32
    %c0_i32_1 = arith.constant 0 : i32
    return %arg0, %c0_i32, %c0_i32_0 : i32, i32, i32
  }
}

module attributes {stable_mosaic.version = 11 : i64} {
  func.func @_encoder_kernel(%arg0: i32, %arg1: memref<1x18x18x1xf32, #tpu.memory_space<vmem>>, %arg2: memref<9x1x16xf32, #tpu.memory_space<vmem>>, %arg3: memref<1x16xf32, #tpu.memory_space<vmem>>, %arg4: memref<9x16x8xf32, #tpu.memory_space<vmem>>, %arg5: memref<1x8xf32, #tpu.memory_space<vmem>>, %arg6: memref<16x32xf32, #tpu.memory_space<vmem>>, %arg7: memref<8x32xf32, #tpu.memory_space<vmem>>, %arg8: memref<1x32xf32, #tpu.memory_space<vmem>>, %arg9: memref<1x16x16x32xf32, #tpu.memory_space<vmem>>, %arg10: memref<18x18x16xf32, #tpu.memory_space<vmem>>) attributes {dimension_semantics = [#tpu.dimension_semantics<parallel>], iteration_bounds = array<i64: 2>, scalar_prefetch = 0 : i64, scratch_operands = 1 : i64, tpu.core_type = #tpu.core_type<tc>, window_params = [{transform_indices = @transform_0, window_bounds = array<i64: 1, 18, 18, 1>}, {pipeline_mode = #tpu.pipeline_mode<synchronous>, transform_indices = @transform_1, window_bounds = array<i64: 9, 1, 16>}, {pipeline_mode = #tpu.pipeline_mode<synchronous>, transform_indices = @transform_2, window_bounds = array<i64: 1, 16>}, {pipeline_mode = #tpu.pipeline_mode<synchronous>, transform_indices = @transform_3, window_bounds = array<i64: 9, 16, 8>}, {pipeline_mode = #tpu.pipeline_mode<synchronous>, transform_indices = @transform_4, window_bounds = array<i64: 1, 8>}, {pipeline_mode = #tpu.pipeline_mode<synchronous>, transform_indices = @transform_5, window_bounds = array<i64: 16, 32>}, {pipeline_mode = #tpu.pipeline_mode<synchronous>, transform_indices = @transform_6, window_bounds = array<i64: 8, 32>}, {pipeline_mode = #tpu.pipeline_mode<synchronous>, transform_indices = @transform_7, window_bounds = array<i64: 1, 32>}, {transform_indices = @transform_8, window_bounds = array<i64: 1, 16, 16, 32>}]} {
    %cst = arith.constant 0.000000e+00 : f32
    %0 = vector.broadcast %cst : f32 to vector<16x16x16xf32>
    %c0 = arith.constant 0 : index
    %c0_0 = arith.constant 0 : index
    %c0_1 = arith.constant 0 : index
    %c0_2 = arith.constant 0 : index
    %1 = vector.load %arg1[%c0, %c0_0, %c0_1, %c0_2] : memref<1x18x18x1xf32, #tpu.memory_space<vmem>>, vector<1x16x16x1xf32>
    %2 = vector.shape_cast %1 : vector<1x16x16x1xf32> to vector<16x16x1xf32>
    %c0_3 = arith.constant 0 : index
    %c0_4 = arith.constant 0 : index
    %c0_5 = arith.constant 0 : index
    %3 = vector.load %arg2[%c0_3, %c0_4, %c0_5] : memref<9x1x16xf32, #tpu.memory_space<vmem>>, vector<1x1x16xf32>
    %4 = vector.shape_cast %3 : vector<1x1x16xf32> to vector<16xf32>
    %5 = vector.shape_cast %4 : vector<16xf32> to vector<1x1x16xf32>
    %6 = vector.broadcast %2 : vector<16x16x1xf32> to vector<16x16x16xf32>
    %7 = vector.broadcast %5 : vector<1x1x16xf32> to vector<16x16x16xf32>
    %8 = arith.mulf %6, %7 : vector<16x16x16xf32>
    %9 = arith.addf %0, %8 : vector<16x16x16xf32>
    %c0_6 = arith.constant 0 : index
    %c0_7 = arith.constant 0 : index
    %c1 = arith.constant 1 : index
    %c0_8 = arith.constant 0 : index
    %10 = vector.load %arg1[%c0_6, %c0_7, %c1, %c0_8] : memref<1x18x18x1xf32, #tpu.memory_space<vmem>>, vector<1x16x16x1xf32>
    %11 = vector.shape_cast %10 : vector<1x16x16x1xf32> to vector<16x16x1xf32>
    %c1_9 = arith.constant 1 : index
    %c0_10 = arith.constant 0 : index
    %c0_11 = arith.constant 0 : index
    %12 = vector.load %arg2[%c1_9, %c0_10, %c0_11] : memref<9x1x16xf32, #tpu.memory_space<vmem>>, vector<1x1x16xf32>
    %13 = vector.shape_cast %12 : vector<1x1x16xf32> to vector<16xf32>
    %14 = vector.shape_cast %13 : vector<16xf32> to vector<1x1x16xf32>
    %15 = vector.broadcast %11 : vector<16x16x1xf32> to vector<16x16x16xf32>
    %16 = vector.broadcast %14 : vector<1x1x16xf32> to vector<16x16x16xf32>
    %17 = arith.mulf %15, %16 : vector<16x16x16xf32>
    %18 = arith.addf %9, %17 : vector<16x16x16xf32>
    %c0_12 = arith.constant 0 : index
    %c0_13 = arith.constant 0 : index
    %c2 = arith.constant 2 : index
    %c0_14 = arith.constant 0 : index
    %19 = vector.load %arg1[%c0_12, %c0_13, %c2, %c0_14] : memref<1x18x18x1xf32, #tpu.memory_space<vmem>>, vector<1x16x16x1xf32>
    %20 = vector.shape_cast %19 : vector<1x16x16x1xf32> to vector<16x16x1xf32>
    %c2_15 = arith.constant 2 : index
    %c0_16 = arith.constant 0 : index
    %c0_17 = arith.constant 0 : index
    %21 = vector.load %arg2[%c2_15, %c0_16, %c0_17] : memref<9x1x16xf32, #tpu.memory_space<vmem>>, vector<1x1x16xf32>
    %22 = vector.shape_cast %21 : vector<1x1x16xf32> to vector<16xf32>
    %23 = vector.shape_cast %22 : vector<16xf32> to vector<1x1x16xf32>
    %24 = vector.broadcast %20 : vector<16x16x1xf32> to vector<16x16x16xf32>
    %25 = vector.broadcast %23 : vector<1x1x16xf32> to vector<16x16x16xf32>
    %26 = arith.mulf %24, %25 : vector<16x16x16xf32>
    %27 = arith.addf %18, %26 : vector<16x16x16xf32>
    %c0_18 = arith.constant 0 : index
    %c1_19 = arith.constant 1 : index
    %c0_20 = arith.constant 0 : index
    %c0_21 = arith.constant 0 : index
    %28 = vector.load %arg1[%c0_18, %c1_19, %c0_20, %c0_21] : memref<1x18x18x1xf32, #tpu.memory_space<vmem>>, vector<1x16x16x1xf32>
    %29 = vector.shape_cast %28 : vector<1x16x16x1xf32> to vector<16x16x1xf32>
    %c3 = arith.constant 3 : index
    %c0_22 = arith.constant 0 : index
    %c0_23 = arith.constant 0 : index
    %30 = vector.load %arg2[%c3, %c0_22, %c0_23] : memref<9x1x16xf32, #tpu.memory_space<vmem>>, vector<1x1x16xf32>
    %31 = vector.shape_cast %30 : vector<1x1x16xf32> to vector<16xf32>
    %32 = vector.shape_cast %31 : vector<16xf32> to vector<1x1x16xf32>
    %33 = vector.broadcast %29 : vector<16x16x1xf32> to vector<16x16x16xf32>
    %34 = vector.broadcast %32 : vector<1x1x16xf32> to vector<16x16x16xf32>
    %35 = arith.mulf %33, %34 : vector<16x16x16xf32>
    %36 = arith.addf %27, %35 : vector<16x16x16xf32>
    %c0_24 = arith.constant 0 : index
    %c1_25 = arith.constant 1 : index
    %c1_26 = arith.constant 1 : index
    %c0_27 = arith.constant 0 : index
    %37 = vector.load %arg1[%c0_24, %c1_25, %c1_26, %c0_27] : memref<1x18x18x1xf32, #tpu.memory_space<vmem>>, vector<1x16x16x1xf32>
    %38 = vector.shape_cast %37 : vector<1x16x16x1xf32> to vector<16x16x1xf32>
    %c4 = arith.constant 4 : index
    %c0_28 = arith.constant 0 : index
    %c0_29 = arith.constant 0 : index
    %39 = vector.load %arg2[%c4, %c0_28, %c0_29] : memref<9x1x16xf32, #tpu.memory_space<vmem>>, vector<1x1x16xf32>
    %40 = vector.shape_cast %39 : vector<1x1x16xf32> to vector<16xf32>
    %41 = vector.shape_cast %40 : vector<16xf32> to vector<1x1x16xf32>
    %42 = vector.broadcast %38 : vector<16x16x1xf32> to vector<16x16x16xf32>
    %43 = vector.broadcast %41 : vector<1x1x16xf32> to vector<16x16x16xf32>
    %44 = arith.mulf %42, %43 : vector<16x16x16xf32>
    %45 = arith.addf %36, %44 : vector<16x16x16xf32>
    %c0_30 = arith.constant 0 : index
    %c1_31 = arith.constant 1 : index
    %c2_32 = arith.constant 2 : index
    %c0_33 = arith.constant 0 : index
    %46 = vector.load %arg1[%c0_30, %c1_31, %c2_32, %c0_33] : memref<1x18x18x1xf32, #tpu.memory_space<vmem>>, vector<1x16x16x1xf32>
    %47 = vector.shape_cast %46 : vector<1x16x16x1xf32> to vector<16x16x1xf32>
    %c5 = arith.constant 5 : index
    %c0_34 = arith.constant 0 : index
    %c0_35 = arith.constant 0 : index
    %48 = vector.load %arg2[%c5, %c0_34, %c0_35] : memref<9x1x16xf32, #tpu.memory_space<vmem>>, vector<1x1x16xf32>
    %49 = vector.shape_cast %48 : vector<1x1x16xf32> to vector<16xf32>
    %50 = vector.shape_cast %49 : vector<16xf32> to vector<1x1x16xf32>
    %51 = vector.broadcast %47 : vector<16x16x1xf32> to vector<16x16x16xf32>
    %52 = vector.broadcast %50 : vector<1x1x16xf32> to vector<16x16x16xf32>
    %53 = arith.mulf %51, %52 : vector<16x16x16xf32>
    %54 = arith.addf %45, %53 : vector<16x16x16xf32>
    %c0_36 = arith.constant 0 : index
    %c2_37 = arith.constant 2 : index
    %c0_38 = arith.constant 0 : index
    %c0_39 = arith.constant 0 : index
    %55 = vector.load %arg1[%c0_36, %c2_37, %c0_38, %c0_39] : memref<1x18x18x1xf32, #tpu.memory_space<vmem>>, vector<1x16x16x1xf32>
    %56 = vector.shape_cast %55 : vector<1x16x16x1xf32> to vector<16x16x1xf32>
    %c6 = arith.constant 6 : index
    %c0_40 = arith.constant 0 : index
    %c0_41 = arith.constant 0 : index
    %57 = vector.load %arg2[%c6, %c0_40, %c0_41] : memref<9x1x16xf32, #tpu.memory_space<vmem>>, vector<1x1x16xf32>
    %58 = vector.shape_cast %57 : vector<1x1x16xf32> to vector<16xf32>
    %59 = vector.shape_cast %58 : vector<16xf32> to vector<1x1x16xf32>
    %60 = vector.broadcast %56 : vector<16x16x1xf32> to vector<16x16x16xf32>
    %61 = vector.broadcast %59 : vector<1x1x16xf32> to vector<16x16x16xf32>
    %62 = arith.mulf %60, %61 : vector<16x16x16xf32>
    %63 = arith.addf %54, %62 : vector<16x16x16xf32>
    %c0_42 = arith.constant 0 : index
    %c2_43 = arith.constant 2 : index
    %c1_44 = arith.constant 1 : index
    %c0_45 = arith.constant 0 : index
    %64 = vector.load %arg1[%c0_42, %c2_43, %c1_44, %c0_45] : memref<1x18x18x1xf32, #tpu.memory_space<vmem>>, vector<1x16x16x1xf32>
    %65 = vector.shape_cast %64 : vector<1x16x16x1xf32> to vector<16x16x1xf32>
    %c7 = arith.constant 7 : index
    %c0_46 = arith.constant 0 : index
    %c0_47 = arith.constant 0 : index
    %66 = vector.load %arg2[%c7, %c0_46, %c0_47] : memref<9x1x16xf32, #tpu.memory_space<vmem>>, vector<1x1x16xf32>
    %67 = vector.shape_cast %66 : vector<1x1x16xf32> to vector<16xf32>
    %68 = vector.shape_cast %67 : vector<16xf32> to vector<1x1x16xf32>
    %69 = vector.broadcast %65 : vector<16x16x1xf32> to vector<16x16x16xf32>
    %70 = vector.broadcast %68 : vector<1x1x16xf32> to vector<16x16x16xf32>
    %71 = arith.mulf %69, %70 : vector<16x16x16xf32>
    %72 = arith.addf %63, %71 : vector<16x16x16xf32>
    %c0_48 = arith.constant 0 : index
    %c2_49 = arith.constant 2 : index
    %c2_50 = arith.constant 2 : index
    %c0_51 = arith.constant 0 : index
    %73 = vector.load %arg1[%c0_48, %c2_49, %c2_50, %c0_51] : memref<1x18x18x1xf32, #tpu.memory_space<vmem>>, vector<1x16x16x1xf32>
    %74 = vector.shape_cast %73 : vector<1x16x16x1xf32> to vector<16x16x1xf32>
    %c8 = arith.constant 8 : index
    %c0_52 = arith.constant 0 : index
    %c0_53 = arith.constant 0 : index
    %75 = vector.load %arg2[%c8, %c0_52, %c0_53] : memref<9x1x16xf32, #tpu.memory_space<vmem>>, vector<1x1x16xf32>
    %76 = vector.shape_cast %75 : vector<1x1x16xf32> to vector<16xf32>
    %77 = vector.shape_cast %76 : vector<16xf32> to vector<1x1x16xf32>
    %78 = vector.broadcast %74 : vector<16x16x1xf32> to vector<16x16x16xf32>
    %79 = vector.broadcast %77 : vector<1x1x16xf32> to vector<16x16x16xf32>
    %80 = arith.mulf %78, %79 : vector<16x16x16xf32>
    %81 = arith.addf %72, %80 : vector<16x16x16xf32>
    %c0_54 = arith.constant 0 : index
    %c0_55 = arith.constant 0 : index
    %82 = vector.load %arg3[%c0_54, %c0_55] : memref<1x16xf32, #tpu.memory_space<vmem>>, vector<1x16xf32>
    %83 = vector.shape_cast %82 : vector<1x16xf32> to vector<16xf32>
    %84 = vector.shape_cast %83 : vector<16xf32> to vector<1x1x16xf32>
    %85 = vector.broadcast %84 : vector<1x1x16xf32> to vector<16x16x16xf32>
    %86 = arith.addf %81, %85 : vector<16x16x16xf32>
    %cst_56 = arith.constant 0.000000e+00 : f32
    %87 = vector.broadcast %cst_56 : f32 to vector<16x16x16xf32>
    %88 = arith.maximumf %86, %87 : vector<16x16x16xf32>
    %cst_57 = arith.constant 0.000000e+00 : f32
    %89 = vector.broadcast %cst_57 : f32 to vector<18x18x16xf32>
    %c0_58 = arith.constant 0 : index
    %c0_59 = arith.constant 0 : index
    %c0_60 = arith.constant 0 : index
    %90 = vector.load %arg10[%c0_58, %c0_59, %c0_60] : memref<18x18x16xf32, #tpu.memory_space<vmem>>, vector<18x18x16xf32>
    tpu.vector_store %arg10[%c0_58, %c0_59, %c0_60], %89 {strides = array<i32>} : memref<18x18x16xf32, #tpu.memory_space<vmem>>, vector<18x18x16xf32>,
    %c1_61 = arith.constant 1 : index
    %c1_62 = arith.constant 1 : index
    %c0_63 = arith.constant 0 : index
    %91 = vector.load %arg10[%c1_61, %c1_62, %c0_63] : memref<18x18x16xf32, #tpu.memory_space<vmem>>, vector<16x16x16xf32>
    tpu.vector_store %arg10[%c1_61, %c1_62, %c0_63], %88 {strides = array<i32>} : memref<18x18x16xf32, #tpu.memory_space<vmem>>, vector<16x16x16xf32>,
    %cst_64 = arith.constant 0.000000e+00 : f32
    %92 = vector.broadcast %cst_64 : f32 to vector<16x16x8xf32>
    %c0_65 = arith.constant 0 : index
    %c0_66 = arith.constant 0 : index
    %c0_67 = arith.constant 0 : index
    %93 = vector.load %arg10[%c0_65, %c0_66, %c0_67] : memref<18x18x16xf32, #tpu.memory_space<vmem>>, vector<16x16x16xf32>
    %94 = arith.truncf %93 : vector<16x16x16xf32> to vector<16x16x16xbf16>
    %c0_68 = arith.constant 0 : index
    %c0_69 = arith.constant 0 : index
    %c0_70 = arith.constant 0 : index
    %95 = vector.load %arg4[%c0_68, %c0_69, %c0_70] : memref<9x16x8xf32, #tpu.memory_space<vmem>>, vector<1x16x8xf32>
    %96 = vector.shape_cast %95 : vector<1x16x8xf32> to vector<16x8xf32>
    %97 = arith.truncf %96 : vector<16x8xf32> to vector<16x8xbf16>
    %cst_71 = arith.constant dense<0.000000e+00> : vector<16x16x8xf32>
    %98 = tpu.matmul %94, %97, %cst_71 {dimension_numbers = #tpu.dot_dimension_numbers<[2], [0], [0, 1], [1], [0, 0, 0, 1, 1, 1], [], []>} : vector<16x16x16xbf16>, vector<16x8xbf16>, vector<16x16x8xf32> -> vector<16x16x8xf32>
    %99 = arith.addf %92, %98 : vector<16x16x8xf32>
    %c0_72 = arith.constant 0 : index
    %c1_73 = arith.constant 1 : index
    %c0_74 = arith.constant 0 : index
    %100 = vector.load %arg10[%c0_72, %c1_73, %c0_74] : memref<18x18x16xf32, #tpu.memory_space<vmem>>, vector<16x16x16xf32>
    %101 = arith.truncf %100 : vector<16x16x16xf32> to vector<16x16x16xbf16>
    %c1_75 = arith.constant 1 : index
    %c0_76 = arith.constant 0 : index
    %c0_77 = arith.constant 0 : index
    %102 = vector.load %arg4[%c1_75, %c0_76, %c0_77] : memref<9x16x8xf32, #tpu.memory_space<vmem>>, vector<1x16x8xf32>
    %103 = vector.shape_cast %102 : vector<1x16x8xf32> to vector<16x8xf32>
    %104 = arith.truncf %103 : vector<16x8xf32> to vector<16x8xbf16>
    %cst_78 = arith.constant dense<0.000000e+00> : vector<16x16x8xf32>
    %105 = tpu.matmul %101, %104, %cst_78 {dimension_numbers = #tpu.dot_dimension_numbers<[2], [0], [0, 1], [1], [0, 0, 0, 1, 1, 1], [], []>} : vector<16x16x16xbf16>, vector<16x8xbf16>, vector<16x16x8xf32> -> vector<16x16x8xf32>
    %106 = arith.addf %99, %105 : vector<16x16x8xf32>
    %c0_79 = arith.constant 0 : index
    %c2_80 = arith.constant 2 : index
    %c0_81 = arith.constant 0 : index
    %107 = vector.load %arg10[%c0_79, %c2_80, %c0_81] : memref<18x18x16xf32, #tpu.memory_space<vmem>>, vector<16x16x16xf32>
    %108 = arith.truncf %107 : vector<16x16x16xf32> to vector<16x16x16xbf16>
    %c2_82 = arith.constant 2 : index
    %c0_83 = arith.constant 0 : index
    %c0_84 = arith.constant 0 : index
    %109 = vector.load %arg4[%c2_82, %c0_83, %c0_84] : memref<9x16x8xf32, #tpu.memory_space<vmem>>, vector<1x16x8xf32>
    %110 = vector.shape_cast %109 : vector<1x16x8xf32> to vector<16x8xf32>
    %111 = arith.truncf %110 : vector<16x8xf32> to vector<16x8xbf16>
    %cst_85 = arith.constant dense<0.000000e+00> : vector<16x16x8xf32>
    %112 = tpu.matmul %108, %111, %cst_85 {dimension_numbers = #tpu.dot_dimension_numbers<[2], [0], [0, 1], [1], [0, 0, 0, 1, 1, 1], [], []>} : vector<16x16x16xbf16>, vector<16x8xbf16>, vector<16x16x8xf32> -> vector<16x16x8xf32>
    %113 = arith.addf %106, %112 : vector<16x16x8xf32>
    %c1_86 = arith.constant 1 : index
    %c0_87 = arith.constant 0 : index
    %c0_88 = arith.constant 0 : index
    %114 = vector.load %arg10[%c1_86, %c0_87, %c0_88] : memref<18x18x16xf32, #tpu.memory_space<vmem>>, vector<16x16x16xf32>
    %115 = arith.truncf %114 : vector<16x16x16xf32> to vector<16x16x16xbf16>
    %c3_89 = arith.constant 3 : index
    %c0_90 = arith.constant 0 : index
    %c0_91 = arith.constant 0 : index
    %116 = vector.load %arg4[%c3_89, %c0_90, %c0_91] : memref<9x16x8xf32, #tpu.memory_space<vmem>>, vector<1x16x8xf32>
    %117 = vector.shape_cast %116 : vector<1x16x8xf32> to vector<16x8xf32>
    %118 = arith.truncf %117 : vector<16x8xf32> to vector<16x8xbf16>
    %cst_92 = arith.constant dense<0.000000e+00> : vector<16x16x8xf32>
    %119 = tpu.matmul %115, %118, %cst_92 {dimension_numbers = #tpu.dot_dimension_numbers<[2], [0], [0, 1], [1], [0, 0, 0, 1, 1, 1], [], []>} : vector<16x16x16xbf16>, vector<16x8xbf16>, vector<16x16x8xf32> -> vector<16x16x8xf32>
    %120 = arith.addf %113, %119 : vector<16x16x8xf32>
    %c1_93 = arith.constant 1 : index
    %c1_94 = arith.constant 1 : index
    %c0_95 = arith.constant 0 : index
    %121 = vector.load %arg10[%c1_93, %c1_94, %c0_95] : memref<18x18x16xf32, #tpu.memory_space<vmem>>, vector<16x16x16xf32>
    %122 = arith.truncf %121 : vector<16x16x16xf32> to vector<16x16x16xbf16>
    %c4_96 = arith.constant 4 : index
    %c0_97 = arith.constant 0 : index
    %c0_98 = arith.constant 0 : index
    %123 = vector.load %arg4[%c4_96, %c0_97, %c0_98] : memref<9x16x8xf32, #tpu.memory_space<vmem>>, vector<1x16x8xf32>
    %124 = vector.shape_cast %123 : vector<1x16x8xf32> to vector<16x8xf32>
    %125 = arith.truncf %124 : vector<16x8xf32> to vector<16x8xbf16>
    %cst_99 = arith.constant dense<0.000000e+00> : vector<16x16x8xf32>
    %126 = tpu.matmul %122, %125, %cst_99 {dimension_numbers = #tpu.dot_dimension_numbers<[2], [0], [0, 1], [1], [0, 0, 0, 1, 1, 1], [], []>} : vector<16x16x16xbf16>, vector<16x8xbf16>, vector<16x16x8xf32> -> vector<16x16x8xf32>
    %127 = arith.addf %120, %126 : vector<16x16x8xf32>
    %c1_100 = arith.constant 1 : index
    %c2_101 = arith.constant 2 : index
    %c0_102 = arith.constant 0 : index
    %128 = vector.load %arg10[%c1_100, %c2_101, %c0_102] : memref<18x18x16xf32, #tpu.memory_space<vmem>>, vector<16x16x16xf32>
    %129 = arith.truncf %128 : vector<16x16x16xf32> to vector<16x16x16xbf16>
    %c5_103 = arith.constant 5 : index
    %c0_104 = arith.constant 0 : index
    %c0_105 = arith.constant 0 : index
    %130 = vector.load %arg4[%c5_103, %c0_104, %c0_105] : memref<9x16x8xf32, #tpu.memory_space<vmem>>, vector<1x16x8xf32>
    %131 = vector.shape_cast %130 : vector<1x16x8xf32> to vector<16x8xf32>
    %132 = arith.truncf %131 : vector<16x8xf32> to vector<16x8xbf16>
    %cst_106 = arith.constant dense<0.000000e+00> : vector<16x16x8xf32>
    %133 = tpu.matmul %129, %132, %cst_106 {dimension_numbers = #tpu.dot_dimension_numbers<[2], [0], [0, 1], [1], [0, 0, 0, 1, 1, 1], [], []>} : vector<16x16x16xbf16>, vector<16x8xbf16>, vector<16x16x8xf32> -> vector<16x16x8xf32>
    %134 = arith.addf %127, %133 : vector<16x16x8xf32>
    %c2_107 = arith.constant 2 : index
    %c0_108 = arith.constant 0 : index
    %c0_109 = arith.constant 0 : index
    %135 = vector.load %arg10[%c2_107, %c0_108, %c0_109] : memref<18x18x16xf32, #tpu.memory_space<vmem>>, vector<16x16x16xf32>
    %136 = arith.truncf %135 : vector<16x16x16xf32> to vector<16x16x16xbf16>
    %c6_110 = arith.constant 6 : index
    %c0_111 = arith.constant 0 : index
    %c0_112 = arith.constant 0 : index
    %137 = vector.load %arg4[%c6_110, %c0_111, %c0_112] : memref<9x16x8xf32, #tpu.memory_space<vmem>>, vector<1x16x8xf32>
    %138 = vector.shape_cast %137 : vector<1x16x8xf32> to vector<16x8xf32>
    %139 = arith.truncf %138 : vector<16x8xf32> to vector<16x8xbf16>
    %cst_113 = arith.constant dense<0.000000e+00> : vector<16x16x8xf32>
    %140 = tpu.matmul %136, %139, %cst_113 {dimension_numbers = #tpu.dot_dimension_numbers<[2], [0], [0, 1], [1], [0, 0, 0, 1, 1, 1], [], []>} : vector<16x16x16xbf16>, vector<16x8xbf16>, vector<16x16x8xf32> -> vector<16x16x8xf32>
    %141 = arith.addf %134, %140 : vector<16x16x8xf32>
    %c2_114 = arith.constant 2 : index
    %c1_115 = arith.constant 1 : index
    %c0_116 = arith.constant 0 : index
    %142 = vector.load %arg10[%c2_114, %c1_115, %c0_116] : memref<18x18x16xf32, #tpu.memory_space<vmem>>, vector<16x16x16xf32>
    %143 = arith.truncf %142 : vector<16x16x16xf32> to vector<16x16x16xbf16>
    %c7_117 = arith.constant 7 : index
    %c0_118 = arith.constant 0 : index
    %c0_119 = arith.constant 0 : index
    %144 = vector.load %arg4[%c7_117, %c0_118, %c0_119] : memref<9x16x8xf32, #tpu.memory_space<vmem>>, vector<1x16x8xf32>
    %145 = vector.shape_cast %144 : vector<1x16x8xf32> to vector<16x8xf32>
    %146 = arith.truncf %145 : vector<16x8xf32> to vector<16x8xbf16>
    %cst_120 = arith.constant dense<0.000000e+00> : vector<16x16x8xf32>
    %147 = tpu.matmul %143, %146, %cst_120 {dimension_numbers = #tpu.dot_dimension_numbers<[2], [0], [0, 1], [1], [0, 0, 0, 1, 1, 1], [], []>} : vector<16x16x16xbf16>, vector<16x8xbf16>, vector<16x16x8xf32> -> vector<16x16x8xf32>
    %148 = arith.addf %141, %147 : vector<16x16x8xf32>
    %c2_121 = arith.constant 2 : index
    %c2_122 = arith.constant 2 : index
    %c0_123 = arith.constant 0 : index
    %149 = vector.load %arg10[%c2_121, %c2_122, %c0_123] : memref<18x18x16xf32, #tpu.memory_space<vmem>>, vector<16x16x16xf32>
    %150 = arith.truncf %149 : vector<16x16x16xf32> to vector<16x16x16xbf16>
    %c8_124 = arith.constant 8 : index
    %c0_125 = arith.constant 0 : index
    %c0_126 = arith.constant 0 : index
    %151 = vector.load %arg4[%c8_124, %c0_125, %c0_126] : memref<9x16x8xf32, #tpu.memory_space<vmem>>, vector<1x16x8xf32>
    %152 = vector.shape_cast %151 : vector<1x16x8xf32> to vector<16x8xf32>
    %153 = arith.truncf %152 : vector<16x8xf32> to vector<16x8xbf16>
    %cst_127 = arith.constant dense<0.000000e+00> : vector<16x16x8xf32>
    %154 = tpu.matmul %150, %153, %cst_127 {dimension_numbers = #tpu.dot_dimension_numbers<[2], [0], [0, 1], [1], [0, 0, 0, 1, 1, 1], [], []>} : vector<16x16x16xbf16>, vector<16x8xbf16>, vector<16x16x8xf32> -> vector<16x16x8xf32>
    %155 = arith.addf %148, %154 : vector<16x16x8xf32>
    %c0_128 = arith.constant 0 : index
    %c0_129 = arith.constant 0 : index
    %156 = vector.load %arg5[%c0_128, %c0_129] : memref<1x8xf32, #tpu.memory_space<vmem>>, vector<1x8xf32>
    %157 = vector.shape_cast %156 : vector<1x8xf32> to vector<8xf32>
    %158 = vector.shape_cast %157 : vector<8xf32> to vector<1x1x8xf32>
    %159 = vector.broadcast %158 : vector<1x1x8xf32> to vector<16x16x8xf32>
    %160 = arith.addf %155, %159 : vector<16x16x8xf32>
    %cst_130 = arith.constant 0.000000e+00 : f32
    %161 = vector.broadcast %cst_130 : f32 to vector<16x16x8xf32>
    %162 = arith.maximumf %160, %161 : vector<16x16x8xf32>
    %163 = arith.truncf %88 : vector<16x16x16xf32> to vector<16x16x16xbf16>
    %c0_131 = arith.constant 0 : index
    %c0_132 = arith.constant 0 : index
    %164 = vector.load %arg6[%c0_131, %c0_132] : memref<16x32xf32, #tpu.memory_space<vmem>>, vector<16x32xf32>
    %165 = arith.truncf %164 : vector<16x32xf32> to vector<16x32xbf16>
    %cst_133 = arith.constant dense<0.000000e+00> : vector<16x16x32xf32>
    %166 = tpu.matmul %163, %165, %cst_133 {dimension_numbers = #tpu.dot_dimension_numbers<[2], [0], [0, 1], [1], [0, 0, 0, 1, 1, 1], [], []>} : vector<16x16x16xbf16>, vector<16x32xbf16>, vector<16x16x32xf32> -> vector<16x16x32xf32>
    %167 = arith.truncf %162 : vector<16x16x8xf32> to vector<16x16x8xbf16>
    %c0_134 = arith.constant 0 : index
    %c0_135 = arith.constant 0 : index
    %168 = vector.load %arg7[%c0_134, %c0_135] : memref<8x32xf32, #tpu.memory_space<vmem>>, vector<8x32xf32>
    %169 = arith.truncf %168 : vector<8x32xf32> to vector<8x32xbf16>
    %cst_136 = arith.constant dense<0.000000e+00> : vector<16x16x32xf32>
    %170 = tpu.matmul %167, %169, %cst_136 {dimension_numbers = #tpu.dot_dimension_numbers<[2], [0], [0, 1], [1], [0, 0, 0, 1, 1, 1], [], []>} : vector<16x16x8xbf16>, vector<8x32xbf16>, vector<16x16x32xf32> -> vector<16x16x32xf32>
    %171 = arith.addf %166, %170 : vector<16x16x32xf32>
    %c0_137 = arith.constant 0 : index
    %c0_138 = arith.constant 0 : index
    %172 = vector.load %arg8[%c0_137, %c0_138] : memref<1x32xf32, #tpu.memory_space<vmem>>, vector<1x32xf32>
    %173 = vector.shape_cast %172 : vector<1x32xf32> to vector<32xf32>
    %174 = vector.shape_cast %173 : vector<32xf32> to vector<1x1x32xf32>
    %175 = vector.broadcast %174 : vector<1x1x32xf32> to vector<16x16x32xf32>
    %176 = arith.addf %171, %175 : vector<16x16x32xf32>
    %c0_139 = arith.constant 0 : index
    %c0_140 = arith.constant 0 : index
    %c0_141 = arith.constant 0 : index
    %c0_142 = arith.constant 0 : index
    %177 = vector.load %arg9[%c0_139, %c0_140, %c0_141, %c0_142] : memref<1x16x16x32xf32, #tpu.memory_space<vmem>>, vector<1x16x16x32xf32>
    %178 = vector.shape_cast %177 : vector<1x16x16x32xf32> to vector<16x16x32xf32>
    %179 = vector.shape_cast %176 : vector<16x16x32xf32> to vector<1x16x16x32xf32>
    tpu.vector_store %arg9[%c0_139, %c0_140, %c0_141, %c0_142], %179 {strides = array<i32>} : memref<1x16x16x32xf32, #tpu.memory_space<vmem>>, vector<1x16x16x32xf32>,
    return
  }
  func.func @transform_0(%arg0: i32) -> (i32, i32, i32, i32) {
    %c0_i32 = arith.constant 0 : i32
    %c0_i32_0 = arith.constant 0 : i32
    %c0_i32_1 = arith.constant 0 : i32
    %c0_i32_2 = arith.constant 0 : i32
    return %arg0, %c0_i32, %c0_i32_0, %c0_i32_1 : i32, i32, i32, i32
  }
  func.func @transform_1(%arg0: i32) -> (i32, i32, i32) {
    %c0_i32 = arith.constant 0 : i32
    %c0_i32_0 = arith.constant 0 : i32
    %c0_i32_1 = arith.constant 0 : i32
    %c0_i32_2 = arith.constant 0 : i32
    return %c0_i32, %c0_i32_0, %c0_i32_1 : i32, i32, i32
  }
  func.func @transform_2(%arg0: i32) -> (i32, i32) {
    %c0_i32 = arith.constant 0 : i32
    %c0_i32_0 = arith.constant 0 : i32
    %c0_i32_1 = arith.constant 0 : i32
    return %c0_i32, %c0_i32_0 : i32, i32
  }
  func.func @transform_3(%arg0: i32) -> (i32, i32, i32) {
    %c0_i32 = arith.constant 0 : i32
    %c0_i32_0 = arith.constant 0 : i32
    %c0_i32_1 = arith.constant 0 : i32
    %c0_i32_2 = arith.constant 0 : i32
    return %c0_i32, %c0_i32_0, %c0_i32_1 : i32, i32, i32
  }
  func.func @transform_4(%arg0: i32) -> (i32, i32) {
    %c0_i32 = arith.constant 0 : i32
    %c0_i32_0 = arith.constant 0 : i32
    %c0_i32_1 = arith.constant 0 : i32
    return %c0_i32, %c0_i32_0 : i32, i32
  }
  func.func @transform_5(%arg0: i32) -> (i32, i32) {
    %c0_i32 = arith.constant 0 : i32
    %c0_i32_0 = arith.constant 0 : i32
    %c0_i32_1 = arith.constant 0 : i32
    return %c0_i32, %c0_i32_0 : i32, i32
  }
  func.func @transform_6(%arg0: i32) -> (i32, i32) {
    %c0_i32 = arith.constant 0 : i32
    %c0_i32_0 = arith.constant 0 : i32
    %c0_i32_1 = arith.constant 0 : i32
    return %c0_i32, %c0_i32_0 : i32, i32
  }
  func.func @transform_7(%arg0: i32) -> (i32, i32) {
    %c0_i32 = arith.constant 0 : i32
    %c0_i32_0 = arith.constant 0 : i32
    %c0_i32_1 = arith.constant 0 : i32
    return %c0_i32, %c0_i32_0 : i32, i32
  }
  func.func @transform_8(%arg0: i32) -> (i32, i32, i32, i32) {
    %c0_i32 = arith.constant 0 : i32
    %c0_i32_0 = arith.constant 0 : i32
    %c0_i32_1 = arith.constant 0 : i32
    %c0_i32_2 = arith.constant 0 : i32
    return %arg0, %c0_i32, %c0_i32_0, %c0_i32_1 : i32, i32, i32, i32
  }
}

module attributes {stable_mosaic.version = 11 : i64} {
  func.func @_matmul_kernel(%arg0: i32, %arg1: i32, %arg2: i32, %arg3: memref<128x32xf32, #tpu.memory_space<vmem>>, %arg4: memref<32x64xf32, #tpu.memory_space<vmem>>, %arg5: memref<1x64xf32, #tpu.memory_space<vmem>>, %arg6: memref<128x64xf32, #tpu.memory_space<vmem>>, %arg7: memref<128x64xf32, #tpu.memory_space<vmem>>) attributes {dimension_semantics = [#tpu.dimension_semantics<parallel>, #tpu.dimension_semantics<parallel>, #tpu.dimension_semantics<arbitrary>], iteration_bounds = array<i64: 1, 1, 1>, scalar_prefetch = 0 : i64, scratch_operands = 1 : i64, tpu.core_type = #tpu.core_type<tc>, window_params = [{transform_indices = @transform_0, window_bounds = array<i64: 128, 32>}, {transform_indices = @transform_1, window_bounds = array<i64: 32, 64>}, {transform_indices = @transform_2, window_bounds = array<i64: 1, 64>}, {transform_indices = @transform_3, window_bounds = array<i64: 128, 64>}]} {
    %c0_i32 = arith.constant 0 : i32
    %0 = arith.cmpi eq, %arg2, %c0_i32 : i32
    %1 = arith.extui %0 : i1 to i32
    %c0_i32_0 = arith.constant 0 : i32
    %2 = arith.cmpi ne, %1, %c0_i32_0 : i32
    scf.if %2 {
      %cst_10 = arith.constant 0.000000e+00 : f32
      %14 = vector.broadcast %cst_10 : f32 to vector<128x64xf32>
      %c0_11 = arith.constant 0 : index
      %c0_12 = arith.constant 0 : index
      %15 = vector.load %arg7[%c0_11, %c0_12] : memref<128x64xf32, #tpu.memory_space<vmem>>, vector<128x64xf32>
      tpu.vector_store %arg7[%c0_11, %c0_12], %14 {strides = array<i32>} : memref<128x64xf32, #tpu.memory_space<vmem>>, vector<128x64xf32>,
    } else {
    }
    %c0 = arith.constant 0 : index
    %c0_1 = arith.constant 0 : index
    %3 = vector.load %arg7[%c0, %c0_1] : memref<128x64xf32, #tpu.memory_space<vmem>>, vector<128x64xf32>
    %c0_2 = arith.constant 0 : index
    %c0_3 = arith.constant 0 : index
    %4 = vector.load %arg3[%c0_2, %c0_3] : memref<128x32xf32, #tpu.memory_space<vmem>>, vector<128x32xf32>
    %5 = arith.truncf %4 : vector<128x32xf32> to vector<128x32xbf16>
    %c0_4 = arith.constant 0 : index
    %c0_5 = arith.constant 0 : index
    %6 = vector.load %arg4[%c0_4, %c0_5] : memref<32x64xf32, #tpu.memory_space<vmem>>, vector<32x64xf32>
    %7 = arith.truncf %6 : vector<32x64xf32> to vector<32x64xbf16>
    %cst = arith.constant dense<0.000000e+00> : vector<128x64xf32>
    %8 = tpu.matmul %5, %7, %cst {dimension_numbers = #tpu.dot_dimension_numbers<[1], [0], [0], [1], [0, 0, 1, 1], [], []>} : vector<128x32xbf16>, vector<32x64xbf16>, vector<128x64xf32> -> vector<128x64xf32>
    %9 = arith.addf %3, %8 : vector<128x64xf32>
    %c0_6 = arith.constant 0 : index
    %c0_7 = arith.constant 0 : index
    %10 = vector.load %arg7[%c0_6, %c0_7] : memref<128x64xf32, #tpu.memory_space<vmem>>, vector<128x64xf32>
    tpu.vector_store %arg7[%c0_6, %c0_7], %9 {strides = array<i32>} : memref<128x64xf32, #tpu.memory_space<vmem>>, vector<128x64xf32>,
    %c0_i32_8 = arith.constant 0 : i32
    %11 = arith.cmpi eq, %arg2, %c0_i32_8 : i32
    %12 = arith.extui %11 : i1 to i32
    %c0_i32_9 = arith.constant 0 : i32
    %13 = arith.cmpi ne, %12, %c0_i32_9 : i32
    scf.if %13 {
      %c0_10 = arith.constant 0 : index
      %c0_11 = arith.constant 0 : index
      %14 = vector.load %arg7[%c0_10, %c0_11] : memref<128x64xf32, #tpu.memory_space<vmem>>, vector<128x64xf32>
      %c0_12 = arith.constant 0 : index
      %c0_13 = arith.constant 0 : index
      %15 = vector.load %arg5[%c0_12, %c0_13] : memref<1x64xf32, #tpu.memory_space<vmem>>, vector<1x64xf32>
      %16 = vector.broadcast %15 : vector<1x64xf32> to vector<128x64xf32>
      %17 = arith.addf %14, %16 : vector<128x64xf32>
      %c0_14 = arith.constant 0 : index
      %c0_15 = arith.constant 0 : index
      %18 = vector.load %arg6[%c0_14, %c0_15] : memref<128x64xf32, #tpu.memory_space<vmem>>, vector<128x64xf32>
      tpu.vector_store %arg6[%c0_14, %c0_15], %17 {strides = array<i32>} : memref<128x64xf32, #tpu.memory_space<vmem>>, vector<128x64xf32>,
    } else {
    }
    return
  }
  func.func @transform_0(%arg0: i32, %arg1: i32, %arg2: i32) -> (i32, i32) {
    %c0_i32 = arith.constant 0 : i32
    return %arg0, %arg2 : i32, i32
  }
  func.func @transform_1(%arg0: i32, %arg1: i32, %arg2: i32) -> (i32, i32) {
    %c0_i32 = arith.constant 0 : i32
    return %arg2, %arg1 : i32, i32
  }
  func.func @transform_2(%arg0: i32, %arg1: i32, %arg2: i32) -> (i32, i32) {
    %c0_i32 = arith.constant 0 : i32
    %c0_i32_0 = arith.constant 0 : i32
    return %c0_i32, %arg1 : i32, i32
  }
  func.func @transform_3(%arg0: i32, %arg1: i32, %arg2: i32) -> (i32, i32) {
    %c0_i32 = arith.constant 0 : i32
    return %arg0, %arg1 : i32, i32
  }
}

module attributes {stable_mosaic.version = 11 : i64} {
  func.func @_mha_kernel(%arg0: i32, %arg1: i32, %arg2: memref<1x8x32xf32, #tpu.memory_space<vmem>>, %arg3: memref<1x64x32xf32, #tpu.memory_space<vmem>>, %arg4: memref<1x64x32xf32, #tpu.memory_space<vmem>>, %arg5: memref<1x8x32xf32, #tpu.memory_space<vmem>>, %arg6: memref<4x8x1xf32, #tpu.memory_space<vmem>>, %arg7: memref<4x8x1xf32, #tpu.memory_space<vmem>>, %arg8: memref<4x8x8xf32, #tpu.memory_space<vmem>>) attributes {dimension_semantics = [#tpu.dimension_semantics<parallel>, #tpu.dimension_semantics<arbitrary>], iteration_bounds = array<i64: 2, 1>, scalar_prefetch = 0 : i64, scratch_operands = 3 : i64, tpu.core_type = #tpu.core_type<tc>, window_params = [{transform_indices = @transform_0, window_bounds = array<i64: 1, 8, 32>}, {transform_indices = @transform_1, window_bounds = array<i64: 1, 64, 32>}, {transform_indices = @transform_2, window_bounds = array<i64: 1, 64, 32>}, {transform_indices = @transform_3, window_bounds = array<i64: 1, 8, 32>}]} {
    %c0_i32 = arith.constant 0 : i32
    %0 = arith.cmpi eq, %arg1, %c0_i32 : i32
    %1 = arith.extui %0 : i1 to i32
    %c0_i32_0 = arith.constant 0 : i32
    %2 = arith.cmpi ne, %1, %c0_i32_0 : i32
    scf.if %2 {
      %cst_33 = arith.constant 0xFF800000 : f32
      %68 = vector.broadcast %cst_33 : f32 to vector<4x8x1xf32>
      %c0_34 = arith.constant 0 : index
      %c0_35 = arith.constant 0 : index
      %c0_36 = arith.constant 0 : index
      %69 = vector.load %arg6[%c0_34, %c0_35, %c0_36] : memref<4x8x1xf32, #tpu.memory_space<vmem>>, vector<4x8x1xf32>
      tpu.vector_store %arg6[%c0_34, %c0_35, %c0_36], %68 {strides = array<i32>} : memref<4x8x1xf32, #tpu.memory_space<vmem>>, vector<4x8x1xf32>,
      %cst_37 = arith.constant 0.000000e+00 : f32
      %70 = vector.broadcast %cst_37 : f32 to vector<4x8x1xf32>
      %c0_38 = arith.constant 0 : index
      %c0_39 = arith.constant 0 : index
      %c0_40 = arith.constant 0 : index
      %71 = vector.load %arg7[%c0_38, %c0_39, %c0_40] : memref<4x8x1xf32, #tpu.memory_space<vmem>>, vector<4x8x1xf32>
      tpu.vector_store %arg7[%c0_38, %c0_39, %c0_40], %70 {strides = array<i32>} : memref<4x8x1xf32, #tpu.memory_space<vmem>>, vector<4x8x1xf32>,
      %cst_41 = arith.constant 0.000000e+00 : f32
      %72 = vector.broadcast %cst_41 : f32 to vector<4x8x8xf32>
      %c0_42 = arith.constant 0 : index
      %c0_43 = arith.constant 0 : index
      %c0_44 = arith.constant 0 : index
      %73 = vector.load %arg8[%c0_42, %c0_43, %c0_44] : memref<4x8x8xf32, #tpu.memory_space<vmem>>, vector<4x8x8xf32>
      tpu.vector_store %arg8[%c0_42, %c0_43, %c0_44], %72 {strides = array<i32>} : memref<4x8x8xf32, #tpu.memory_space<vmem>>, vector<4x8x8xf32>,
    } else {
    }
    %c0 = arith.constant 0 : index
    %c0_1 = arith.constant 0 : index
    %c0_2 = arith.constant 0 : index
    %3 = vector.load %arg2[%c0, %c0_1, %c0_2] : memref<1x8x32xf32, #tpu.memory_space<vmem>>, vector<1x8x32xf32>
    %4 = vector.shape_cast %3 : vector<1x8x32xf32> to vector<8x32xf32>
    %cst = arith.constant 0.353553385 : f32
    %5 = vector.broadcast %cst : f32 to vector<8x32xf32>
    %6 = arith.mulf %4, %5 : vector<8x32xf32>
    %c0_3 = arith.constant 0 : index
    %c0_4 = arith.constant 0 : index
    %c0_5 = arith.constant 0 : index
    %7 = vector.load %arg3[%c0_3, %c0_4, %c0_5] : memref<1x64x32xf32, #tpu.memory_space<vmem>>, vector<1x64x32xf32>
    %8 = vector.shape_cast %7 : vector<1x64x32xf32> to vector<64x32xf32>
    %c0_6 = arith.constant 0 : index
    %c0_7 = arith.constant 0 : index
    %c0_8 = arith.constant 0 : index
    %9 = vector.load %arg4[%c0_6, %c0_7, %c0_8] : memref<1x64x32xf32, #tpu.memory_space<vmem>>, vector<1x64x32xf32>
    %10 = vector.shape_cast %9 : vector<1x64x32xf32> to vector<64x32xf32>
    %11 = vector.extract_strided_slice %6 {offsets = [0, 0], sizes = [8, 8], strides = [1, 1]} : vector<8x32xf32> to vector<8x8xf32>
    %12 = vector.extract_strided_slice %6 {offsets = [0, 8], sizes = [8, 8], strides = [1, 1]} : vector<8x32xf32> to vector<8x8xf32>
    %13 = vector.extract_strided_slice %6 {offsets = [0, 16], sizes = [8, 8], strides = [1, 1]} : vector<8x32xf32> to vector<8x8xf32>
    %14 = vector.extract_strided_slice %6 {offsets = [0, 24], sizes = [8, 8], strides = [1, 1]} : vector<8x32xf32> to vector<8x8xf32>
    %15 = vector.shape_cast %11 : vector<8x8xf32> to vector<1x8x8xf32>
    %16 = vector.shape_cast %12 : vector<8x8xf32> to vector<1x8x8xf32>
    %17 = vector.shape_cast %13 : vector<8x8xf32> to vector<1x8x8xf32>
    %18 = vector.shape_cast %14 : vector<8x8xf32> to vector<1x8x8xf32>
    %19 = tpu.concatenate %15, %16, %17, %18 in 0 : vector<1x8x8xf32>, vector<1x8x8xf32>, vector<1x8x8xf32>, vector<1x8x8xf32> -> vector<4x8x8xf32>
    %20 = vector.extract_strided_slice %8 {offsets = [0, 0], sizes = [64, 8], strides = [1, 1]} : vector<64x32xf32> to vector<64x8xf32>
    %21 = vector.extract_strided_slice %8 {offsets = [0, 8], sizes = [64, 8], strides = [1, 1]} : vector<64x32xf32> to vector<64x8xf32>
    %22 = vector.extract_strided_slice %8 {offsets = [0, 16], sizes = [64, 8], strides = [1, 1]} : vector<64x32xf32> to vector<64x8xf32>
    %23 = vector.extract_strided_slice %8 {offsets = [0, 24], sizes = [64, 8], strides = [1, 1]} : vector<64x32xf32> to vector<64x8xf32>
    %24 = vector.shape_cast %20 : vector<64x8xf32> to vector<1x64x8xf32>
    %25 = vector.shape_cast %21 : vector<64x8xf32> to vector<1x64x8xf32>
    %26 = vector.shape_cast %22 : vector<64x8xf32> to vector<1x64x8xf32>
    %27 = vector.shape_cast %23 : vector<64x8xf32> to vector<1x64x8xf32>
    %28 = tpu.concatenate %24, %25, %26, %27 in 0 : vector<1x64x8xf32>, vector<1x64x8xf32>, vector<1x64x8xf32>, vector<1x64x8xf32> -> vector<4x64x8xf32>
    %29 = vector.extract_strided_slice %10 {offsets = [0, 0], sizes = [64, 8], strides = [1, 1]} : vector<64x32xf32> to vector<64x8xf32>
    %30 = vector.extract_strided_slice %10 {offsets = [0, 8], sizes = [64, 8], strides = [1, 1]} : vector<64x32xf32> to vector<64x8xf32>
    %31 = vector.extract_strided_slice %10 {offsets = [0, 16], sizes = [64, 8], strides = [1, 1]} : vector<64x32xf32> to vector<64x8xf32>
    %32 = vector.extract_strided_slice %10 {offsets = [0, 24], sizes = [64, 8], strides = [1, 1]} : vector<64x32xf32> to vector<64x8xf32>
    %33 = vector.shape_cast %29 : vector<64x8xf32> to vector<1x64x8xf32>
    %34 = vector.shape_cast %30 : vector<64x8xf32> to vector<1x64x8xf32>
    %35 = vector.shape_cast %31 : vector<64x8xf32> to vector<1x64x8xf32>
    %36 = vector.shape_cast %32 : vector<64x8xf32> to vector<1x64x8xf32>
    %37 = tpu.concatenate %33, %34, %35, %36 in 0 : vector<1x64x8xf32>, vector<1x64x8xf32>, vector<1x64x8xf32>, vector<1x64x8xf32> -> vector<4x64x8xf32>
    %38 = arith.truncf %19 : vector<4x8x8xf32> to vector<4x8x8xbf16>
    %39 = arith.truncf %28 : vector<4x64x8xf32> to vector<4x64x8xbf16>
    "tpu.trace_start"() <{level = 10 : i32, message = "hqd,hkd->hqk"}> : () -> ()
    %cst_9 = arith.constant dense<0.000000e+00> : vector<4x8x64xf32>
    %40 = tpu.matmul %38, %39, %cst_9 {dimension_numbers = #tpu.dot_dimension_numbers<[2], [2], [1], [1], [0, 0, 0, 1, 1, 1], [0], [0]>} : vector<4x8x8xbf16>, vector<4x64x8xbf16>, vector<4x8x64xf32> -> vector<4x8x64xf32>
    "tpu.trace_stop"() : () -> ()
    %c0_10 = arith.constant 0 : index
    %c0_11 = arith.constant 0 : index
    %c0_12 = arith.constant 0 : index
    %41 = vector.load %arg6[%c0_10, %c0_11, %c0_12] : memref<4x8x1xf32, #tpu.memory_space<vmem>>, vector<4x8x1xf32>
    %cst_13 = arith.constant dense<0xFF800000> : vector<4x8xf32>
    %42 = vector.multi_reduction <maximumf>, %40, %cst_13 [2] : vector<4x8x64xf32> to vector<4x8xf32>
    %43 = vector.shape_cast %42 : vector<4x8xf32> to vector<4x8x1xf32>
    %44 = arith.maximumf %41, %43 : vector<4x8x1xf32>
    %45 = arith.subf %41, %44 : vector<4x8x1xf32>
    %46 = math.exp %45 : vector<4x8x1xf32>
    %47 = vector.broadcast %44 : vector<4x8x1xf32> to vector<4x8x64xf32>
    %48 = arith.subf %40, %47 : vector<4x8x64xf32>
    %49 = math.exp %48 : vector<4x8x64xf32>
    %c0_14 = arith.constant 0 : index
    %c0_15 = arith.constant 0 : index
    %c0_16 = arith.constant 0 : index
    %50 = vector.load %arg7[%c0_14, %c0_15, %c0_16] : memref<4x8x1xf32, #tpu.memory_space<vmem>>, vector<4x8x1xf32>
    %51 = arith.mulf %46, %50 : vector<4x8x1xf32>
    %cst_17 = arith.constant dense<0.000000e+00> : vector<4x8xf32>
    %52 = vector.multi_reduction <add>, %49, %cst_17 [2] : vector<4x8x64xf32> to vector<4x8xf32>
    %53 = vector.shape_cast %52 : vector<4x8xf32> to vector<4x8x1xf32>
    %54 = arith.addf %51, %53 : vector<4x8x1xf32>
    %c0_18 = arith.constant 0 : index
    %c0_19 = arith.constant 0 : index
    %c0_20 = arith.constant 0 : index
    %55 = vector.load %arg7[%c0_18, %c0_19, %c0_20] : memref<4x8x1xf32, #tpu.memory_space<vmem>>, vector<4x8x1xf32>
    tpu.vector_store %arg7[%c0_18, %c0_19, %c0_20], %54 {strides = array<i32>} : memref<4x8x1xf32, #tpu.memory_space<vmem>>, vector<4x8x1xf32>,
    %c0_21 = arith.constant 0 : index
    %c0_22 = arith.constant 0 : index
    %c0_23 = arith.constant 0 : index
    %56 = vector.load %arg8[%c0_21, %c0_22, %c0_23] : memref<4x8x8xf32, #tpu.memory_space<vmem>>, vector<4x8x8xf32>
    %57 = vector.broadcast %46 : vector<4x8x1xf32> to vector<4x8x8xf32>
    %58 = arith.mulf %57, %56 : vector<4x8x8xf32>
    %59 = arith.truncf %49 : vector<4x8x64xf32> to vector<4x8x64xbf16>
    %60 = arith.truncf %37 : vector<4x64x8xf32> to vector<4x64x8xbf16>
    "tpu.trace_start"() <{level = 10 : i32, message = "hqk,hkd->hqd"}> : () -> ()
    %cst_24 = arith.constant dense<0.000000e+00> : vector<4x8x8xf32>
    %61 = tpu.matmul %59, %60, %cst_24 {dimension_numbers = #tpu.dot_dimension_numbers<[2], [1], [1], [2], [0, 0, 0, 1, 1, 2], [0], [0]>} : vector<4x8x64xbf16>, vector<4x64x8xbf16>, vector<4x8x8xf32> -> vector<4x8x8xf32>
    "tpu.trace_stop"() : () -> ()
    %62 = arith.addf %58, %61 : vector<4x8x8xf32>
    %c0_25 = arith.constant 0 : index
    %c0_26 = arith.constant 0 : index
    %c0_27 = arith.constant 0 : index
    %63 = vector.load %arg8[%c0_25, %c0_26, %c0_27] : memref<4x8x8xf32, #tpu.memory_space<vmem>>, vector<4x8x8xf32>
    tpu.vector_store %arg8[%c0_25, %c0_26, %c0_27], %62 {strides = array<i32>} : memref<4x8x8xf32, #tpu.memory_space<vmem>>, vector<4x8x8xf32>,
    %c0_28 = arith.constant 0 : index
    %c0_29 = arith.constant 0 : index
    %c0_30 = arith.constant 0 : index
    %64 = vector.load %arg6[%c0_28, %c0_29, %c0_30] : memref<4x8x1xf32, #tpu.memory_space<vmem>>, vector<4x8x1xf32>
    tpu.vector_store %arg6[%c0_28, %c0_29, %c0_30], %44 {strides = array<i32>} : memref<4x8x1xf32, #tpu.memory_space<vmem>>, vector<4x8x1xf32>,
    %c0_i32_31 = arith.constant 0 : i32
    %65 = arith.cmpi eq, %arg1, %c0_i32_31 : i32
    %66 = arith.extui %65 : i1 to i32
    %c0_i32_32 = arith.constant 0 : i32
    %67 = arith.cmpi ne, %66, %c0_i32_32 : i32
    scf.if %67 {
      %c0_33 = arith.constant 0 : index
      %c0_34 = arith.constant 0 : index
      %c0_35 = arith.constant 0 : index
      %68 = vector.load %arg8[%c0_33, %c0_34, %c0_35] : memref<4x8x8xf32, #tpu.memory_space<vmem>>, vector<4x8x8xf32>
      %c0_36 = arith.constant 0 : index
      %c0_37 = arith.constant 0 : index
      %c0_38 = arith.constant 0 : index
      %69 = vector.load %arg7[%c0_36, %c0_37, %c0_38] : memref<4x8x1xf32, #tpu.memory_space<vmem>>, vector<4x8x1xf32>
      %70 = tpu.reciprocal %69 {approx = true} : vector<4x8x1xf32> -> vector<4x8x1xf32>
      %71 = vector.broadcast %70 : vector<4x8x1xf32> to vector<4x8x8xf32>
      %72 = arith.mulf %68, %71 : vector<4x8x8xf32>
      %73 = vector.extract_strided_slice %72 {offsets = [0, 0, 0], sizes = [1, 8, 8], strides = [1, 1, 1]} : vector<4x8x8xf32> to vector<1x8x8xf32>
      %74 = vector.shape_cast %73 : vector<1x8x8xf32> to vector<8x8xf32>
      %75 = vector.extract_strided_slice %72 {offsets = [1, 0, 0], sizes = [1, 8, 8], strides = [1, 1, 1]} : vector<4x8x8xf32> to vector<1x8x8xf32>
      %76 = vector.shape_cast %75 : vector<1x8x8xf32> to vector<8x8xf32>
      %77 = vector.extract_strided_slice %72 {offsets = [2, 0, 0], sizes = [1, 8, 8], strides = [1, 1, 1]} : vector<4x8x8xf32> to vector<1x8x8xf32>
      %78 = vector.shape_cast %77 : vector<1x8x8xf32> to vector<8x8xf32>
      %79 = vector.extract_strided_slice %72 {offsets = [3, 0, 0], sizes = [1, 8, 8], strides = [1, 1, 1]} : vector<4x8x8xf32> to vector<1x8x8xf32>
      %80 = vector.shape_cast %79 : vector<1x8x8xf32> to vector<8x8xf32>
      %81 = tpu.concatenate %74, %76, %78, %80 in 1 : vector<8x8xf32>, vector<8x8xf32>, vector<8x8xf32>, vector<8x8xf32> -> vector<8x32xf32>
      %c0_39 = arith.constant 0 : index
      %c0_40 = arith.constant 0 : index
      %c0_41 = arith.constant 0 : index
      %82 = vector.load %arg5[%c0_39, %c0_40, %c0_41] : memref<1x8x32xf32, #tpu.memory_space<vmem>>, vector<1x8x32xf32>
      %83 = vector.shape_cast %82 : vector<1x8x32xf32> to vector<8x32xf32>
      %84 = vector.shape_cast %81 : vector<8x32xf32> to vector<1x8x32xf32>
      tpu.vector_store %arg5[%c0_39, %c0_40, %c0_41], %84 {strides = array<i32>} : memref<1x8x32xf32, #tpu.memory_space<vmem>>, vector<1x8x32xf32>,
    } else {
    }
    return
  }
  func.func @transform_0(%arg0: i32, %arg1: i32) -> (i32, i32, i32) {
    %c0_i32 = arith.constant 0 : i32
    %c0_i32_0 = arith.constant 0 : i32
    %c0_i32_1 = arith.constant 0 : i32
    return %arg0, %c0_i32, %c0_i32_0 : i32, i32, i32
  }
  func.func @transform_1(%arg0: i32, %arg1: i32) -> (i32, i32, i32) {
    %c0_i32 = arith.constant 0 : i32
    %c0_i32_0 = arith.constant 0 : i32
    return %arg0, %arg1, %c0_i32 : i32, i32, i32
  }
  func.func @transform_2(%arg0: i32, %arg1: i32) -> (i32, i32, i32) {
    %c0_i32 = arith.constant 0 : i32
    %c0_i32_0 = arith.constant 0 : i32
    return %arg0, %arg1, %c0_i32 : i32, i32, i32
  }
  func.func @transform_3(%arg0: i32, %arg1: i32) -> (i32, i32, i32) {
    %c0_i32 = arith.constant 0 : i32
    %c0_i32_0 = arith.constant 0 : i32
    %c0_i32_1 = arith.constant 0 : i32
    return %arg0, %c0_i32, %c0_i32_0 : i32, i32, i32
  }
}

module attributes {stable_mosaic.version = 11 : i64} {
  func.func @_matmul_kernel(%arg0: i32, %arg1: i32, %arg2: i32, %arg3: memref<16x32xf32, #tpu.memory_space<vmem>>, %arg4: memref<32x128xf32, #tpu.memory_space<vmem>>, %arg5: memref<1x128xf32, #tpu.memory_space<vmem>>, %arg6: memref<16x128xf32, #tpu.memory_space<vmem>>, %arg7: memref<16x128xf32, #tpu.memory_space<vmem>>) attributes {dimension_semantics = [#tpu.dimension_semantics<parallel>, #tpu.dimension_semantics<parallel>, #tpu.dimension_semantics<arbitrary>], iteration_bounds = array<i64: 1, 1, 1>, scalar_prefetch = 0 : i64, scratch_operands = 1 : i64, tpu.core_type = #tpu.core_type<tc>, window_params = [{transform_indices = @transform_0, window_bounds = array<i64: 16, 32>}, {transform_indices = @transform_1, window_bounds = array<i64: 32, 128>}, {transform_indices = @transform_2, window_bounds = array<i64: 1, 128>}, {transform_indices = @transform_3, window_bounds = array<i64: 16, 128>}]} {
    %c0_i32 = arith.constant 0 : i32
    %0 = arith.cmpi eq, %arg2, %c0_i32 : i32
    %1 = arith.extui %0 : i1 to i32
    %c0_i32_0 = arith.constant 0 : i32
    %2 = arith.cmpi ne, %1, %c0_i32_0 : i32
    scf.if %2 {
      %cst_10 = arith.constant 0.000000e+00 : f32
      %14 = vector.broadcast %cst_10 : f32 to vector<16x128xf32>
      %c0_11 = arith.constant 0 : index
      %c0_12 = arith.constant 0 : index
      %15 = vector.load %arg7[%c0_11, %c0_12] : memref<16x128xf32, #tpu.memory_space<vmem>>, vector<16x128xf32>
      tpu.vector_store %arg7[%c0_11, %c0_12], %14 {strides = array<i32>} : memref<16x128xf32, #tpu.memory_space<vmem>>, vector<16x128xf32>,
    } else {
    }
    %c0 = arith.constant 0 : index
    %c0_1 = arith.constant 0 : index
    %3 = vector.load %arg7[%c0, %c0_1] : memref<16x128xf32, #tpu.memory_space<vmem>>, vector<16x128xf32>
    %c0_2 = arith.constant 0 : index
    %c0_3 = arith.constant 0 : index
    %4 = vector.load %arg3[%c0_2, %c0_3] : memref<16x32xf32, #tpu.memory_space<vmem>>, vector<16x32xf32>
    %5 = arith.truncf %4 : vector<16x32xf32> to vector<16x32xbf16>
    %c0_4 = arith.constant 0 : index
    %c0_5 = arith.constant 0 : index
    %6 = vector.load %arg4[%c0_4, %c0_5] : memref<32x128xf32, #tpu.memory_space<vmem>>, vector<32x128xf32>
    %7 = arith.truncf %6 : vector<32x128xf32> to vector<32x128xbf16>
    %cst = arith.constant dense<0.000000e+00> : vector<16x128xf32>
    %8 = tpu.matmul %5, %7, %cst {dimension_numbers = #tpu.dot_dimension_numbers<[1], [0], [0], [1], [0, 0, 1, 1], [], []>} : vector<16x32xbf16>, vector<32x128xbf16>, vector<16x128xf32> -> vector<16x128xf32>
    %9 = arith.addf %3, %8 : vector<16x128xf32>
    %c0_6 = arith.constant 0 : index
    %c0_7 = arith.constant 0 : index
    %10 = vector.load %arg7[%c0_6, %c0_7] : memref<16x128xf32, #tpu.memory_space<vmem>>, vector<16x128xf32>
    tpu.vector_store %arg7[%c0_6, %c0_7], %9 {strides = array<i32>} : memref<16x128xf32, #tpu.memory_space<vmem>>, vector<16x128xf32>,
    %c0_i32_8 = arith.constant 0 : i32
    %11 = arith.cmpi eq, %arg2, %c0_i32_8 : i32
    %12 = arith.extui %11 : i1 to i32
    %c0_i32_9 = arith.constant 0 : i32
    %13 = arith.cmpi ne, %12, %c0_i32_9 : i32
    scf.if %13 {
      %c0_10 = arith.constant 0 : index
      %c0_11 = arith.constant 0 : index
      %14 = vector.load %arg7[%c0_10, %c0_11] : memref<16x128xf32, #tpu.memory_space<vmem>>, vector<16x128xf32>
      %c0_12 = arith.constant 0 : index
      %c0_13 = arith.constant 0 : index
      %15 = vector.load %arg5[%c0_12, %c0_13] : memref<1x128xf32, #tpu.memory_space<vmem>>, vector<1x128xf32>
      %16 = vector.broadcast %15 : vector<1x128xf32> to vector<16x128xf32>
      %17 = arith.addf %14, %16 : vector<16x128xf32>
      %c0_14 = arith.constant 0 : index
      %c0_15 = arith.constant 0 : index
      %18 = vector.load %arg6[%c0_14, %c0_15] : memref<16x128xf32, #tpu.memory_space<vmem>>, vector<16x128xf32>
      tpu.vector_store %arg6[%c0_14, %c0_15], %17 {strides = array<i32>} : memref<16x128xf32, #tpu.memory_space<vmem>>, vector<16x128xf32>,
    } else {
    }
    return
  }
  func.func @transform_0(%arg0: i32, %arg1: i32, %arg2: i32) -> (i32, i32) {
    %c0_i32 = arith.constant 0 : i32
    return %arg0, %arg2 : i32, i32
  }
  func.func @transform_1(%arg0: i32, %arg1: i32, %arg2: i32) -> (i32, i32) {
    %c0_i32 = arith.constant 0 : i32
    return %arg2, %arg1 : i32, i32
  }
  func.func @transform_2(%arg0: i32, %arg1: i32, %arg2: i32) -> (i32, i32) {
    %c0_i32 = arith.constant 0 : i32
    %c0_i32_0 = arith.constant 0 : i32
    return %c0_i32, %arg1 : i32, i32
  }
  func.func @transform_3(%arg0: i32, %arg1: i32, %arg2: i32) -> (i32, i32) {
    %c0_i32 = arith.constant 0 : i32
    return %arg0, %arg1 : i32, i32
  }
}

module attributes {stable_mosaic.version = 11 : i64} {
  func.func @_ffn_add_ln_kernel(%arg0: i32, %arg1: memref<16x32xf32, #tpu.memory_space<vmem>>, %arg2: memref<32x64xf32, #tpu.memory_space<vmem>>, %arg3: memref<1x64xf32, #tpu.memory_space<vmem>>, %arg4: memref<64x32xf32, #tpu.memory_space<vmem>>, %arg5: memref<1x32xf32, #tpu.memory_space<vmem>>, %arg6: memref<1x32xf32, #tpu.memory_space<vmem>>, %arg7: memref<1x32xf32, #tpu.memory_space<vmem>>, %arg8: memref<16x32xf32, #tpu.memory_space<vmem>>) attributes {dimension_semantics = [#tpu.dimension_semantics<parallel>], iteration_bounds = array<i64: 1>, scalar_prefetch = 0 : i64, scratch_operands = 0 : i64, tpu.core_type = #tpu.core_type<tc>, window_params = [{transform_indices = @transform_0, window_bounds = array<i64: 16, 32>}, {pipeline_mode = #tpu.pipeline_mode<synchronous>, transform_indices = @transform_1, window_bounds = array<i64: 32, 64>}, {pipeline_mode = #tpu.pipeline_mode<synchronous>, transform_indices = @transform_2, window_bounds = array<i64: 1, 64>}, {pipeline_mode = #tpu.pipeline_mode<synchronous>, transform_indices = @transform_3, window_bounds = array<i64: 64, 32>}, {pipeline_mode = #tpu.pipeline_mode<synchronous>, transform_indices = @transform_4, window_bounds = array<i64: 1, 32>}, {pipeline_mode = #tpu.pipeline_mode<synchronous>, transform_indices = @transform_5, window_bounds = array<i64: 1, 32>}, {pipeline_mode = #tpu.pipeline_mode<synchronous>, transform_indices = @transform_6, window_bounds = array<i64: 1, 32>}, {transform_indices = @transform_7, window_bounds = array<i64: 16, 32>}]} {
    %c0 = arith.constant 0 : index
    %c0_0 = arith.constant 0 : index
    %0 = vector.load %arg1[%c0, %c0_0] : memref<16x32xf32, #tpu.memory_space<vmem>>, vector<16x32xf32>
    %cst = arith.constant 0.000000e+00 : f32
    %1 = vector.broadcast %cst : f32 to vector<16x32xf32>
    %c0_1 = arith.constant 0 : index
    %c0_2 = arith.constant 0 : index
    %2 = vector.load %arg5[%c0_1, %c0_2] : memref<1x32xf32, #tpu.memory_space<vmem>>, vector<1x32xf32>
    %3 = vector.broadcast %2 : vector<1x32xf32> to vector<16x32xf32>
    %4 = arith.addf %1, %3 : vector<16x32xf32>
    %5 = arith.truncf %0 : vector<16x32xf32> to vector<16x32xbf16>
    %c0_3 = arith.constant 0 : index
    %c0_4 = arith.constant 0 : index
    %6 = vector.load %arg2[%c0_3, %c0_4] : memref<32x64xf32, #tpu.memory_space<vmem>>, vector<32x64xf32>
    %7 = arith.truncf %6 : vector<32x64xf32> to vector<32x64xbf16>
    %cst_5 = arith.constant dense<0.000000e+00> : vector<16x64xf32>
    %8 = tpu.matmul %5, %7, %cst_5 {dimension_numbers = #tpu.dot_dimension_numbers<[1], [0], [0], [1], [0, 0, 1, 1], [], []>} : vector<16x32xbf16>, vector<32x64xbf16>, vector<16x64xf32> -> vector<16x64xf32>
    %c0_6 = arith.constant 0 : index
    %c0_7 = arith.constant 0 : index
    %9 = vector.load %arg3[%c0_6, %c0_7] : memref<1x64xf32, #tpu.memory_space<vmem>>, vector<1x64xf32>
    %10 = vector.broadcast %9 : vector<1x64xf32> to vector<16x64xf32>
    %11 = arith.addf %8, %10 : vector<16x64xf32>
    %cst_8 = arith.constant 0.000000e+00 : f32
    %12 = vector.broadcast %cst_8 : f32 to vector<16x64xf32>
    %13 = arith.maximumf %11, %12 : vector<16x64xf32>
    %14 = arith.truncf %13 : vector<16x64xf32> to vector<16x64xbf16>
    %c0_9 = arith.constant 0 : index
    %c0_10 = arith.constant 0 : index
    %15 = vector.load %arg4[%c0_9, %c0_10] : memref<64x32xf32, #tpu.memory_space<vmem>>, vector<64x32xf32>
    %16 = arith.truncf %15 : vector<64x32xf32> to vector<64x32xbf16>
    %cst_11 = arith.constant dense<0.000000e+00> : vector<16x32xf32>
    %17 = tpu.matmul %14, %16, %cst_11 {dimension_numbers = #tpu.dot_dimension_numbers<[1], [0], [0], [1], [0, 0, 1, 1], [], []>} : vector<16x64xbf16>, vector<64x32xbf16>, vector<16x32xf32> -> vector<16x32xf32>
    %18 = arith.addf %4, %17 : vector<16x32xf32>
    %19 = arith.addf %0, %18 : vector<16x32xf32>
    %cst_12 = arith.constant dense<0.000000e+00> : vector<16xf32>
    %20 = vector.multi_reduction <add>, %19, %cst_12 [1] : vector<16x32xf32> to vector<16xf32>
    %21 = vector.shape_cast %20 : vector<16xf32> to vector<16x1xf32>
    %cst_13 = arith.constant 3.200000e+01 : f32
    %22 = vector.broadcast %cst_13 : f32 to vector<16x1xf32>
    %23 = arith.divf %21, %22 : vector<16x1xf32>
    %24 = vector.broadcast %23 : vector<16x1xf32> to vector<16x32xf32>
    %25 = arith.subf %19, %24 : vector<16x32xf32>
    %26 = arith.mulf %25, %25 : vector<16x32xf32>
    %cst_14 = arith.constant dense<0.000000e+00> : vector<16xf32>
    %27 = vector.multi_reduction <add>, %26, %cst_14 [1] : vector<16x32xf32> to vector<16xf32>
    %28 = vector.shape_cast %27 : vector<16xf32> to vector<16x1xf32>
    %cst_15 = arith.constant 3.200000e+01 : f32
    %29 = vector.broadcast %cst_15 : f32 to vector<16x1xf32>
    %30 = arith.divf %28, %29 : vector<16x1xf32>
    %31 = vector.broadcast %23 : vector<16x1xf32> to vector<16x32xf32>
    %32 = arith.subf %19, %31 : vector<16x32xf32>
    %cst_16 = arith.constant 9.99999974E-6 : f32
    %33 = vector.broadcast %cst_16 : f32 to vector<16x1xf32>
    %34 = arith.addf %30, %33 : vector<16x1xf32>
    %35 = math.rsqrt %34 : vector<16x1xf32>
    %36 = vector.broadcast %35 : vector<16x1xf32> to vector<16x32xf32>
    %37 = arith.mulf %32, %36 : vector<16x32xf32>
    %c0_17 = arith.constant 0 : index
    %c0_18 = arith.constant 0 : index
    %38 = vector.load %arg6[%c0_17, %c0_18] : memref<1x32xf32, #tpu.memory_space<vmem>>, vector<1x32xf32>
    %39 = vector.broadcast %38 : vector<1x32xf32> to vector<16x32xf32>
    %40 = arith.mulf %37, %39 : vector<16x32xf32>
    %c0_19 = arith.constant 0 : index
    %c0_20 = arith.constant 0 : index
    %41 = vector.load %arg7[%c0_19, %c0_20] : memref<1x32xf32, #tpu.memory_space<vmem>>, vector<1x32xf32>
    %42 = vector.broadcast %41 : vector<1x32xf32> to vector<16x32xf32>
    %43 = arith.addf %40, %42 : vector<16x32xf32>
    %c0_21 = arith.constant 0 : index
    %c0_22 = arith.constant 0 : index
    %44 = vector.load %arg8[%c0_21, %c0_22] : memref<16x32xf32, #tpu.memory_space<vmem>>, vector<16x32xf32>
    tpu.vector_store %arg8[%c0_21, %c0_22], %43 {strides = array<i32>} : memref<16x32xf32, #tpu.memory_space<vmem>>, vector<16x32xf32>,
    return
  }
  func.func @transform_0(%arg0: i32) -> (i32, i32) {
    %c0_i32 = arith.constant 0 : i32
    %c0_i32_0 = arith.constant 0 : i32
    return %arg0, %c0_i32 : i32, i32
  }
  func.func @transform_1(%arg0: i32) -> (i32, i32) {
    %c0_i32 = arith.constant 0 : i32
    %c0_i32_0 = arith.constant 0 : i32
    %c0_i32_1 = arith.constant 0 : i32
    return %c0_i32, %c0_i32_0 : i32, i32
  }
  func.func @transform_2(%arg0: i32) -> (i32, i32) {
    %c0_i32 = arith.constant 0 : i32
    %c0_i32_0 = arith.constant 0 : i32
    %c0_i32_1 = arith.constant 0 : i32
    return %c0_i32, %c0_i32_0 : i32, i32
  }
  func.func @transform_3(%arg0: i32) -> (i32, i32) {
    %c0_i32 = arith.constant 0 : i32
    %c0_i32_0 = arith.constant 0 : i32
    %c0_i32_1 = arith.constant 0 : i32
    return %c0_i32, %c0_i32_0 : i32, i32
  }
  func.func @transform_4(%arg0: i32) -> (i32, i32) {
    %c0_i32 = arith.constant 0 : i32
    %c0_i32_0 = arith.constant 0 : i32
    %c0_i32_1 = arith.constant 0 : i32
    return %c0_i32, %c0_i32_0 : i32, i32
  }
  func.func @transform_5(%arg0: i32) -> (i32, i32) {
    %c0_i32 = arith.constant 0 : i32
    %c0_i32_0 = arith.constant 0 : i32
    %c0_i32_1 = arith.constant 0 : i32
    return %c0_i32, %c0_i32_0 : i32, i32
  }
  func.func @transform_6(%arg0: i32) -> (i32, i32) {
    %c0_i32 = arith.constant 0 : i32
    %c0_i32_0 = arith.constant 0 : i32
    %c0_i32_1 = arith.constant 0 : i32
    return %c0_i32, %c0_i32_0 : i32, i32
  }
  func.func @transform_7(%arg0: i32) -> (i32, i32) {
    %c0_i32 = arith.constant 0 : i32
    %c0_i32_0 = arith.constant 0 : i32
    return %arg0, %c0_i32 : i32, i32
  }
}

</mosaic_0001>

<bundles_post_ra>
// kernel: bttr_forward.11
= control target key start
LH: loop header
LB: loop body
LE: loop exit
PB: predicated region body
PF: predicated region fallthrough
CT: control target
= control target key end

     0   :  { %vm19_vm0 = vcmask 785408   ;;  %v118_v0 = vmov 0.0   ;;  %vm119_vm1 = vmmov 0   ;;  %vm33_vm2 = vcmask 261120   ;;  %s173_s1 = inlined_call_operand.vmem [shape: f32[32,96], index: 1, kind: input, shape index: {}]   ;;  %s174_s0 = inlined_call_operand.vmem [shape: f32[16,32], index: 0, kind: input, shape index: {}]   ;;  %s175_s2 = inlined_call_operand.vmem [shape: f32[1,96], index: 2, kind: input, shape index: {}]   ;;  %s176_s3 = inlined_call_operand.vmem [shape: f32[16,96], index: 3, kind: output, shape index: {}]  }
   0x1   :  { %108 = vmatprep.subr.bf16.mxu0 %v118_v0  ;;  %v27_v1 = vld [vmem:[%s173_s1] sm:$0xff]  ;;  %v28_v2 = vld [vmem:[%s173_s1 + $0x8] sm:$0xff]  ;;  %v29_v3 = vld [vmem:[%s173_s1 + $0x10] sm:$0xff]  ;;  %112 = vmatprep.mubr.msk.bf16.mxu0 %vm119_vm1, %v118_v0  ;;  %20 = vst.msk [vmem:[#allocation2] sm:$0xff] %vm19_vm0, %v118_v0 }
   0x2   :  { %21 = vst.msk [vmem:[#allocation2 + $0x8] sm:$0xff] %vm19_vm0, %v118_v0  ;;  %v31_v4 = vpack.c.bf16 %v28_v2, %v27_v1  ;;  %v30_v5 = vld [vmem:[%s173_s1 + $0x18] sm:$0xff]  ;;  %v24_v7 = vld [vmem:[%s174_s0] sm:$0xff]  ;;  %v25_v8 = vld [vmem:[%s174_s0 + $0x8] sm:$0xff] }
   0x3   :  { %v32_v6 = vpack.c.bf16 %v30_v5, %v29_v3  ;;  %v26_v9 = vpack.c.bf16 %v25_v8, %v24_v7  ;;  %v104_v18 = vld [vmem:[%s175_s2] ss:$0 sm:$0xff] }
   0x4   :  { %109 = vmatpush3.bf16.msra.mxu0 %v31_v4 }
   0x5   :  { %110 = vmatprep.subr.bf16.mxu0 %v118_v0 }
   0x8   :  { %111 = vmatpush3.bf16.msra.mxu0 %v32_v6  ;;  %v22_v10 = vld [vmem:[#allocation2] sm:$0xff] }
   0x9   :  { %v23_v12 = vld [vmem:[#allocation2 + $0x8] sm:$0xff] }
   0xb   :  { %113 = vmatmul.mubr.msk.bf16.vlgmr.msra.gmra.mrb[0].mxu0 %vm33_vm2, %v26_v9 }
  0xde   :  { %v71_v11 = vpop.f32.mrb[0].mxu0 }
  0xdf   :  { %v78_v13 = vadd.f32 %v71_v11, %v22_v10  ;;  %v114_v14 = vpop.f32.mrb[1].mxu0 }
  0xe0   :  { %v74_v15 = vpop.f32.mrb[2].mxu0 }
  0xe1   :  { %81 = vst.msk [vmem:[#allocation2] sm:$0xff] %vm19_vm0, %v78_v13  ;;  %v79_v16 = vadd.f32 %v74_v15, %v23_v12  ;;  %v115_v17 = vpop.f32.mrb[3].mxu0 }
  0xe3   :  { %82 = vst.msk [vmem:[#allocation2 + $0x8] sm:$0xff] %vm19_vm0, %v79_v16 }
  0xe8   :  { %v86_v19 = vld [vmem:[#allocation2] sm:$0xff] }
  0xe9   :  { %v95_v20 = vadd.f32 %v104_v18, %v86_v19 }
  0xea   :  { %v87_v21 = vld [vmem:[#allocation2 + $0x8] sm:$0xff] }
  0xeb   :  { %97 = vst.msk [vmem:[%s176_s3] sm:$0xff] %vm19_vm0, %v95_v20  ;;  %v96_v22 = vadd.f32 %v104_v18, %v87_v21 }
  0xed   :  { %98 = vst.msk [vmem:[%s176_s3 + $0x8] sm:$0xff] %vm19_vm0, %v96_v22 }

// kernel: bttr_forward.15
= control target key start
LH: loop header
LB: loop body
LE: loop exit
PB: predicated region body
PF: predicated region fallthrough
CT: control target
= control target key end

     0   :  { %vm19_vm0 = vcmask 261120   ;;  %v117_v0 = vmov 0.0   ;;  %vm118_vm1 = vmmov 0   ;;  %s173_s1 = inlined_call_operand.vmem [shape: f32[32,32], index: 1, kind: input, shape index: {}]   ;;  %s174_s0 = inlined_call_operand.vmem [shape: f32[16,32], index: 0, kind: input, shape index: {}]   ;;  %s175_s2 = inlined_call_operand.vmem [shape: f32[1,32], index: 2, kind: input, shape index: {}]   ;;  %s176_s3 = inlined_call_operand.vmem [shape: f32[16,32], index: 3, kind: output, shape index: {}]  }
   0x1   :  { %107 = vmatprep.subr.bf16.mxu0 %v117_v0  ;;  %v27_v1 = vld [vmem:[%s173_s1] sm:$0xff]  ;;  %v28_v2 = vld [vmem:[%s173_s1 + $0x8] sm:$0xff]  ;;  %v29_v3 = vld [vmem:[%s173_s1 + $0x10] sm:$0xff]  ;;  %111 = vmatprep.mubr.msk.bf16.mxu0 %vm118_vm1, %v117_v0  ;;  %20 = vst.msk [vmem:[#allocation2] sm:$0xff] %vm19_vm0, %v117_v0 }
   0x2   :  { %21 = vst.msk [vmem:[#allocation2 + $0x8] sm:$0xff] %vm19_vm0, %v117_v0  ;;  %v31_v4 = vpack.c.bf16 %v28_v2, %v27_v1  ;;  %v30_v5 = vld [vmem:[%s173_s1 + $0x18] sm:$0xff]  ;;  %v24_v7 = vld [vmem:[%s174_s0] sm:$0xff]  ;;  %v25_v8 = vld [vmem:[%s174_s0 + $0x8] sm:$0xff] }
   0x3   :  { %v32_v6 = vpack.c.bf16 %v30_v5, %v29_v3  ;;  %v26_v9 = vpack.c.bf16 %v25_v8, %v24_v7  ;;  %v103_v18 = vld [vmem:[%s175_s2] ss:$0 sm:$0xff] }
   0x4   :  { %108 = vmatpush3.bf16.msra.mxu0 %v31_v4 }
   0x5   :  { %109 = vmatprep.subr.bf16.mxu0 %v117_v0 }
   0x8   :  { %110 = vmatpush3.bf16.msra.mxu0 %v32_v6  ;;  %v22_v10 = vld [vmem:[#allocation2] sm:$0xff] }
   0x9   :  { %v23_v12 = vld [vmem:[#allocation2 + $0x8] sm:$0xff] }
   0xb   :  { %112 = vmatmul.mubr.msk.bf16.vlgmr.msra.gmra.mrb[0].mxu0 %vm19_vm0, %v26_v9 }
  0xde   :  { %v71_v11 = vpop.f32.mrb[0].mxu0 }
  0xdf   :  { %v78_v13 = vadd.f32 %v71_v11, %v22_v10  ;;  %v113_v14 = vpop.f32.mrb[1].mxu0 }
  0xe0   :  { %v74_v15 = vpop.f32.mrb[2].mxu0 }
  0xe1   :  { %80 = vst.msk [vmem:[#allocation2] sm:$0xff] %vm19_vm0, %v78_v13  ;;  %v79_v16 = vadd.f32 %v74_v15, %v23_v12  ;;  %v114_v17 = vpop.f32.mrb[3].mxu0 }
  0xe3   :  { %81 = vst.msk [vmem:[#allocation2 + $0x8] sm:$0xff] %vm19_vm0, %v79_v16 }
  0xe8   :  { %v85_v19 = vld [vmem:[#allocation2] sm:$0xff] }
  0xe9   :  { %v94_v20 = vadd.f32 %v103_v18, %v85_v19 }
  0xea   :  { %v86_v21 = vld [vmem:[#allocation2 + $0x8] sm:$0xff] }
  0xeb   :  { %96 = vst.msk [vmem:[%s176_s3] sm:$0xff] %vm19_vm0, %v94_v20  ;;  %v95_v22 = vadd.f32 %v103_v18, %v86_v21 }
  0xed   :  { %97 = vst.msk [vmem:[%s176_s3 + $0x8] sm:$0xff] %vm19_vm0, %v95_v22 }

// kernel: bttr_forward.13
= control target key start
LH: loop header
LB: loop body
LE: loop exit
PB: predicated region body
PF: predicated region fallthrough
CT: control target
= control target key end

     0   :  { %v161_v0 = vmov 0.0   ;;  %vm162_vm0 = vmmov 0   ;;  %vm40_vm1 = vcmask 261120   ;;  %s244_s1 = inlined_call_operand.vmem [shape: f32[32,32], index: 1, kind: input, shape index: {}]   ;;  %s245_s0 = inlined_call_operand.vmem [shape: f32[16,32], index: 0, kind: input, shape index: {}]   ;;  %s246_s2 = inlined_call_operand.vmem [shape: f32[1,32], index: 2, kind: input, shape index: {}]   ;;  %s247_s3 = inlined_call_operand.vmem [shape: f32[16,32], index: 3, kind: input, shape index: {}]   ;;  %s248_s4 = inlined_call_operand.vmem [shape: f32[1,32], index: 4, kind: input, shape index: {}]   ;;  %s249_s5 = inlined_call_operand.vmem [shape: f32[1,32], index: 5, kind: input, shape index: {}]   ;;  %s250_s6 = inlined_call_operand.vmem [shape: f32[16,32], index: 6, kind: output, shape index: {}]  }
   0x1   :  { %147 = vmatprep.subr.bf16.mxu0 %v161_v0  ;;  %v27_v1 = vld [vmem:[%s244_s1] sm:$0xff]  ;;  %v28_v2 = vld [vmem:[%s244_s1 + $0x8] sm:$0xff]  ;;  %v29_v3 = vld [vmem:[%s244_s1 + $0x10] sm:$0xff]  ;;  %151 = vmatprep.mubr.msk.bf16.mxu0 %vm162_vm0, %v161_v0 }
   0x2   :  { %v31_v4 = vpack.c.bf16 %v28_v2, %v27_v1  ;;  %v30_v5 = vld [vmem:[%s244_s1 + $0x18] sm:$0xff]  ;;  %v24_v7 = vld [vmem:[%s245_s0] sm:$0xff]  ;;  %v25_v8 = vld [vmem:[%s245_s0 + $0x8] sm:$0xff] }
   0x3   :  { %v32_v6 = vpack.c.bf16 %v30_v5, %v29_v3  ;;  %v26_v9 = vpack.c.bf16 %v25_v8, %v24_v7  ;;  %v140_v10 = vld [vmem:[%s246_s2] ss:$0 sm:$0xff]  ;;  %v86_v16 = vld [vmem:[%s247_s3 + $0x8] sm:$0xff] }
   0x4   :  { %148 = vmatpush3.bf16.msra.mxu0 %v31_v4  ;;  %v85_v12 = vld [vmem:[%s247_s3] sm:$0xff] }
   0x5   :  { %149 = vmatprep.subr.bf16.mxu0 %v161_v0  ;;  %v142_v40 = vld [vmem:[%s248_s4] ss:$0 sm:$0xff] }
   0x6   :  { %v143_v42 = vld [vmem:[%s249_s5] ss:$0 sm:$0xff] }
   0x8   :  { %150 = vmatpush3.bf16.msra.mxu0 %v32_v6 }
   0xb   :  { %152 = vmatmul.mubr.msk.bf16.vlgmr.msra.gmra.mrb[0].mxu0 %vm40_vm1, %v26_v9 }
  0xde   :  { %v78_v11 = vpop.f32.mrb[0].mxu0 }
  0xdf   :  { %v79_v13 = vadd.f32 %v140_v10, %v78_v11  ;;  %v153_v14 = vpop.f32.mrb[1].mxu0 }
  0xe0   :  { %v81_v15 = vpop.f32.mrb[2].mxu0 }
  0xe1   :  { %v82_v17 = vadd.f32 %v140_v10, %v81_v15  ;;  %v154_v18 = vpop.f32.mrb[3].mxu0  ;;  %v87_v19 = vadd.f32 %v85_v12, %v79_v13 }
  0xe3   :  { %v89_v20 = vsel %vm40_vm1, %v87_v19, 0.0  ;;  %v88_v21 = vadd.f32 %v86_v16, %v82_v17 }
  0xe4   :  { %90 = vadd.xlane.f32.xlu0 %v89_v20 }
  0xe5   :  { %v92_v22 = vsel %vm40_vm1, %v88_v21, 0.0 }
  0xe8   :  { %93 = vadd.xlane.f32.xlu0 %v92_v22 }
 0x171   :  { %v91_v23 = vpop.xlane.xlu0 %90 }
 0x172   :  { %v96_v24 = vmul.f32 0.03125, %v91_v23 }
 0x174   :  { %v98_v25 = vsub.f32 %v87_v19, %v96_v24 }
 0x175   :  { %v94_v26 = vpop.xlane.xlu0 %93 }
 0x176   :  { %v97_v27 = vmul.f32 0.03125, %v94_v26  ;;  %v100_v28 = vmul.f32 %v98_v25, %v98_v25 }
 0x178   :  { %v99_v29 = vsub.f32 %v88_v21, %v97_v27  ;;  %v102_v30 = vsel %vm40_vm1, %v100_v28, 0.0 }
 0x179   :  { %103 = vadd.xlane.f32.xlu1 %v102_v30 }
 0x17a   :  { %v101_v31 = vmul.f32 %v99_v29, %v99_v29 }
 0x17c   :  { %v105_v32 = vsel %vm40_vm1, %v101_v31, 0.0 }
 0x17d   :  { %106 = vadd.xlane.f32.xlu1 %v105_v32 }
 0x206   :  { %v104_v33 = vpop.xlane.xlu1 %103 }
 0x207   :  { %v108_v34 = vmul.f32 0.03125, %v104_v33 }
 0x209   :  { %v110_v35 = vadd.f32 1e-05, %v108_v34 }
 0x20a   :  { %v107_v36 = vpop.xlane.xlu1 %106 }
 0x20b   :  { %157 = vrsqrt.f32 %v110_v35  ;;  %v109_v37 = vmul.f32 0.03125, %v107_v36 }
 0x20d   :  { %v111_v38 = vadd.f32 1e-05, %v109_v37 }
 0x20f   :  { %159 = vrsqrt.f32 %v111_v38 }
 0x215   :  { %v158_v39 = vpop.eup %157 }
 0x216   :  { %v114_v41 = vmul.f32 %v158_v39, %v98_v25 }
 0x218   :  { %v123_v43 = vmul.f32 %v142_v40, %v114_v41 }
 0x219   :  { %v160_v44 = vpop.eup %159 }
 0x21a   :  { %v132_v45 = vadd.f32 %v143_v42, %v123_v43  ;;  %v115_v46 = vmul.f32 %v160_v44, %v99_v29 }
 0x21c   :  { %134 = vst.msk [vmem:[%s250_s6] sm:$0xff] %vm40_vm1, %v132_v45  ;;  %v124_v47 = vmul.f32 %v142_v40, %v115_v46 }
 0x21e   :  { %v133_v48 = vadd.f32 %v143_v42, %v124_v47 }
 0x220   :  { %135 = vst.msk [vmem:[%s250_s6 + $0x8] sm:$0xff] %vm40_vm1, %v133_v48 }

// kernel: bttr_forward.12
= control target key start
LH: loop header
LB: loop body
LE: loop exit
PB: predicated region body
PF: predicated region fallthrough
CT: control target
= control target key end

     0   :  { %s1166_s12 = smov 0   ;;  %s1168_s13 = smov 0   ;;  %s1353_s0 = inlined_call_operand.vmem [shape: f32[2,8,32], index: 0, kind: input, shape index: {}]   ;;  %s1354_s1 = inlined_call_operand.vmem [shape: f32[2,8,32], index: 1, kind: input, shape index: {}]   ;;  %s1355_s2 = inlined_call_operand.vmem [shape: f32[2,8,32], index: 2, kind: input, shape index: {}]   ;;  %s1356_s3 = inlined_call_operand.vmem [shape: f32[2,8,32], index: 3, kind: output, shape index: {}]  }
   0x1   :  { %s1170_s14 = smov 0  }
   0x2 LB: > { %s25_s15 = sadd.s32 1, %s1130_s13  ;;  %p973_p0 = scmp.ge.s32.totalorder %s1134_s14, 1  ;;  %s1134_s14 = sphi %s1170_s14, %s13_s14   ;;  %s1130_s13 = sphi %s1168_s13, %s1358_s13   ;;  %s1126_s12 = sphi %s1166_s12, %s1357_s12  }
   0x3   : > { %p27_p1 = scmp.ge.s32.totalorder %s25_s15, 2  ;;  %p176_p2 = scmp.lt.s32.totalorder %s1134_s14, 3 }
   0x5   : > { %s1360_s15 = smov (%p27_p1, %s25_s15), 0  ;;  %p177_p3 = pnand %p973_p0, %p176_p2 }
   0x6   : > { %p212_p4 = scmp.lt.s32.totalorder (!%p177_p3), %s1126_s12, 1  ;;  %vm248_vm0 = vcmask (!%p177_p3), 64512   ;;  %v1136_v0 = vmov (!%p177_p3), 0.0   ;;  %vm1137_vm1 = vmmov (!%p177_p3), 0   ;;  %s1138_s23 = smov (!%p177_p3), 120   ;;  %v480_v22 = vlaneseq (!%p177_p3) }
   0x7   : > { %180 = sbr.rel (%p177_p3) target bundleno = 1063 (0x427), region = 32  ;;  %1004 = vmatprep.subr.bf16.mxu0 (!%p177_p3), %v1136_v0  ;;  %249 = vst.msk [vmem:[#allocation4] sm:$0xff] (!%p177_p3), %vm248_vm0, %v1136_v0  ;;  %250 = vst.msk [vmem:[#allocation4 + $0x8] sm:$0xff] (!%p177_p3), %vm248_vm0, %v1136_v0  ;;  %1006 = vmatprep.mubr.msk.bf16.mxu0 (!%p177_p3), %vm1137_vm1, %v1136_v0  ;;  %s1139_s24 = smov (!%p177_p3), 112   ;;  %vm239_vm3 = vcmask (!%p177_p3), 7168   ;;  %v1141_v25 = vmov (!%p177_p3), -inf  }
   0x8   : > { %251 = vst.msk [vmem:[#allocation4 + $0x10] sm:$0xff] (!%p177_p3), %vm248_vm0, %v1136_v0  ;;  %252 = vst.msk [vmem:[#allocation4 + $0x18] sm:$0xff] (!%p177_p3), %vm248_vm0, %v1136_v0  ;;  %1010 = vmatprep.subr.bf16.mxu1 (!%p177_p3), %v1136_v0  ;;  %1012 = vmatprep.mubr.msk.bf16.mxu1 (!%p177_p3), %vm1137_vm1, %v1136_v0  ;;  %s1140_s25 = smov (!%p177_p3), 104   ;;  %v481_v23 = vshrl.u32 (!%p177_p3), %v480_v22, 7  ;;  %v483_v24 = vand.u32 (!%p177_p3), 127, %v480_v22  ;;  %v1142_v32 = vmov (!%p177_p3), 0  }
   0x9   : > { %240 = vst.msk [vmem:[#allocation2] sm:$0xff] (!%p177_p3), %vm239_vm3, %v1141_v25  ;;  %241 = vst.msk [vmem:[#allocation2 + $0x8] sm:$0xff] (!%p177_p3), %vm239_vm3, %v1141_v25  ;;  %1086 = vset.pattern.permute.xlu1 (!%p177_p3), %v1142_v32  ;;  %1087 = vset.pattern.permute.xlu0 (!%p177_p3), %v1142_v32  ;;  %vm626_vm4 = vcmask (!%p177_p3), 1043456   ;;  %s1143_s29 = smov (!%p177_p3), 8   ;;  %s1144_s30 = smov (!%p177_p3), 16   ;;  %vm872_vm5 = vcmask (!%p177_p3), 130048  }
   0xa   : > { %vm487_vm2 = vcmp.ge.s32.totalorder (!%p177_p3), %v481_v23, %v483_v24  ;;  %242 = vst.msk [vmem:[#allocation2 + $0x10] sm:$0xff] (!%p177_p3), %vm239_vm3, %v1141_v25  ;;  %243 = vst.msk [vmem:[#allocation2 + $0x18] sm:$0xff] (!%p177_p3), %vm239_vm3, %v1141_v25  ;;  %s1145_s4 = smov (!%p177_p3), 24   ;;  %vm874_vm6 = vcmask (!%p177_p3), 195584   ;;  %vm876_vm7 = vcmask (!%p177_p3), 261120  }
   0xb   : > { %244 = vst.msk [vmem:[#allocation3] sm:$0xff] (!%p177_p3), %vm239_vm3, %v1136_v0  ;;  %245 = vst.msk [vmem:[#allocation3 + $0x8] sm:$0xff] (!%p177_p3), %vm239_vm3, %v1136_v0 }
   0xc   : > { %246 = vst.msk [vmem:[#allocation3 + $0x10] sm:$0xff] (!%p177_p3), %vm239_vm3, %v1136_v0  ;;  %247 = vst.msk [vmem:[#allocation3 + $0x18] sm:$0xff] (!%p177_p3), %vm239_vm3, %v1136_v0 }
   0xe   : > { %s1362_s12 = smov (!%p212_p4, %s1126_s12), 1 }
   0xf   : > { %s1198_s16 = sshll.u32 %s1362_s12, 3 }
  0x10   : > { %s222_s19 = scalar_lea.vmem %s1354_s1, %s1198_s16  ;;  %s215_s22 = scalar_lea.vmem %s1353_s0, %s1198_s16  ;;  %v1260_v51 = vld [vmem:[#allocation2] sm:$0xff]  ;;  %v1276_v58 = vld [vmem:[#allocation2 + $0x8] sm:$0xff] }
  0x11   : > { %v255_v1 = vld [vmem:[%s222_s19] sm:$0xff]  ;;  %s229_s28 = scalar_lea.vmem %s1355_s2, %s1198_s16  ;;  %v1281_v61 = vld [vmem:[#allocation2 + $0x10] sm:$0xff]  ;;  %s233_s7 = scalar_lea.vmem %s1356_s3, %s1198_s16 }
  0x12   : > { %v253_v2 = vld [vmem:[%s215_s22] sm:$0xff]  ;;  %268 = vrot.lane.b32.xlu0 %v255_v1, %s1138_s23  ;;  %v291_v3 = vpack.c.bf16 %v255_v1, %v255_v1 }
  0x13   : > { %v254_v4 = vmul.f32 0.35355338, %v253_v2  ;;  %v256_v55 = vld [vmem:[%s229_s28] sm:$0xff]  ;;  %v1291_v2 = vld [vmem:[#allocation2 + $0x18] sm:$0xff] }
  0x14   : > { %v300_v5 = vsel %vm248_vm0, %v291_v3, 0  ;;  %v619_v56 = vpack.c.bf16 %v256_v55, %v256_v55 }
  0x15   : > { %258 = vrot.lane.b32.xlu1 %v254_v4, %s1138_s23  ;;  %1005 = vmatpush3.bf16.xpose.msra.mxu0 %v300_v5  ;;  %v287_v6 = vpack.c.bf16 %v254_v4, %v254_v4 }
  0x16   : > { %271 = vrot.lane.b32.xlu0 %v255_v1, %s1139_s24  ;;  %1016 = vmatprep.subr.bf16.mxu0 %v1136_v0  ;;  %v628_v57 = vsel %vm626_vm4, %v619_v56, 0  ;;  %v560_v56 = vld [vmem:[#allocation3 + $0x10] sm:$0xff] }
  0x19   : > { %274 = vrot.lane.b32.xlu1 %v255_v1, %s1140_s25 }
  0x1a   : > { %261 = vrot.lane.b32.xlu0 %v254_v4, %s1139_s24 }
  0x1c   : > { %1007 = vmatmul.mubr.msk.bf16.vlgmr.msra.gmra.mrb[0].mxu0 %vm248_vm0, %v287_v6 }
  0x1d   : > { %264 = vrot.lane.b32.xlu1 %v254_v4, %s1140_s25  ;;  %1018 = vmatprep.mubr.msk.bf16.mxu0 %vm1137_vm1, %v1136_v0 }
  0x84   : > { %v269_v7 = vpop.permute.xlu0 %268 }
  0x85   : > { %v292_v8 = vpack.c.bf16 %v269_v7, %v269_v7 }
  0x87   : > { %v259_v9 = vpop.permute.xlu1 %258  ;;  %v346_v10 = vsel %vm248_vm0, %v292_v8, 0 }
  0x88   : > { %1011 = vmatpush3.bf16.xpose.msra.mxu1 %v346_v10  ;;  %v272_v11 = vpop.permute.xlu0 %271  ;;  %v288_v17 = vpack.c.bf16 %v259_v9, %v259_v9 }
  0x89   : > { %v293_v12 = vpack.c.bf16 %v272_v11, %v272_v11  ;;  %1022 = vmatprep.subr.bf16.mxu1 %v1136_v0 }
  0x8b   : > { %v275_v13 = vpop.permute.xlu1 %274  ;;  %v392_v14 = vsel %vm248_vm0, %v293_v12, 0 }
  0x8c   : > { %v294_v15 = vpack.c.bf16 %v275_v13, %v275_v13  ;;  %1017 = vmatpush3.bf16.xpose.msra.mxu0 %v392_v14  ;;  %v262_v16 = vpop.permute.xlu0 %261 }
  0x8d   : > { %1028 = vmatprep.subr.bf16.mxu0 %v1136_v0  ;;  %v289_v19 = vpack.c.bf16 %v262_v16, %v262_v16 }
  0x8e   : > { %v438_v18 = vsel %vm248_vm0, %v294_v15, 0 }
  0x8f   : > { %1013 = vmatmul.mubr.msk.bf16.vlgmr.msra.gmra.mrb[0].mxu1 %vm248_vm0, %v288_v17  ;;  %v265_v20 = vpop.permute.xlu1 %264 }
  0x90   : > { %1023 = vmatpush3.bf16.xpose.msra.mxu1 %v438_v18  ;;  %1024 = vmatprep.mubr.msk.bf16.mxu1 %vm1137_vm1, %v1136_v0  ;;  %v290_v21 = vpack.c.bf16 %v265_v20, %v265_v20 }
  0x91   : > { %1034 = vmatprep.subr.bf16.mxu1 %v1136_v0 }
  0x93   : > { %1019 = vmatmul.mubr.msk.bf16.vlgmr.msra.gmra.mrb[4].mxu0 %vm248_vm0, %v289_v19 }
  0x94   : > { %1030 = vmatprep.mubr.msk.bf16.mxu0 %vm1137_vm1, %v1136_v0  ;;  %1029 = vmatpush3.bf16.msra.mxu0 %v628_v57 }
  0x95   : > { %1040 = vmatprep.subr.bf16.mxu0 %v1136_v0 }
  0x97   : > { %1025 = vmatmul.mubr.msk.bf16.vlgmr.msra.gmra.mrb[4].mxu1 %vm248_vm0, %v290_v21 }
  0x98   : > { %1036 = vmatprep.mubr.msk.bf16.mxu1 %vm1137_vm1, %v1136_v0 }
  0xef   : > { %v336_v26 = vpop.f32.mrb[0].mxu0 }
  0xf0   : > { %v1247_v27 = vsel %vm487_vm2, %v336_v26, -1e+09  ;;  %v1008_v28 = vpop.f32.mrb[1].mxu0 }
  0xf1   : > { %v498_v29 = vsel %vm248_vm0, %v1247_v27, -inf  ;;  %v339_v30 = vpop.f32.mrb[2].mxu0 }
  0xf2   : > { %499 = vmax.xlane.f32.xlu0 %v498_v29  ;;  %v1009_v31 = vpop.f32.mrb[3].mxu0 }
 0x162   : > { %v382_v33 = vpop.f32.mrb[0].mxu1 }
 0x163   : > { %v1252_v34 = vsel %vm487_vm2, %v382_v33, -1e+09  ;;  %v1014_v35 = vpop.f32.mrb[1].mxu1 }
 0x164   : > { %v385_v36 = vpop.f32.mrb[2].mxu1  ;;  %v501_v37 = vsel %vm248_vm0, %v1252_v34, -inf }
 0x165   : > { %502 = vmax.xlane.f32.xlu1 %v501_v37  ;;  %v1015_v38 = vpop.f32.mrb[3].mxu1 }
 0x166   : > { %v428_v39 = vpop.f32.mrb[4].mxu0 }
 0x167   : > { %v492_v40 = vsel %vm487_vm2, %v428_v39, -1e+09  ;;  %v1020_v41 = vpop.f32.mrb[5].mxu0 }
 0x168   : > { %v431_v42 = vpop.f32.mrb[6].mxu0  ;;  %v504_v43 = vsel %vm248_vm0, %v492_v40, -inf }
 0x169   : > { %505 = vmax.xlane.f32.xlu0 %v504_v43  ;;  %v1021_v44 = vpop.f32.mrb[7].mxu0 }
 0x16a   : > { %v474_v45 = vpop.f32.mrb[4].mxu1 }
 0x16b   : > { %v493_v46 = vsel %vm487_vm2, %v474_v45, -1e+09  ;;  %v1026_v47 = vpop.f32.mrb[5].mxu1 }
 0x16c   : > { %v477_v48 = vpop.f32.mrb[6].mxu1  ;;  %v507_v49 = vsel %vm248_vm0, %v493_v46, -inf }
 0x16d   : > { %v1027_v50 = vpop.f32.mrb[7].mxu1  ;;  %508 = vmax.xlane.f32.xlu0 %v507_v49 }
 0x16e   : > { %v559_v50 = vld [vmem:[#allocation3 + $0x8] sm:$0xff] }
 0x17f   : > { %v500_v52 = vpop.xlane.xlu0 %499 }
 0x180   : > { %v1263_v53 = vmax.f32 %v1260_v51, %v500_v52 }
 0x182   : > { %v514_v54 = vsub.f32 %v1260_v51, %v1263_v53  ;;  %816 = vst.msk [vmem:[#allocation2] sm:$0xff] %vm239_vm3, %v1263_v53  ;;  %528 = vperm.xlu1 %1086, %v1263_v53  }
 0x184   : > { %v518_v49 = vmul.f32 1.442695, %v514_v54 }
 0x1f2   : > { %v503_v59 = vpop.xlane.xlu1 %502 }
 0x1f3   : > { %v1279_v60 = vmax.f32 %v1276_v58, %v503_v59 }
 0x1f5   : > { %v515_v62 = vsub.f32 %v1276_v58, %v1279_v60  ;;  %817 = vst.msk [vmem:[#allocation2 + $0x8] sm:$0xff] %vm239_vm3, %v1279_v60  ;;  %533 = vperm.xlu0 %1087, %v1279_v60   ;;  %v561_v60 = vld [vmem:[#allocation3 + $0x18] sm:$0xff] }
 0x1f6   : > { %v506_v63 = vpop.xlane.xlu0 %505 }
 0x1f7   : > { %v1289_v1 = vmax.f32 %v1281_v61, %v506_v63  ;;  %v520_v39 = vmul.f32 1.442695, %v515_v62 }
 0x1f9   : > { %v516_v3 = vsub.f32 %v1281_v61, %v1289_v1  ;;  %818 = vst.msk [vmem:[#allocation2 + $0x10] sm:$0xff] %vm239_vm3, %v1289_v1  ;;  %538 = vperm.xlu1 %1086, %v1289_v1  }
 0x1fa   : > { %v509_v4 = vpop.xlane.xlu0 %508 }
 0x1fb   : > { %v513_v5 = vmax.f32 %v1291_v2, %v509_v4 }
 0x1fd   : > { %v517_v6 = vsub.f32 %v1291_v2, %v513_v5  ;;  %819 = vst.msk [vmem:[#allocation2 + $0x18] sm:$0xff] %vm239_vm3, %v513_v5  ;;  %543 = vperm.xlu1 %1086, %v513_v5   ;;  %v558_v2 = vld [vmem:[#allocation3] sm:$0xff] }
 0x1ff   : > { %v524_v41 = vmul.f32 1.442695, %v517_v6 }
 0x201   : > { %v529_v7 = vpop.permute.xlu1 %528  ;;  %278 = vrot.lane.b32.xlu1 %v256_v55, %s1138_s23 }
 0x202   : > { %v546_v8 = vsub.f32 %v1247_v27, %v529_v7 }
 0x204   : > { %v550_v9 = vmul.f32 1.442695, %v546_v8 }
 0x205   : > { %281 = vrot.lane.b32.xlu1 %v256_v55, %s1139_s24 }
 0x206   : > { %1088 = vpow2.f32 %v550_v9 }
 0x209   : > { %284 = vrot.lane.b32.xlu1 %v256_v55, %s1140_s25 }
 0x210   : > { %v1089_v10 = vpop.eup %1088 }
 0x211   : > { %v615_v11 = vpack.c.bf16 %v1089_v10, %v1089_v10 }
 0x213   : > { %1031 = vmatmul.mubr.msk.bf16.vlgmr.msra.gmra.mrb[8].mxu0 %vm248_vm0, %v615_v11 }
 0x214   : > { %1042 = vmatprep.mubr.msk.bf16.mxu0 %vm1137_vm1, %v1136_v0 }
 0x274   : > { %v534_v12 = vpop.permute.xlu0 %533 }
 0x275   : > { %v547_v13 = vsub.f32 %v1252_v34, %v534_v12  ;;  %v588_v12 = vld [vmem:[#allocation4 + $0x8] sm:$0xff] }
 0x277   : > { %v552_v14 = vmul.f32 1.442695, %v547_v13 }
 0x278   : > { %v539_v15 = vpop.permute.xlu1 %538 }
 0x279   : > { %1090 = vpow2.f32 %v552_v14  ;;  %v548_v16 = vsub.f32 %v492_v40, %v539_v15  ;;  %v522_v40 = vmul.f32 1.442695, %v516_v3 }
 0x27b   : > { %v554_v17 = vmul.f32 1.442695, %v548_v16  ;;  %v589_v16 = vld [vmem:[#allocation4 + $0x10] sm:$0xff] }
 0x27c   : > { %v544_v18 = vpop.permute.xlu1 %543 }
 0x27d   : > { %1092 = vpow2.f32 %v554_v17  ;;  %v549_v19 = vsub.f32 %v493_v46, %v544_v18 }
 0x27f   : > { %v556_v20 = vmul.f32 1.442695, %v549_v19 }
 0x280   : > { %v279_v21 = vpop.permute.xlu1 %278 }
 0x281   : > { %1094 = vpow2.f32 %v556_v20  ;;  %v620_v22 = vpack.c.bf16 %v279_v21, %v279_v21 }
 0x282   : > { %1096 = vpow2.f32 %v520_v39 }
 0x283   : > { %v1091_v23 = vpop.eup %1090  ;;  %v674_v24 = vsel %vm626_vm4, %v620_v22, 0  ;;  %1098 = vpow2.f32 %v522_v40 }
 0x284   : > { %1035 = vmatpush3.bf16.msra.mxu1 %v674_v24  ;;  %v282_v25 = vpop.permute.xlu1 %281  ;;  %v569_v26 = vsel %vm248_vm0, %v1091_v23, 0.0  ;;  %v616_v27 = vpack.c.bf16 %v1091_v23, %v1091_v23  ;;  %1100 = vpow2.f32 %v524_v41  ;;  %v590_v23 = vld [vmem:[#allocation4 + $0x18] sm:$0xff]  ;;  %v587_v41 = vld [vmem:[#allocation4] sm:$0xff] }
 0x285   : > { %v621_v28 = vpack.c.bf16 %v282_v25, %v282_v25  ;;  %570 = vadd.xlane.f32.xlu1 %v569_v26  ;;  %1046 = vmatprep.subr.bf16.mxu1 %v1136_v0  ;;  %1102 = vpow2.f32 %v518_v49 }
 0x287   : > { %v1093_v29 = vpop.eup %1092  ;;  %v720_v30 = vsel %vm626_vm4, %v621_v28, 0  ;;  %1037 = vmatmul.mubr.msk.bf16.vlgmr.msra.gmra.mrb[8].mxu1 %vm248_vm0, %v616_v27 }
 0x288   : > { %1041 = vmatpush3.bf16.msra.mxu0 %v720_v30  ;;  %v285_v31 = vpop.permute.xlu1 %284  ;;  %v572_v32 = vsel %vm248_vm0, %v1093_v29, 0.0  ;;  %v617_v33 = vpack.c.bf16 %v1093_v29, %v1093_v29  ;;  %1048 = vmatprep.mubr.msk.bf16.mxu1 %vm1137_vm1, %v1136_v0  ;;  %v566_v0 = vsel %vm248_vm0, %v1089_v10, 0.0 }
 0x289   : > { %v622_v34 = vpack.c.bf16 %v285_v31, %v285_v31  ;;  %573 = vadd.xlane.f32.xlu0 %v572_v32 }
 0x28b   : > { %v1095_v35 = vpop.eup %1094  ;;  %v766_v36 = vsel %vm626_vm4, %v622_v34, 0  ;;  %1043 = vmatmul.mubr.msk.bf16.vlgmr.msra.gmra.mrb[12].mxu0 %vm248_vm0, %v617_v33 }
 0x28c   : > { %1047 = vmatpush3.bf16.msra.mxu1 %v766_v36  ;;  %v575_v37 = vsel %vm248_vm0, %v1095_v35, 0.0  ;;  %v618_v38 = vpack.c.bf16 %v1095_v35, %v1095_v35  ;;  %v1097_v42 = vpop.eup %1096 }
 0x28d   : > { %576 = vadd.xlane.f32.xlu1 %v575_v37  ;;  %v1099_v43 = vpop.eup %1098  ;;  %v563_v52 = vmul.f32 %v1097_v42, %v559_v50 }
 0x28e   : > { %v1101_v44 = vpop.eup %1100  ;;  %v564_v58 = vmul.f32 %v1099_v43, %v560_v56 }
 0x28f   : > { %1049 = vmatmul.mubr.msk.bf16.vlgmr.msra.gmra.mrb[12].mxu1 %vm248_vm0, %v618_v38  ;;  %v565_v62 = vmul.f32 %v1101_v44, %v561_v60  ;;  %v1103_v63 = vpop.eup %1102 }
 0x290   : > { %v562_v54 = vmul.f32 %v1103_v63, %v558_v2 }
 0x291   : > { %567 = vadd.xlane.f32.xlu1 %v566_v0 }
 0x29f   : > { %598 = vperm.xlu0 %1087, %v1097_v42  }
 0x2a2   : > { %603 = vperm.xlu1 %1086, %v1099_v43  }
 0x2a6   : > { %608 = vperm.xlu1 %1086, %v1101_v44  }
 0x2e6   : > { %v1325_v45 = vpop.f32.mrb[8].mxu0 }
 0x2e7   : > { %v1032_v46 = vpop.f32.mrb[9].mxu0 }
 0x2e8   : > { %v667_v47 = vpop.f32.mrb[10].mxu0 }
 0x2e9   : > { %v1033_v48 = vpop.f32.mrb[11].mxu0 }
 0x312   : > { %v571_v55 = vpop.xlane.xlu1 %570 }
 0x313   : > { %v579_v57 = vadd.f32 %v571_v55, %v563_v52 }
 0x315   : > { %584 = vst.msk [vmem:[#allocation3 + $0x8] sm:$0xff] %vm239_vm3, %v579_v57 }
 0x316   : > { %v574_v59 = vpop.xlane.xlu0 %573 }
 0x317   : > { %v580_v61 = vadd.f32 %v574_v59, %v564_v58 }
 0x319   : > { %585 = vst.msk [vmem:[#allocation3 + $0x10] sm:$0xff] %vm239_vm3, %v580_v61 }
 0x31a   : > { %v577_v1 = vpop.xlane.xlu1 %576 }
 0x31b   : > { %v581_v51 = vadd.f32 %v577_v1, %v565_v62 }
 0x31c   : > { %v828_v53 = vld [vmem:[#allocation3 + $0x8] sm:$0xff] }
 0x31d   : > { %586 = vst.msk [vmem:[#allocation3 + $0x18] sm:$0xff] %vm239_vm3, %v581_v51  ;;  %1104 = vrcp.f32 %v828_v53 }
 0x31e   : > { %v568_v3 = vpop.xlane.xlu1 %567  ;;  %v599_v13 = vpop.permute.xlu0 %598 }
 0x31f   : > { %v578_v4 = vadd.f32 %v568_v3, %v562_v54  ;;  %v612_v15 = vmul.f32 %v599_v13, %v588_v12 }
 0x320   : > { %v829_v5 = vld [vmem:[#allocation3 + $0x10] sm:$0xff] }
 0x321   : > { %583 = vst.msk [vmem:[#allocation3] sm:$0xff] %vm239_vm3, %v578_v4  ;;  %1106 = vrcp.f32 %v829_v5 }
 0x322   : > { %v604_v14 = vpop.permute.xlu1 %603 }
 0x323   : > { %v613_v21 = vmul.f32 %v604_v14, %v589_v16 }
 0x324   : > { %v830_v6 = vld [vmem:[#allocation3 + $0x18] sm:$0xff] }
 0x325   : > { %1108 = vrcp.f32 %v830_v6 }
 0x326   : > { %v609_v24 = vpop.permute.xlu1 %608 }
 0x327   : > { %v1105_v7 = vpop.eup %1104  ;;  %v614_v29 = vmul.f32 %v609_v24, %v590_v23 }
 0x328   : > { %842 = vperm.xlu0 %1087, %v1105_v7   ;;  %v827_v8 = vld [vmem:[#allocation3] sm:$0xff] }
 0x329   : > { %1110 = vrcp.f32 %v827_v8 }
 0x32b   : > { %v1107_v9 = vpop.eup %1106 }
 0x32c   : > { %847 = vperm.xlu1 %1086, %v1107_v9  }
 0x32f   : > { %v1109_v10 = vpop.eup %1108 }
 0x330   : > { %852 = vperm.xlu0 %1087, %v1109_v10   ;;  %593 = vperm.xlu1 %1086, %v1103_v63  }
 0x333   : > { %v1111_v11 = vpop.eup %1110 }
 0x334   : > { %837 = vperm.xlu0 %1087, %v1111_v11  }
 0x35a   : > { %v710_v17 = vpop.f32.mrb[8].mxu1 }
 0x35b   : > { %v809_v18 = vadd.f32 %v710_v17, %v612_v15  ;;  %v1038_v19 = vpop.f32.mrb[9].mxu1 }
 0x35c   : > { %v713_v20 = vpop.f32.mrb[10].mxu1 }
 0x35d   : > { %813 = vst.msk [vmem:[#allocation4 + $0x8] sm:$0xff] %vm248_vm0, %v809_v18  ;;  %v1039_v22 = vpop.f32.mrb[11].mxu1 }
 0x35e   : > { %v756_v25 = vpop.f32.mrb[12].mxu0 }
 0x35f   : > { %v810_v26 = vadd.f32 %v756_v25, %v613_v21  ;;  %v1044_v27 = vpop.f32.mrb[13].mxu0 }
 0x360   : > { %v759_v28 = vpop.f32.mrb[14].mxu0 }
 0x361   : > { %814 = vst.msk [vmem:[#allocation4 + $0x10] sm:$0xff] %vm248_vm0, %v810_v26  ;;  %v1045_v30 = vpop.f32.mrb[15].mxu0 }
 0x362   : > { %v802_v31 = vpop.f32.mrb[12].mxu1 }
 0x363   : > { %v811_v32 = vadd.f32 %v802_v31, %v614_v29  ;;  %v1050_v33 = vpop.f32.mrb[13].mxu1 }
 0x364   : > { %v805_v34 = vpop.f32.mrb[14].mxu1  ;;  %v824_v36 = vld [vmem:[#allocation4 + $0x8] sm:$0xff] }
 0x365   : > { %815 = vst.msk [vmem:[#allocation4 + $0x18] sm:$0xff] %vm248_vm0, %v811_v32  ;;  %v1051_v35 = vpop.f32.mrb[15].mxu1 }
 0x368   : > { %v825_v0 = vld [vmem:[#allocation4 + $0x10] sm:$0xff] }
 0x36c   : > { %v826_v43 = vld [vmem:[#allocation4 + $0x18] sm:$0xff] }
 0x3a7   : > { %v843_v37 = vpop.permute.xlu0 %842 }
 0x3a8   : > { %v856_v38 = vmul.f32 %v843_v37, %v824_v36 }
 0x3aa   : > { %860 = vrot.lane.b32.xlu1 %v856_v38, %s1143_s29 }
 0x3ab   : > { %v848_v39 = vpop.permute.xlu1 %847 }
 0x3ac   : > { %v857_v40 = vmul.f32 %v848_v39, %v825_v0 }
 0x3ae   : > { %864 = vrot.lane.b32.xlu0 %v857_v40, %s1144_s30 }
 0x3af   : > { %v594_v42 = vpop.permute.xlu1 %593  ;;  %v853_v44 = vpop.permute.xlu0 %852 }
 0x3b0   : > { %v611_v46 = vmul.f32 %v594_v42, %v587_v41  ;;  %v858_v47 = vmul.f32 %v853_v44, %v826_v43 }
 0x3b2   : > { %v808_v48 = vadd.f32 %v1325_v45, %v611_v46  ;;  %868 = vrot.lane.b32.xlu1 %v858_v47, %s1145_s4 }
 0x3b3   : > { %v838_v49 = vpop.permute.xlu0 %837 }
 0x3b4   : > { %812 = vst.msk [vmem:[#allocation4] sm:$0xff] %vm248_vm0, %v808_v48 }
 0x3bb   : > { %v823_v50 = vld [vmem:[#allocation4] sm:$0xff] }
 0x3bc   : > { %v855_v55 = vmul.f32 %v838_v49, %v823_v50 }
 0x41c   : > { %v861_v52 = vpop.permute.xlu1 %860 }
 0x41d   : > { %v871_v57 = vsel %vm248_vm0, %v855_v55, %v861_v52 }
 0x420   : > { %v865_v56 = vpop.permute.xlu0 %864 }
 0x421   : > { %v873_v58 = vsel %vm872_vm5, %v871_v57, %v865_v56 }
 0x424   : > { %v869_v45 = vpop.permute.xlu1 %868 }
 0x425   : > { %v875_v59 = vsel %vm874_vm6, %v873_v58, %v869_v45 }
 0x426   : > { %877 = vst.msk [vmem:[%s233_s7] sm:$0xff] %vm876_vm7, %v875_v59 }
 0x427 PF: > { %s13_s14 = sadd.s32 1, %s1134_s14   ;;  %s1357_s12 = smov %s1130_s13 }
 0x428   : > { %p10_p5 = scmp.ge.s32.totalorder %s13_s14, 4   ;;  %s1358_s13 = smov %s1360_s15 }
 0x42a   :  { %12 = sbr.rel (!%p10_p5) target bundleno = 2 (0x2), region = 76 }

// kernel: bttr_forward.14
= control target key start
LH: loop header
LB: loop body
LE: loop exit
PB: predicated region body
PF: predicated region fallthrough
CT: control target
= control target key end

     0   :  { %vm19_vm0 = vcmask 523264   ;;  %v343_v3 = vmov 0.0   ;;  %vm82_vm1 = vcmask 261120   ;;  %s549_s1 = inlined_call_operand.vmem [shape: f32[32,64], index: 1, kind: input, shape index: {}]   ;;  %s550_s0 = inlined_call_operand.vmem [shape: f32[128,32], index: 0, kind: input, shape index: {}]   ;;  %s551_s2 = inlined_call_operand.vmem [shape: f32[1,64], index: 2, kind: input, shape index: {}]   ;;  %s552_s3 = inlined_call_operand.vmem [shape: f32[128,64], index: 3, kind: output, shape index: {}]  }
   0x1   :  { %v76_v0 = vld [vmem:[%s549_s1] sm:$0xff]  ;;  %v77_v1 = vld [vmem:[%s549_s1 + $0x8] sm:$0xff]  ;;  %v78_v2 = vld [vmem:[%s549_s1 + $0x10] sm:$0xff]  ;;  %22 = vst.msk [vmem:[#allocation2 + $0x10] sm:$0xff] %vm19_vm0, %v343_v3 }
   0x2   :  { %20 = vst.msk [vmem:[#allocation2] sm:$0xff] %vm19_vm0, %v343_v3  ;;  %21 = vst.msk [vmem:[#allocation2 + $0x8] sm:$0xff] %vm19_vm0, %v343_v3  ;;  %v80_v4 = vpack.c.bf16 %v77_v1, %v76_v0  ;;  %v79_v5 = vld [vmem:[%s549_s1 + $0x18] sm:$0xff]  ;;  %v52_v6 = vld [vmem:[%s550_s0] sm:$0xff] }
   0x3   :  { %23 = vst.msk [vmem:[#allocation2 + $0x18] sm:$0xff] %vm19_vm0, %v343_v3  ;;  %24 = vst.msk [vmem:[#allocation2 + $0x20] sm:$0xff] %vm19_vm0, %v343_v3  ;;  %v53_v7 = vld [vmem:[%s550_s0 + $0x8] sm:$0xff]  ;;  %v81_v8 = vpack.c.bf16 %v79_v5, %v78_v2  ;;  %v60_v10 = vld [vmem:[%s550_s0 + $0x40] sm:$0xff] }
   0x4   :  { %25 = vst.msk [vmem:[#allocation2 + $0x28] sm:$0xff] %vm19_vm0, %v343_v3  ;;  %26 = vst.msk [vmem:[#allocation2 + $0x30] sm:$0xff] %vm19_vm0, %v343_v3  ;;  %v68_v9 = vpack.c.bf16 %v53_v7, %v52_v6  ;;  %v61_v11 = vld [vmem:[%s550_s0 + $0x48] sm:$0xff]  ;;  %318 = vmatprep.subr.bf16.mxu0 %v80_v4  ;;  %338 = vmatprep.subr.bf16.mxu1 %v80_v4  ;;  %v54_v13 = vld [vmem:[%s550_s0 + $0x10] sm:$0xff] }
   0x5   :  { %27 = vst.msk [vmem:[#allocation2 + $0x38] sm:$0xff] %vm19_vm0, %v343_v3  ;;  %28 = vst.msk [vmem:[#allocation2 + $0x40] sm:$0xff] %vm19_vm0, %v343_v3  ;;  %v72_v12 = vpack.c.bf16 %v61_v11, %v60_v10  ;;  %v55_v14 = vld [vmem:[%s550_s0 + $0x18] sm:$0xff]  ;;  %319 = vmatpush3.bf16.msra.mxu0 %v80_v4  ;;  %340 = vmatpush3.bf16.msra.mxu1 %v80_v4  ;;  %v62_v15 = vld [vmem:[%s550_s0 + $0x50] sm:$0xff] }
   0x6   :  { %29 = vst.msk [vmem:[#allocation2 + $0x48] sm:$0xff] %vm19_vm0, %v343_v3  ;;  %30 = vst.msk [vmem:[#allocation2 + $0x50] sm:$0xff] %vm19_vm0, %v343_v3  ;;  %v63_v16 = vld [vmem:[%s550_s0 + $0x58] sm:$0xff]  ;;  %v56_v17 = vld [vmem:[%s550_s0 + $0x20] sm:$0xff]  ;;  %320 = vmatprep.subr.bf16.mxu0 %v81_v8  ;;  %339 = vmatprep.subr.bf16.mxu1 %v81_v8  ;;  %v69_v21 = vpack.c.bf16 %v55_v14, %v54_v13 }
   0x7   :  { %31 = vst.msk [vmem:[#allocation2 + $0x58] sm:$0xff] %vm19_vm0, %v343_v3  ;;  %32 = vst.msk [vmem:[#allocation2 + $0x60] sm:$0xff] %vm19_vm0, %v343_v3  ;;  %v57_v18 = vld [vmem:[%s550_s0 + $0x28] sm:$0xff]  ;;  %v64_v19 = vld [vmem:[%s550_s0 + $0x60] sm:$0xff]  ;;  %322 = vmatprep.mubr.msk.bf16.mxu0 %vm82_vm1, %v68_v9  ;;  %330 = vmatprep.mubr.msk.bf16.mxu1 %vm82_vm1, %v72_v12  ;;  %v73_v22 = vpack.c.bf16 %v63_v16, %v62_v15 }
   0x8   :  { %33 = vst.msk [vmem:[#allocation2 + $0x68] sm:$0xff] %vm19_vm0, %v343_v3  ;;  %34 = vst.msk [vmem:[#allocation2 + $0x70] sm:$0xff] %vm19_vm0, %v343_v3  ;;  %v65_v20 = vld [vmem:[%s550_s0 + $0x68] sm:$0xff]  ;;  %v70_v23 = vpack.c.bf16 %v57_v18, %v56_v17  ;;  %v58_v25 = vld [vmem:[%s550_s0 + $0x30] sm:$0xff] }
   0x9   :  { %35 = vst.msk [vmem:[#allocation2 + $0x78] sm:$0xff] %vm19_vm0, %v343_v3  ;;  %321 = vmatpush3.bf16.msra.mxu0 %v81_v8  ;;  %341 = vmatpush3.bf16.msra.mxu1 %v81_v8  ;;  %v74_v24 = vpack.c.bf16 %v65_v20, %v64_v19  ;;  %v59_v26 = vld [vmem:[%s550_s0 + $0x38] sm:$0xff]  ;;  %v66_v27 = vld [vmem:[%s550_s0 + $0x70] sm:$0xff]  ;;  %v36_v33 = vld [vmem:[#allocation2] sm:$0xff] }
   0xa   :  { %v67_v28 = vld [vmem:[%s550_s0 + $0x78] sm:$0xff]  ;;  %v71_v29 = vpack.c.bf16 %v59_v26, %v58_v25  ;;  %v38_v31 = vld [vmem:[#allocation2 + $0x10] sm:$0xff]  ;;  %v37_v43 = vld [vmem:[#allocation2 + $0x8] sm:$0xff] }
   0xb   :  { %v75_v30 = vpack.c.bf16 %v67_v28, %v66_v27  ;;  %v39_v37 = vld [vmem:[#allocation2 + $0x18] sm:$0xff]  ;;  %v42_v55 = vld [vmem:[#allocation2 + $0x30] sm:$0xff]  ;;  %v40_v57 = vld [vmem:[#allocation2 + $0x20] sm:$0xff] }
   0xc   :  { %323 = vmatmul.mubr.msk.bf16.vlgmr.msra.gmra.mrb[0].mxu0 %vm82_vm1, %v69_v21  ;;  %331 = vmatmul.mubr.msk.bf16.vlgmr.msra.gmra.mrb[0].mxu1 %vm82_vm1, %v73_v22  ;;  %v44_v34 = vld [vmem:[#allocation2 + $0x40] sm:$0xff]  ;;  %v43_v62 = vld [vmem:[#allocation2 + $0x38] sm:$0xff]  ;;  %v41_v4 = vld [vmem:[#allocation2 + $0x28] sm:$0xff] }
   0xd   :  { %326 = vmatprep.mubr.msk.bf16.mxu0 %vm82_vm1, %v70_v23  ;;  %334 = vmatprep.mubr.msk.bf16.mxu1 %vm82_vm1, %v74_v24  ;;  %v46_v32 = vld [vmem:[#allocation2 + $0x50] sm:$0xff]  ;;  %v45_v44 = vld [vmem:[#allocation2 + $0x48] sm:$0xff]  ;;  %v459_v59 = vld [vmem:[%s551_s2] ss:$0 sm:$0xff] }
   0xe   :  { %v47_v38 = vld [vmem:[#allocation2 + $0x58] sm:$0xff]  ;;  %v48_v58 = vld [vmem:[#allocation2 + $0x60] sm:$0xff] }
   0xf   :  { %v50_v56 = vld [vmem:[#allocation2 + $0x70] sm:$0xff]  ;;  %v49_v5 = vld [vmem:[#allocation2 + $0x68] sm:$0xff] }
  0x10   :  { %v51_v63 = vld [vmem:[#allocation2 + $0x78] sm:$0xff] }
  0x14   :  { %327 = vmatmul.mubr.msk.bf16.gmra.mrb[4].mxu0 %vm82_vm1, %v71_v29  ;;  %335 = vmatmul.mubr.msk.bf16.gmra.mrb[4].mxu1 %vm82_vm1, %v75_v30 }
  0xdf   :  { %v324_v35 = vpop.f32.mrb[0].mxu0  ;;  %v332_v36 = vpop.f32.mrb[0].mxu1 }
  0xe0   :  { %v206_v39 = vadd.f32 %v324_v35, %v38_v31  ;;  %v214_v40 = vadd.f32 %v332_v36, %v46_v32  ;;  %v141_v41 = vpop.f32.mrb[1].mxu0  ;;  %v173_v42 = vpop.f32.mrb[1].mxu1 }
  0xe1   :  { %v204_v45 = vadd.f32 %v141_v41, %v36_v33  ;;  %v212_v46 = vadd.f32 %v173_v42, %v44_v34  ;;  %v325_v47 = vpop.f32.mrb[2].mxu0  ;;  %v333_v48 = vpop.f32.mrb[2].mxu1 }
  0xe2   :  { %223 = vst.msk [vmem:[#allocation2 + $0x10] sm:$0xff] %vm19_vm0, %v206_v39  ;;  %231 = vst.msk [vmem:[#allocation2 + $0x50] sm:$0xff] %vm19_vm0, %v214_v40  ;;  %v207_v49 = vadd.f32 %v325_v47, %v39_v37  ;;  %v215_v50 = vadd.f32 %v333_v48, %v47_v38  ;;  %v144_v51 = vpop.f32.mrb[3].mxu0  ;;  %v176_v52 = vpop.f32.mrb[3].mxu1 }
  0xe3   :  { %221 = vst.msk [vmem:[#allocation2] sm:$0xff] %vm19_vm0, %v204_v45  ;;  %229 = vst.msk [vmem:[#allocation2 + $0x40] sm:$0xff] %vm19_vm0, %v212_v46  ;;  %v205_v53 = vadd.f32 %v144_v51, %v37_v43  ;;  %v213_v54 = vadd.f32 %v176_v52, %v45_v44 }
  0xe4   :  { %224 = vst.msk [vmem:[#allocation2 + $0x18] sm:$0xff] %vm19_vm0, %v207_v49  ;;  %232 = vst.msk [vmem:[#allocation2 + $0x58] sm:$0xff] %vm19_vm0, %v215_v50 }
  0xe5   :  { %222 = vst.msk [vmem:[#allocation2 + $0x8] sm:$0xff] %vm19_vm0, %v205_v53  ;;  %230 = vst.msk [vmem:[#allocation2 + $0x48] sm:$0xff] %vm19_vm0, %v213_v54 }
  0xe7   :  { %v328_v60 = vpop.f32.mrb[4].mxu0  ;;  %v336_v61 = vpop.f32.mrb[4].mxu1 }
  0xe8   :  { %v210_v0 = vadd.f32 %v328_v60, %v42_v55  ;;  %v218_v1 = vadd.f32 %v336_v61, %v50_v56  ;;  %v157_v2 = vpop.f32.mrb[5].mxu0  ;;  %v189_v3 = vpop.f32.mrb[5].mxu1 }
  0xe9   :  { %v242_v6 = vld [vmem:[#allocation2 + $0x10] sm:$0xff]  ;;  %v208_v8 = vadd.f32 %v157_v2, %v40_v57  ;;  %v216_v9 = vadd.f32 %v189_v3, %v48_v58  ;;  %v329_v10 = vpop.f32.mrb[6].mxu0  ;;  %v337_v11 = vpop.f32.mrb[6].mxu1 }
  0xea   :  { %v250_v7 = vld [vmem:[#allocation2 + $0x50] sm:$0xff]  ;;  %v265_v12 = vadd.f32 %v459_v59, %v242_v6  ;;  %v240_v14 = vld [vmem:[#allocation2] sm:$0xff]  ;;  %227 = vst.msk [vmem:[#allocation2 + $0x30] sm:$0xff] %vm19_vm0, %v210_v0  ;;  %235 = vst.msk [vmem:[#allocation2 + $0x70] sm:$0xff] %vm19_vm0, %v218_v1  ;;  %v211_v16 = vadd.f32 %v329_v10, %v43_v62  ;;  %v219_v17 = vadd.f32 %v337_v11, %v51_v63  ;;  %v160_v18 = vpop.f32.mrb[7].mxu0  ;;  %v192_v19 = vpop.f32.mrb[7].mxu1 }
  0xeb   :  { %v273_v13 = vadd.f32 %v459_v59, %v250_v7  ;;  %v248_v15 = vld [vmem:[#allocation2 + $0x40] sm:$0xff]  ;;  %v263_v20 = vadd.f32 %v459_v59, %v240_v14  ;;  %v243_v22 = vld [vmem:[#allocation2 + $0x18] sm:$0xff]  ;;  %225 = vst.msk [vmem:[#allocation2 + $0x20] sm:$0xff] %vm19_vm0, %v208_v8  ;;  %233 = vst.msk [vmem:[#allocation2 + $0x60] sm:$0xff] %vm19_vm0, %v216_v9  ;;  %v209_v24 = vadd.f32 %v160_v18, %v41_v4 }
  0xec   :  { %v271_v21 = vadd.f32 %v459_v59, %v248_v15  ;;  %v251_v23 = vld [vmem:[#allocation2 + $0x58] sm:$0xff]  ;;  %v217_v25 = vadd.f32 %v192_v19, %v49_v5  ;;  %281 = vst.msk [vmem:[%s552_s3 + $0x10] sm:$0xff] %vm19_vm0, %v265_v12  ;;  %v266_v26 = vadd.f32 %v459_v59, %v243_v22  ;;  %v241_v28 = vld [vmem:[#allocation2 + $0x8] sm:$0xff]  ;;  %228 = vst.msk [vmem:[#allocation2 + $0x38] sm:$0xff] %vm19_vm0, %v211_v16 }
  0xed   :  { %289 = vst.msk [vmem:[%s552_s3 + $0x50] sm:$0xff] %vm19_vm0, %v273_v13  ;;  %v274_v27 = vadd.f32 %v459_v59, %v251_v23  ;;  %v249_v29 = vld [vmem:[#allocation2 + $0x48] sm:$0xff]  ;;  %236 = vst.msk [vmem:[#allocation2 + $0x78] sm:$0xff] %vm19_vm0, %v219_v17  ;;  %v264_v30 = vadd.f32 %v459_v59, %v241_v28 }
  0xee   :  { %279 = vst.msk [vmem:[%s552_s3] sm:$0xff] %vm19_vm0, %v263_v20  ;;  %287 = vst.msk [vmem:[%s552_s3 + $0x40] sm:$0xff] %vm19_vm0, %v271_v21  ;;  %v272_v31 = vadd.f32 %v459_v59, %v249_v29 }
  0xef   :  { %226 = vst.msk [vmem:[#allocation2 + $0x28] sm:$0xff] %vm19_vm0, %v209_v24  ;;  %234 = vst.msk [vmem:[#allocation2 + $0x68] sm:$0xff] %vm19_vm0, %v217_v25 }
  0xf0   :  { %282 = vst.msk [vmem:[%s552_s3 + $0x18] sm:$0xff] %vm19_vm0, %v266_v26  ;;  %290 = vst.msk [vmem:[%s552_s3 + $0x58] sm:$0xff] %vm19_vm0, %v274_v27 }
  0xf1   :  { %280 = vst.msk [vmem:[%s552_s3 + $0x8] sm:$0xff] %vm19_vm0, %v264_v30  ;;  %288 = vst.msk [vmem:[%s552_s3 + $0x48] sm:$0xff] %vm19_vm0, %v272_v31  ;;  %v246_v32 = vld [vmem:[#allocation2 + $0x30] sm:$0xff] }
  0xf2   :  { %v254_v33 = vld [vmem:[#allocation2 + $0x70] sm:$0xff]  ;;  %v269_v34 = vadd.f32 %v459_v59, %v246_v32  ;;  %v244_v36 = vld [vmem:[#allocation2 + $0x20] sm:$0xff] }
  0xf3   :  { %v277_v35 = vadd.f32 %v459_v59, %v254_v33  ;;  %v252_v37 = vld [vmem:[#allocation2 + $0x60] sm:$0xff]  ;;  %v267_v38 = vadd.f32 %v459_v59, %v244_v36  ;;  %v247_v40 = vld [vmem:[#allocation2 + $0x38] sm:$0xff] }
  0xf4   :  { %v275_v39 = vadd.f32 %v459_v59, %v252_v37  ;;  %v255_v41 = vld [vmem:[#allocation2 + $0x78] sm:$0xff]  ;;  %285 = vst.msk [vmem:[%s552_s3 + $0x30] sm:$0xff] %vm19_vm0, %v269_v34  ;;  %v270_v42 = vadd.f32 %v459_v59, %v247_v40 }
  0xf5   :  { %293 = vst.msk [vmem:[%s552_s3 + $0x70] sm:$0xff] %vm19_vm0, %v277_v35  ;;  %v278_v43 = vadd.f32 %v459_v59, %v255_v41  ;;  %283 = vst.msk [vmem:[%s552_s3 + $0x20] sm:$0xff] %vm19_vm0, %v267_v38 }
  0xf6   :  { %v245_v44 = vld [vmem:[#allocation2 + $0x28] sm:$0xff]  ;;  %291 = vst.msk [vmem:[%s552_s3 + $0x60] sm:$0xff] %vm19_vm0, %v275_v39  ;;  %286 = vst.msk [vmem:[%s552_s3 + $0x38] sm:$0xff] %vm19_vm0, %v270_v42 }
  0xf7   :  { %v253_v45 = vld [vmem:[#allocation2 + $0x68] sm:$0xff]  ;;  %v268_v46 = vadd.f32 %v459_v59, %v245_v44  ;;  %294 = vst.msk [vmem:[%s552_s3 + $0x78] sm:$0xff] %vm19_vm0, %v278_v43 }
  0xf8   :  { %v276_v47 = vadd.f32 %v459_v59, %v253_v45 }
  0xf9   :  { %284 = vst.msk [vmem:[%s552_s3 + $0x28] sm:$0xff] %vm19_vm0, %v268_v46 }
  0xfa   :  { %292 = vst.msk [vmem:[%s552_s3 + $0x68] sm:$0xff] %vm19_vm0, %v276_v47 }

// kernel: bttr_forward.16
= control target key start
LH: loop header
LB: loop body
LE: loop exit
PB: predicated region body
PF: predicated region fallthrough
CT: control target
= control target key end

     0   :  { %s1572_s12 = smov 0   ;;  %s1574_s13 = smov 0   ;;  %s1829_s0 = inlined_call_operand.vmem [shape: f32[2,8,32], index: 0, kind: input, shape index: {}]   ;;  %s1830_s1 = inlined_call_operand.vmem [shape: f32[2,64,32], index: 1, kind: input, shape index: {}]   ;;  %s1831_s2 = inlined_call_operand.vmem [shape: f32[2,64,32], index: 2, kind: input, shape index: {}]   ;;  %s1832_s3 = inlined_call_operand.vmem [shape: f32[2,8,32], index: 3, kind: output, shape index: {}]  }
   0x1   :  { %s1576_s14 = smov 0  }
   0x2 LB: > { %s25_s15 = sadd.s32 1, %s1536_s13  ;;  %p1183_p0 = scmp.ge.s32.totalorder %s1540_s14, 1  ;;  %s1540_s14 = sphi %s1576_s14, %s13_s14   ;;  %s1536_s13 = sphi %s1574_s13, %s1834_s13   ;;  %s1532_s12 = sphi %s1572_s12, %s1833_s12  }
   0x3   : > { %p27_p1 = scmp.ge.s32.totalorder %s25_s15, 2  ;;  %p182_p2 = scmp.lt.s32.totalorder %s1540_s14, 3 }
   0x5   : > { %s1836_s15 = smov (%p27_p1, %s25_s15), 0  ;;  %p183_p3 = pnand %p1183_p0, %p182_p2 }
   0x6   : > { %p222_p4 = scmp.lt.s32.totalorder (!%p183_p3), %s1532_s12, 1  ;;  %vm264_vm0 = vcmask (!%p183_p3), 64512   ;;  %v1542_v0 = vmov (!%p183_p3), 0.0   ;;  %vm1543_vm1 = vmmov (!%p183_p3), 0   ;;  %s1544_s21 = smov (!%p183_p3), 120   ;;  %vm702_vm2 = vcmask (!%p183_p3), 523264  }
   0x7   : > { %186 = sbr.rel (%p183_p3) target bundleno = 1114 (0x45a), region = 32  ;;  %1242 = vmatprep.subr.bf16.mxu0 (!%p183_p3), %v1542_v0  ;;  %265 = vst.msk [vmem:[#allocation4] sm:$0xff] (!%p183_p3), %vm264_vm0, %v1542_v0  ;;  %266 = vst.msk [vmem:[#allocation4 + $0x8] sm:$0xff] (!%p183_p3), %vm264_vm0, %v1542_v0  ;;  %1250 = vmatprep.mubr.msk.bf16.mxu0 (!%p183_p3), %vm1543_vm1, %v1542_v0  ;;  %s1545_s25 = smov (!%p183_p3), 112   ;;  %vm255_vm3 = vcmask (!%p183_p3), 7168   ;;  %vm1076_vm4 = vcmask (!%p183_p3), 130048  }
   0x8   : > { %267 = vst.msk [vmem:[#allocation4 + $0x10] sm:$0xff] (!%p183_p3), %vm264_vm0, %v1542_v0  ;;  %268 = vst.msk [vmem:[#allocation4 + $0x18] sm:$0xff] (!%p183_p3), %vm264_vm0, %v1542_v0  ;;  %1254 = vmatprep.subr.bf16.mxu1 (!%p183_p3), %v1542_v0  ;;  %1262 = vmatprep.mubr.msk.bf16.mxu1 (!%p183_p3), %vm1543_vm1, %v1542_v0  ;;  %s1546_s26 = smov (!%p183_p3), 104   ;;  %s1549_s30 = smov (!%p183_p3), 8   ;;  %vm1078_vm5 = vcmask (!%p183_p3), 195584   ;;  %vm1080_vm6 = vcmask (!%p183_p3), 261120  }
   0x9   : > { %260 = vst.msk [vmem:[#allocation3] sm:$0xff] (!%p183_p3), %vm255_vm3, %v1542_v0  ;;  %261 = vst.msk [vmem:[#allocation3 + $0x8] sm:$0xff] (!%p183_p3), %vm255_vm3, %v1542_v0  ;;  %s1550_s4 = smov (!%p183_p3), 16   ;;  %s1551_s5 = smov (!%p183_p3), 24  }
   0xa   : > { %262 = vst.msk [vmem:[#allocation3 + $0x10] sm:$0xff] (!%p183_p3), %vm255_vm3, %v1542_v0  ;;  %263 = vst.msk [vmem:[#allocation3 + $0x18] sm:$0xff] (!%p183_p3), %vm255_vm3, %v1542_v0 }
   0xe   : > { %s1838_s12 = smov (!%p222_p4, %s1532_s12), 1 }
   0xf   : > { %s1200_s16 = sshll.u32 %s1838_s12, 6  ;;  %s1184_s20 = sshll.u32 %s1838_s12, 3 }
  0x10   : > { %s234_s19 = scalar_lea.vmem %s1830_s1, %s1200_s16  ;;  %s225_s24 = scalar_lea.vmem %s1829_s0, %s1184_s20 }
  0x11   : > { %v271_v1 = vld [vmem:[%s234_s19] sm:$0xff]  ;;  %v272_v2 = vld [vmem:[%s234_s19 + $0x8] sm:$0xff]  ;;  %v273_v6 = vld [vmem:[%s234_s19 + $0x10] sm:$0xff]  ;;  %s244_s29 = scalar_lea.vmem %s1831_s2, %s1200_s16  ;;  %s249_s8 = scalar_lea.vmem %s1832_s3, %s1184_s20 }
  0x12   : > { %v275_v3 = vld [vmem:[%s234_s19 + $0x20] sm:$0xff]  ;;  %v1372_v4 = vpack.i.bf16 %v272_v2, %v271_v1  ;;  %v276_v5 = vld [vmem:[%s234_s19 + $0x28] sm:$0xff]  ;;  %v274_v7 = vld [vmem:[%s234_s19 + $0x18] sm:$0xff]  ;;  %v461_v8 = vpack.c.bf16 %v272_v2, %v271_v1 }
  0x13   : > { %v1382_v9 = vpack.i.bf16 %v276_v5, %v275_v3  ;;  %v277_v10 = vld [vmem:[%s234_s19 + $0x30] sm:$0xff]  ;;  %v278_v11 = vld [vmem:[%s234_s19 + $0x38] sm:$0xff]  ;;  %v1377_v12 = vpack.i.bf16 %v274_v7, %v273_v6  ;;  %v462_v15 = vpack.c.bf16 %v274_v7, %v273_v6  ;;  %v269_v16 = vld [vmem:[%s225_s24] sm:$0xff]  ;;  %v463_v19 = vpack.c.bf16 %v276_v5, %v275_v3 }
  0x14   : > { %1373 = vrot.lane.b32.xlu0 %v1372_v4, %s1544_s21  ;;  %v482_v13 = vsel %vm264_vm0, %v461_v8, 0  ;;  %v1387_v14 = vpack.i.bf16 %v278_v11, %v277_v10  ;;  %v270_v18 = vmul.f32 0.35355338, %v269_v16  ;;  %v464_v21 = vpack.c.bf16 %v278_v11, %v277_v10 }
  0x15   : > { %1383 = vrot.lane.b32.xlu1 %v1382_v9, %s1544_s21  ;;  %1243 = vmatpush3.bf16.xpose.msra.mxu0 %v482_v13  ;;  %v485_v17 = vsel %vm264_vm0, %v462_v15, 0  ;;  %v488_v20 = vsel %vm264_vm0, %v463_v19, 0 }
  0x16   : > { %1244 = vmatprep.subr.bf16.mxu0 %v1542_v0  ;;  %v491_v22 = vsel %vm264_vm0, %v464_v21, 0  ;;  %v457_v23 = vpack.c.bf16 %v270_v18, %v270_v18 }
  0x18   : > { %1378 = vrot.lane.b32.xlu0 %v1377_v12, %s1544_s21 }
  0x19   : > { %1388 = vrot.lane.b32.xlu1 %v1387_v14, %s1544_s21 }
  0x1c   : > { %1393 = vrot.lane.b32.xlu0 %v1372_v4, %s1545_s25 }
  0x1d   : > { %1398 = vrot.lane.b32.xlu1 %v1372_v4, %s1546_s26  ;;  %1245 = vmatpush3.bf16.xpose.msra.mxu0 %v485_v17 }
  0x1e   : > { %1246 = vmatprep.subr.bf16.mxu0 %v1542_v0 }
  0x20   : > { %288 = vrot.lane.b32.xlu0 %v270_v18, %s1544_s21 }
  0x21   : > { %1403 = vrot.lane.b32.xlu1 %v1377_v12, %s1545_s25 }
  0x24   : > { %1408 = vrot.lane.b32.xlu0 %v1377_v12, %s1546_s26 }
  0x25   : > { %1247 = vmatpush3.bf16.xpose.msra.mxu0 %v488_v20  ;;  %1413 = vrot.lane.b32.xlu1 %v1382_v9, %s1545_s25 }
  0x26   : > { %1248 = vmatprep.subr.bf16.mxu0 %v1542_v0 }
  0x28   : > { %1418 = vrot.lane.b32.xlu0 %v1382_v9, %s1546_s26 }
  0x29   : > { %1423 = vrot.lane.b32.xlu1 %v1387_v14, %s1545_s25 }
  0x2c   : > { %1428 = vrot.lane.b32.xlu0 %v1387_v14, %s1546_s26 }
  0x2d   : > { %1249 = vmatpush3.bf16.xpose.msra.mxu0 %v491_v22  ;;  %291 = vrot.lane.b32.xlu1 %v270_v18, %s1545_s25 }
  0x2e   : > { %1266 = vmatprep.subr.bf16.mxu0 %v1542_v0 }
  0x30   : > { %294 = vrot.lane.b32.xlu0 %v270_v18, %s1546_s26 }
  0x34   : > { %1251 = vmatmul.mubr.msk.bf16.vlgmr.msra.gmra.mrb[0].mxu0 %vm264_vm0, %v457_v23 }
  0x35   : > { %1274 = vmatprep.mubr.msk.bf16.mxu0 %vm1543_vm1, %v1542_v0 }
  0x86   : > { %v1374_v24 = vpop.permute.xlu0 %1373 }
  0x87   : > { %v1376_v25 = vunpack.i.h.bf16 %v1374_v24  ;;  %v1375_v26 = vunpack.i.l.bf16 %v1374_v24  ;;  %v1384_v27 = vpop.permute.xlu1 %1383 }
  0x88   : > { %v1386_v39 = vunpack.i.h.bf16 %v1384_v27  ;;  %v1385_v40 = vunpack.i.l.bf16 %v1384_v27 }
  0x89   : > { %v465_v28 = vpack.c.bf16 %v1376_v25, %v1375_v26 }
  0x8a   : > { %v1379_v29 = vpop.permute.xlu0 %1378  ;;  %v467_v47 = vpack.c.bf16 %v1386_v39, %v1385_v40 }
  0x8b   : > { %v1381_v30 = vunpack.i.h.bf16 %v1379_v29  ;;  %v1380_v31 = vunpack.i.l.bf16 %v1379_v29  ;;  %v537_v32 = vsel %vm264_vm0, %v465_v28, 0  ;;  %v1389_v33 = vpop.permute.xlu1 %1388 }
  0x8c   : > { %1255 = vmatpush3.bf16.xpose.msra.mxu1 %v537_v32  ;;  %v1391_v50 = vunpack.i.h.bf16 %v1389_v33  ;;  %v1390_v51 = vunpack.i.l.bf16 %v1389_v33  ;;  %v543_v52 = vsel %vm264_vm0, %v467_v47, 0  ;;  %v1547_v32 = vmov -inf  }
  0x8d   : > { %1256 = vmatprep.subr.bf16.mxu1 %v1542_v0  ;;  %v466_v34 = vpack.c.bf16 %v1381_v30, %v1380_v31  ;;  %256 = vst.msk [vmem:[#allocation2] sm:$0xff] %vm255_vm3, %v1547_v32  ;;  %257 = vst.msk [vmem:[#allocation2 + $0x8] sm:$0xff] %vm255_vm3, %v1547_v32  ;;  %v1548_v33 = vmov 0  }
  0x8e   : > { %v1394_v35 = vpop.permute.xlu0 %1393  ;;  %v468_v57 = vpack.c.bf16 %v1391_v50, %v1390_v51  ;;  %258 = vst.msk [vmem:[#allocation2 + $0x10] sm:$0xff] %vm255_vm3, %v1547_v32  ;;  %259 = vst.msk [vmem:[#allocation2 + $0x18] sm:$0xff] %vm255_vm3, %v1547_v32  ;;  %1432 = vset.pattern.permute.xlu0 %v1548_v33  ;;  %1438 = vset.pattern.permute.xlu1 %v1548_v33 }
  0x8f   : > { %v1396_v36 = vunpack.i.h.bf16 %v1394_v35  ;;  %v1395_v37 = vunpack.i.l.bf16 %v1394_v35  ;;  %v1399_v38 = vpop.permute.xlu1 %1398  ;;  %v540_v42 = vsel %vm264_vm0, %v466_v34, 0 }
  0x90   : > { %v1401_v59 = vunpack.i.h.bf16 %v1399_v38  ;;  %v1400_v60 = vunpack.i.l.bf16 %v1399_v38  ;;  %v546_v61 = vsel %vm264_vm0, %v468_v57, 0 }
  0x91   : > { %v469_v41 = vpack.c.bf16 %v1396_v36, %v1395_v37 }
  0x92   : > { %v289_v2 = vpop.permute.xlu0 %288  ;;  %v473_v3 = vpack.c.bf16 %v1401_v59, %v1400_v60 }
  0x93   : > { %v592_v43 = vsel %vm264_vm0, %v469_v41, 0  ;;  %v1404_v44 = vpop.permute.xlu1 %1403  ;;  %v458_v6 = vpack.c.bf16 %v289_v2, %v289_v2  ;;  %v286_v2 = vld [vmem:[%s244_s29 + $0x38] sm:$0xff] }
  0x94   : > { %1257 = vmatpush3.bf16.xpose.msra.mxu1 %v540_v42  ;;  %1267 = vmatpush3.bf16.xpose.msra.mxu0 %v592_v43  ;;  %v1406_v45 = vunpack.i.h.bf16 %v1404_v44  ;;  %v1405_v46 = vunpack.i.l.bf16 %v1404_v44  ;;  %v647_v8 = vsel %vm264_vm0, %v473_v3, 0  ;;  %v281_v44 = vld [vmem:[%s244_s29 + $0x10] sm:$0xff]  ;;  %v1708_v47 = vld [vmem:[#allocation2] sm:$0xff] }
  0x95   : > { %1258 = vmatprep.subr.bf16.mxu1 %v1542_v0  ;;  %1268 = vmatprep.subr.bf16.mxu0 %v1542_v0 }
  0x96   : > { %v470_v48 = vpack.c.bf16 %v1406_v45, %v1405_v46  ;;  %v1409_v5 = vpop.permute.xlu0 %1408  ;;  %v282_v45 = vld [vmem:[%s244_s29 + $0x18] sm:$0xff] }
  0x97   : > { %v1414_v49 = vpop.permute.xlu1 %1413  ;;  %v1411_v9 = vunpack.i.h.bf16 %v1409_v5  ;;  %v1410_v10 = vunpack.i.l.bf16 %v1409_v5  ;;  %v1706_v46 = vpack.i.bf16 %v282_v45, %v281_v44 }
  0x98   : > { %v595_v53 = vsel %vm264_vm0, %v470_v48, 0  ;;  %v1416_v54 = vunpack.i.h.bf16 %v1414_v49  ;;  %v1415_v55 = vunpack.i.l.bf16 %v1414_v49  ;;  %v283_v48 = vld [vmem:[%s244_s29 + $0x20] sm:$0xff]  ;;  %v284_v49 = vld [vmem:[%s244_s29 + $0x28] sm:$0xff] }
  0x99   : > { %v474_v12 = vpack.c.bf16 %v1411_v9, %v1410_v10  ;;  %v1710_v50 = vpack.i.bf16 %v284_v49, %v283_v48  ;;  %v700_v10 = vld [vmem:[#allocation2 + $0x10] sm:$0xff] }
  0x9a   : > { %v471_v56 = vpack.c.bf16 %v1416_v54, %v1415_v55  ;;  %v1419_v13 = vpop.permute.xlu0 %1418  ;;  %v279_v54 = vld [vmem:[%s244_s29] sm:$0xff]  ;;  %v280_v55 = vld [vmem:[%s244_s29 + $0x8] sm:$0xff] }
  0x9b   : > { %v1424_v58 = vpop.permute.xlu1 %1423  ;;  %v650_v15 = vsel %vm264_vm0, %v474_v12, 0  ;;  %v1421_v16 = vunpack.i.h.bf16 %v1419_v13  ;;  %v1420_v17 = vunpack.i.l.bf16 %v1419_v13  ;;  %v824_v57 = vpack.c.bf16 %v280_v55, %v279_v54 }
  0x9c   : > { %1259 = vmatpush3.bf16.xpose.msra.mxu1 %v543_v52  ;;  %1269 = vmatpush3.bf16.xpose.msra.mxu0 %v595_v53  ;;  %v598_v62 = vsel %vm264_vm0, %v471_v56, 0  ;;  %v1426_v63 = vunpack.i.h.bf16 %v1424_v58  ;;  %v1425_v1 = vunpack.i.l.bf16 %v1424_v58 }
  0x9d   : > { %1260 = vmatprep.subr.bf16.mxu1 %v1542_v0  ;;  %1270 = vmatprep.subr.bf16.mxu0 %v1542_v0  ;;  %v475_v18 = vpack.c.bf16 %v1421_v16, %v1420_v17  ;;  %v701_v17 = vld [vmem:[#allocation2 + $0x18] sm:$0xff] }
  0x9e   : > { %v472_v4 = vpack.c.bf16 %v1426_v63, %v1425_v1  ;;  %v1429_v19 = vpop.permute.xlu0 %1428  ;;  %v826_v63 = vpack.c.bf16 %v284_v49, %v283_v48  ;;  %v285_v1 = vld [vmem:[%s244_s29 + $0x30] sm:$0xff] }
  0x9f   : > { %v292_v11 = vpop.permute.xlu1 %291  ;;  %v653_v20 = vsel %vm264_vm0, %v475_v18, 0  ;;  %v1431_v21 = vunpack.i.h.bf16 %v1429_v19  ;;  %v1430_v22 = vunpack.i.l.bf16 %v1429_v19  ;;  %v827_v3 = vpack.c.bf16 %v286_v2, %v285_v1 }
  0xa0   : > { %v601_v7 = vsel %vm264_vm0, %v472_v4, 0  ;;  %v459_v14 = vpack.c.bf16 %v292_v11, %v292_v11  ;;  %v1433_v4 = vpack.i.bf16 %v280_v55, %v279_v54  ;;  %v1449_v5 = vpack.i.bf16 %v286_v2, %v285_v1 }
  0xa1   : > { %v476_v23 = vpack.c.bf16 %v1431_v21, %v1430_v22 }
  0xa2   : > { %v295_v25 = vpop.permute.xlu0 %294 }
  0xa3   : > { %v656_v24 = vsel %vm264_vm0, %v476_v23, 0  ;;  %v460_v26 = vpack.c.bf16 %v295_v25, %v295_v25 }
  0xa4   : > { %1261 = vmatpush3.bf16.xpose.msra.mxu1 %v546_v61  ;;  %1271 = vmatpush3.bf16.xpose.msra.mxu0 %v598_v62  ;;  %v825_v62 = vpack.c.bf16 %v282_v45, %v281_v44 }
  0xa5   : > { %1272 = vmatprep.subr.bf16.mxu0 %v1542_v0  ;;  %1278 = vmatprep.subr.bf16.mxu1 %v1542_v0 }
  0xab   : > { %1263 = vmatmul.mubr.msk.bf16.vlgmr.msra.gmra.mrb[0].mxu1 %vm264_vm0, %v458_v6  ;;  %v1735_v6 = vld [vmem:[#allocation2 + $0x8] sm:$0xff] }
  0xac   : > { %1273 = vmatpush3.bf16.xpose.msra.mxu0 %v601_v7  ;;  %1279 = vmatpush3.bf16.xpose.msra.mxu1 %v647_v8 }
  0xad   : > { %1280 = vmatprep.subr.bf16.mxu1 %v1542_v0  ;;  %1286 = vmatprep.mubr.msk.bf16.mxu1 %vm1543_vm1, %v1542_v0 }
  0xae   : > { %1290 = vmatprep.subr.bf16.mxu0 %v1542_v0 }
  0xb3   : > { %1275 = vmatmul.mubr.msk.bf16.vlgmr.msra.gmra.mrb[4].mxu0 %vm264_vm0, %v459_v14 }
  0xb4   : > { %1281 = vmatpush3.bf16.xpose.msra.mxu1 %v650_v15  ;;  %1298 = vmatprep.mubr.msk.bf16.mxu0 %vm1543_vm1, %v1542_v0 }
  0xb5   : > { %1282 = vmatprep.subr.bf16.mxu1 %v1542_v0  ;;  %1291 = vmatpush3.bf16.msra.mxu0 %v824_v57 }
  0xb6   : > { %1292 = vmatprep.subr.bf16.mxu0 %v1542_v0 }
  0xb9   : > { %1293 = vmatpush3.bf16.msra.mxu0 %v825_v62 }
  0xba   : > { %1294 = vmatprep.subr.bf16.mxu0 %v1542_v0 }
  0xbc   : > { %1283 = vmatpush3.bf16.xpose.msra.mxu1 %v653_v20 }
  0xbd   : > { %1284 = vmatprep.subr.bf16.mxu1 %v1542_v0  ;;  %1295 = vmatpush3.bf16.msra.mxu0 %v826_v63 }
  0xbe   : > { %1296 = vmatprep.subr.bf16.mxu0 %v1542_v0 }
  0xc1   : > { %1297 = vmatpush3.bf16.msra.mxu0 %v827_v3 }
  0xc2   : > { %1314 = vmatprep.subr.bf16.mxu0 %v1542_v0 }
  0xc4   : > { %1285 = vmatpush3.bf16.xpose.msra.mxu1 %v656_v24 }
  0xc5   : > { %1302 = vmatprep.subr.bf16.mxu1 %v1542_v0 }
  0xcb   : > { %1287 = vmatmul.mubr.msk.bf16.vlgmr.msra.gmra.mrb[4].mxu1 %vm264_vm0, %v460_v26 }
  0xcc   : > { %1310 = vmatprep.mubr.msk.bf16.mxu1 %vm1543_vm1, %v1542_v0 }
 0x107   : > { %v1677_v27 = vpop.f32.mrb[0].mxu0 }
 0x108   : > { %v703_v28 = vsel %vm702_vm2, %v1677_v27, -inf  ;;  %v1252_v29 = vpop.f32.mrb[1].mxu0 }
 0x109   : > { %704 = vmax.xlane.f32.xlu1 %v703_v28  ;;  %v530_v30 = vpop.f32.mrb[2].mxu0 }
 0x10a   : > { %v1253_v31 = vpop.f32.mrb[3].mxu0 }
 0x17e   : > { %v1693_v34 = vpop.f32.mrb[0].mxu1 }
 0x17f   : > { %v1264_v35 = vpop.f32.mrb[1].mxu1  ;;  %v706_v36 = vsel %vm702_vm2, %v1693_v34, -inf }
 0x180   : > { %707 = vmax.xlane.f32.xlu0 %v706_v36  ;;  %v585_v37 = vpop.f32.mrb[2].mxu1 }
 0x181   : > { %v1265_v38 = vpop.f32.mrb[3].mxu1 }
 0x186   : > { %v1697_v39 = vpop.f32.mrb[4].mxu0 }
 0x187   : > { %v709_v40 = vsel %vm702_vm2, %v1697_v39, -inf  ;;  %v1276_v41 = vpop.f32.mrb[5].mxu0 }
 0x188   : > { %710 = vmax.xlane.f32.xlu0 %v709_v40  ;;  %v640_v42 = vpop.f32.mrb[6].mxu0 }
 0x189   : > { %v1277_v43 = vpop.f32.mrb[7].mxu0 }
 0x196   : > { %v705_v51 = vpop.xlane.xlu1 %704 }
 0x197   : > { %v1713_v52 = vmax.f32 %v1708_v47, %v705_v51 }
 0x199   : > { %v719_v53 = vsub.f32 %v1708_v47, %v1713_v52  ;;  %1020 = vst.msk [vmem:[#allocation2] sm:$0xff] %vm255_vm3, %v1713_v52 }
 0x19e   : > { %v1719_v56 = vpop.f32.mrb[4].mxu1  ;;  %733 = vperm.xlu0 %1432, %v1713_v52  }
 0x19f   : > { %v1288_v58 = vpop.f32.mrb[5].mxu1  ;;  %v712_v59 = vsel %vm702_vm2, %v1719_v56, -inf }
 0x1a0   : > { %v695_v60 = vpop.f32.mrb[6].mxu1  ;;  %713 = vmax.xlane.f32.xlu1 %v712_v59 }
 0x1a1   : > { %v1289_v61 = vpop.f32.mrb[7].mxu1 }
 0x1a2   : > { %1460 = vrot.lane.b32.xlu0 %v1433_v4, %s1546_s26 }
 0x1a6   : > { %1470 = vrot.lane.b32.xlu0 %v1706_v46, %s1546_s26 }
 0x1aa   : > { %1480 = vrot.lane.b32.xlu0 %v1710_v50, %s1546_s26 }
 0x1ae   : > { %1490 = vrot.lane.b32.xlu0 %v1449_v5, %s1546_s26 }
 0x1b1   : > { %1434 = vrot.lane.b32.xlu1 %v1433_v4, %s1544_s21 }
 0x20d   : > { %v708_v7 = vpop.xlane.xlu0 %707 }
 0x20e   : > { %v1738_v8 = vmax.f32 %v1735_v6, %v708_v7 }
 0x210   : > { %v720_v9 = vsub.f32 %v1735_v6, %v1738_v8  ;;  %1021 = vst.msk [vmem:[#allocation2 + $0x8] sm:$0xff] %vm255_vm3, %v1738_v8  ;;  %738 = vperm.xlu1 %1438, %v1738_v8   ;;  %v723_v6 = vmul.f32 1.442695, %v719_v53  ;;  %v764_v8 = vld [vmem:[#allocation3 + $0x8] sm:$0xff] }
 0x214   : > { %1440 = vrot.lane.b32.xlu1 %v1706_v46, %s1544_s21 }
 0x215   : > { %v711_v11 = vpop.xlane.xlu0 %710 }
 0x216   : > { %v717_v12 = vmax.f32 %v700_v10, %v711_v11 }
 0x218   : > { %1445 = vrot.lane.b32.xlu1 %v1710_v50, %s1544_s21  ;;  %v721_v13 = vsub.f32 %v700_v10, %v717_v12  ;;  %1022 = vst.msk [vmem:[#allocation2 + $0x10] sm:$0xff] %vm255_vm3, %v717_v12 }
 0x21a   : > { %v727_v45 = vmul.f32 1.442695, %v721_v13 }
 0x21c   : > { %743 = vperm.xlu1 %1438, %v717_v12  }
 0x21d   : > { %v734_v14 = vpop.permute.xlu0 %733 }
 0x21e   : > { %v751_v15 = vsub.f32 %v1677_v27, %v734_v14 }
 0x220   : > { %v755_v16 = vmul.f32 1.442695, %v751_v15 }
 0x221   : > { %v1461_v49 = vpop.permute.xlu0 %1460 }
 0x222   : > { %1494 = vpow2.f32 %v755_v16  ;;  %v1463_v58 = vunpack.i.h.bf16 %v1461_v49  ;;  %v1462_v62 = vunpack.i.l.bf16 %v1461_v49 }
 0x225   : > { %v1471_v55 = vpop.permute.xlu0 %1470 }
 0x226   : > { %v1473_v10 = vunpack.i.h.bf16 %v1471_v55  ;;  %v1472_v11 = vunpack.i.l.bf16 %v1471_v55 }
 0x228   : > { %v837_v16 = vpack.c.bf16 %v1473_v10, %v1472_v11 }
 0x22c   : > { %v1495_v18 = vpop.eup %1494 }
 0x22d   : > { %v714_v19 = vpop.xlane.xlu1 %713  ;;  %v820_v20 = vpack.c.bf16 %v1495_v18, %v1495_v18  ;;  %v771_v44 = vsel %vm702_vm2, %v1495_v18, 0.0 }
 0x22e   : > { %v718_v21 = vmax.f32 %v701_v17, %v714_v19 }
 0x22f   : > { %1299 = vmatmul.mubr.msk.bf16.vlgmr.msra.gmra.mrb[8].mxu0 %vm702_vm2, %v820_v20 }
 0x230   : > { %v722_v22 = vsub.f32 %v701_v17, %v718_v21  ;;  %1023 = vst.msk [vmem:[#allocation2 + $0x18] sm:$0xff] %vm255_vm3, %v718_v21  ;;  %748 = vperm.xlu1 %1438, %v718_v21   ;;  %1322 = vmatprep.mubr.msk.bf16.mxu0 %vm1543_vm1, %v1542_v0 }
 0x231   : > { %v1435_v23 = vpop.permute.xlu1 %1434 }
 0x232   : > { %v1437_v24 = vunpack.i.h.bf16 %v1435_v23  ;;  %v1436_v25 = vunpack.i.l.bf16 %v1435_v23  ;;  %v729_v48 = vmul.f32 1.442695, %v722_v22 }
 0x234   : > { %1450 = vrot.lane.b32.xlu1 %v1449_v5, %s1544_s21  ;;  %v828_v26 = vpack.c.bf16 %v1437_v24, %v1436_v25 }
 0x236   : > { %1303 = vmatpush3.bf16.msra.mxu1 %v828_v26 }
 0x237   : > { %1304 = vmatprep.subr.bf16.mxu1 %v1542_v0 }
 0x238   : > { %1455 = vrot.lane.b32.xlu1 %v1433_v4, %s1545_s25 }
 0x23c   : > { %1465 = vrot.lane.b32.xlu1 %v1706_v46, %s1545_s25 }
 0x240   : > { %1475 = vrot.lane.b32.xlu1 %v1710_v50, %s1545_s25 }
 0x244   : > { %1485 = vrot.lane.b32.xlu1 %v1449_v5, %s1545_s25  ;;  %v836_v5 = vpack.c.bf16 %v1463_v58, %v1462_v62 }
 0x28f   : > { %v739_v27 = vpop.permute.xlu1 %738 }
 0x290   : > { %v752_v28 = vsub.f32 %v1693_v34, %v739_v27 }
 0x292   : > { %v757_v29 = vmul.f32 1.442695, %v752_v28 }
 0x293   : > { %v1441_v30 = vpop.permute.xlu1 %1440 }
 0x294   : > { %1496 = vpow2.f32 %v757_v29  ;;  %v1443_v31 = vunpack.i.h.bf16 %v1441_v30  ;;  %v1442_v32 = vunpack.i.l.bf16 %v1441_v30 }
 0x296   : > { %v829_v33 = vpack.c.bf16 %v1443_v31, %v1442_v32 }
 0x297   : > { %v1446_v35 = vpop.permute.xlu1 %1445 }
 0x298   : > { %v1448_v36 = vunpack.i.h.bf16 %v1446_v35  ;;  %v1447_v37 = vunpack.i.l.bf16 %v1446_v35  ;;  %1305 = vmatpush3.bf16.msra.mxu1 %v829_v33 }
 0x299   : > { %1306 = vmatprep.subr.bf16.mxu1 %v1542_v0 }
 0x29a   : > { %v830_v38 = vpack.c.bf16 %v1448_v36, %v1447_v37  ;;  %v725_v36 = vmul.f32 1.442695, %v720_v9 }
 0x29b   : > { %v744_v40 = vpop.permute.xlu1 %743 }
 0x29c   : > { %v753_v41 = vsub.f32 %v1697_v39, %v744_v40  ;;  %1307 = vmatpush3.bf16.msra.mxu1 %v830_v38 }
 0x29d   : > { %1308 = vmatprep.subr.bf16.mxu1 %v1542_v0 }
 0x29e   : > { %v1497_v34 = vpop.eup %1496  ;;  %v759_v42 = vmul.f32 1.442695, %v753_v41 }
 0x29f   : > { %v774_v43 = vsel %vm702_vm2, %v1497_v34, 0.0  ;;  %v821_v7 = vpack.c.bf16 %v1497_v34, %v1497_v34 }
 0x2a0   : > { %1498 = vpow2.f32 %v759_v42  ;;  %775 = vadd.xlane.f32.xlu1 %v774_v43 }
 0x2a1   : > { %1500 = vpow2.f32 %v727_v45  ;;  %v763_v45 = vld [vmem:[#allocation3] sm:$0xff] }
 0x2a2   : > { %1502 = vpow2.f32 %v729_v48 }
 0x2a4   : > { %772 = vadd.xlane.f32.xlu1 %v771_v44 }
 0x2aa   : > { %v1769_v46 = vpop.eup %1498 }
 0x2ab   : > { %v777_v39 = vsel %vm702_vm2, %v1769_v46, 0.0  ;;  %v1774_v59 = vpop.eup %1500  ;;  %v822_v37 = vpack.c.bf16 %v1769_v46, %v1769_v46 }
 0x2ac   : > { %778 = vadd.xlane.f32.xlu0 %v777_v39  ;;  %v1777_v2 = vpop.eup %1502 }
 0x2af   : > { %v749_v50 = vpop.permute.xlu1 %748 }
 0x2b0   : > { %v754_v51 = vsub.f32 %v1719_v56, %v749_v50  ;;  %v1481_v56 = vpop.permute.xlu0 %1480  ;;  %v765_v50 = vld [vmem:[#allocation3 + $0x10] sm:$0xff] }
 0x2b1   : > { %v1483_v17 = vunpack.i.h.bf16 %v1481_v56  ;;  %v1482_v18 = vunpack.i.l.bf16 %v1481_v56 }
 0x2b2   : > { %v761_v54 = vmul.f32 1.442695, %v754_v51 }
 0x2b3   : > { %v1451_v57 = vpop.permute.xlu1 %1450  ;;  %v838_v26 = vpack.c.bf16 %v1483_v17, %v1482_v18 }
 0x2b4   : > { %1504 = vpow2.f32 %v761_v54  ;;  %v1453_v60 = vunpack.i.h.bf16 %v1451_v57  ;;  %v1452_v61 = vunpack.i.l.bf16 %v1451_v57  ;;  %v1491_v21 = vpop.permute.xlu0 %1490  ;;  %v769_v54 = vmul.f32 %v1774_v59, %v765_v50  ;;  %v766_v57 = vld [vmem:[#allocation3 + $0x18] sm:$0xff] }
 0x2b5   : > { %808 = vperm.xlu1 %1438, %v1774_v59   ;;  %v1493_v27 = vunpack.i.h.bf16 %v1491_v21  ;;  %v1492_v28 = vunpack.i.l.bf16 %v1491_v21  ;;  %1506 = vpow2.f32 %v725_v36  ;;  %v770_v58 = vmul.f32 %v1777_v2, %v766_v57  ;;  %v792_v36 = vld [vmem:[#allocation4] sm:$0xff] }
 0x2b6   : > { %v831_v63 = vpack.c.bf16 %v1453_v60, %v1452_v61  ;;  %1508 = vpow2.f32 %v723_v6 }
 0x2b7   : > { %v1456_v1 = vpop.permute.xlu1 %1455  ;;  %v839_v33 = vpack.c.bf16 %v1493_v27, %v1492_v28 }
 0x2b8   : > { %v1458_v3 = vunpack.i.h.bf16 %v1456_v1  ;;  %v1457_v4 = vunpack.i.l.bf16 %v1456_v1  ;;  %1309 = vmatpush3.bf16.msra.mxu1 %v831_v63 }
 0x2b9   : > { %813 = vperm.xlu1 %1438, %v1777_v2   ;;  %1326 = vmatprep.subr.bf16.mxu1 %v1542_v0 }
 0x2ba   : > { %v832_v12 = vpack.c.bf16 %v1458_v3, %v1457_v4  ;;  %v793_v4 = vld [vmem:[#allocation4 + $0x8] sm:$0xff] }
 0x2bb   : > { %v1466_v13 = vpop.permute.xlu1 %1465  ;;  %1311 = vmatmul.mubr.msk.bf16.vlgmr.msra.gmra.mrb[8].mxu1 %vm702_vm2, %v821_v7 }
 0x2bc   : > { %v1468_v14 = vunpack.i.h.bf16 %v1466_v13  ;;  %v1467_v15 = vunpack.i.l.bf16 %v1466_v13  ;;  %1315 = vmatpush3.bf16.msra.mxu0 %v832_v12  ;;  %1327 = vmatpush3.bf16.msra.mxu1 %v836_v5 }
 0x2bd   : > { %1316 = vmatprep.subr.bf16.mxu0 %v1542_v0  ;;  %1328 = vmatprep.subr.bf16.mxu1 %v1542_v0 }
 0x2be   : > { %v1505_v19 = vpop.eup %1504  ;;  %v833_v20 = vpack.c.bf16 %v1468_v14, %v1467_v15  ;;  %1334 = vmatprep.mubr.msk.bf16.mxu1 %vm1543_vm1, %v1542_v0  ;;  %v794_v14 = vld [vmem:[#allocation4 + $0x10] sm:$0xff]  ;;  %v795_v15 = vld [vmem:[#allocation4 + $0x18] sm:$0xff] }
 0x2bf   : > { %v1476_v22 = vpop.permute.xlu1 %1475  ;;  %v780_v23 = vsel %vm702_vm2, %v1505_v19, 0.0  ;;  %v823_v38 = vpack.c.bf16 %v1505_v19, %v1505_v19  ;;  %v1507_v40 = vpop.eup %1506 }
 0x2c0   : > { %v1478_v24 = vunpack.i.h.bf16 %v1476_v22  ;;  %v1477_v25 = vunpack.i.l.bf16 %v1476_v22  ;;  %781 = vadd.xlane.f32.xlu0 %v780_v23  ;;  %1317 = vmatpush3.bf16.msra.mxu0 %v833_v20  ;;  %v768_v9 = vmul.f32 %v1507_v40, %v764_v8  ;;  %v1509_v43 = vpop.eup %1508 }
 0x2c1   : > { %1329 = vmatpush3.bf16.msra.mxu1 %v837_v16  ;;  %1318 = vmatprep.subr.bf16.mxu0 %v1542_v0  ;;  %v767_v48 = vmul.f32 %v1509_v43, %v763_v45 }
 0x2c2   : > { %v834_v29 = vpack.c.bf16 %v1478_v24, %v1477_v25  ;;  %1330 = vmatprep.subr.bf16.mxu1 %v1542_v0 }
 0x2c3   : > { %v1486_v30 = vpop.permute.xlu1 %1485 }
 0x2c4   : > { %v1488_v31 = vunpack.i.h.bf16 %v1486_v30  ;;  %v1487_v32 = vunpack.i.l.bf16 %v1486_v30  ;;  %1319 = vmatpush3.bf16.msra.mxu0 %v834_v29 }
 0x2c5   : > { %1331 = vmatpush3.bf16.msra.mxu1 %v838_v26  ;;  %1320 = vmatprep.subr.bf16.mxu0 %v1542_v0 }
 0x2c6   : > { %v835_v35 = vpack.c.bf16 %v1488_v31, %v1487_v32  ;;  %1332 = vmatprep.subr.bf16.mxu1 %v1542_v0 }
 0x2c8   : > { %1321 = vmatpush3.bf16.msra.mxu0 %v835_v35 }
 0x2c9   : > { %1333 = vmatpush3.bf16.msra.mxu1 %v839_v33 }
 0x2cb   : > { %1323 = vmatmul.mubr.msk.bf16.vlgmr.msra.gmra.mrb[12].mxu0 %vm702_vm2, %v822_v37 }
 0x2cc   : > { %1335 = vmatmul.mubr.msk.bf16.vlgmr.msra.gmra.mrb[12].mxu1 %vm702_vm2, %v823_v38 }
 0x2d6   : > { %803 = vperm.xlu0 %1432, %v1507_v40  }
 0x302   : > { %v1798_v41 = vpop.f32.mrb[8].mxu0 }
 0x303   : > { %v1300_v0 = vpop.f32.mrb[9].mxu0 }
 0x304   : > { %v880_v34 = vpop.f32.mrb[10].mxu0 }
 0x305   : > { %v1301_v42 = vpop.f32.mrb[11].mxu0 }
 0x32d   : > { %v776_v44 = vpop.xlane.xlu1 %775 }
 0x32e   : > { %v784_v46 = vadd.f32 %v776_v44, %v768_v9 }
 0x330   : > { %789 = vst.msk [vmem:[#allocation3 + $0x8] sm:$0xff] %vm255_vm3, %v784_v46 }
 0x331   : > { %v773_v39 = vpop.xlane.xlu1 %772 }
 0x332   : > { %v783_v49 = vadd.f32 %v773_v39, %v767_v48 }
 0x334   : > { %788 = vst.msk [vmem:[#allocation3] sm:$0xff] %vm255_vm3, %v783_v49 }
 0x335   : > { %v809_v13 = vpop.permute.xlu1 %808 }
 0x336   : > { %v818_v17 = vmul.f32 %v809_v13, %v794_v14 }
 0x337   : > { %v1032_v51 = vld [vmem:[#allocation3 + $0x8] sm:$0xff] }
 0x338   : > { %1510 = vrcp.f32 %v1032_v51 }
 0x339   : > { %v779_v47 = vpop.xlane.xlu0 %778  ;;  %v814_v16 = vpop.permute.xlu1 %813 }
 0x33a   : > { %v785_v52 = vadd.f32 %v779_v47, %v769_v54  ;;  %v819_v18 = vmul.f32 %v814_v16, %v795_v15 }
 0x33b   : > { %v1031_v63 = vld [vmem:[#allocation3] sm:$0xff] }
 0x33c   : > { %790 = vst.msk [vmem:[#allocation3 + $0x10] sm:$0xff] %vm255_vm3, %v785_v52 }
 0x342   : > { %v1511_v53 = vpop.eup %1510 }
 0x343   : > { %1046 = vperm.xlu0 %1432, %v1511_v53   ;;  %v1033_v55 = vld [vmem:[#allocation3 + $0x10] sm:$0xff] }
 0x344   : > { %1512 = vrcp.f32 %v1033_v55 }
 0x34d   : > { %v782_v60 = vpop.xlane.xlu0 %781 }
 0x34e   : > { %v1513_v61 = vpop.eup %1512  ;;  %v786_v62 = vadd.f32 %v782_v60, %v770_v58 }
 0x34f   : > { %1051 = vperm.xlu1 %1438, %v1513_v61  }
 0x350   : > { %791 = vst.msk [vmem:[#allocation3 + $0x18] sm:$0xff] %vm255_vm3, %v786_v62 }
 0x353   : > { %798 = vperm.xlu1 %1438, %v1509_v43  }
 0x355   : > { %v804_v5 = vpop.permute.xlu0 %803 }
 0x356   : > { %v817_v56 = vmul.f32 %v804_v5, %v793_v4 }
 0x357   : > { %v1034_v59 = vld [vmem:[#allocation3 + $0x18] sm:$0xff] }
 0x358   : > { %1514 = vrcp.f32 %v1034_v59 }
 0x359   : > { %1516 = vrcp.f32 %v1031_v63 }
 0x362   : > { %v1515_v1 = vpop.eup %1514 }
 0x363   : > { %1056 = vperm.xlu0 %1432, %v1515_v1   ;;  %v1517_v3 = vpop.eup %1516 }
 0x367   : > { %1041 = vperm.xlu0 %1432, %v1517_v3  }
 0x38e   : > { %v920_v7 = vpop.f32.mrb[8].mxu1 }
 0x38f   : > { %v1013_v2 = vadd.f32 %v920_v7, %v817_v56  ;;  %v1312_v10 = vpop.f32.mrb[9].mxu1 }
 0x390   : > { %v923_v11 = vpop.f32.mrb[10].mxu1 }
 0x391   : > { %1017 = vst.msk [vmem:[#allocation4 + $0x8] sm:$0xff] %vm264_vm0, %v1013_v2  ;;  %v1313_v12 = vpop.f32.mrb[11].mxu1 }
 0x398   : > { %v1028_v29 = vld [vmem:[#allocation4 + $0x8] sm:$0xff] }
 0x39e   : > { %v963_v19 = vpop.f32.mrb[12].mxu0 }
 0x39f   : > { %v1014_v20 = vadd.f32 %v963_v19, %v818_v17  ;;  %v1006_v21 = vpop.f32.mrb[12].mxu1  ;;  %v1324_v22 = vpop.f32.mrb[13].mxu0 }
 0x3a0   : > { %v1015_v23 = vadd.f32 %v1006_v21, %v819_v18  ;;  %v1336_v24 = vpop.f32.mrb[13].mxu1  ;;  %v966_v25 = vpop.f32.mrb[14].mxu0 }
 0x3a1   : > { %1018 = vst.msk [vmem:[#allocation4 + $0x10] sm:$0xff] %vm264_vm0, %v1014_v20  ;;  %v1009_v26 = vpop.f32.mrb[14].mxu1  ;;  %v1325_v27 = vpop.f32.mrb[15].mxu0 }
 0x3a2   : > { %1019 = vst.msk [vmem:[#allocation4 + $0x18] sm:$0xff] %vm264_vm0, %v1015_v23  ;;  %v1337_v28 = vpop.f32.mrb[15].mxu1 }
 0x3a8   : > { %v1029_v33 = vld [vmem:[#allocation4 + $0x10] sm:$0xff] }
 0x3a9   : > { %v1030_v34 = vld [vmem:[#allocation4 + $0x18] sm:$0xff] }
 0x3c2   : > { %v1047_v30 = vpop.permute.xlu0 %1046 }
 0x3c3   : > { %v1060_v31 = vmul.f32 %v1047_v30, %v1028_v29 }
 0x3c5   : > { %1064 = vrot.lane.b32.xlu1 %v1060_v31, %s1549_s30 }
 0x3ce   : > { %v1052_v32 = vpop.permute.xlu1 %1051 }
 0x3cf   : > { %v1061_v35 = vmul.f32 %v1052_v32, %v1029_v33 }
 0x3d1   : > { %1068 = vrot.lane.b32.xlu0 %v1061_v35, %s1550_s4 }
 0x3d2   : > { %v799_v37 = vpop.permute.xlu1 %798 }
 0x3d3   : > { %v816_v38 = vmul.f32 %v799_v37, %v792_v36 }
 0x3d5   : > { %v1012_v40 = vadd.f32 %v1798_v41, %v816_v38 }
 0x3d7   : > { %1016 = vst.msk [vmem:[#allocation4] sm:$0xff] %vm264_vm0, %v1012_v40 }
 0x3de   : > { %v1027_v8 = vld [vmem:[#allocation4] sm:$0xff] }
 0x3e2   : > { %v1057_v0 = vpop.permute.xlu0 %1056 }
 0x3e3   : > { %v1062_v42 = vmul.f32 %v1057_v0, %v1030_v34 }
 0x3e5   : > { %1072 = vrot.lane.b32.xlu1 %v1062_v42, %s1551_s5 }
 0x3e6   : > { %v1042_v6 = vpop.permute.xlu0 %1041 }
 0x3e7   : > { %v1059_v43 = vmul.f32 %v1042_v6, %v1027_v8 }
 0x437   : > { %v1065_v9 = vpop.permute.xlu1 %1064 }
 0x438   : > { %v1075_v45 = vsel %vm264_vm0, %v1059_v43, %v1065_v9 }
 0x443   : > { %v1069_v44 = vpop.permute.xlu0 %1068 }
 0x444   : > { %v1077_v41 = vsel %vm1076_vm4, %v1075_v45, %v1069_v44 }
 0x457   : > { %v1073_v46 = vpop.permute.xlu1 %1072 }
 0x458   : > { %v1079_v48 = vsel %vm1078_vm5, %v1077_v41, %v1073_v46 }
 0x459   : > { %1081 = vst.msk [vmem:[%s249_s8] sm:$0xff] %vm1080_vm6, %v1079_v48 }
 0x45a PF: > { %s13_s14 = sadd.s32 1, %s1540_s14   ;;  %s1833_s12 = smov %s1536_s13 }
 0x45b   : > { %p10_p5 = scmp.ge.s32.totalorder %s13_s14, 4   ;;  %s1834_s13 = smov %s1836_s15 }
 0x45d   :  { %12 = sbr.rel (!%p10_p5) target bundleno = 2 (0x2), region = 76 }

// kernel: bttr_forward.19
= control target key start
LH: loop header
LB: loop body
LE: loop exit
PB: predicated region body
PF: predicated region fallthrough
CT: control target
= control target key end

     0   :  { %v116_v0 = vmov 0.0   ;;  %vm117_vm0 = vmmov 0   ;;  %vm32_vm1 = vcmask 261120   ;;  %s165_s1 = inlined_call_operand.vmem [shape: f32[32,128], index: 1, kind: input, shape index: {}]   ;;  %s166_s0 = inlined_call_operand.vmem [shape: f32[16,32], index: 0, kind: input, shape index: {}]   ;;  %s167_s2 = inlined_call_operand.vmem [shape: f32[1,128], index: 2, kind: input, shape index: {}]   ;;  %s168_s3 = inlined_call_operand.vmem [shape: f32[16,128], index: 3, kind: output, shape index: {}]  }
   0x1   :  { %106 = vmatprep.subr.bf16.mxu0 %v116_v0  ;;  %v26_v1 = vld [vmem:[%s165_s1] sm:$0xff]  ;;  %v27_v2 = vld [vmem:[%s165_s1 + $0x8] sm:$0xff]  ;;  %v28_v3 = vld [vmem:[%s165_s1 + $0x10] sm:$0xff]  ;;  %110 = vmatprep.mubr.msk.bf16.mxu0 %vm117_vm0, %v116_v0 }
   0x2   :  { %v30_v4 = vpack.c.bf16 %v27_v2, %v26_v1  ;;  %v29_v5 = vld [vmem:[%s165_s1 + $0x18] sm:$0xff]  ;;  %v23_v7 = vld [vmem:[%s166_s0] sm:$0xff]  ;;  %v24_v8 = vld [vmem:[%s166_s0 + $0x8] sm:$0xff] }
   0x3   :  { %v31_v6 = vpack.c.bf16 %v29_v5, %v28_v3  ;;  %v25_v9 = vpack.c.bf16 %v24_v8, %v23_v7  ;;  %v102_v10 = vld [vmem:[%s167_s2] ss:$0 sm:$0xff] }
   0x4   :  { %107 = vmatpush3.bf16.msra.mxu0 %v30_v4 }
   0x5   :  { %108 = vmatprep.subr.bf16.mxu0 %v116_v0 }
   0x8   :  { %109 = vmatpush3.bf16.msra.mxu0 %v31_v6 }
   0xb   :  { %111 = vmatmul.mubr.msk.bf16.vlgmr.msra.gmra.mrb[0].mxu0 %vm32_vm1, %v25_v9 }
  0xde   :  { %v70_v11 = vpop.f32.mrb[0].mxu0 }
  0xdf   :  { %v93_v12 = vadd.f32 %v102_v10, %v70_v11  ;;  %v112_v13 = vpop.f32.mrb[1].mxu0 }
  0xe0   :  { %v73_v14 = vpop.f32.mrb[2].mxu0 }
  0xe1   :  { %95 = vst [vmem:[%s168_s3] sm:$0xff] %v93_v12  ;;  %v94_v15 = vadd.f32 %v102_v10, %v73_v14  ;;  %v113_v16 = vpop.f32.mrb[3].mxu0 }
  0xe3   :  { %96 = vst [vmem:[%s168_s3 + $0x8] sm:$0xff] %v94_v15 }

// kernel: bttr_forward.18
= control target key start
LH: loop header
LB: loop body
LE: loop exit
PB: predicated region body
PF: predicated region fallthrough
CT: control target
= control target key end

     0   :  { %v251_v0 = vmov 0.0   ;;  %vm252_vm0 = vmmov 0   ;;  %vm51_vm1 = vcmask 261120   ;;  %vm111_vm2 = vcmask 523264   ;;  %s360_s1 = inlined_call_operand.vmem [shape: f32[32,64], index: 1, kind: input, shape index: {}]   ;;  %s361_s3 = inlined_call_operand.vmem [shape: f32[64,32], index: 3, kind: input, shape index: {}]   ;;  %s362_s0 = inlined_call_operand.vmem [shape: f32[16,32], index: 0, kind: input, shape index: {}]   ;;  %s363_s2 = inlined_call_operand.vmem [shape: f32[1,64], index: 2, kind: input, shape index: {}]   ;;  %s364_s4 = inlined_call_operand.vmem [shape: f32[1,32], index: 4, kind: input, shape index: {}]   ;;  %s365_s5 = inlined_call_operand.vmem [shape: f32[1,32], index: 5, kind: input, shape index: {}]   ;;  %s366_s6 = inlined_call_operand.vmem [shape: f32[1,32], index: 6, kind: input, shape index: {}]   ;;  %s367_s7 = inlined_call_operand.vmem [shape: f32[16,32], index: 7, kind: output, shape index: {}]  }
   0x1   :  { %225 = vmatprep.subr.bf16.mxu0 %v251_v0  ;;  %v38_v1 = vld [vmem:[%s360_s1] sm:$0xff]  ;;  %v39_v2 = vld [vmem:[%s360_s1 + $0x8] sm:$0xff]  ;;  %v40_v3 = vld [vmem:[%s360_s1 + $0x10] sm:$0xff]  ;;  %229 = vmatprep.mubr.msk.bf16.mxu0 %vm252_vm0, %v251_v0 }
   0x2   :  { %v42_v4 = vpack.c.bf16 %v39_v2, %v38_v1  ;;  %v41_v5 = vld [vmem:[%s360_s1 + $0x18] sm:$0xff]  ;;  %233 = vmatprep.subr.bf16.mxu1 %v251_v0  ;;  %241 = vmatprep.mubr.msk.bf16.mxu1 %vm252_vm0, %v251_v0  ;;  %v99_v6 = vld [vmem:[%s361_s3] sm:$0xff]  ;;  %v100_v7 = vld [vmem:[%s361_s3 + $0x8] sm:$0xff] }
   0x3   :  { %v101_v8 = vld [vmem:[%s361_s3 + $0x10] sm:$0xff]  ;;  %v43_v9 = vpack.c.bf16 %v41_v5, %v40_v3  ;;  %v27_v10 = vld [vmem:[%s362_s0] sm:$0xff]  ;;  %v28_v11 = vld [vmem:[%s362_s0 + $0x8] sm:$0xff]  ;;  %v107_v12 = vpack.c.bf16 %v100_v7, %v99_v6 }
   0x4   :  { %226 = vmatpush3.bf16.msra.mxu0 %v42_v4  ;;  %v102_v13 = vld [vmem:[%s361_s3 + $0x18] sm:$0xff]  ;;  %v37_v15 = vpack.c.bf16 %v28_v11, %v27_v10  ;;  %v103_v16 = vld [vmem:[%s361_s3 + $0x20] sm:$0xff]  ;;  %v104_v17 = vld [vmem:[%s361_s3 + $0x28] sm:$0xff] }
   0x5   :  { %227 = vmatprep.subr.bf16.mxu0 %v251_v0  ;;  %234 = vmatpush3.bf16.msra.mxu1 %v107_v12  ;;  %v108_v14 = vpack.c.bf16 %v102_v13, %v101_v8  ;;  %v109_v18 = vpack.c.bf16 %v104_v17, %v103_v16  ;;  %v105_v19 = vld [vmem:[%s361_s3 + $0x30] sm:$0xff]  ;;  %v106_v20 = vld [vmem:[%s361_s3 + $0x38] sm:$0xff]  ;;  %v212_v22 = vld [vmem:[%s363_s2] ss:$0 sm:$0xff] }
   0x6   :  { %235 = vmatprep.subr.bf16.mxu1 %v251_v0  ;;  %v110_v21 = vpack.c.bf16 %v106_v20, %v105_v19  ;;  %v211_v32 = vld [vmem:[%s364_s4] ss:$0 sm:$0xff] }
   0x7   :  { %v215_v60 = vld [vmem:[%s365_s5] ss:$0 sm:$0xff] }
   0x8   :  { %228 = vmatpush3.bf16.msra.mxu0 %v43_v9  ;;  %v216_v62 = vld [vmem:[%s366_s6] ss:$0 sm:$0xff] }
   0x9   :  { %236 = vmatpush3.bf16.msra.mxu1 %v108_v14 }
   0xa   :  { %237 = vmatprep.subr.bf16.mxu1 %v251_v0 }
   0xb   :  { %230 = vmatmul.mubr.msk.bf16.vlgmr.msra.gmra.mrb[0].mxu0 %vm51_vm1, %v37_v15 }
   0xd   :  { %238 = vmatpush3.bf16.msra.mxu1 %v109_v18 }
   0xe   :  { %239 = vmatprep.subr.bf16.mxu1 %v251_v0 }
  0x11   :  { %240 = vmatpush3.bf16.msra.mxu1 %v110_v21 }
  0xde   :  { %v89_v23 = vpop.f32.mrb[0].mxu0 }
  0xdf   :  { %v90_v24 = vadd.f32 %v212_v22, %v89_v23  ;;  %v231_v25 = vpop.f32.mrb[1].mxu0 }
  0xe0   :  { %v92_v26 = vpop.f32.mrb[2].mxu0 }
  0xe1   :  { %v93_v27 = vadd.f32 %v212_v22, %v92_v26  ;;  %v232_v28 = vpop.f32.mrb[3].mxu0  ;;  %v96_v29 = vmax.f32 %v90_v24, 0.0 }
  0xe3   :  { %v97_v30 = vmax.f32 %v93_v27, 0.0 }
  0xe5   :  { %v98_v31 = vpack.c.bf16 %v97_v30, %v96_v29 }
  0xe7   :  { %242 = vmatmul.mubr.msk.bf16.vlgmr.msra.gmra.mrb[0].mxu1 %vm111_vm2, %v98_v31 }
 0x1ba   :  { %v149_v33 = vpop.f32.mrb[0].mxu1 }
 0x1bb   :  { %v156_v34 = vadd.f32 %v211_v32, %v149_v33  ;;  %v243_v35 = vpop.f32.mrb[1].mxu1 }
 0x1bc   :  { %v152_v36 = vpop.f32.mrb[2].mxu1 }
 0x1bd   :  { %v157_v37 = vadd.f32 %v211_v32, %v152_v36  ;;  %v244_v38 = vpop.f32.mrb[3].mxu1  ;;  %v158_v39 = vadd.f32 %v156_v34, %v27_v10 }
 0x1bf   :  { %v160_v40 = vsel %vm51_vm1, %v158_v39, 0.0  ;;  %v159_v41 = vadd.f32 %v157_v37, %v28_v11 }
 0x1c0   :  { %161 = vadd.xlane.f32.xlu0 %v160_v40 }
 0x1c1   :  { %v163_v42 = vsel %vm51_vm1, %v159_v41, 0.0 }
 0x1c4   :  { %164 = vadd.xlane.f32.xlu0 %v163_v42 }
 0x24d   :  { %v162_v43 = vpop.xlane.xlu0 %161 }
 0x24e   :  { %v167_v44 = vmul.f32 0.03125, %v162_v43 }
 0x250   :  { %v169_v45 = vsub.f32 %v158_v39, %v167_v44 }
 0x251   :  { %v165_v46 = vpop.xlane.xlu0 %164 }
 0x252   :  { %v168_v47 = vmul.f32 0.03125, %v165_v46  ;;  %v171_v48 = vmul.f32 %v169_v45, %v169_v45 }
 0x254   :  { %v170_v49 = vsub.f32 %v159_v41, %v168_v47  ;;  %v173_v50 = vsel %vm51_vm1, %v171_v48, 0.0 }
 0x255   :  { %174 = vadd.xlane.f32.xlu1 %v173_v50 }
 0x256   :  { %v172_v51 = vmul.f32 %v170_v49, %v170_v49 }
 0x258   :  { %v176_v52 = vsel %vm51_vm1, %v172_v51, 0.0 }
 0x259   :  { %177 = vadd.xlane.f32.xlu1 %v176_v52 }
 0x2e2   :  { %v175_v53 = vpop.xlane.xlu1 %174 }
 0x2e3   :  { %v179_v54 = vmul.f32 0.03125, %v175_v53 }
 0x2e5   :  { %v181_v55 = vadd.f32 1e-05, %v179_v54 }
 0x2e6   :  { %v178_v56 = vpop.xlane.xlu1 %177 }
 0x2e7   :  { %247 = vrsqrt.f32 %v181_v55  ;;  %v180_v57 = vmul.f32 0.03125, %v178_v56 }
 0x2e9   :  { %v182_v58 = vadd.f32 1e-05, %v180_v57 }
 0x2eb   :  { %249 = vrsqrt.f32 %v182_v58 }
 0x2f1   :  { %v248_v59 = vpop.eup %247 }
 0x2f2   :  { %v185_v61 = vmul.f32 %v248_v59, %v169_v45 }
 0x2f4   :  { %v194_v63 = vmul.f32 %v215_v60, %v185_v61 }
 0x2f5   :  { %v250_v0 = vpop.eup %249 }
 0x2f6   :  { %v203_v1 = vadd.f32 %v216_v62, %v194_v63  ;;  %v186_v2 = vmul.f32 %v250_v0, %v170_v49 }
 0x2f8   :  { %205 = vst.msk [vmem:[%s367_s7] sm:$0xff] %vm51_vm1, %v203_v1  ;;  %v195_v3 = vmul.f32 %v215_v60, %v186_v2 }
 0x2fa   :  { %v204_v4 = vadd.f32 %v216_v62, %v195_v3 }
 0x2fc   :  { %206 = vst.msk [vmem:[%s367_s7 + $0x8] sm:$0xff] %vm51_vm1, %v204_v4 }

// kernel: bttr_forward.10
= control target key start
LH: loop header
LB: loop body
LE: loop exit
PB: predicated region body
PF: predicated region fallthrough
CT: control target
= control target key end

     0   :  { %s7428_s27 = smov 0   ;;  %s9730_s0 = inlined_call_operand.vmem [shape: f32[2,18,18,1], index: 0, kind: input, shape index: {}]   ;;  %s9731_s1 = inlined_call_operand.vmem [shape: f32[9,1,16], index: 1, kind: input, shape index: {}]   ;;  %s9732_s2 = inlined_call_operand.vmem [shape: f32[1,16], index: 2, kind: input, shape index: {}]   ;;  %s9733_s3 = inlined_call_operand.vmem [shape: f32[9,16,8], index: 3, kind: input, shape index: {}]   ;;  %s9734_s4 = inlined_call_operand.vmem [shape: f32[1,8], index: 4, kind: input, shape index: {}]   ;;  %s9735_s5 = inlined_call_operand.vmem [shape: f32[16,32], index: 5, kind: input, shape index: {}]   ;;  %s9736_s6 = inlined_call_operand.vmem [shape: f32[8,32], index: 6, kind: input, shape index: {}]   ;;  %s9737_s7 = inlined_call_operand.vmem [shape: f32[1,32], index: 7, kind: input, shape index: {}]   ;;  %s9738_s8 = inlined_call_operand.vmem [shape: f32[2,16,16,32], index: 8, kind: output, shape index: {}]  }
   0x1 LB: > { %s6075_s28 = sadd.s32 4294967295, %s7379_s27   ;;  %p6079_p0 = scmp.ge.s32.totalorder %s7379_s27, 1  ;;  %s7379_s27 = sphi %s7428_s27, %s18_s27  }
   0x2   : > { %p262_p1 = scmp.lt.s32.totalorder %s7379_s27, 3 }
   0x4   : > { %p263_p2 = pnand %p6079_p0, %p262_p1 }
   0x6   : > { %266 = sbr.rel (%p263_p2) target bundleno = 1501 (0x5dd), region = 52 }
   0xd   : > { %p296_p3 = scmp.lt.s32.totalorder %s6075_s28, 1  ;;  %v7381_v0 = vmov 0   ;;  %vm2755_vm0 = vcmask 130048   ;;  %vm2758_vm1 = vcmask 123904   ;;  %vm5574_vm2 = vcmask 1043456  }
   0xe   : > { %7354 = vset.pattern.permute.xlu1 %v7381_v0  ;;  %7353 = vset.pattern.permute.xlu0 %v7381_v0  ;;  %vm5525_vm3 = vcmask 64512   ;;  %vm5987_vm4 = vcmask 261120  }
   0xf   : > { %s9832_s28 = smov (!%p296_p3, %s6075_s28), 1 }
  0x10   : > { %s7342_s29 = smul.u32 432, %s9832_s28  ;;  %s6489_s13 = sshll.u32 %s9832_s28, 8 }
  0x11   : > { %s9629_s18 = scalar_lea.vmem %s9738_s8, %s6489_s13 }
  0x12   : > { %s7442_s10 = scalar_lea.vmem %s9730_s0, %s7342_s29 }
  0x13   : > { %v7445_v1 = vld [vmem:[%s7442_s10 + $0x18] sm:$0xff]  ;;  %v307_v2 = vld [vmem:[%s7442_s10] sm:$0xff]  ;;  %v308_v4 = vld [vmem:[%s7442_s10 + $0x8] sm:$0xff] }
  0x14   : > { %352 = vperm.xlu1 %7354, %v7445_v1   ;;  %342 = vperm.xlu0 %7353, %v307_v2   ;;  %v7450_v3 = vld [vmem:[%s7442_s10 + $0x20] sm:$0xff]  ;;  %v7455_v5 = vld [vmem:[%s7442_s10 + $0x38] sm:$0xff]  ;;  %v7458_v6 = vld [vmem:[%s7442_s10 + $0x30] sm:$0xff] }
  0x15   : > { %v7463_v7 = vld [vmem:[%s7442_s10 + $0x50] sm:$0xff]  ;;  %v7466_v8 = vld [vmem:[%s7442_s10 + $0x48] sm:$0xff]  ;;  %v7474_v10 = vld [vmem:[%s7442_s10 + $0x60] sm:$0xff] }
  0x16   : > { %v7471_v9 = vld [vmem:[%s7442_s10 + $0x68] sm:$0xff]  ;;  %v7479_v11 = vld [vmem:[%s7442_s10 + $0x80] sm:$0xff]  ;;  %v7482_v12 = vld [vmem:[%s7442_s10 + $0x78] sm:$0xff] }
  0x17   : > { %v7487_v13 = vld [vmem:[%s7442_s10 + $0x98] sm:$0xff]  ;;  %v7490_v14 = vld [vmem:[%s7442_s10 + $0x90] sm:$0xff]  ;;  %v7498_v16 = vld [vmem:[%s7442_s10 + $0xa8] sm:$0xff] }
  0x18   : > { %357 = vperm.xlu1 %7354, %v7450_v3   ;;  %347 = vperm.xlu0 %7353, %v308_v4   ;;  %v7495_v15 = vld [vmem:[%s7442_s10 + $0xb0] sm:$0xff]  ;;  %v7503_v17 = vld [vmem:[%s7442_s10 + $0xc8] sm:$0xff]  ;;  %v7506_v18 = vld [vmem:[%s7442_s10 + $0xc0] sm:$0xff] }
  0x19   : > { %v326_v19 = vld [vmem:[%s7442_s10 + $0xe0] sm:$0xff]  ;;  %v325_v20 = vld [vmem:[%s7442_s10 + $0xd8] sm:$0xff]  ;;  %v327_v22 = vld [vmem:[%s7442_s10 + $0xf0] sm:$0xff] }
  0x1a   : > { %v328_v21 = vld [vmem:[%s7442_s10 + $0xf8] sm:$0xff]  ;;  %v330_v23 = vld [vmem:[%s7442_s10 + $0x110] sm:$0xff]  ;;  %v329_v24 = vld [vmem:[%s7442_s10 + $0x108] sm:$0xff] }
  0x1b   : > { %v332_v25 = vld [vmem:[%s7442_s10 + $0x128] sm:$0xff]  ;;  %v331_v26 = vld [vmem:[%s7442_s10 + $0x120] sm:$0xff]  ;;  %v333_v28 = vld [vmem:[%s7442_s10 + $0x138] sm:$0xff] }
  0x1c   : > { %367 = vperm.xlu1 %7354, %v7455_v5   ;;  %362 = vperm.xlu0 %7353, %v7458_v6   ;;  %v334_v27 = vld [vmem:[%s7442_s10 + $0x140] sm:$0xff]  ;;  %v336_v29 = vld [vmem:[%s7442_s10 + $0x158] sm:$0xff]  ;;  %v335_v30 = vld [vmem:[%s7442_s10 + $0x150] sm:$0xff] }
  0x1d   : > { %v338_v31 = vld [vmem:[%s7442_s10 + $0x170] sm:$0xff]  ;;  %v337_v32 = vld [vmem:[%s7442_s10 + $0x168] sm:$0xff]  ;;  %v572_v36 = vld [vmem:[%s7442_s10 + $0x19] sm:$0xff] }
  0x1e   : > { %v571_v33 = vld [vmem:[%s7442_s10 + $0x9] sm:$0xff]  ;;  %v570_v34 = vld [vmem:[%s7442_s10 + $0x1] sm:$0xff]  ;;  %v7529_v37 = vld [vmem:[%s7442_s10 + $0x39] sm:$0xff] }
  0x1f   : > { %v573_v35 = vld [vmem:[%s7442_s10 + $0x21] sm:$0xff]  ;;  %v7532_v38 = vld [vmem:[%s7442_s10 + $0x31] sm:$0xff]  ;;  %v7540_v40 = vld [vmem:[%s7442_s10 + $0x49] sm:$0xff] }
  0x20   : > { %377 = vperm.xlu1 %7354, %v7463_v7   ;;  %372 = vperm.xlu0 %7353, %v7466_v8   ;;  %v7537_v39 = vld [vmem:[%s7442_s10 + $0x51] sm:$0xff]  ;;  %v7545_v41 = vld [vmem:[%s7442_s10 + $0x69] sm:$0xff]  ;;  %v7548_v42 = vld [vmem:[%s7442_s10 + $0x61] sm:$0xff] }
  0x21   : > { %v7553_v43 = vld [vmem:[%s7442_s10 + $0x81] sm:$0xff]  ;;  %v7556_v44 = vld [vmem:[%s7442_s10 + $0x79] sm:$0xff]  ;;  %v7564_v46 = vld [vmem:[%s7442_s10 + $0x91] sm:$0xff] }
  0x22   : > { %v7561_v45 = vld [vmem:[%s7442_s10 + $0x99] sm:$0xff]  ;;  %v7569_v47 = vld [vmem:[%s7442_s10 + $0xb1] sm:$0xff]  ;;  %v7572_v48 = vld [vmem:[%s7442_s10 + $0xa9] sm:$0xff] }
  0x23   : > { %v7577_v49 = vld [vmem:[%s7442_s10 + $0xc9] sm:$0xff]  ;;  %v7580_v50 = vld [vmem:[%s7442_s10 + $0xc1] sm:$0xff]  ;;  %v588_v52 = vld [vmem:[%s7442_s10 + $0xd9] sm:$0xff] }
  0x24   : > { %387 = vperm.xlu1 %7354, %v7471_v9   ;;  %382 = vperm.xlu0 %7353, %v7474_v10   ;;  %v589_v51 = vld [vmem:[%s7442_s10 + $0xe1] sm:$0xff]  ;;  %v835_v53 = vld [vmem:[%s7442_s10 + $0xa] sm:$0xff]  ;;  %v7604_v60 = vld [vmem:[%s7442_s10 + $0x32] sm:$0xff] }
  0x25   : > { %v834_v54 = vld [vmem:[%s7442_s10 + $0x2] sm:$0xff]  ;;  %v836_v56 = vld [vmem:[%s7442_s10 + $0x1a] sm:$0xff]  ;;  %v7628_v4 = vld [vmem:[%s7442_s10 + $0x4a] sm:$0xff] }
  0x26   : > { %v837_v55 = vld [vmem:[%s7442_s10 + $0x22] sm:$0xff]  ;;  %v7601_v59 = vld [vmem:[%s7442_s10 + $0x3a] sm:$0xff] }
  0x28   : > { %397 = vperm.xlu1 %7354, %v7479_v11   ;;  %392 = vperm.xlu0 %7353, %v7482_v12  }
  0x2c   : > { %407 = vperm.xlu1 %7354, %v7487_v13   ;;  %402 = vperm.xlu0 %7353, %v7490_v14  }
  0x30   : > { %417 = vperm.xlu1 %7354, %v7495_v15   ;;  %412 = vperm.xlu0 %7353, %v7498_v16  }
  0x34   : > { %427 = vperm.xlu1 %7354, %v7503_v17   ;;  %422 = vperm.xlu0 %7353, %v7506_v18  }
  0x38   : > { %437 = vperm.xlu1 %7354, %v326_v19   ;;  %432 = vperm.xlu0 %7353, %v325_v20  }
  0x3c   : > { %447 = vperm.xlu1 %7354, %v328_v21   ;;  %442 = vperm.xlu0 %7353, %v327_v22  }
  0x40   : > { %457 = vperm.xlu1 %7354, %v330_v23   ;;  %452 = vperm.xlu0 %7353, %v329_v24  }
  0x44   : > { %467 = vperm.xlu1 %7354, %v332_v25   ;;  %462 = vperm.xlu0 %7353, %v331_v26  }
  0x48   : > { %477 = vperm.xlu1 %7354, %v334_v27   ;;  %472 = vperm.xlu0 %7353, %v333_v28  }
  0x4c   : > { %487 = vperm.xlu1 %7354, %v336_v29   ;;  %482 = vperm.xlu0 %7353, %v335_v30  }
  0x50   : > { %497 = vperm.xlu1 %7354, %v338_v31   ;;  %492 = vperm.xlu0 %7353, %v337_v32   ;;  %v7382_v31 = vmov 0.0  }
  0x51   : > { %2761 = vst.msk [vmem:[#allocation2 + $0x20] sm:$0xff] %vm2755_vm0, %v7382_v31  ;;  %2756 = vst.msk [vmem:[#allocation2] sm:$0xff] %vm2755_vm0, %v7382_v31 }
  0x52   : > { %2757 = vst.msk [vmem:[#allocation2 + $0x8] sm:$0xff] %vm2755_vm0, %v7382_v31  ;;  %2760 = vst.msk [vmem:[#allocation2 + $0x18] sm:$0xff] %vm2755_vm0, %v7382_v31 }
  0x53   : > { %2763 = vst.msk [vmem:[#allocation2 + $0x30] sm:$0xff] %vm2755_vm0, %v7382_v31  ;;  %2764 = vst.msk [vmem:[#allocation2 + $0x38] sm:$0xff] %vm2755_vm0, %v7382_v31 }
  0x54   : > { %611 = vperm.xlu1 %7354, %v571_v33   ;;  %606 = vperm.xlu0 %7353, %v570_v34   ;;  %2766 = vst.msk [vmem:[#allocation2 + $0x48] sm:$0xff] %vm2755_vm0, %v7382_v31  ;;  %2767 = vst.msk [vmem:[#allocation2 + $0x50] sm:$0xff] %vm2755_vm0, %v7382_v31 }
  0x55   : > { %2769 = vst.msk [vmem:[#allocation2 + $0x60] sm:$0xff] %vm2755_vm0, %v7382_v31  ;;  %2770 = vst.msk [vmem:[#allocation2 + $0x68] sm:$0xff] %vm2755_vm0, %v7382_v31 }
  0x56   : > { %2772 = vst.msk [vmem:[#allocation2 + $0x78] sm:$0xff] %vm2755_vm0, %v7382_v31  ;;  %2773 = vst.msk [vmem:[#allocation2 + $0x80] sm:$0xff] %vm2755_vm0, %v7382_v31 }
  0x57   : > { %2775 = vst.msk [vmem:[#allocation2 + $0x90] sm:$0xff] %vm2755_vm0, %v7382_v31  ;;  %2776 = vst.msk [vmem:[#allocation2 + $0x98] sm:$0xff] %vm2755_vm0, %v7382_v31 }
  0x58   : > { %621 = vperm.xlu1 %7354, %v573_v35   ;;  %616 = vperm.xlu0 %7353, %v572_v36   ;;  %2778 = vst.msk [vmem:[#allocation2 + $0xa8] sm:$0xff] %vm2755_vm0, %v7382_v31  ;;  %2779 = vst.msk [vmem:[#allocation2 + $0xb0] sm:$0xff] %vm2755_vm0, %v7382_v31 }
  0x59   : > { %2781 = vst.msk [vmem:[#allocation2 + $0xc0] sm:$0xff] %vm2755_vm0, %v7382_v31  ;;  %2782 = vst.msk [vmem:[#allocation2 + $0xc8] sm:$0xff] %vm2755_vm0, %v7382_v31 }
  0x5a   : > { %2784 = vst.msk [vmem:[#allocation2 + $0xd8] sm:$0xff] %vm2755_vm0, %v7382_v31  ;;  %2785 = vst.msk [vmem:[#allocation2 + $0xe0] sm:$0xff] %vm2755_vm0, %v7382_v31 }
  0x5b   : > { %2787 = vst.msk [vmem:[#allocation2 + $0xf0] sm:$0xff] %vm2755_vm0, %v7382_v31  ;;  %2788 = vst.msk [vmem:[#allocation2 + $0xf8] sm:$0xff] %vm2755_vm0, %v7382_v31 }
  0x5c   : > { %631 = vperm.xlu1 %7354, %v7529_v37   ;;  %626 = vperm.xlu0 %7353, %v7532_v38   ;;  %2790 = vst.msk [vmem:[#allocation2 + $0x108] sm:$0xff] %vm2755_vm0, %v7382_v31  ;;  %2791 = vst.msk [vmem:[#allocation2 + $0x110] sm:$0xff] %vm2755_vm0, %v7382_v31 }
  0x5d   : > { %2793 = vst.msk [vmem:[#allocation2 + $0x120] sm:$0xff] %vm2755_vm0, %v7382_v31  ;;  %2794 = vst.msk [vmem:[#allocation2 + $0x128] sm:$0xff] %vm2755_vm0, %v7382_v31 }
  0x5e   : > { %2796 = vst.msk [vmem:[#allocation2 + $0x138] sm:$0xff] %vm2755_vm0, %v7382_v31  ;;  %2797 = vst.msk [vmem:[#allocation2 + $0x140] sm:$0xff] %vm2755_vm0, %v7382_v31 }
  0x5f   : > { %2799 = vst.msk [vmem:[#allocation2 + $0x150] sm:$0xff] %vm2755_vm0, %v7382_v31  ;;  %2800 = vst.msk [vmem:[#allocation2 + $0x158] sm:$0xff] %vm2755_vm0, %v7382_v31 }
  0x60   : > { %641 = vperm.xlu1 %7354, %v7537_v39   ;;  %636 = vperm.xlu0 %7353, %v7540_v40   ;;  %2802 = vst.msk [vmem:[#allocation2 + $0x168] sm:$0xff] %vm2755_vm0, %v7382_v31  ;;  %2803 = vst.msk [vmem:[#allocation2 + $0x170] sm:$0xff] %vm2755_vm0, %v7382_v31 }
  0x61   : > { %2805 = vst.msk [vmem:[#allocation2 + $0x180] sm:$0xff] %vm2755_vm0, %v7382_v31  ;;  %2806 = vst.msk [vmem:[#allocation2 + $0x188] sm:$0xff] %vm2755_vm0, %v7382_v31 }
  0x62   : > { %2808 = vst.msk [vmem:[#allocation2 + $0x198] sm:$0xff] %vm2755_vm0, %v7382_v31  ;;  %2809 = vst.msk [vmem:[#allocation2 + $0x1a0] sm:$0xff] %vm2755_vm0, %v7382_v31 }
  0x63   : > { %2762 = vst.msk [vmem:[#allocation2 + $0x28] sm:$0x3] %vm2758_vm1, %v7382_v31  ;;  %2759 = vst.msk [vmem:[#allocation2 + $0x10] sm:$0x3] %vm2758_vm1, %v7382_v31 }
  0x64   : > { %651 = vperm.xlu1 %7354, %v7545_v41   ;;  %646 = vperm.xlu0 %7353, %v7548_v42   ;;  %2765 = vst.msk [vmem:[#allocation2 + $0x40] sm:$0x3] %vm2758_vm1, %v7382_v31  ;;  %2768 = vst.msk [vmem:[#allocation2 + $0x58] sm:$0x3] %vm2758_vm1, %v7382_v31 }
  0x65   : > { %2771 = vst.msk [vmem:[#allocation2 + $0x70] sm:$0x3] %vm2758_vm1, %v7382_v31  ;;  %2774 = vst.msk [vmem:[#allocation2 + $0x88] sm:$0x3] %vm2758_vm1, %v7382_v31 }
  0x66   : > { %2777 = vst.msk [vmem:[#allocation2 + $0xa0] sm:$0x3] %vm2758_vm1, %v7382_v31  ;;  %2780 = vst.msk [vmem:[#allocation2 + $0xb8] sm:$0x3] %vm2758_vm1, %v7382_v31 }
  0x67   : > { %2783 = vst.msk [vmem:[#allocation2 + $0xd0] sm:$0x3] %vm2758_vm1, %v7382_v31  ;;  %2786 = vst.msk [vmem:[#allocation2 + $0xe8] sm:$0x3] %vm2758_vm1, %v7382_v31 }
  0x68   : > { %661 = vperm.xlu1 %7354, %v7553_v43   ;;  %656 = vperm.xlu0 %7353, %v7556_v44   ;;  %2789 = vst.msk [vmem:[#allocation2 + $0x100] sm:$0x3] %vm2758_vm1, %v7382_v31  ;;  %2792 = vst.msk [vmem:[#allocation2 + $0x118] sm:$0x3] %vm2758_vm1, %v7382_v31 }
  0x69   : > { %2795 = vst.msk [vmem:[#allocation2 + $0x130] sm:$0x3] %vm2758_vm1, %v7382_v31  ;;  %2798 = vst.msk [vmem:[#allocation2 + $0x148] sm:$0x3] %vm2758_vm1, %v7382_v31 }
  0x6a   : > { %2801 = vst.msk [vmem:[#allocation2 + $0x160] sm:$0x3] %vm2758_vm1, %v7382_v31  ;;  %2804 = vst.msk [vmem:[#allocation2 + $0x178] sm:$0x3] %vm2758_vm1, %v7382_v31 }
  0x6b   : > { %2807 = vst.msk [vmem:[#allocation2 + $0x190] sm:$0x3] %vm2758_vm1, %v7382_v31  ;;  %2810 = vst.msk [vmem:[#allocation2 + $0x1a8] sm:$0x3] %vm2758_vm1, %v7382_v31  ;;  %v6346_v31 = vld [vmem:[%s9733_s3 + $0x38] sm:$0xff] }
  0x6c   : > { %671 = vperm.xlu1 %7354, %v7561_v45   ;;  %666 = vperm.xlu0 %7353, %v7564_v46  }
  0x70   : > { %681 = vperm.xlu1 %7354, %v7569_v47   ;;  %676 = vperm.xlu0 %7353, %v7572_v48  }
  0x74   : > { %691 = vperm.xlu1 %7354, %v7577_v49   ;;  %686 = vperm.xlu0 %7353, %v7580_v50  }
  0x78   : > { %701 = vperm.xlu1 %7354, %v589_v51   ;;  %696 = vperm.xlu0 %7353, %v588_v52   ;;  %v6294_v51 = vld [vmem:[%s9733_s3 + $0x18] sm:$0xff] }
  0x7c   : > { %875 = vperm.xlu1 %7354, %v835_v53   ;;  %870 = vperm.xlu0 %7353, %v834_v54  }
  0x80   : > { %885 = vperm.xlu1 %7354, %v837_v55   ;;  %880 = vperm.xlu0 %7353, %v836_v56  }
  0x84   : > { %1140 = vperm.xlu1 %7354, %v7450_v3   ;;  %1135 = vperm.xlu0 %7353, %v7445_v1   ;;  %v7625_v3 = vld [vmem:[%s7442_s10 + $0x52] sm:$0xff] }
  0x88   : > { %1150 = vperm.xlu1 %7354, %v7455_v5   ;;  %1145 = vperm.xlu0 %7353, %v7458_v6  }
  0x8c   : > { %1404 = vperm.xlu1 %7354, %v573_v35   ;;  %1399 = vperm.xlu0 %7353, %v572_v36  }
  0x90   : > { %1414 = vperm.xlu1 %7354, %v7529_v37   ;;  %1409 = vperm.xlu0 %7353, %v7532_v38  }
  0x93   : > { %v7596_v57 = vpop.permute.xlu1 %352  ;;  %v7598_v58 = vpop.permute.xlu0 %342 }
  0x94   : > { %1668 = vperm.xlu1 %7354, %v837_v55   ;;  %1663 = vperm.xlu0 %7353, %v836_v56   ;;  %v2895_v55 = vld [vmem:[#allocation2 + $0x1] sm:$0xff]  ;;  %v2896_v56 = vld [vmem:[#allocation2 + $0x9] sm:$0xff] }
  0x97   : > { %v7606_v61 = vpop.permute.xlu1 %357  ;;  %v7608_v62 = vpop.permute.xlu0 %347 }
  0x98   : > { %1678 = vperm.xlu1 %7354, %v7601_v59   ;;  %1673 = vperm.xlu0 %7353, %v7604_v60  }
  0x9b   : > { %v7612_v63 = vpop.permute.xlu1 %367  ;;  %v7614_v0 = vpop.permute.xlu0 %362 }
  0x9c   : > { %895 = vperm.xlu1 %7354, %v7601_v59   ;;  %890 = vperm.xlu0 %7353, %v7604_v60  }
  0x9f   : > { %v7618_v1 = vpop.permute.xlu1 %377  ;;  %v7620_v2 = vpop.permute.xlu0 %372 }
  0xa0   : > { %1933 = vperm.xlu1 %7354, %v7455_v5   ;;  %1928 = vperm.xlu0 %7353, %v7458_v6  }
  0xa3   : > { %v7630_v19 = vpop.permute.xlu1 %387  ;;  %v7632_v20 = vpop.permute.xlu0 %382 }
  0xa4   : > { %9743 = vst [vmem:[#allocation3_spill] sm:$0xff] %v7630_v19  ;;  %9744 = vst [vmem:[#allocation4_spill] sm:$0xff] %v7632_v20  ;;  %905 = vperm.xlu1 %7354, %v7625_v3   ;;  %900 = vperm.xlu0 %7353, %v7628_v4   ;;  %v7978_v20 = vld [vmem:[%s9731_s1 + $0x7] ss:$0 sm:$0xff] }
  0xa7   : > { %v7636_v21 = vpop.permute.xlu1 %397  ;;  %v7638_v22 = vpop.permute.xlu0 %392 }
  0xa8   : > { %9745 = vst [vmem:[#allocation5_spill] sm:$0xff] %v7636_v21  ;;  %9746 = vst [vmem:[#allocation6_spill] sm:$0xff] %v7638_v22  ;;  %1943 = vperm.xlu1 %7354, %v7463_v7   ;;  %1938 = vperm.xlu0 %7353, %v7466_v8  }
  0xab   : > { %v7642_v5 = vpop.permute.xlu1 %407  ;;  %v7644_v6 = vpop.permute.xlu0 %402 }
  0xac   : > { %9747 = vst [vmem:[#allocation7_spill] sm:$0xff] %v7642_v5  ;;  %9748 = vst [vmem:[#allocation8_spill] sm:$0xff] %v7644_v6  ;;  %1160 = vperm.xlu1 %7354, %v7463_v7   ;;  %1155 = vperm.xlu0 %7353, %v7466_v8  }
  0xaf   : > { %v7648_v23 = vpop.permute.xlu1 %417  ;;  %v7650_v24 = vpop.permute.xlu0 %412 }
  0xb0   : > { %9749 = vst [vmem:[#allocation9_spill] sm:$0xff] %v7648_v23  ;;  %9750 = vst [vmem:[#allocation10_spill] sm:$0xff] %v7650_v24  ;;  %2197 = vperm.xlu1 %7354, %v7529_v37   ;;  %2192 = vperm.xlu0 %7353, %v7532_v38   ;;  %v6293_v38 = vld [vmem:[%s9733_s3 + $0x10] sm:$0xff] }
  0xb1   : > { %v2946_v52 = vpack.c.bf16 %v6294_v51, %v6293_v38 }
  0xb3   : > { %v7654_v25 = vpop.permute.xlu1 %427  ;;  %v7656_v26 = vpop.permute.xlu0 %422  ;;  %6677 = vmatprep.subr.bf16.mxu1 %v2946_v52 }
  0xb4   : > { %9751 = vst [vmem:[#allocation11_spill] sm:$0xff] %v7654_v25  ;;  %9752 = vst [vmem:[#allocation12_spill] sm:$0xff] %v7656_v26  ;;  %1170 = vperm.xlu1 %7354, %v7471_v9   ;;  %1165 = vperm.xlu0 %7353, %v7474_v10  }
  0xb5   : > { %6678 = vmatpush3.bf16.msra.mxu1 %v2946_v52 }
  0xb7   : > { %v7660_v27 = vpop.permute.xlu1 %437  ;;  %v7662_v7 = vpop.permute.xlu0 %432 }
  0xb8   : > { %9753 = vst [vmem:[#allocation13_spill] sm:$0xff] %v7660_v27  ;;  %9754 = vst [vmem:[#allocation14_spill] sm:$0xff] %v7662_v7  ;;  %2207 = vperm.xlu1 %7354, %v7537_v39   ;;  %2202 = vperm.xlu0 %7353, %v7540_v40  }
  0xbb   : > { %v7666_v8 = vpop.permute.xlu1 %447  ;;  %v7668_v28 = vpop.permute.xlu0 %442 }
  0xbc   : > { %9755 = vst [vmem:[#allocation15_spill] sm:$0xff] %v7666_v8  ;;  %9756 = vst [vmem:[#allocation16_spill] sm:$0xff] %v7668_v28  ;;  %1424 = vperm.xlu1 %7354, %v7537_v39   ;;  %1419 = vperm.xlu0 %7353, %v7540_v40   ;;  %v6163_v39 = vld [vmem:[%s7442_s10 + $0x6a] sm:$0xff]  ;;  %v6162_v40 = vld [vmem:[%s7442_s10 + $0x62] sm:$0xff] }
  0xbf   : > { %v7672_v29 = vpop.permute.xlu1 %457  ;;  %v7674_v30 = vpop.permute.xlu0 %452 }
  0xc0   : > { %9757 = vst [vmem:[#allocation17_spill] sm:$0xff] %v7672_v29  ;;  %9758 = vst [vmem:[#allocation18_spill] sm:$0xff] %v7674_v30  ;;  %2461 = vperm.xlu1 %7354, %v7601_v59   ;;  %2456 = vperm.xlu0 %7353, %v7604_v60   ;;  %v2927_v59 = vpack.c.bf16 %v2896_v56, %v2895_v55  ;;  %v845_v55 = vld [vmem:[%s7442_s10 + $0x82] sm:$0xff]  ;;  %v844_v56 = vld [vmem:[%s7442_s10 + $0x7a] sm:$0xff] }
  0xc1   : > { %v7863_v30 = vld [vmem:[%s7442_s10 + $0xaa] sm:$0xff] }
  0xc2   : > { %6679 = vmatprep.mubr.msk.bf16.mxu1 %vm2755_vm0, %v2927_v59 }
  0xc3   : > { %v7732_v32 = vpop.permute.xlu1 %467  ;;  %v7734_v33 = vpop.permute.xlu0 %462 }
  0xc4   : > { %9759 = vst [vmem:[#allocation19_spill] sm:$0xff] %v7732_v32  ;;  %9760 = vst [vmem:[#allocation20_spill] sm:$0xff] %v7734_v33  ;;  %1434 = vperm.xlu1 %7354, %v7545_v41   ;;  %1429 = vperm.xlu0 %7353, %v7548_v42  }
  0xc7   : > { %v7738_v34 = vpop.permute.xlu1 %477  ;;  %v7740_v35 = vpop.permute.xlu0 %472 }
  0xc8   : > { %9761 = vst [vmem:[#allocation21_spill] sm:$0xff] %v7738_v34  ;;  %9762 = vst [vmem:[#allocation22_spill] sm:$0xff] %v7740_v35  ;;  %2471 = vperm.xlu1 %7354, %v7625_v3   ;;  %2466 = vperm.xlu0 %7353, %v7628_v4  }
  0xcb   : > { %v7744_v36 = vpop.permute.xlu1 %487  ;;  %v7746_v37 = vpop.permute.xlu0 %482 }
  0xcc   : > { %9763 = vst [vmem:[#allocation23_spill] sm:$0xff] %v7744_v36  ;;  %9764 = vst [vmem:[#allocation24_spill] sm:$0xff] %v7746_v37  ;;  %1688 = vperm.xlu1 %7354, %v7625_v3   ;;  %1683 = vperm.xlu0 %7353, %v7628_v4   ;;  %v6345_v4 = vld [vmem:[%s9733_s3 + $0x30] sm:$0xff] }
  0xcd   : > { %v7773_v38 = vpack.c.bf16 %v6346_v31, %v6345_v4 }
  0xcf   : > { %v7758_v53 = vpop.permute.xlu1 %497  ;;  %v7760_v54 = vpop.permute.xlu0 %492  ;;  %9767 = vst [vmem:[#allocation27_spill] sm:$0xff] %v7773_v38  ;;  %6779 = vmatprep.subr.bf16.mxu0 %v7773_v38 }
  0xd0   : > { %9765 = vst [vmem:[#allocation25_spill] sm:$0xff] %v7758_v53  ;;  %9766 = vst [vmem:[#allocation26_spill] sm:$0xff] %v7760_v54  ;;  %1698 = vperm.xlu1 %7354, %v6163_v39   ;;  %1693 = vperm.xlu0 %7353, %v6162_v40  }
  0xd1   : > { %6780 = vmatpush3.bf16.msra.mxu0 %v7773_v38 }
  0xd3   : > { %v7763_v60 = vpop.permute.xlu1 %611  ;;  %v7765_v3 = vpop.permute.xlu0 %606 }
  0xd4   : > { %915 = vperm.xlu1 %7354, %v6163_v39   ;;  %910 = vperm.xlu0 %7353, %v6162_v40  }
  0xd7   : > { %v7775_v51 = vpop.permute.xlu1 %621  ;;  %v7777_v52 = vpop.permute.xlu0 %616 }
  0xd8   : > { %1953 = vperm.xlu1 %7354, %v7471_v9   ;;  %1948 = vperm.xlu0 %7353, %v7474_v10  }
  0xdb   : > { %v7785_v59 = vpop.permute.xlu1 %631  ;;  %v7787_v54 = vpop.permute.xlu0 %626 }
  0xdc   : > { %925 = vperm.xlu1 %7354, %v845_v55   ;;  %920 = vperm.xlu0 %7353, %v844_v56  }
  0xdf   : > { %v7789_v4 = vpop.permute.xlu1 %641  ;;  %v7791_v31 = vpop.permute.xlu0 %636 }
  0xe0   : > { %1963 = vperm.xlu1 %7354, %v7479_v11   ;;  %1958 = vperm.xlu0 %7353, %v7482_v12  }
  0xe3   : > { %v7795_v9 = vpop.permute.xlu1 %651  ;;  %v7797_v10 = vpop.permute.xlu0 %646 }
  0xe4   : > { %1180 = vperm.xlu1 %7354, %v7479_v11   ;;  %1175 = vperm.xlu0 %7353, %v7482_v12  }
  0xe7   : > { %v7801_v38 = vpop.permute.xlu1 %661  ;;  %v7803_v53 = vpop.permute.xlu0 %656 }
  0xe8   : > { %9768 = vst [vmem:[#allocation28_spill] sm:$0xff] %v7801_v38  ;;  %9769 = vst [vmem:[#allocation29_spill] sm:$0xff] %v7803_v53  ;;  %2217 = vperm.xlu1 %7354, %v7545_v41   ;;  %2212 = vperm.xlu0 %7353, %v7548_v42  }
  0xeb   : > { %v7807_v37 = vpop.permute.xlu1 %671  ;;  %v7809_v36 = vpop.permute.xlu0 %666 }
  0xec   : > { %9770 = vst [vmem:[#allocation30_spill] sm:$0xff] %v7807_v37  ;;  %9771 = vst [vmem:[#allocation31_spill] sm:$0xff] %v7809_v36  ;;  %1190 = vperm.xlu1 %7354, %v7487_v13   ;;  %1185 = vperm.xlu0 %7353, %v7490_v14  }
  0xef   : > { %v7813_v35 = vpop.permute.xlu1 %681  ;;  %v7815_v11 = vpop.permute.xlu0 %676 }
  0xf0   : > { %9772 = vst [vmem:[#allocation32_spill] sm:$0xff] %v7813_v35  ;;  %9773 = vst [vmem:[#allocation33_spill] sm:$0xff] %v7815_v11  ;;  %2227 = vperm.xlu1 %7354, %v7553_v43   ;;  %2222 = vperm.xlu0 %7353, %v7556_v44  }
  0xf3   : > { %v7819_v12 = vpop.permute.xlu1 %691  ;;  %v7821_v41 = vpop.permute.xlu0 %686 }
  0xf4   : > { %9774 = vst [vmem:[#allocation34_spill] sm:$0xff] %v7819_v12  ;;  %9775 = vst [vmem:[#allocation35_spill] sm:$0xff] %v7821_v41  ;;  %1444 = vperm.xlu1 %7354, %v7553_v43   ;;  %1439 = vperm.xlu0 %7353, %v7556_v44  }
  0xf7   : > { %v7825_v42 = vpop.permute.xlu1 %701  ;;  %v7827_v34 = vpop.permute.xlu0 %696 }
  0xf8   : > { %9776 = vst [vmem:[#allocation36_spill] sm:$0xff] %v7825_v42  ;;  %9777 = vst [vmem:[#allocation37_spill] sm:$0xff] %v7827_v34  ;;  %2481 = vperm.xlu1 %7354, %v6163_v39   ;;  %2476 = vperm.xlu0 %7353, %v6162_v40   ;;  %v6167_v39 = vld [vmem:[%s7442_s10 + $0x9a] sm:$0xff]  ;;  %v6166_v40 = vld [vmem:[%s7442_s10 + $0x92] sm:$0xff] }
  0xfb   : > { %v7829_v33 = vpop.permute.xlu1 %875  ;;  %v7831_v32 = vpop.permute.xlu0 %870 }
  0xfc   : > { %1454 = vperm.xlu1 %7354, %v7561_v45   ;;  %1449 = vperm.xlu0 %7353, %v7564_v46  }
  0xff   : > { %v7835_v7 = vpop.permute.xlu1 %885  ;;  %v7837_v43 = vpop.permute.xlu0 %880 }
 0x100   : > { %2491 = vperm.xlu1 %7354, %v845_v55   ;;  %2486 = vperm.xlu0 %7353, %v844_v56  }
 0x103   : > { %v7839_v44 = vpop.permute.xlu1 %1140  ;;  %v7841_v27 = vpop.permute.xlu0 %1135 }
 0x104   : > { %1708 = vperm.xlu1 %7354, %v845_v55   ;;  %1703 = vperm.xlu0 %7353, %v844_v56   ;;  %v7860_v56 = vld [vmem:[%s7442_s10 + $0xb2] sm:$0xff] }
 0x107   : > { %v7845_v34 = vpop.permute.xlu1 %1150  ;;  %v7847_v42 = vpop.permute.xlu0 %1145 }
 0x108   : > { %1718 = vperm.xlu1 %7354, %v6167_v39   ;;  %1713 = vperm.xlu0 %7353, %v6166_v40  }
 0x10b   : > { %v7849_v26 = vpop.permute.xlu1 %1404  ;;  %v7851_v25 = vpop.permute.xlu0 %1399 }
 0x10c   : > { %935 = vperm.xlu1 %7354, %v6167_v39   ;;  %930 = vperm.xlu0 %7353, %v6166_v40  }
 0x10f   : > { %v7853_v41 = vpop.permute.xlu1 %1414  ;;  %v7855_v55 = vpop.permute.xlu0 %1409 }
 0x110   : > { %1973 = vperm.xlu1 %7354, %v7487_v13   ;;  %1968 = vperm.xlu0 %7353, %v7490_v14  }
 0x113   : > { %v1669_v12 = vpop.permute.xlu1 %1668  ;;  %v7865_v29 = vpop.permute.xlu0 %1663 }
 0x114   : > { %945 = vperm.xlu1 %7354, %v7860_v56   ;;  %940 = vperm.xlu0 %7353, %v7863_v30  }
 0x117   : > { %v7869_v28 = vpop.permute.xlu1 %1678  ;;  %v7871_v8 = vpop.permute.xlu0 %1673 }
 0x118   : > { %1983 = vperm.xlu1 %7354, %v7495_v15   ;;  %1978 = vperm.xlu0 %7353, %v7498_v16  }
 0x11b   : > { %v7875_v13 = vpop.permute.xlu1 %895  ;;  %v7877_v14 = vpop.permute.xlu0 %890 }
 0x11c   : > { %1200 = vperm.xlu1 %7354, %v7495_v15   ;;  %1195 = vperm.xlu0 %7353, %v7498_v16  }
 0x11f   : > { %v1934_v24 = vpop.permute.xlu1 %1933  ;;  %v7881_v23 = vpop.permute.xlu0 %1928 }
 0x120   : > { %2237 = vperm.xlu1 %7354, %v7561_v45   ;;  %2232 = vperm.xlu0 %7353, %v7564_v46   ;;  %v7904_v46 = vld [vmem:[%s9731_s1 + $0x1] ss:$0 sm:$0xff] }
 0x121   : > { %v771_v5 = vmul.f32 %v7904_v46, %v7763_v60 }
 0x123   : > { %v7885_v11 = vpop.permute.xlu1 %905  ;;  %v7887_v35 = vpop.permute.xlu0 %900 }
 0x124   : > { %1210 = vperm.xlu1 %7354, %v7503_v17   ;;  %1205 = vperm.xlu0 %7353, %v7506_v18   ;;  %v7911_v17 = vld [vmem:[%s9731_s1 + $0x2] ss:$0 sm:$0xff]  ;;  %v7916_v18 = vld [vmem:[%s9731_s1] ss:$0 sm:$0xff] }
 0x125   : > { %v507_v22 = vmul.f32 %v7916_v18, %v7608_v62  ;;  %v1035_v21 = vmul.f32 %v7911_v17, %v7829_v33  ;;  %v506_v60 = vmul.f32 %v7916_v18, %v7598_v58  ;;  %v1034_v53 = vmul.f32 %v7911_v17, %v7831_v32  ;;  %v7951_v32 = vld [vmem:[%s9731_s1 + $0x5] ss:$0 sm:$0xff] }
 0x127   : > { %v7891_v6 = vpop.permute.xlu1 %1943  ;;  %v7893_v15 = vpop.permute.xlu0 %1938  ;;  %v803_v38 = vadd.f32 %v771_v5, %v507_v22 }
 0x128   : > { %2247 = vperm.xlu1 %7354, %v7569_v47   ;;  %2242 = vperm.xlu0 %7353, %v7572_v48  }
 0x129   : > { %v1067_v22 = vadd.f32 %v1035_v21, %v803_v38 }
 0x12b   : > { %v7897_v16 = vpop.permute.xlu1 %1160  ;;  %v7899_v45 = vpop.permute.xlu0 %1155 }
 0x12c   : > { %1464 = vperm.xlu1 %7354, %v7569_v47   ;;  %1459 = vperm.xlu0 %7353, %v7572_v48   ;;  %v770_v47 = vmul.f32 %v7904_v46, %v7765_v3  ;;  %v7925_v48 = vld [vmem:[%s9731_s1 + $0x3] ss:$0 sm:$0xff]  ;;  %v7938_v3 = vld [vmem:[%s9731_s1 + $0x4] ss:$0 sm:$0xff] }
 0x12d   : > { %v1299_v58 = vmul.f32 %v7925_v48, %v7841_v27  ;;  %v1564_v5 = vmul.f32 %v7938_v3, %v7849_v26  ;;  %v1563_v27 = vmul.f32 %v7938_v3, %v7851_v25  ;;  %v1828_v26 = vmul.f32 %v7951_v32, %v1669_v12 }
 0x12e   : > { %v802_v33 = vadd.f32 %v770_v47, %v506_v60  ;;  %v7964_v60 = vld [vmem:[%s9731_s1 + $0x6] ss:$0 sm:$0xff] }
 0x12f   : > { %v2198_v36 = vpop.permute.xlu1 %2197  ;;  %v2193_v37 = vpop.permute.xlu0 %2192  ;;  %v2093_v12 = vmul.f32 %v7964_v60, %v1934_v24 }
 0x130   : > { %2501 = vperm.xlu1 %7354, %v6167_v39   ;;  %2496 = vperm.xlu0 %7353, %v6166_v40   ;;  %v1300_v39 = vmul.f32 %v7925_v48, %v7839_v44  ;;  %v773_v44 = vmul.f32 %v7904_v46, %v7775_v51  ;;  %v1066_v47 = vadd.f32 %v1034_v53, %v802_v33 }
 0x131   : > { %v1037_v53 = vmul.f32 %v7911_v17, %v7835_v7  ;;  %v1827_v33 = vmul.f32 %v7951_v32, %v7865_v29  ;;  %v1302_v29 = vmul.f32 %v7925_v48, %v7845_v34  ;;  %v2356_v34 = vmul.f32 %v7978_v20, %v2193_v37 }
 0x132   : > { %v1332_v21 = vadd.f32 %v1300_v39, %v1067_v22  ;;  %v1331_v25 = vadd.f32 %v1299_v58, %v1066_v47  ;;  %v2092_v22 = vmul.f32 %v7964_v60, %v7881_v23  ;;  %v1565_v37 = vmul.f32 %v7938_v3, %v7855_v55 }
 0x133   : > { %v7942_v40 = vpop.permute.xlu1 %1170  ;;  %v7944_v62 = vpop.permute.xlu0 %1165 }
 0x134   : > { %1474 = vperm.xlu1 %7354, %v7577_v49   ;;  %1469 = vperm.xlu0 %7353, %v7580_v50   ;;  %v509_v49 = vmul.f32 %v7916_v18, %v7606_v61  ;;  %v772_v50 = vmul.f32 %v7904_v46, %v7777_v52  ;;  %v508_v61 = vmul.f32 %v7916_v18, %v7596_v57 }
 0x135   : > { %v1036_v52 = vmul.f32 %v7911_v17, %v7837_v43  ;;  %v1596_v7 = vadd.f32 %v1564_v5, %v1332_v21  ;;  %v1595_v58 = vadd.f32 %v1563_v27, %v1331_v25  ;;  %v1301_v57 = vmul.f32 %v7925_v48, %v7847_v42  ;;  %v8012_v21 = vld [vmem:[%s7442_s10 + $0xc2] sm:$0xff] }
 0x136   : > { %v805_v39 = vadd.f32 %v773_v44, %v509_v49  ;;  %v804_v47 = vadd.f32 %v772_v50, %v508_v61  ;;  %v2357_v43 = vmul.f32 %v7978_v20, %v2198_v36  ;;  %v1566_v27 = vmul.f32 %v7938_v3, %v7853_v41  ;;  %v8006_v36 = vld [vmem:[%s9731_s1 + $0x8] ss:$0 sm:$0xff]  ;;  %v8009_v50 = vld [vmem:[%s7442_s10 + $0xca] sm:$0xff] }
 0x137   : > { %v2208_v38 = vpop.permute.xlu1 %2207  ;;  %v2203_v51 = vpop.permute.xlu0 %2202  ;;  %v1860_v19 = vadd.f32 %v1828_v26, %v1596_v7  ;;  %v1859_v49 = vadd.f32 %v1827_v33, %v1595_v58  ;;  %v1830_v41 = vmul.f32 %v7951_v32, %v7869_v28  ;;  %v2095_v28 = vmul.f32 %v7964_v60, %v7891_v6 }
 0x138   : > { %2511 = vperm.xlu1 %7354, %v7860_v56   ;;  %2506 = vperm.xlu0 %7353, %v7863_v30   ;;  %v1069_v44 = vadd.f32 %v1037_v53, %v805_v39  ;;  %v1068_v23 = vadd.f32 %v1036_v52, %v804_v47  ;;  %v6202_v47 = vld [vmem:[%s7442_s10 + $0xc0] sm:$0xff] }
 0x139   : > { %v2125_v42 = vadd.f32 %v2093_v12, %v1860_v19  ;;  %v1829_v19 = vmul.f32 %v7951_v32, %v7871_v8  ;;  %v8029_v8 = vld [vmem:[%s9732_s2] ss:$0 sm:$0xff]  ;;  %v6203_v12 = vld [vmem:[%s7442_s10 + $0xc8] sm:$0xff] }
 0x13a   : > { %v1334_v26 = vadd.f32 %v1302_v29, %v1069_v44  ;;  %v2094_v29 = vmul.f32 %v7964_v60, %v7893_v15 }
 0x13b   : > { %v7994_v5 = vpop.permute.xlu1 %1424  ;;  %v7996_v24 = vpop.permute.xlu0 %1419  ;;  %v2389_v53 = vadd.f32 %v2357_v43, %v2125_v42  ;;  %v2359_v43 = vmul.f32 %v7978_v20, %v2208_v38  ;;  %v8044_v42 = vld [vmem:[%s7442_s10 + $0xe0] sm:$0xff] }
 0x13c   : > { %1728 = vperm.xlu1 %7354, %v7860_v56   ;;  %1723 = vperm.xlu0 %7353, %v7863_v30   ;;  %v2124_v30 = vadd.f32 %v2092_v22, %v1859_v49  ;;  %v1333_v56 = vadd.f32 %v1301_v57, %v1068_v23  ;;  %v1598_v55 = vadd.f32 %v1566_v27, %v1334_v26 }
 0x13e   : > { %v2388_v61 = vadd.f32 %v2356_v34, %v2124_v30  ;;  %v1597_v39 = vadd.f32 %v1565_v37, %v1333_v56  ;;  %v1862_v57 = vadd.f32 %v1830_v41, %v1598_v55  ;;  %v2358_v34 = vmul.f32 %v7978_v20, %v2203_v51  ;;  %v8047_v30 = vld [vmem:[%s7442_s10 + $0xd8] sm:$0xff]  ;;  %v6236_v55 = vld [vmem:[%s7442_s10 + $0xc1] sm:$0xff] }
 0x13f   : > { %v2462_v25 = vpop.permute.xlu1 %2461  ;;  %v2457_v33 = vpop.permute.xlu0 %2456 }
 0x140   : > { %v2621_v52 = vmul.f32 %v8006_v36, %v2462_v25  ;;  %v2620_v7 = vmul.f32 %v8006_v36, %v2457_v33  ;;  %1738 = vperm.xlu1 %7354, %v8009_v50   ;;  %1733 = vperm.xlu0 %7353, %v8012_v21   ;;  %v1861_v49 = vadd.f32 %v1829_v19, %v1597_v39 }
 0x141   : > { %v2127_v15 = vadd.f32 %v2095_v28, %v1862_v57  ;;  %v8069_v57 = vld [vmem:[%s7442_s10 + $0xd9] sm:$0xff] }
 0x142   : > { %v2653_v58 = vadd.f32 %v2621_v52, %v2389_v53  ;;  %v2652_v22 = vadd.f32 %v2620_v7, %v2388_v61  ;;  %v2126_v26 = vadd.f32 %v2094_v29, %v1861_v49  ;;  %v6237_v61 = vld [vmem:[%s7442_s10 + $0xc9] sm:$0xff] }
 0x143   : > { %v8036_v44 = vpop.permute.xlu1 %1434  ;;  %v8038_v6 = vpop.permute.xlu0 %1429  ;;  %v2391_v56 = vadd.f32 %v2359_v43, %v2127_v15 }
 0x144   : > { %v2692_v23 = vadd.f32 %v8029_v8, %v2653_v58  ;;  %v2691_v27 = vadd.f32 %v8029_v8, %v2652_v22  ;;  %1993 = vperm.xlu1 %7354, %v6203_v12   ;;  %1988 = vperm.xlu0 %7353, %v6202_v47   ;;  %v2390_v51 = vadd.f32 %v2358_v34, %v2126_v26  ;;  %v8066_v58 = vld [vmem:[%s7442_s10 + $0xe1] sm:$0xff] }
 0x146   : > { %v2724_v37 = vmax.f32 %v2692_v23, 0.0  ;;  %v2723_v38 = vmax.f32 %v2691_v27, 0.0 }
 0x147   : > { %v2472_v41 = vpop.permute.xlu1 %2471  ;;  %v2467_v19 = vpop.permute.xlu0 %2466 }
 0x148   : > { %2813 = vst.msk [vmem:[#allocation2 + $0x21] sm:$0xff] %vm2755_vm0, %v2724_v37  ;;  %2812 = vst.msk [vmem:[#allocation2 + $0x19] sm:$0xff] %vm2755_vm0, %v2723_v38  ;;  %v2623_v53 = vmul.f32 %v8006_v36, %v2472_v41  ;;  %v2622_v25 = vmul.f32 %v8006_v36, %v2467_v19  ;;  %2003 = vperm.xlu1 %7354, %v8044_v42   ;;  %v8054_v33 = vpack.c.bf16 %v2724_v37, %v2723_v38  ;;  %v8093_v19 = vld [vmem:[%s7442_s10 + $0xe2] sm:$0xff] }
 0x149   : > { %1998 = vperm.xlu0 %7353, %v8047_v30  }
 0x14a   : > { %9778 = vst [vmem:[#allocation38_spill] sm:$0xff] %v8054_v33  ;;  %v2655_v52 = vadd.f32 %v2623_v53, %v2391_v56  ;;  %v2654_v7 = vadd.f32 %v2622_v25, %v2390_v51  ;;  %v8096_v51 = vld [vmem:[%s7442_s10 + $0xda] sm:$0xff] }
 0x14b   : > { %v8059_v28 = vpop.permute.xlu1 %1688  ;;  %v8061_v12 = vpop.permute.xlu0 %1683 }
 0x14c   : > { %v2694_v39 = vadd.f32 %v8029_v8, %v2655_v52  ;;  %v2693_v29 = vadd.f32 %v8029_v8, %v2654_v7  ;;  %2257 = vperm.xlu1 %7354, %v6237_v61  }
 0x14d   : > { %2252 = vperm.xlu0 %7353, %v6236_v55  }
 0x14e   : > { %v2726_v22 = vmax.f32 %v2694_v39, 0.0  ;;  %v2725_v47 = vmax.f32 %v2693_v29, 0.0 }
 0x14f   : > { %v8071_v43 = vpop.permute.xlu1 %1698  ;;  %v8073_v49 = vpop.permute.xlu0 %1693  ;;  %v2897_v34 = vld [vmem:[#allocation2 + $0x19] sm:$0xff]  ;;  %v2898_v23 = vld [vmem:[#allocation2 + $0x21] sm:$0xff] }
 0x150   : > { %v3658_v27 = vld [vmem:[#allocation2 + $0x18] sm:$0xff]  ;;  %2815 = vst.msk [vmem:[#allocation2 + $0x39] sm:$0xff] %vm2755_vm0, %v2726_v22  ;;  %2814 = vst.msk [vmem:[#allocation2 + $0x31] sm:$0xff] %vm2755_vm0, %v2725_v47  ;;  %v8077_v15 = vpack.c.bf16 %v2726_v22, %v2725_v47  ;;  %2267 = vperm.xlu1 %7354, %v8066_v58   ;;  %v8080_v26 = vpack.c.bf16 %v2898_v23, %v2897_v34  ;;  %v3659_v37 = vld [vmem:[#allocation2 + $0x20] sm:$0xff] }
 0x151   : > { %2262 = vperm.xlu0 %7353, %v8069_v57   ;;  %v3690_v38 = vpack.c.bf16 %v3659_v37, %v3658_v27 }
 0x152   : > { %9779 = vst [vmem:[#allocation39_spill] sm:$0xff] %v8077_v15  ;;  %9780 = vst [vmem:[#allocation40_spill] sm:$0xff] %v8080_v26  ;;  %6680 = vmatmul.mubr.msk.bf16.vlgmr.msra.gmra.mrb[0].mxu1 %vm2755_vm0, %v8080_v26 }
 0x153   : > { %6781 = vmatprep.mubr.msk.bf16.mxu0 %vm2755_vm0, %v3690_v38  ;;  %v8086_v56 = vpop.permute.xlu1 %915  ;;  %v8088_v41 = vpop.permute.xlu0 %910  ;;  %v8128_v38 = vld [vmem:[%s7442_s10 + $0xf8] sm:$0xff] }
 0x154   : > { %2521 = vperm.xlu1 %7354, %v8009_v50  }
 0x155   : > { %2516 = vperm.xlu0 %7353, %v8012_v21  }
 0x157   : > { %v8098_v53 = vpop.permute.xlu1 %1953  ;;  %v8100_v25 = vpop.permute.xlu0 %1948  ;;  %v2899_v61 = vld [vmem:[#allocation2 + $0x31] sm:$0xff]  ;;  %v2900_v52 = vld [vmem:[#allocation2 + $0x39] sm:$0xff] }
 0x158   : > { %v3660_v7 = vld [vmem:[#allocation2 + $0x30] sm:$0xff]  ;;  %2531 = vperm.xlu1 %7354, %v8093_v19   ;;  %v8103_v55 = vpack.c.bf16 %v2900_v52, %v2899_v61  ;;  %v3661_v39 = vld [vmem:[#allocation2 + $0x38] sm:$0xff] }
 0x159   : > { %2526 = vperm.xlu0 %7353, %v8096_v51   ;;  %v3691_v29 = vpack.c.bf16 %v3661_v39, %v3660_v7  ;;  %v774_v7 = vmul.f32 %v7904_v46, %v7787_v54  ;;  %v510_v39 = vmul.f32 %v7916_v18, %v7614_v0  ;;  %v1304_v54 = vmul.f32 %v7925_v48, %v7897_v16  ;;  %v6363_v0 = vld [vmem:[%s9733_s3 + $0x40] sm:$0xff]  ;;  %v6364_v16 = vld [vmem:[%s9733_s3 + $0x48] sm:$0xff] }
 0x15a   : > { %9781 = vst [vmem:[#allocation41_spill] sm:$0xff] %v8103_v55  ;;  %6683 = vmatprep.mubr.msk.bf16.mxu1 %vm2755_vm0, %v8103_v55 }
 0x15b   : > { %6782 = vmatmul.mubr.msk.bf16.vlgmr.msra.gmra.mrb[0].mxu0 %vm2755_vm0, %v3691_v29  ;;  %v8109_v22 = vpop.permute.xlu1 %925  ;;  %v8111_v47 = vpop.permute.xlu0 %920 }
 0x15c   : > { %955 = vperm.xlu1 %7354, %v8009_v50   ;;  %v8131_v50 = vld [vmem:[%s7442_s10 + $0xf0] sm:$0xff] }
 0x15d   : > { %950 = vperm.xlu0 %7353, %v8012_v21   ;;  %v775_v21 = vmul.f32 %v7904_v46, %v7785_v59  ;;  %v1038_v59 = vmul.f32 %v7911_v17, %v7877_v14 }
 0x15f   : > { %v8115_v34 = vpop.permute.xlu1 %1963  ;;  %v8117_v23 = vpop.permute.xlu0 %1958 }
 0x160   : > { %965 = vperm.xlu1 %7354, %v8093_v19  }
 0x161   : > { %960 = vperm.xlu0 %7353, %v8096_v51  }
 0x163   : > { %v8121_v27 = vpop.permute.xlu1 %1180  ;;  %v8123_v37 = vpop.permute.xlu0 %1175 }
 0x164   : > { %1220 = vperm.xlu1 %7354, %v8044_v42   ;;  %v511_v42 = vmul.f32 %v7916_v18, %v7612_v63  ;;  %v806_v63 = vadd.f32 %v774_v7, %v510_v39  ;;  %v1568_v7 = vmul.f32 %v7938_v3, %v7994_v5  ;;  %v4002_v39 = vpack.c.bf16 %v6364_v16, %v6363_v0 }
 0x165   : > { %1215 = vperm.xlu0 %7353, %v8047_v30   ;;  %v1039_v30 = vmul.f32 %v7911_v17, %v7875_v13  ;;  %v1303_v13 = vmul.f32 %v7925_v48, %v7899_v45  ;;  %v1567_v45 = vmul.f32 %v7938_v3, %v7996_v24  ;;  %v1832_v5 = vmul.f32 %v7951_v32, %v8059_v28 }
 0x166   : > { %v807_v29 = vadd.f32 %v775_v21, %v511_v42  ;;  %v8161_v21 = vld [vmem:[%s7442_s10 + $0xf9] sm:$0xff]  ;;  %v1070_v42 = vadd.f32 %v1038_v59, %v806_v63  ;;  %v1831_v24 = vmul.f32 %v7951_v32, %v8061_v12  ;;  %6813 = vmatprep.subr.bf16.mxu0 %v4002_v39  ;;  %v2097_v12 = vmul.f32 %v7964_v60, %v8098_v53 }
 0x167   : > { %v2218_v61 = vpop.permute.xlu1 %2217  ;;  %v2213_v52 = vpop.permute.xlu0 %2212  ;;  %6814 = vmatpush3.bf16.msra.mxu0 %v4002_v39 }
 0x168   : > { %1230 = vperm.xlu1 %7354, %v8128_v38   ;;  %v1071_v14 = vadd.f32 %v1039_v30, %v807_v29  ;;  %v513_v30 = vmul.f32 %v7916_v18, %v7618_v1  ;;  %v776_v29 = vmul.f32 %v7904_v46, %v7791_v31  ;;  %v1335_v26 = vadd.f32 %v1303_v13, %v1070_v42 }
 0x169   : > { %1225 = vperm.xlu0 %7353, %v8131_v50   ;;  %v512_v1 = vmul.f32 %v7916_v18, %v7620_v2  ;;  %v1040_v31 = vmul.f32 %v7911_v17, %v7887_v35  ;;  %v2096_v13 = vmul.f32 %v7964_v60, %v8100_v25  ;;  %v1306_v2 = vmul.f32 %v7925_v48, %v7942_v40 }
 0x16a   : > { %v1336_v55 = vadd.f32 %v1304_v54, %v1071_v14  ;;  %v1599_v28 = vadd.f32 %v1567_v45, %v1335_v26  ;;  %v2361_v42 = vmul.f32 %v7978_v20, %v2218_v61  ;;  %v2360_v53 = vmul.f32 %v7978_v20, %v2213_v52 }
 0x16b   : > { %v8149_v15 = vpop.permute.xlu1 %1190  ;;  %v8151_v33 = vpop.permute.xlu0 %1185  ;;  %v808_v14 = vadd.f32 %v776_v29, %v512_v1  ;;  %v1570_v40 = vmul.f32 %v7938_v3, %v8036_v44  ;;  %v1834_v61 = vmul.f32 %v7951_v32, %v8071_v43  ;;  %v1833_v52 = vmul.f32 %v7951_v32, %v8073_v49  ;;  %v8222_v43 = vld [vmem:[%s7442_s10 + $0x111] sm:$0xff] }
 0x16c   : > { %1484 = vperm.xlu1 %7354, %v8066_v58   ;;  %v8171_v58 = vld [vmem:[%s7442_s10 + $0xf1] sm:$0xff]  ;;  %v1600_v54 = vadd.f32 %v1568_v7, %v1336_v55  ;;  %v1863_v26 = vadd.f32 %v1831_v24, %v1599_v28 }
 0x16d   : > { %1479 = vperm.xlu0 %7353, %v8069_v57   ;;  %v777_v57 = vmul.f32 %v7904_v46, %v7789_v4  ;;  %v1041_v4 = vmul.f32 %v7911_v17, %v7885_v11  ;;  %v1305_v11 = vmul.f32 %v7925_v48, %v7944_v62  ;;  %v1072_v7 = vadd.f32 %v1040_v31, %v808_v14 }
 0x16e   : > { %v1864_v55 = vadd.f32 %v1832_v5, %v1600_v54  ;;  %v1569_v62 = vmul.f32 %v7938_v3, %v8038_v6  ;;  %v2128_v39 = vadd.f32 %v2096_v13, %v1863_v26  ;;  %v2099_v31 = vmul.f32 %v7964_v60, %v8115_v34  ;;  %v8227_v13 = vld [vmem:[%s7442_s10 + $0x109] sm:$0xff]  ;;  %v8240_v26 = vld [vmem:[%s7442_s10 + $0xfa] sm:$0xff] }
 0x16f   : > { %v2228_v59 = vpop.permute.xlu1 %2227  ;;  %v2223_v63 = vpop.permute.xlu0 %2222  ;;  %v809_v0 = vadd.f32 %v777_v57, %v513_v30  ;;  %v1337_v57 = vadd.f32 %v1305_v11, %v1072_v7  ;;  %v2098_v54 = vmul.f32 %v7964_v60, %v8117_v23 }
 0x170   : > { %1494 = vperm.xlu1 %7354, %v8161_v21   ;;  %v2129_v45 = vadd.f32 %v2097_v12, %v1864_v55  ;;  %v2392_v24 = vadd.f32 %v2360_v53, %v2128_v39 }
 0x171   : > { %1489 = vperm.xlu0 %7353, %v8171_v58   ;;  %v1073_v25 = vadd.f32 %v1041_v4, %v809_v0  ;;  %v1601_v49 = vadd.f32 %v1569_v62, %v1337_v57 }
 0x172   : > { %v2393_v44 = vadd.f32 %v2361_v42, %v2129_v45 }
 0x173   : > { %v8199_v35 = vpop.permute.xlu1 %1444  ;;  %v8201_v16 = vpop.permute.xlu0 %1439  ;;  %v1338_v30 = vadd.f32 %v1306_v2, %v1073_v25  ;;  %v2362_v2 = vmul.f32 %v7978_v20, %v2223_v63  ;;  %v8243_v25 = vld [vmem:[%s7442_s10 + $0xf2] sm:$0xff] }
 0x174   : > { %711 = vperm.xlu1 %7354, %v8161_v21  }
 0x175   : > { %706 = vperm.xlu0 %7353, %v8171_v58   ;;  %v1602_v4 = vadd.f32 %v1570_v40, %v1338_v30 }
 0x177   : > { %v2482_v29 = vpop.permute.xlu1 %2481  ;;  %v2477_v5 = vpop.permute.xlu0 %2476  ;;  %v1866_v0 = vadd.f32 %v1834_v61, %v1602_v4 }
 0x178   : > { %v2625_v1 = vmul.f32 %v8006_v36, %v2482_v29  ;;  %v2624_v6 = vmul.f32 %v8006_v36, %v2477_v5  ;;  %1748 = vperm.xlu1 %7354, %v8093_v19   ;;  %v2363_v19 = vmul.f32 %v7978_v20, %v2228_v59 }
 0x179   : > { %1743 = vperm.xlu0 %7353, %v8096_v51   ;;  %v1865_v51 = vadd.f32 %v1833_v52, %v1601_v49  ;;  %v2131_v23 = vadd.f32 %v2099_v31, %v1866_v0 }
 0x17a   : > { %v2657_v28 = vadd.f32 %v2625_v1, %v2393_v44  ;;  %v2656_v12 = vadd.f32 %v2624_v6, %v2392_v24 }
 0x17b   : > { %v8230_v14 = vpop.permute.xlu1 %1454  ;;  %v8232_v34 = vpop.permute.xlu0 %1449  ;;  %v2130_v42 = vadd.f32 %v2098_v54, %v1865_v51  ;;  %v2395_v7 = vadd.f32 %v2363_v19, %v2131_v23  ;;  %v8274_v51 = vld [vmem:[%s7442_s10 + $0x112] sm:$0xff] }
 0x17c   : > { %v2696_v11 = vadd.f32 %v8029_v8, %v2657_v28  ;;  %v2695_v55 = vadd.f32 %v8029_v8, %v2656_v12  ;;  %721 = vperm.xlu1 %7354, %v8222_v43  }
 0x17d   : > { %716 = vperm.xlu0 %7353, %v8227_v13   ;;  %v2394_v63 = vadd.f32 %v2362_v2, %v2130_v42  ;;  %v8279_v2 = vld [vmem:[%s7442_s10 + $0x10a] sm:$0xff] }
 0x17e   : > { %v2728_v59 = vmax.f32 %v2696_v11, 0.0  ;;  %v2727_v53 = vmax.f32 %v2695_v55, 0.0  ;;  %v6209_v55 = vld [vmem:[%s7442_s10 + $0x110] sm:$0xff] }
 0x17f   : > { %v2492_v40 = vpop.permute.xlu1 %2491  ;;  %v2487_v62 = vpop.permute.xlu0 %2486 }
 0x180   : > { %2817 = vst.msk [vmem:[#allocation2 + $0x51] sm:$0xff] %vm2755_vm0, %v2728_v59  ;;  %2816 = vst.msk [vmem:[#allocation2 + $0x49] sm:$0xff] %vm2755_vm0, %v2727_v53  ;;  %v2627_v45 = vmul.f32 %v8006_v36, %v2492_v40  ;;  %v2626_v39 = vmul.f32 %v8006_v36, %v2487_v62  ;;  %1758 = vperm.xlu1 %7354, %v8240_v26   ;;  %v8250_v30 = vpack.c.bf16 %v2728_v59, %v2727_v53 }
 0x181   : > { %1753 = vperm.xlu0 %7353, %v8243_v25  }
 0x182   : > { %v2659_v57 = vadd.f32 %v2627_v45, %v2395_v7  ;;  %v2658_v61 = vadd.f32 %v2626_v39, %v2394_v63 }
 0x183   : > { %v8253_v52 = vpop.permute.xlu1 %1708  ;;  %v8255_v29 = vpop.permute.xlu0 %1703 }
 0x184   : > { %v2698_v5 = vadd.f32 %v8029_v8, %v2659_v57  ;;  %v2697_v44 = vadd.f32 %v8029_v8, %v2658_v61  ;;  %975 = vperm.xlu1 %7354, %v8240_v26  }
 0x185   : > { %970 = vperm.xlu0 %7353, %v8243_v25  }
 0x186   : > { %v2730_v24 = vmax.f32 %v2698_v5, 0.0  ;;  %v2729_v1 = vmax.f32 %v2697_v44, 0.0  ;;  %v8310_v5 = vld [vmem:[%s7442_s10 + $0x128] sm:$0xff]  ;;  %v8313_v44 = vld [vmem:[%s7442_s10 + $0x120] sm:$0xff] }
 0x187   : > { %v8261_v6 = vpop.permute.xlu1 %1718  ;;  %v8263_v4 = vpop.permute.xlu0 %1713  ;;  %v2901_v31 = vld [vmem:[#allocation2 + $0x49] sm:$0xff]  ;;  %v2902_v49 = vld [vmem:[#allocation2 + $0x51] sm:$0xff] }
 0x188   : > { %v3662_v54 = vld [vmem:[#allocation2 + $0x48] sm:$0xff]  ;;  %2819 = vst.msk [vmem:[#allocation2 + $0x69] sm:$0xff] %vm2755_vm0, %v2730_v24  ;;  %2818 = vst.msk [vmem:[#allocation2 + $0x61] sm:$0xff] %vm2755_vm0, %v2729_v1  ;;  %2013 = vperm.xlu1 %7354, %v8128_v38   ;;  %v8268_v28 = vpack.c.bf16 %v2902_v49, %v2901_v31  ;;  %v3663_v12 = vld [vmem:[#allocation2 + $0x50] sm:$0xff]  ;;  %v8270_v0 = vpack.c.bf16 %v2730_v24, %v2729_v1 }
 0x189   : > { %2008 = vperm.xlu0 %7353, %v8131_v50   ;;  %v3692_v19 = vpack.c.bf16 %v3663_v12, %v3662_v54  ;;  %v6208_v50 = vld [vmem:[%s7442_s10 + $0x108] sm:$0xff]  ;;  %v779_v54 = vmul.f32 %v7904_v46, %v7795_v9 }
 0x18a   : > { %9782 = vst [vmem:[#allocation42_spill] sm:$0xff] %v8270_v0  ;;  %6684 = vmatmul.mubr.msk.bf16.gmra.mrb[4].mxu1 %vm2755_vm0, %v8268_v28 }
 0x18b   : > { %6785 = vmatprep.mubr.msk.bf16.mxu0 %vm2755_vm0, %v3692_v19  ;;  %v8282_v11 = vpop.permute.xlu1 %935  ;;  %v8284_v38 = vpop.permute.xlu0 %930  ;;  %v9784_v19 = vld [vmem:[#allocation4_spill] sm:$0xff] }
 0x18c   : > { %985 = vperm.xlu1 %7354, %v8274_v51  }
 0x18d   : > { %980 = vperm.xlu0 %7353, %v8279_v2  }
 0x18f   : > { %v8290_v23 = vpop.permute.xlu1 %1973  ;;  %v8292_v42 = vpop.permute.xlu0 %1968  ;;  %v2903_v59 = vld [vmem:[#allocation2 + $0x61] sm:$0xff]  ;;  %v2904_v53 = vld [vmem:[#allocation2 + $0x69] sm:$0xff] }
 0x190   : > { %v3664_v7 = vld [vmem:[#allocation2 + $0x60] sm:$0xff]  ;;  %2023 = vperm.xlu1 %7354, %v6209_v55   ;;  %v8294_v40 = vpack.c.bf16 %v2904_v53, %v2903_v59  ;;  %v3665_v62 = vld [vmem:[#allocation2 + $0x68] sm:$0xff]  ;;  %v1042_v59 = vmul.f32 %v7911_v17, %v8088_v41  ;;  %v1572_v41 = vmul.f32 %v7938_v3, %v8199_v35  ;;  %v1835_v35 = vmul.f32 %v7951_v32, %v8255_v29 }
 0x191   : > { %2018 = vperm.xlu0 %7353, %v6208_v50   ;;  %v3693_v63 = vpack.c.bf16 %v3665_v62, %v3664_v7  ;;  %v1308_v62 = vmul.f32 %v7925_v48, %v8121_v27  ;;  %v9786_v27 = vld [vmem:[#allocation29_spill] sm:$0xff] }
 0x192   : > { %6687 = vmatprep.mubr.msk.bf16.mxu1 %vm2755_vm0, %v8294_v40 }
 0x193   : > { %6786 = vmatmul.mubr.msk.bf16.gmra.mrb[4].mxu0 %vm2755_vm0, %v3693_v63  ;;  %v8299_v45 = vpop.permute.xlu1 %945  ;;  %v8301_v39 = vpop.permute.xlu0 %940  ;;  %v1307_v63 = vmul.f32 %v7925_v48, %v8123_v37 }
 0x194   : > { %1240 = vperm.xlu1 %7354, %v6209_v55   ;;  %v514_v55 = vmul.f32 %v7916_v18, %v9784_v19  ;;  %v780_v19 = vmul.f32 %v7904_v46, %v9786_v27 }
 0x195   : > { %1235 = vperm.xlu0 %7353, %v6208_v50   ;;  %v1043_v50 = vmul.f32 %v7911_v17, %v8086_v56 }
 0x197   : > { %v8303_v57 = vpop.permute.xlu1 %1983  ;;  %v8305_v61 = vpop.permute.xlu0 %1978 }
 0x198   : > { %2277 = vperm.xlu1 %7354, %v8161_v21   ;;  %v778_v21 = vmul.f32 %v7904_v46, %v7797_v10 }
 0x199   : > { %2272 = vperm.xlu0 %7353, %v8171_v58   ;;  %v9783_v58 = vld [vmem:[#allocation3_spill] sm:$0xff] }
 0x19a   : > { %v515_v12 = vmul.f32 %v7916_v18, %v9783_v58  ;;  %v810_v7 = vadd.f32 %v778_v21, %v514_v55  ;;  %v9785_v21 = vld [vmem:[#allocation28_spill] sm:$0xff] }
 0x19b   : > { %v8315_v24 = vpop.permute.xlu1 %1200  ;;  %v8317_v1 = vpop.permute.xlu0 %1195 }
 0x19c   : > { %1250 = vperm.xlu1 %7354, %v8310_v5   ;;  %v811_v10 = vadd.f32 %v779_v54, %v515_v12  ;;  %v1074_v58 = vadd.f32 %v1042_v59, %v810_v7  ;;  %v1571_v54 = vmul.f32 %v7938_v3, %v8201_v16  ;;  %v781_v12 = vmul.f32 %v7904_v46, %v9785_v21  ;;  %v9787_v16 = vld [vmem:[#allocation5_spill] sm:$0xff] }
 0x19d   : > { %1245 = vperm.xlu0 %7353, %v8313_v44   ;;  %v517_v59 = vmul.f32 %v7916_v18, %v9787_v16  ;;  %v1045_v21 = vmul.f32 %v7911_v17, %v8109_v22  ;;  %v1310_v22 = vmul.f32 %v7925_v48, %v8149_v15  ;;  %v1574_v15 = vmul.f32 %v7938_v3, %v8230_v14 }
 0x19e   : > { %v1075_v56 = vadd.f32 %v1043_v50, %v811_v10  ;;  %v1836_v50 = vmul.f32 %v7951_v32, %v8253_v52  ;;  %v9788_v10 = vld [vmem:[#allocation6_spill] sm:$0xff] }
 0x19f   : > { %v2238_v31 = vpop.permute.xlu1 %2237  ;;  %v2233_v49 = vpop.permute.xlu0 %2232  ;;  %v516_v7 = vmul.f32 %v7916_v18, %v9788_v10  ;;  %v8368_v52 = vld [vmem:[%s7442_s10 + $0x129] sm:$0xff]  ;;  %v813_v27 = vadd.f32 %v781_v12, %v517_v59 }
 0x1a0   : > { %2287 = vperm.xlu1 %7354, %v8222_v43  }
 0x1a1   : > { %2282 = vperm.xlu0 %7353, %v8227_v13   ;;  %v812_v16 = vadd.f32 %v780_v19, %v516_v7  ;;  %v1077_v12 = vadd.f32 %v1045_v21, %v813_v27 }
 0x1a3   : > { %v8335_v9 = vpop.permute.xlu1 %1210  ;;  %v8337_v53 = vpop.permute.xlu0 %1205 }
 0x1a4   : > { %1504 = vperm.xlu1 %7354, %v8222_v43   ;;  %v1340_v43 = vadd.f32 %v1308_v62, %v1075_v56  ;;  %v1044_v62 = vmul.f32 %v7911_v17, %v8111_v47  ;;  %v2100_v56 = vmul.f32 %v7964_v60, %v8292_v42  ;;  %v1309_v47 = vmul.f32 %v7925_v48, %v8151_v33 }
 0x1a5   : > { %1499 = vperm.xlu0 %7353, %v8227_v13   ;;  %v1339_v13 = vadd.f32 %v1307_v63, %v1074_v58  ;;  %v8375_v58 = vld [vmem:[%s7442_s10 + $0x121] sm:$0xff]  ;;  %v2364_v42 = vmul.f32 %v7978_v20, %v2233_v49  ;;  %v1573_v33 = vmul.f32 %v7938_v3, %v8232_v34  ;;  %v1837_v49 = vmul.f32 %v7951_v32, %v8263_v4 }
 0x1a6   : > { %v1604_v63 = vadd.f32 %v1572_v41, %v1340_v43  ;;  %v1076_v19 = vadd.f32 %v1044_v62, %v812_v16  ;;  %v2102_v4 = vmul.f32 %v7964_v60, %v8305_v61 }
 0x1a7   : > { %v2248_v37 = vpop.permute.xlu1 %2247  ;;  %v2243_v55 = vpop.permute.xlu0 %2242  ;;  %v1603_v29 = vadd.f32 %v1571_v54, %v1339_v13 }
 0x1a8   : > { %2541 = vperm.xlu1 %7354, %v8240_v26   ;;  %v2101_v26 = vmul.f32 %v7964_v60, %v8290_v23  ;;  %v1868_v54 = vadd.f32 %v1836_v50, %v1604_v63  ;;  %v2365_v23 = vmul.f32 %v7978_v20, %v2238_v31  ;;  %v1342_v50 = vadd.f32 %v1310_v22, %v1077_v12 }
 0x1a9   : > { %2536 = vperm.xlu0 %7353, %v8243_v25   ;;  %v1867_v43 = vadd.f32 %v1835_v35, %v1603_v29  ;;  %v1341_v35 = vadd.f32 %v1309_v47, %v1076_v19  ;;  %v1838_v31 = vmul.f32 %v7951_v32, %v8261_v6  ;;  %v2103_v29 = vmul.f32 %v7964_v60, %v8303_v57 }
 0x1aa   : > { %v2133_v13 = vadd.f32 %v2101_v26, %v1868_v54  ;;  %v1606_v34 = vadd.f32 %v1574_v15, %v1342_v50  ;;  %v2367_v16 = vmul.f32 %v7978_v20, %v2248_v37 }
 0x1ab   : > { %v8381_v25 = vpop.permute.xlu1 %1464  ;;  %v8383_v41 = vpop.permute.xlu0 %1459  ;;  %v2132_v59 = vadd.f32 %v2100_v56, %v1867_v43  ;;  %v1605_v6 = vadd.f32 %v1573_v33, %v1341_v35  ;;  %v2366_v43 = vmul.f32 %v7978_v20, %v2243_v55  ;;  %v8424_v35 = vld [vmem:[%s7442_s10 + $0x141] sm:$0xff] }
 0x1ac   : > { %1514 = vperm.xlu1 %7354, %v8368_v52   ;;  %v2397_v21 = vadd.f32 %v2365_v23, %v2133_v13  ;;  %v1870_v27 = vadd.f32 %v1838_v31, %v1606_v34  ;;  %v8441_v34 = vld [vmem:[%s7442_s10 + $0x122] sm:$0xff] }
 0x1ad   : > { %1509 = vperm.xlu0 %7353, %v8375_v58   ;;  %v2396_v62 = vadd.f32 %v2364_v42, %v2132_v59  ;;  %v1869_v54 = vadd.f32 %v1837_v49, %v1605_v6 }
 0x1ae   : > { %v2135_v42 = vadd.f32 %v2103_v29, %v1870_v27 }
 0x1af   : > { %v2502_v10 = vpop.permute.xlu1 %2501  ;;  %v2497_v7 = vpop.permute.xlu0 %2496  ;;  %v2134_v61 = vadd.f32 %v2102_v4, %v1869_v54 }
 0x1b0   : > { %v2629_v14 = vmul.f32 %v8006_v36, %v2502_v10  ;;  %v2628_v63 = vmul.f32 %v8006_v36, %v2497_v7  ;;  %2551 = vperm.xlu1 %7354, %v8274_v51   ;;  %v2399_v19 = vadd.f32 %v2367_v16, %v2135_v42  ;;  %v8427_v10 = vld [vmem:[%s7442_s10 + $0x139] sm:$0xff] }
 0x1b1   : > { %2546 = vperm.xlu0 %7353, %v8279_v2   ;;  %v2398_v13 = vadd.f32 %v2366_v43, %v2134_v61 }
 0x1b2   : > { %v2661_v26 = vadd.f32 %v2629_v14, %v2397_v21  ;;  %v2660_v56 = vadd.f32 %v2628_v63, %v2396_v62 }
 0x1b3   : > { %v8406_v22 = vpop.permute.xlu1 %1474  ;;  %v8408_v47 = vpop.permute.xlu0 %1469 }
 0x1b4   : > { %v2700_v57 = vadd.f32 %v8029_v8, %v2661_v26  ;;  %v2699_v23 = vadd.f32 %v8029_v8, %v2660_v56  ;;  %731 = vperm.xlu1 %7354, %v8368_v52  }
 0x1b5   : > { %726 = vperm.xlu0 %7353, %v8375_v58  }
 0x1b6   : > { %v2732_v12 = vmax.f32 %v2700_v57, 0.0  ;;  %v2731_v37 = vmax.f32 %v2699_v23, 0.0  ;;  %v9791_v23 = vld [vmem:[#allocation30_spill] sm:$0xff] }
 0x1b7   : > { %v2512_v15 = vpop.permute.xlu1 %2511  ;;  %v2507_v33 = vpop.permute.xlu0 %2506  ;;  %v783_v42 = vmul.f32 %v7904_v46, %v9791_v23 }
 0x1b8   : > { %2821 = vst.msk [vmem:[#allocation2 + $0x81] sm:$0xff] %vm2755_vm0, %v2732_v12  ;;  %2820 = vst.msk [vmem:[#allocation2 + $0x79] sm:$0xff] %vm2755_vm0, %v2731_v37  ;;  %v2631_v55 = vmul.f32 %v8006_v36, %v2512_v15  ;;  %v2630_v59 = vmul.f32 %v8006_v36, %v2507_v33  ;;  %1768 = vperm.xlu1 %7354, %v8274_v51   ;;  %v8420_v50 = vpack.c.bf16 %v2732_v12, %v2731_v37  ;;  %v8438_v51 = vld [vmem:[%s7442_s10 + $0x12a] sm:$0xff] }
 0x1b9   : > { %1763 = vperm.xlu0 %7353, %v8279_v2   ;;  %v9792_v12 = vld [vmem:[#allocation31_spill] sm:$0xff]  ;;  %v1047_v33 = vmul.f32 %v7911_v17, %v8282_v11 }
 0x1ba   : > { %9789 = vst [vmem:[#allocation3_spill] sm:$0xff] %v8420_v50  ;;  %v2663_v31 = vadd.f32 %v2631_v55, %v2399_v19  ;;  %v2662_v49 = vadd.f32 %v2630_v59, %v2398_v13  ;;  %v782_v37 = vmul.f32 %v7904_v46, %v9792_v12  ;;  %v9793_v19 = vld [vmem:[#allocation7_spill] sm:$0xff]  ;;  %v9794_v13 = vld [vmem:[#allocation8_spill] sm:$0xff]  ;;  %v1046_v59 = vmul.f32 %v7911_v17, %v8284_v38 }
 0x1bb   : > { %v8429_v7 = vpop.permute.xlu1 %1728  ;;  %v8431_v21 = vpop.permute.xlu0 %1723  ;;  %v519_v15 = vmul.f32 %v7916_v18, %v9793_v19  ;;  %v518_v55 = vmul.f32 %v7916_v18, %v9794_v13  ;;  %v8489_v19 = vld [vmem:[%s7442_s10 + $0x142] sm:$0xff] }
 0x1bc   : > { %v2702_v62 = vadd.f32 %v8029_v8, %v2663_v31  ;;  %v2701_v14 = vadd.f32 %v8029_v8, %v2662_v49  ;;  %741 = vperm.xlu1 %7354, %v8424_v35  }
 0x1bd   : > { %736 = vperm.xlu0 %7353, %v8427_v10  }
 0x1be   : > { %v2734_v2 = vmax.f32 %v2702_v62, 0.0  ;;  %v2733_v63 = vmax.f32 %v2701_v14, 0.0 }
 0x1bf   : > { %v8443_v29 = vpop.permute.xlu1 %1738  ;;  %v8445_v6 = vpop.permute.xlu0 %1733  ;;  %v2905_v4 = vld [vmem:[#allocation2 + $0x79] sm:$0xff]  ;;  %v2906_v26 = vld [vmem:[#allocation2 + $0x81] sm:$0xff] }
 0x1c0   : > { %v3666_v56 = vld [vmem:[#allocation2 + $0x78] sm:$0xff]  ;;  %2823 = vst.msk [vmem:[#allocation2 + $0x99] sm:$0xff] %vm2755_vm0, %v2734_v2  ;;  %2822 = vst.msk [vmem:[#allocation2 + $0x91] sm:$0xff] %vm2755_vm0, %v2733_v63  ;;  %1778 = vperm.xlu1 %7354, %v8438_v51   ;;  %v8450_v27 = vpack.c.bf16 %v2906_v26, %v2905_v4  ;;  %v3667_v16 = vld [vmem:[#allocation2 + $0x80] sm:$0xff]  ;;  %v8452_v54 = vpack.c.bf16 %v2734_v2, %v2733_v63  ;;  %v815_v2 = vadd.f32 %v783_v42, %v519_v15 }
 0x1c1   : > { %1773 = vperm.xlu0 %7353, %v8441_v34   ;;  %v3694_v43 = vpack.c.bf16 %v3667_v16, %v3666_v56  ;;  %v9795_v63 = vld [vmem:[#allocation32_spill] sm:$0xff]  ;;  %v1312_v26 = vmul.f32 %v7925_v48, %v8315_v24  ;;  %v814_v16 = vadd.f32 %v782_v37, %v518_v55  ;;  %v1311_v42 = vmul.f32 %v7925_v48, %v8317_v1  ;;  %v9797_v24 = vld [vmem:[#allocation9_spill] sm:$0xff] }
 0x1c2   : > { %9790 = vst [vmem:[#allocation4_spill] sm:$0xff] %v8452_v54  ;;  %6688 = vmatmul.mubr.msk.bf16.gmra.mrb[8].mxu1 %vm2755_vm0, %v8450_v27  ;;  %v785_v4 = vmul.f32 %v7904_v46, %v9795_v63  ;;  %v521_v15 = vmul.f32 %v7916_v18, %v9797_v24  ;;  %v1079_v13 = vadd.f32 %v1047_v33, %v815_v2  ;;  %v8505_v48 = vld [vmem:[%s9731_s1] ss:$0 sm:$0xff] }
 0x1c3   : > { %6789 = vmatprep.mubr.msk.bf16.mxu0 %vm2755_vm0, %v3694_v43  ;;  %v1994_v57 = vpop.permute.xlu1 %1993  ;;  %v1989_v61 = vpop.permute.xlu0 %1988  ;;  %v9796_v43 = vld [vmem:[#allocation33_spill] sm:$0xff]  ;;  %v1576_v37 = vmul.f32 %v7938_v3, %v8381_v25  ;;  %v1078_v1 = vadd.f32 %v1046_v59, %v814_v16  ;;  %v1575_v25 = vmul.f32 %v7938_v3, %v8383_v41  ;;  %v1839_v63 = vmul.f32 %v7951_v32, %v8431_v21 }
 0x1c4   : > { %995 = vperm.xlu1 %7354, %v8438_v51   ;;  %v784_v23 = vmul.f32 %v7904_v46, %v9796_v43  ;;  %v8500_v46 = vld [vmem:[%s7442_s10 + $0x13a] sm:$0xff]  ;;  %v817_v55 = vadd.f32 %v785_v4, %v521_v15  ;;  %v8522_v59 = vld [vmem:[%s9731_s1 + $0x3] ss:$0 sm:$0xff]  ;;  %v2105_v16 = vmul.f32 %v7964_v60, %v1994_v57  ;;  %v2104_v21 = vmul.f32 %v7964_v60, %v1989_v61  ;;  %v8550_v15 = vld [vmem:[%s9731_s1 + $0x5] ss:$0 sm:$0xff] }
 0x1c5   : > { %990 = vperm.xlu0 %7353, %v8441_v34   ;;  %v1343_v41 = vadd.f32 %v1311_v42, %v1078_v1  ;;  %v1313_v2 = vmul.f32 %v8522_v59, %v8337_v53  ;;  %v6213_v4 = vld [vmem:[%s7442_s10 + $0x140] sm:$0xff]  ;;  %v6212_v43 = vld [vmem:[%s7442_s10 + $0x138] sm:$0xff]  ;;  %v1841_v60 = vmul.f32 %v8550_v15, %v8445_v6 }
 0x1c7   : > { %v8472_v31 = vpop.permute.xlu1 %2003  ;;  %v2907_v49 = vld [vmem:[#allocation2 + $0x91] sm:$0xff]  ;;  %v2908_v62 = vld [vmem:[#allocation2 + $0x99] sm:$0xff] }
 0x1c8   : > { %v3668_v14 = vld [vmem:[#allocation2 + $0x90] sm:$0xff]  ;;  %v8478_v11 = vpop.permute.xlu0 %1998  ;;  %2033 = vperm.xlu1 %7354, %v8310_v5   ;;  %v8481_v56 = vpack.c.bf16 %v2908_v62, %v2907_v49  ;;  %v3669_v38 = vld [vmem:[#allocation2 + $0x98] sm:$0xff]  ;;  %v1049_v5 = vmul.f32 %v7911_v17, %v8299_v45  ;;  %v8512_v17 = vld [vmem:[%s9731_s1 + $0x2] ss:$0 sm:$0xff]  ;;  %v1344_v49 = vadd.f32 %v1312_v26, %v1079_v13  ;;  %v1314_v62 = vmul.f32 %v8522_v59, %v8335_v9 }
 0x1c9   : > { %2028 = vperm.xlu0 %7353, %v8313_v44   ;;  %v3695_v12 = vpack.c.bf16 %v3669_v38, %v3668_v14  ;;  %v9798_v44 = vld [vmem:[#allocation10_spill] sm:$0xff]  ;;  %v1048_v45 = vmul.f32 %v8512_v17, %v8301_v39  ;;  %v1840_v39 = vmul.f32 %v7951_v32, %v8429_v7  ;;  %v8538_v9 = vld [vmem:[%s9731_s1 + $0x4] ss:$0 sm:$0xff] }
 0x1ca   : > { %6691 = vmatprep.mubr.msk.bf16.mxu1 %vm2755_vm0, %v8481_v56  ;;  %v520_v18 = vmul.f32 %v8505_v48, %v9798_v44  ;;  %v1081_v26 = vadd.f32 %v1049_v5, %v817_v55  ;;  %v1608_v38 = vadd.f32 %v1576_v37, %v1344_v49  ;;  %v1578_v7 = vmul.f32 %v8538_v9, %v8406_v22 }
 0x1cb   : > { %6790 = vmatmul.mubr.msk.bf16.gmra.mrb[8].mxu0 %vm2755_vm0, %v3695_v12  ;;  %v2258_v33 = vpop.permute.xlu1 %2257  ;;  %v1577_v32 = vmul.f32 %v8538_v9, %v8408_v47  ;;  %v1842_v22 = vmul.f32 %v8550_v15, %v8443_v29  ;;  %v8560_v47 = vld [vmem:[%s9731_s1 + $0x7] ss:$0 sm:$0xff] }
 0x1cc   : > { %v2253_v14 = vpop.permute.xlu0 %2252  ;;  %1005 = vperm.xlu1 %7354, %v8489_v19   ;;  %v816_v3 = vadd.f32 %v784_v23, %v520_v18  ;;  %v1607_v23 = vadd.f32 %v1575_v25, %v1343_v41  ;;  %v1346_v12 = vadd.f32 %v1314_v62, %v1081_v26  ;;  %v1872_v24 = vadd.f32 %v1840_v39, %v1608_v38 }
 0x1cd   : > { %1000 = vperm.xlu0 %7353, %v8500_v46   ;;  %v2369_v57 = vmul.f32 %v7978_v20, %v2258_v33  ;;  %v2368_v61 = vmul.f32 %v8560_v47, %v2253_v14  ;;  %v8566_v20 = vld [vmem:[%s9731_s1 + $0x6] ss:$0 sm:$0xff] }
 0x1ce   : > { %v1080_v53 = vadd.f32 %v1048_v45, %v816_v3  ;;  %v1871_v37 = vadd.f32 %v1839_v63, %v1607_v23  ;;  %v1610_v44 = vadd.f32 %v1578_v7, %v1346_v12  ;;  %v2137_v18 = vadd.f32 %v2105_v16, %v1872_v24  ;;  %v8591_v24 = vld [vmem:[%s7442_s10 + $0x150] sm:$0xff] }
 0x1cf   : > { %v2268_v42 = vpop.permute.xlu1 %2267  ;;  %v2107_v29 = vmul.f32 %v8566_v20, %v8472_v31  ;;  %v2106_v45 = vmul.f32 %v8566_v20, %v8478_v11 }
 0x1d0   : > { %v2263_v13 = vpop.permute.xlu0 %2262  ;;  %2043 = vperm.xlu1 %7354, %v6213_v4   ;;  %v1345_v5 = vadd.f32 %v1313_v2, %v1080_v53  ;;  %v2136_v6 = vadd.f32 %v2104_v21, %v1871_v37  ;;  %v1874_v33 = vadd.f32 %v1842_v22, %v1610_v44  ;;  %v2401_v55 = vadd.f32 %v2369_v57, %v2137_v18  ;;  %v8588_v21 = vld [vmem:[%s7442_s10 + $0x158] sm:$0xff] }
 0x1d1   : > { %2038 = vperm.xlu0 %7353, %v6212_v43   ;;  %v2371_v49 = vmul.f32 %v8560_v47, %v2268_v42  ;;  %v2370_v41 = vmul.f32 %v8560_v47, %v2263_v13 }
 0x1d2   : > { %v1609_v1 = vadd.f32 %v1577_v32, %v1345_v5  ;;  %v2400_v3 = vadd.f32 %v2368_v61, %v2136_v6  ;;  %v2139_v2 = vadd.f32 %v2107_v29, %v1874_v33 }
 0x1d3   : > { %v2522_v25 = vpop.permute.xlu1 %2521 }
 0x1d4   : > { %v2633_v62 = vmul.f32 %v8006_v36, %v2522_v25  ;;  %v2517_v39 = vpop.permute.xlu0 %2516  ;;  %1260 = vperm.xlu1 %7354, %v6213_v4   ;;  %v1873_v14 = vadd.f32 %v1841_v60, %v1609_v1  ;;  %v2403_v7 = vadd.f32 %v2371_v49, %v2139_v2  ;;  %v8580_v4 = vld [vmem:[%s9731_s1 + $0x8] ss:$0 sm:$0xff] }
 0x1d5   : > { %v2632_v31 = vmul.f32 %v8006_v36, %v2517_v39  ;;  %1255 = vperm.xlu0 %7353, %v6212_v43  }
 0x1d6   : > { %v2665_v63 = vadd.f32 %v2633_v62, %v2401_v55  ;;  %v2138_v11 = vadd.f32 %v2106_v45, %v1873_v14 }
 0x1d7   : > { %v2664_v26 = vadd.f32 %v2632_v31, %v2400_v3  ;;  %v2532_v38 = vpop.permute.xlu1 %2531 }
 0x1d8   : > { %v2704_v16 = vadd.f32 %v8029_v8, %v2665_v63  ;;  %v2635_v53 = vmul.f32 %v8580_v4, %v2532_v38  ;;  %v2527_v23 = vpop.permute.xlu0 %2526  ;;  %2297 = vperm.xlu1 %7354, %v8368_v52   ;;  %v2402_v36 = vadd.f32 %v2370_v41, %v2138_v11  ;;  %v8635_v63 = vld [vmem:[%s7442_s10 + $0x159] sm:$0xff]  ;;  %v8638_v11 = vld [vmem:[%s7442_s10 + $0x151] sm:$0xff] }
 0x1d9   : > { %v2703_v43 = vadd.f32 %v8029_v8, %v2664_v26  ;;  %v2634_v32 = vmul.f32 %v8580_v4, %v2527_v23  ;;  %2292 = vperm.xlu0 %7353, %v8375_v58   ;;  %v8604_v58 = vld [vmem:[%s9732_s2] ss:$0 sm:$0xff]  ;;  %v9801_v38 = vld [vmem:[#allocation40_spill] sm:$0xff] }
 0x1da   : > { %v2736_v42 = vmax.f32 %v2704_v16, 0.0  ;;  %v2667_v12 = vadd.f32 %v2635_v53, %v2403_v7  ;;  %v9802_v16 = vld [vmem:[#allocation41_spill] sm:$0xff] }
 0x1db   : > { %v2735_v22 = vmax.f32 %v2703_v43, 0.0  ;;  %v2666_v57 = vadd.f32 %v2634_v32, %v2402_v36  ;;  %v8593_v13 = vpop.permute.xlu1 %955  ;;  %v8669_v32 = vld [vmem:[%s7442_s10 + $0x171] sm:$0xff] }
 0x1dc   : > { %2825 = vst.msk [vmem:[#allocation2 + $0xb1] sm:$0xff] %vm2755_vm0, %v2736_v42  ;;  %v2706_v52 = vadd.f32 %v8029_v8, %v2667_v12  ;;  %v8597_v5 = vpop.permute.xlu0 %950  ;;  %1270 = vperm.xlu1 %7354, %v8588_v21  }
 0x1dd   : > { %2824 = vst.msk [vmem:[#allocation2 + $0xa9] sm:$0xff] %vm2755_vm0, %v2735_v22  ;;  %v2705_v37 = vadd.f32 %v8604_v58, %v2666_v57  ;;  %1265 = vperm.xlu0 %7353, %v8591_v24   ;;  %v8608_v60 = vpack.c.bf16 %v2736_v42, %v2735_v22  ;;  %v8672_v42 = vld [vmem:[%s7442_s10 + $0x169] sm:$0xff]  ;;  %v8681_v22 = vld [vmem:[%s7442_s10 + $0x15a] sm:$0xff] }
 0x1de   : > { %v2738_v61 = vmax.f32 %v2706_v52, 0.0 }
 0x1df   : > { %9799 = vst [vmem:[#allocation28_spill] sm:$0xff] %v8608_v60  ;;  %v2737_v44 = vmax.f32 %v2705_v37, 0.0  ;;  %v8610_v8 = vpop.permute.xlu1 %965 }
 0x1e0   : > { %2827 = vst.msk [vmem:[#allocation2 + $0xc9] sm:$0xff] %vm2755_vm0, %v2738_v61  ;;  %v8613_v18 = vpop.permute.xlu0 %960  ;;  %2307 = vperm.xlu1 %7354, %v8424_v35  }
 0x1e1   : > { %2826 = vst.msk [vmem:[#allocation2 + $0xc1] sm:$0xff] %vm2755_vm0, %v2737_v44  ;;  %2302 = vperm.xlu0 %7353, %v8427_v10   ;;  %v8618_v29 = vpack.c.bf16 %v2738_v61, %v2737_v44  ;;  %v8704_v61 = vld [vmem:[%s7442_s10 + $0x172] sm:$0xff] }
 0x1e3   : > { %9800 = vst [vmem:[#allocation29_spill] sm:$0xff] %v8618_v29  ;;  %v8620_v1 = vpop.permute.xlu1 %1220  ;;  %v2910_v6 = vld [vmem:[#allocation2 + $0xb1] sm:$0xff] }
 0x1e4   : > { %v8622_v45 = vpop.permute.xlu0 %1215  ;;  %1524 = vperm.xlu1 %7354, %v8424_v35   ;;  %v2909_v25 = vld [vmem:[#allocation2 + $0xa9] sm:$0xff] }
 0x1e5   : > { %v3670_v33 = vld [vmem:[#allocation2 + $0xa8] sm:$0xff]  ;;  %v3671_v55 = vld [vmem:[#allocation2 + $0xb0] sm:$0xff]  ;;  %1519 = vperm.xlu0 %7353, %v8427_v10   ;;  %v2934_v49 = vpack.c.bf16 %v2910_v6, %v2909_v25 }
 0x1e6   : > { %v3696_v62 = vpack.c.bf16 %v3671_v55, %v3670_v33  ;;  %v6217_v25 = vld [vmem:[%s7442_s10 + $0x170] sm:$0xff]  ;;  %v8716_v33 = vld [vmem:[%s9731_s1 + $0x1] ss:$0 sm:$0xff] }
 0x1e7   : > { %6692 = vmatmul.mubr.msk.bf16.gmra.mrb[12].mxu1 %vm2755_vm0, %v2934_v49  ;;  %v8628_v39 = vpop.permute.xlu1 %1230  ;;  %v2912_v14 = vld [vmem:[#allocation2 + $0xc9] sm:$0xff] }
 0x1e8   : > { %6793 = vmatprep.mubr.msk.bf16.mxu0 %vm2755_vm0, %v3696_v62  ;;  %v8630_v3 = vpop.permute.xlu0 %1225  ;;  %2561 = vperm.xlu1 %7354, %v8438_v51   ;;  %v2911_v35 = vld [vmem:[#allocation2 + $0xc1] sm:$0xff]  ;;  %v9803_v62 = vld [vmem:[#allocation15_spill] sm:$0xff] }
 0x1e9   : > { %v3672_v41 = vld [vmem:[#allocation2 + $0xc0] sm:$0xff]  ;;  %v3673_v31 = vld [vmem:[#allocation2 + $0xc8] sm:$0xff]  ;;  %2556 = vperm.xlu0 %7353, %v8441_v34   ;;  %v2935_v10 = vpack.c.bf16 %v2912_v14, %v2911_v35  ;;  %v527_v14 = vmul.f32 %v8505_v48, %v9803_v62 }
 0x1ea   : > { %v3697_v2 = vpack.c.bf16 %v3673_v31, %v3672_v41  ;;  %v9804_v31 = vld [vmem:[#allocation16_spill] sm:$0xff] }
 0x1eb   : > { %6695 = vmatprep.mubr.msk.bf16.mxu1 %vm2755_vm0, %v2935_v10  ;;  %v8642_v26 = vpop.permute.xlu1 %1484 }
 0x1ec   : > { %6794 = vmatmul.mubr.msk.bf16.gmra.mrb[12].mxu0 %vm2755_vm0, %v3697_v2  ;;  %v8646_v51 = vpop.permute.xlu0 %1479  ;;  %1534 = vperm.xlu1 %7354, %v8635_v63  }
 0x1ed   : > { %6815 = vmatprep.mubr.msk.bf16.mxu0 %vm2755_vm0, %v9801_v38  ;;  %1529 = vperm.xlu0 %7353, %v8638_v11  }
 0x1ef   : > { %v8650_v34 = vpop.permute.xlu1 %1494 }
 0x1f0   : > { %v8652_v7 = vpop.permute.xlu0 %1489  ;;  %2571 = vperm.xlu1 %7354, %v8489_v19  }
 0x1f1   : > { %2566 = vperm.xlu0 %7353, %v8500_v46  }
 0x1f3   : > { %v712_v53 = vpop.permute.xlu1 %711 }
 0x1f4   : > { %6816 = vmatmul.mubr.msk.bf16.vlgmr.msra.gmra.mrb[0].mxu0 %vm2755_vm0, %v9802_v16  ;;  %v707_v23 = vpop.permute.xlu0 %706  ;;  %751 = vperm.xlu1 %7354, %v8635_v63  }
 0x1f5   : > { %6819 = vmatprep.mubr.msk.bf16.mxu0 %vm2755_vm0, %v8268_v28  ;;  %746 = vperm.xlu0 %7353, %v8638_v11   ;;  %v790_v55 = vmul.f32 %v8716_v33, %v707_v23 }
 0x1f7   : > { %v8662_v36 = vpop.permute.xlu1 %1748 }
 0x1f8   : > { %v8664_v43 = vpop.permute.xlu0 %1743  ;;  %1788 = vperm.xlu1 %7354, %v8489_v19   ;;  %v8684_v19 = vld [vmem:[%s7442_s10 + $0x152] sm:$0xff] }
 0x1f9   : > { %1783 = vperm.xlu0 %7353, %v8500_v46  }
 0x1fb   : > { %v722_v28 = vpop.permute.xlu1 %721 }
 0x1fc   : > { %6820 = vmatmul.mubr.msk.bf16.gmra.mrb[4].mxu0 %vm2755_vm0, %v8294_v40  ;;  %v717_v12 = vpop.permute.xlu0 %716  ;;  %761 = vperm.xlu1 %7354, %v8669_v32   ;;  %v793_v54 = vmul.f32 %v8716_v33, %v722_v28  ;;  %v9807_v28 = vld [vmem:[#allocation18_spill] sm:$0xff] }
 0x1fd   : > { %6823 = vmatprep.mubr.msk.bf16.mxu0 %vm2755_vm0, %v8450_v27  ;;  %756 = vperm.xlu0 %7353, %v8672_v42  }
 0x1ff   : > { %v8686_v46 = vpop.permute.xlu1 %1758 }
 0x200   : > { %v8688_v57 = vpop.permute.xlu0 %1753  ;;  %1798 = vperm.xlu1 %7354, %v8681_v22  }
 0x201   : > { %1793 = vperm.xlu0 %7353, %v8684_v19  }
 0x203   : > { %v976_v40 = vpop.permute.xlu1 %975 }
 0x204   : > { %6824 = vmatmul.mubr.msk.bf16.gmra.mrb[8].mxu0 %vm2755_vm0, %v8481_v56  ;;  %v971_v27 = vpop.permute.xlu0 %970  ;;  %1015 = vperm.xlu1 %7354, %v8681_v22   ;;  %v8707_v56 = vld [vmem:[%s7442_s10 + $0x16a] sm:$0xff]  ;;  %v1055_v35 = vmul.f32 %v8512_v17, %v976_v40 }
 0x205   : > { %6827 = vmatprep.mubr.msk.bf16.mxu0 %vm2755_vm0, %v2934_v49  ;;  %1010 = vperm.xlu0 %7353, %v8684_v19   ;;  %v1054_v2 = vmul.f32 %v8512_v17, %v971_v27  ;;  %v792_v27 = vmul.f32 %v8716_v33, %v717_v12 }
 0x207   : > { %v8697_v52 = vpop.permute.xlu1 %2013 }
 0x208   : > { %v8699_v37 = vpop.permute.xlu0 %2008  ;;  %2053 = vperm.xlu1 %7354, %v8588_v21   ;;  %v791_v21 = vmul.f32 %v8716_v33, %v712_v53 }
 0x209   : > { %2048 = vperm.xlu0 %7353, %v8591_v24   ;;  %v6216_v24 = vld [vmem:[%s7442_s10 + $0x168] sm:$0xff] }
 0x20a   : > { %v823_v38 = vadd.f32 %v791_v21, %v527_v14  ;;  %v9805_v14 = vld [vmem:[#allocation17_spill] sm:$0xff] }
 0x20b   : > { %v986_v44 = vpop.permute.xlu1 %985 }
 0x20c   : > { %6828 = vmatmul.mubr.msk.bf16.gmra.mrb[12].mxu0 %vm2755_vm0, %v2935_v10  ;;  %v981_v6 = vpop.permute.xlu0 %980  ;;  %1025 = vperm.xlu1 %7354, %v8704_v61   ;;  %v526_v10 = vmul.f32 %v8505_v48, %v9804_v31  ;;  %v1087_v23 = vadd.f32 %v1055_v35, %v823_v38  ;;  %v529_v35 = vmul.f32 %v8505_v48, %v9805_v14  ;;  %v9806_v31 = vld [vmem:[#allocation34_spill] sm:$0xff] }
 0x20d   : > { %1020 = vperm.xlu0 %7353, %v8707_v56   ;;  %v8752_v38 = vld [vmem:[%s7442_s10 + $0x188] sm:$0xff]  ;;  %v1050_v14 = vmul.f32 %v8512_v17, %v8597_v5 }
 0x20e   : > { %v822_v16 = vadd.f32 %v790_v55, %v526_v10 }
 0x20f   : > { %v8721_v49 = vpop.permute.xlu1 %2023 }
 0x210   : > { %v8726_v41 = vpop.permute.xlu0 %2018  ;;  %2063 = vperm.xlu1 %7354, %v6217_v25   ;;  %v1086_v62 = vadd.f32 %v1054_v2, %v822_v16  ;;  %v1056_v2 = vmul.f32 %v8512_v17, %v981_v6  ;;  %v9809_v16 = vld [vmem:[#allocation11_spill] sm:$0xff] }
 0x211   : > { %2058 = vperm.xlu0 %7353, %v6216_v24  }
 0x213   : > { %v1241_v53 = vpop.permute.xlu1 %1240 }
 0x214   : > { %v1320_v29 = vmul.f32 %v8522_v59, %v1241_v53  ;;  %v1236_v60 = vpop.permute.xlu0 %1235  ;;  %1280 = vperm.xlu1 %7354, %v6217_v25   ;;  %v787_v25 = vmul.f32 %v8716_v33, %v9806_v31  ;;  %v523_v53 = vmul.f32 %v8505_v48, %v9809_v16 }
 0x215   : > { %v1319_v40 = vmul.f32 %v8522_v59, %v1236_v60  ;;  %1275 = vperm.xlu0 %7353, %v6216_v24   ;;  %v1057_v60 = vmul.f32 %v8512_v17, %v986_v44  ;;  %v9808_v24 = vld [vmem:[#allocation35_spill] sm:$0xff]  ;;  %v1051_v44 = vmul.f32 %v8512_v17, %v8593_v13  ;;  %v1315_v13 = vmul.f32 %v8522_v59, %v8622_v45 }
 0x216   : > { %v8734_v50 = vadd.f32 %v1320_v29, %v1087_v23  ;;  %v528_v29 = vmul.f32 %v8505_v48, %v9807_v28  ;;  %v786_v12 = vmul.f32 %v8716_v33, %v9808_v24  ;;  %v825_v23 = vadd.f32 %v793_v54, %v529_v35 }
 0x217   : > { %v8737_v21 = vadd.f32 %v1319_v40, %v1086_v62  ;;  %v2278_v55 = vpop.permute.xlu1 %2277  ;;  %v9810_v62 = vld [vmem:[#allocation12_spill] sm:$0xff]  ;;  %v1316_v28 = vmul.f32 %v8522_v59, %v8620_v1 }
 0x218   : > { %v2273_v10 = vpop.permute.xlu0 %2272  ;;  %2317 = vperm.xlu1 %7354, %v8635_v63   ;;  %v8759_v63 = vld [vmem:[%s7442_s10 + $0x180] sm:$0xff]  ;;  %v522_v40 = vmul.f32 %v8505_v48, %v9810_v62  ;;  %v824_v6 = vadd.f32 %v792_v27, %v528_v29  ;;  %v1089_v24 = vadd.f32 %v1057_v60, %v825_v23  ;;  %v1580_v27 = vmul.f32 %v8538_v9, %v8642_v26 }
 0x219   : > { %2312 = vperm.xlu0 %7353, %v8638_v11   ;;  %v819_v11 = vadd.f32 %v787_v25, %v523_v53  ;;  %v1579_v60 = vmul.f32 %v8538_v9, %v8646_v51  ;;  %v9811_v53 = vld [vmem:[#allocation36_spill] sm:$0xff]  ;;  %v9812_v26 = vld [vmem:[#allocation37_spill] sm:$0xff]  ;;  %v1843_v51 = vmul.f32 %v8550_v15, %v8664_v43  ;;  %v2108_v43 = vmul.f32 %v8566_v20, %v8699_v37 }
 0x21a   : > { %v818_v54 = vadd.f32 %v786_v12, %v522_v40  ;;  %v1088_v35 = vadd.f32 %v1056_v2, %v824_v6  ;;  %v789_v45 = vmul.f32 %v8716_v33, %v9811_v53  ;;  %v788_v23 = vmul.f32 %v8716_v33, %v9812_v26 }
 0x21b   : > { %v1251_v31 = vpop.permute.xlu1 %1250  ;;  %v1083_v5 = vadd.f32 %v1051_v44, %v819_v11  ;;  %v2372_v37 = vmul.f32 %v8560_v47, %v2273_v10 }
 0x21c   : > { %v1322_v16 = vmul.f32 %v8522_v59, %v1251_v31  ;;  %v1246_v0 = vpop.permute.xlu0 %1245  ;;  %1290 = vperm.xlu1 %7354, %v8752_v38   ;;  %v1082_v25 = vadd.f32 %v1050_v14, %v818_v54  ;;  %v9813_v14 = vld [vmem:[#allocation13_spill] sm:$0xff]  ;;  %v1053_v31 = vmul.f32 %v8512_v17, %v8610_v8  ;;  %v1318_v8 = vmul.f32 %v8522_v59, %v8628_v39 }
 0x21d   : > { %v1321_v62 = vmul.f32 %v8522_v59, %v1246_v0  ;;  %1285 = vperm.xlu0 %7353, %v8759_v63   ;;  %v1348_v2 = vadd.f32 %v1316_v28, %v1083_v5  ;;  %v1844_v0 = vmul.f32 %v8550_v15, %v8662_v36  ;;  %v525_v6 = vmul.f32 %v8505_v48, %v9813_v14  ;;  %v9814_v28 = vld [vmem:[#allocation14_spill] sm:$0xff] }
 0x21e   : > { %v8775_v1 = vadd.f32 %v1322_v16, %v1089_v24  ;;  %v1347_v40 = vadd.f32 %v1315_v13, %v1082_v25  ;;  %v2109_v36 = vmul.f32 %v8566_v20, %v8697_v52  ;;  %v524_v24 = vmul.f32 %v8505_v48, %v9814_v28 }
 0x21f   : > { %v8779_v29 = vadd.f32 %v1321_v62, %v1088_v35  ;;  %v2288_v12 = vpop.permute.xlu1 %2287  ;;  %v1612_v11 = vadd.f32 %v1580_v27, %v1348_v2  ;;  %v1052_v16 = vmul.f32 %v8512_v17, %v8613_v18  ;;  %v821_v35 = vadd.f32 %v789_v45, %v525_v6 }
 0x220   : > { %v2283_v44 = vpop.permute.xlu0 %2282  ;;  %2327 = vperm.xlu1 %7354, %v8669_v32   ;;  %v1611_v54 = vadd.f32 %v1579_v60, %v1347_v40  ;;  %v2373_v5 = vmul.f32 %v8560_v47, %v2278_v55  ;;  %v820_v27 = vadd.f32 %v788_v23, %v524_v24  ;;  %v1317_v18 = vmul.f32 %v8522_v59, %v8630_v3 }
 0x221   : > { %2322 = vperm.xlu0 %7353, %v8672_v42   ;;  %v1876_v62 = vadd.f32 %v1844_v0, %v1612_v11  ;;  %v1085_v60 = vadd.f32 %v1053_v31, %v821_v35  ;;  %v1582_v39 = vmul.f32 %v8538_v9, %v8650_v34  ;;  %v1581_v45 = vmul.f32 %v8538_v9, %v8652_v7  ;;  %v8833_v31 = vld [vmem:[%s7442_s10 + $0x181] sm:$0xff] }
 0x222   : > { %v1875_v25 = vadd.f32 %v1843_v51, %v1611_v54  ;;  %v1084_v55 = vadd.f32 %v1052_v16, %v820_v27  ;;  %v1846_v3 = vmul.f32 %v8550_v15, %v8686_v46  ;;  %v1845_v23 = vmul.f32 %v8550_v15, %v8688_v57  ;;  %v8828_v51 = vld [vmem:[%s7442_s10 + $0x189] sm:$0xff] }
 0x223   : > { %v8803_v13 = vpop.permute.xlu1 %1504  ;;  %v2141_v53 = vadd.f32 %v2109_v36, %v1876_v62  ;;  %v1350_v0 = vadd.f32 %v1318_v8, %v1085_v60  ;;  %v2111_v46 = vmul.f32 %v8566_v20, %v8721_v49  ;;  %v2375_v24 = vmul.f32 %v8560_v47, %v2288_v12  ;;  %v6381_v60 = vld [vmem:[%s9733_s3 + $0x50] sm:$0xff] }
 0x224   : > { %v8808_v52 = vpop.permute.xlu0 %1499  ;;  %1544 = vperm.xlu1 %7354, %v8669_v32   ;;  %v2140_v32 = vadd.f32 %v2108_v43, %v1875_v25  ;;  %v1349_v34 = vadd.f32 %v1317_v18, %v1084_v55  ;;  %v2374_v54 = vmul.f32 %v8560_v47, %v2283_v44 }
 0x225   : > { %1539 = vperm.xlu0 %7353, %v8672_v42   ;;  %v2405_v10 = vadd.f32 %v2373_v5, %v2141_v53  ;;  %v1614_v14 = vadd.f32 %v1582_v39, %v1350_v0  ;;  %v6382_v39 = vld [vmem:[%s9733_s3 + $0x58] sm:$0xff] }
 0x226   : > { %v2404_v40 = vadd.f32 %v2372_v37, %v2140_v32  ;;  %v1613_v11 = vadd.f32 %v1581_v45, %v1349_v34  ;;  %v4295_v55 = vpack.c.bf16 %v6382_v39, %v6381_v60 }
 0x227   : > { %v2542_v2 = vpop.permute.xlu1 %2541  ;;  %v1878_v28 = vadd.f32 %v1846_v3, %v1614_v14 }
 0x228   : > { %v2637_v42 = vmul.f32 %v8580_v4, %v2542_v2  ;;  %v2537_v26 = vpop.permute.xlu0 %2536  ;;  %2581 = vperm.xlu1 %7354, %v8681_v22   ;;  %v2110_v22 = vmul.f32 %v8566_v20, %v8726_v41  ;;  %v1877_v49 = vadd.f32 %v1845_v23, %v1613_v11  ;;  %v9815_v2 = vld [vmem:[#allocation19_spill] sm:$0xff]  ;;  %6847 = vmatprep.subr.bf16.mxu0 %v4295_v55 }
 0x229   : > { %v2636_v7 = vmul.f32 %v8580_v4, %v2537_v26  ;;  %2576 = vperm.xlu0 %7353, %v8684_v19   ;;  %v2143_v41 = vadd.f32 %v2111_v46, %v1878_v28  ;;  %v531_v0 = vmul.f32 %v8505_v48, %v9815_v2  ;;  %v9816_v26 = vld [vmem:[#allocation20_spill] sm:$0xff]  ;;  %6848 = vmatpush3.bf16.msra.mxu0 %v4295_v55  ;;  %v6255_v2 = vld [vmem:[%s7442_s10 + $0x1a1] sm:$0xff] }
 0x22a   : > { %v2669_v6 = vadd.f32 %v2637_v42, %v2405_v10  ;;  %v2142_v8 = vadd.f32 %v2110_v22, %v1877_v49  ;;  %v530_v34 = vmul.f32 %v8505_v48, %v9816_v26 }
 0x22b   : > { %v2668_v36 = vadd.f32 %v2636_v7, %v2404_v40  ;;  %v8837_v57 = vpop.permute.xlu1 %1514  ;;  %v2407_v27 = vadd.f32 %v2375_v24, %v2143_v41  ;;  %v6187_v7 = vld [vmem:[%s7442_s10 + $0x18a] sm:$0xff] }
 0x22c   : > { %v2708_v19 = vadd.f32 %v8604_v58, %v2669_v6  ;;  %v8841_v16 = vpop.permute.xlu0 %1509  ;;  %1554 = vperm.xlu1 %7354, %v8828_v51   ;;  %v2406_v25 = vadd.f32 %v2374_v54, %v2142_v8  ;;  %v6186_v6 = vld [vmem:[%s7442_s10 + $0x182] sm:$0xff] }
 0x22d   : > { %v2707_v43 = vadd.f32 %v8604_v58, %v2668_v36  ;;  %1549 = vperm.xlu0 %7353, %v8833_v31   ;;  %v9817_v54 = vld [vmem:[#allocation21_spill] sm:$0xff]  ;;  %v9818_v8 = vld [vmem:[#allocation22_spill] sm:$0xff] }
 0x22e   : > { %v2740_v35 = vmax.f32 %v2708_v19, 0.0 }
 0x22f   : > { %v2739_v62 = vmax.f32 %v2707_v43, 0.0  ;;  %v2552_v5 = vpop.permute.xlu1 %2551  ;;  %v533_v43 = vmul.f32 %v8505_v48, %v9817_v54 }
 0x230   : > { %2829 = vst.msk [vmem:[#allocation2 + $0xe1] sm:$0xff] %vm2755_vm0, %v2740_v35  ;;  %v2639_v12 = vmul.f32 %v8580_v4, %v2552_v5  ;;  %v2547_v18 = vpop.permute.xlu0 %2546  ;;  %2591 = vperm.xlu1 %7354, %v8704_v61  }
 0x231   : > { %2828 = vst.msk [vmem:[#allocation2 + $0xd9] sm:$0xff] %vm2755_vm0, %v2739_v62  ;;  %v8851_v44 = vpack.c.bf16 %v2740_v35, %v2739_v62  ;;  %v2638_v37 = vmul.f32 %v8580_v4, %v2547_v18  ;;  %2586 = vperm.xlu0 %7353, %v8707_v56   ;;  %v532_v62 = vmul.f32 %v8505_v48, %v9818_v8  ;;  %v6220_v18 = vld [vmem:[%s7442_s10 + $0x198] sm:$0xff] }
 0x232   : > { %v2671_v53 = vadd.f32 %v2639_v12, %v2407_v27  ;;  %v6221_v27 = vld [vmem:[%s7442_s10 + $0x1a0] sm:$0xff] }
 0x233   : > { %v2670_v45 = vadd.f32 %v2638_v37, %v2406_v25  ;;  %v732_v32 = vpop.permute.xlu1 %731 }
 0x234   : > { %v2710_v3 = vadd.f32 %v8604_v58, %v2671_v53  ;;  %v795_v10 = vmul.f32 %v8716_v33, %v732_v32  ;;  %v727_v42 = vpop.permute.xlu0 %726  ;;  %1808 = vperm.xlu1 %7354, %v8704_v61  }
 0x235   : > { %v2709_v23 = vadd.f32 %v8604_v58, %v2670_v45  ;;  %v794_v40 = vmul.f32 %v8716_v33, %v727_v42  ;;  %1803 = vperm.xlu0 %7353, %v8707_v56  }
 0x236   : > { %v2742_v14 = vmax.f32 %v2710_v3, 0.0  ;;  %v827_v46 = vadd.f32 %v795_v10, %v531_v0  ;;  %v6254_v3 = vld [vmem:[%s7442_s10 + $0x199] sm:$0xff] }
 0x237   : > { %v2741_v11 = vmax.f32 %v2709_v23, 0.0  ;;  %v826_v22 = vadd.f32 %v794_v40, %v530_v34  ;;  %v8873_v36 = vpop.permute.xlu1 %1768  ;;  %v2914_v61 = vld [vmem:[#allocation2 + $0xe1] sm:$0xff] }
 0x238   : > { %2831 = vst.msk [vmem:[#allocation2 + $0xf9] sm:$0xff] %vm2755_vm0, %v2742_v14  ;;  %v8876_v28 = vpop.permute.xlu0 %1763  ;;  %1818 = vperm.xlu1 %7354, %v6187_v7   ;;  %v2913_v24 = vld [vmem:[#allocation2 + $0xd9] sm:$0xff] }
 0x239   : > { %2830 = vst.msk [vmem:[#allocation2 + $0xf1] sm:$0xff] %vm2755_vm0, %v2741_v11  ;;  %v8879_v56 = vpack.c.bf16 %v2742_v14, %v2741_v11  ;;  %1813 = vperm.xlu0 %7353, %v6186_v6   ;;  %v2936_v19 = vpack.c.bf16 %v2914_v61, %v2913_v24  ;;  %v6289_v14 = vld [vmem:[%s7442_s10 + $0x1a2] sm:$0xff] }
 0x23b   : > { %6696 = vmatmul.mubr.msk.bf16.gmra.mrb[16].mxu1 %vm2755_vm0, %v2936_v19  ;;  %6831 = vmatprep.mubr.msk.bf16.mxu0 %vm2755_vm0, %v2936_v19  ;;  %v742_v49 = vpop.permute.xlu1 %741 }
 0x23c   : > { %v797_v41 = vmul.f32 %v8716_v33, %v742_v49  ;;  %v737_v35 = vpop.permute.xlu0 %736  ;;  %2073 = vperm.xlu1 %7354, %v8752_v38  }
 0x23d   : > { %v796_v5 = vmul.f32 %v8716_v33, %v737_v35  ;;  %2068 = vperm.xlu0 %7353, %v8759_v63  }
 0x23e   : > { %v829_v12 = vadd.f32 %v797_v41, %v533_v43 }
 0x23f   : > { %v828_v25 = vadd.f32 %v796_v5, %v532_v62  ;;  %v8893_v37 = vpop.permute.xlu1 %1778  ;;  %v2916_v60 = vld [vmem:[#allocation2 + $0xf9] sm:$0xff]  ;;  %v1584_v5 = vmul.f32 %v8538_v9, %v8803_v13 }
 0x240   : > { %v8895_v39 = vpop.permute.xlu0 %1773  ;;  %2083 = vperm.xlu1 %7354, %v6221_v27   ;;  %v2915_v38 = vld [vmem:[#allocation2 + $0xf1] sm:$0xff] }
 0x241   : > { %2078 = vperm.xlu0 %7353, %v6220_v18   ;;  %v2937_v53 = vpack.c.bf16 %v2916_v60, %v2915_v38  ;;  %v2892_v60 = vld [vmem:[%s9733_s3] sm:$0xff]  ;;  %v2893_v38 = vld [vmem:[%s9733_s3 + $0x8] sm:$0xff] }
 0x243   : > { %6699 = vmatprep.mubr.msk.bf16.mxu1 %vm2755_vm0, %v2937_v53  ;;  %6832 = vmatmul.mubr.msk.bf16.gmra.mrb[16].mxu0 %vm2755_vm0, %v2937_v53  ;;  %v996_v63 = vpop.permute.xlu1 %995  ;;  %v2894_v53 = vpack.c.bf16 %v2893_v38, %v2892_v60 }
 0x244   : > { %v1059_v55 = vmul.f32 %v8512_v17, %v996_v63  ;;  %v991_v45 = vpop.permute.xlu0 %990  ;;  %2337 = vperm.xlu1 %7354, %v8828_v51   ;;  %v1847_v63 = vmul.f32 %v8550_v15, %v8876_v28 }
 0x245   : > { %v1058_v32 = vmul.f32 %v8512_v17, %v991_v45  ;;  %2332 = vperm.xlu0 %7353, %v8833_v31   ;;  %v6288_v31 = vld [vmem:[%s7442_s10 + $0x19a] sm:$0xff]  ;;  %6711 = vmatprep.subr.bf16.mxu1 %v2894_v53 }
 0x246   : > { %v1091_v0 = vadd.f32 %v1059_v55, %v827_v46  ;;  %6712 = vmatpush3.bf16.msra.mxu1 %v2894_v53 }
 0x247   : > { %v1090_v10 = vadd.f32 %v1058_v32, %v826_v22  ;;  %v2034_v42 = vpop.permute.xlu1 %2033 }
 0x248   : > { %v2029_v26 = vpop.permute.xlu0 %2028  ;;  %2347 = vperm.xlu1 %7354, %v6255_v2   ;;  %v2113_v55 = vmul.f32 %v8566_v20, %v2034_v42 }
 0x249   : > { %2342 = vperm.xlu0 %7353, %v6254_v3   ;;  %v2112_v32 = vmul.f32 %v8566_v20, %v2029_v26 }
 0x24b   : > { %v1006_v34 = vpop.permute.xlu1 %1005 }
 0x24c   : > { %v1061_v23 = vmul.f32 %v8512_v17, %v1006_v34  ;;  %v1001_v40 = vpop.permute.xlu0 %1000  ;;  %2601 = vperm.xlu1 %7354, %v6187_v7  }
 0x24d   : > { %v1060_v51 = vmul.f32 %v8512_v17, %v1001_v40  ;;  %2596 = vperm.xlu0 %7353, %v6186_v6  }
 0x24e   : > { %v1093_v11 = vadd.f32 %v1061_v23, %v829_v12  ;;  %v1583_v12 = vmul.f32 %v8538_v9, %v8808_v52  ;;  %v1616_v52 = vadd.f32 %v1584_v5, %v8734_v50  ;;  %v1586_v50 = vmul.f32 %v8538_v9, %v8837_v57  ;;  %v6400_v57 = vld [vmem:[%s9733_s3 + $0x68] sm:$0xff] }
 0x24f   : > { %v1092_v61 = vadd.f32 %v1060_v51, %v828_v25  ;;  %v2044_v24 = vpop.permute.xlu1 %2043  ;;  %v1850_v23 = vmul.f32 %v8550_v15, %v8893_v37 }
 0x250   : > { %v2039_v46 = vpop.permute.xlu0 %2038  ;;  %2611 = vperm.xlu1 %7354, %v6289_v14   ;;  %v1615_v45 = vadd.f32 %v1583_v12, %v8737_v21  ;;  %v1585_v21 = vmul.f32 %v8538_v9, %v8841_v16  ;;  %v1849_v16 = vmul.f32 %v8550_v15, %v8895_v39  ;;  %v1618_v37 = vadd.f32 %v1586_v50, %v8775_v1 }
 0x251   : > { %2606 = vperm.xlu0 %7353, %v6288_v31  }
 0x252   : > { %v1882_v39 = vadd.f32 %v1850_v23, %v1618_v37 }
 0x253   : > { %v1261_v22 = vpop.permute.xlu1 %1260 }
 0x254   : > { %v1324_v19 = vmul.f32 %v8522_v59, %v1261_v22  ;;  %v1256_v49 = vpop.permute.xlu0 %1255 }
 0x255   : > { %v1323_v54 = vmul.f32 %v8522_v59, %v1256_v49 }
 0x256   : > { %v8911_v43 = vadd.f32 %v1324_v19, %v1091_v0  ;;  %v2115_v19 = vmul.f32 %v8566_v20, %v2044_v24 }
 0x257   : > { %v8913_v7 = vadd.f32 %v1323_v54, %v1090_v10  ;;  %v2298_v17 = vpop.permute.xlu1 %2297  ;;  %v1879_v10 = vadd.f32 %v1847_v63, %v1615_v45  ;;  %v1617_v54 = vadd.f32 %v1585_v21, %v8779_v29 }
 0x258   : > { %v2293_v6 = vpop.permute.xlu0 %2292  ;;  %v2147_v29 = vadd.f32 %v2115_v19, %v1882_v39  ;;  %v9822_v39 = vld [vmem:[#allocation26_spill] sm:$0xff] }
 0x259   : > { %v2376_v28 = vmul.f32 %v8560_v47, %v2293_v6  ;;  %v2144_v34 = vadd.f32 %v2112_v32, %v1879_v10  ;;  %v1881_v1 = vadd.f32 %v1849_v16, %v1617_v54 }
 0x25b   : > { %v1271_v41 = vpop.permute.xlu1 %1270  ;;  %v2408_v31 = vadd.f32 %v2376_v28, %v2144_v34 }
 0x25c   : > { %v1326_v35 = vmul.f32 %v8522_v59, %v1271_v41  ;;  %v1266_v8 = vpop.permute.xlu0 %1265 }
 0x25d   : > { %v1325_v62 = vmul.f32 %v8522_v59, %v1266_v8  ;;  %v1848_v59 = vmul.f32 %v8550_v15, %v8873_v36  ;;  %v2377_v36 = vmul.f32 %v8560_v47, %v2298_v17  ;;  %v2114_v17 = vmul.f32 %v8566_v20, %v2039_v46 }
 0x25e   : > { %v8919_v27 = vadd.f32 %v1326_v35, %v1093_v11  ;;  %v6399_v11 = vld [vmem:[%s9733_s3 + $0x60] sm:$0xff] }
 0x25f   : > { %v8923_v18 = vadd.f32 %v1325_v62, %v1092_v61  ;;  %v2308_v25 = vpop.permute.xlu1 %2307  ;;  %v1880_v0 = vadd.f32 %v1848_v59, %v1616_v52  ;;  %v8961_v22 = vpack.c.bf16 %v6400_v57, %v6399_v11  ;;  %v2146_v46 = vadd.f32 %v2114_v17, %v1881_v1 }
 0x260   : > { %v2303_v13 = vpop.permute.xlu0 %2302  ;;  %v2379_v35 = vmul.f32 %v8560_v47, %v2308_v25 }
 0x261   : > { %v2145_v42 = vadd.f32 %v2113_v55, %v1880_v0  ;;  %6881 = vmatprep.subr.bf16.mxu0 %v8961_v22  ;;  %v2378_v24 = vmul.f32 %v8560_v47, %v2303_v13  ;;  %v9819_v0 = vld [vmem:[#allocation23_spill] sm:$0xff] }
 0x262   : > { %v2411_v59 = vadd.f32 %v2379_v35, %v2147_v29  ;;  %v536_v35 = vmul.f32 %v8505_v48, %v9822_v39  ;;  %v9065_v39 = vld [vmem:[%s9731_s1 + $0x5] ss:$0 sm:$0xff] }
 0x263   : > { %v8939_v2 = vpop.permute.xlu1 %1524  ;;  %v2409_v40 = vadd.f32 %v2377_v36, %v2145_v42  ;;  %v2410_v63 = vadd.f32 %v2378_v24, %v2146_v46  ;;  %v535_v36 = vmul.f32 %v8505_v48, %v9819_v0  ;;  %v9820_v42 = vld [vmem:[#allocation24_spill] sm:$0xff] }
 0x264   : > { %v8942_v3 = vpop.permute.xlu0 %1519  ;;  %v534_v21 = vmul.f32 %v8505_v48, %v9820_v42 }
 0x267   : > { %v2562_v26 = vpop.permute.xlu1 %2561 }
 0x268   : > { %v2641_v51 = vmul.f32 %v8580_v4, %v2562_v26  ;;  %v2557_v14 = vpop.permute.xlu0 %2556 }
 0x269   : > { %v2640_v61 = vmul.f32 %v8580_v4, %v2557_v14 }
 0x26a   : > { %v2673_v49 = vadd.f32 %v2641_v51, %v2409_v40 }
 0x26b   : > { %v2672_v6 = vadd.f32 %v2640_v61, %v2408_v31  ;;  %v8967_v41 = vpop.permute.xlu1 %1534 }
 0x26c   : > { %v2712_v8 = vadd.f32 %v8604_v58, %v2673_v49  ;;  %v8972_v62 = vpop.permute.xlu0 %1529  ;;  %v9821_v49 = vld [vmem:[#allocation25_spill] sm:$0xff] }
 0x26d   : > { %v2711_v5 = vadd.f32 %v8604_v58, %v2672_v6  ;;  %v537_v54 = vmul.f32 %v8505_v48, %v9821_v49 }
 0x26e   : > { %v2744_v12 = vmax.f32 %v2712_v8, 0.0 }
 0x26f   : > { %v2743_v60 = vmax.f32 %v2711_v5, 0.0  ;;  %v2572_v38 = vpop.permute.xlu1 %2571 }
 0x270   : > { %2833 = vst.msk [vmem:[#allocation2 + $0x111] sm:$0xff] %vm2755_vm0, %v2744_v12  ;;  %v2643_v53 = vmul.f32 %v8580_v4, %v2572_v38  ;;  %v2567_v25 = vpop.permute.xlu0 %2566 }
 0x271   : > { %2832 = vst.msk [vmem:[#allocation2 + $0x109] sm:$0xff] %vm2755_vm0, %v2743_v60  ;;  %v8979_v52 = vpack.c.bf16 %v2744_v12, %v2743_v60  ;;  %v2642_v13 = vmul.f32 %v8580_v4, %v2567_v25 }
 0x272   : > { %v2675_v55 = vadd.f32 %v2643_v53, %v2411_v59 }
 0x273   : > { %v2674_v45 = vadd.f32 %v2642_v13, %v2410_v63  ;;  %v752_v32 = vpop.permute.xlu1 %751 }
 0x274   : > { %v2714_v10 = vadd.f32 %v8604_v58, %v2675_v55  ;;  %v799_v28 = vmul.f32 %v8716_v33, %v752_v32  ;;  %v747_v50 = vpop.permute.xlu0 %746 }
 0x275   : > { %v2713_v34 = vadd.f32 %v8604_v58, %v2674_v45  ;;  %v798_v26 = vmul.f32 %v8716_v33, %v747_v50  ;;  %v1587_v50 = vmul.f32 %v8538_v9, %v8942_v3 }
 0x276   : > { %v2746_v23 = vmax.f32 %v2714_v10, 0.0  ;;  %v8990_v40 = vadd.f32 %v799_v28, %v535_v36  ;;  %v1588_v28 = vmul.f32 %v8538_v9, %v8939_v2 }
 0x277   : > { %v2745_v51 = vmax.f32 %v2713_v34, 0.0  ;;  %v8992_v14 = vadd.f32 %v798_v26, %v534_v21  ;;  %v1789_v11 = vpop.permute.xlu1 %1788  ;;  %v2918_v57 = vld [vmem:[#allocation2 + $0x111] sm:$0xff]  ;;  %v6327_v21 = vld [vmem:[%s9733_s3 + $0x20] sm:$0xff]  ;;  %v6328_v34 = vld [vmem:[%s9733_s3 + $0x28] sm:$0xff]  ;;  %v1619_v3 = vadd.f32 %v1587_v50, %v8913_v7 }
 0x278   : > { %2835 = vst.msk [vmem:[#allocation2 + $0x129] sm:$0xff] %vm2755_vm0, %v2746_v23  ;;  %v1784_v16 = vpop.permute.xlu0 %1783  ;;  %v2917_v31 = vld [vmem:[#allocation2 + $0x109] sm:$0xff]  ;;  %v1852_v26 = vmul.f32 %v8550_v15, %v1789_v11  ;;  %v1620_v2 = vadd.f32 %v1588_v28, %v8911_v43  ;;  %v9056_v43 = vld [vmem:[%s9731_s1 + $0x4] ss:$0 sm:$0xff] }
 0x279   : > { %2834 = vst.msk [vmem:[#allocation2 + $0x121] sm:$0xff] %vm2755_vm0, %v2745_v51  ;;  %v8996_v61 = vpack.c.bf16 %v2746_v23, %v2745_v51  ;;  %v2938_v37 = vpack.c.bf16 %v2918_v57, %v2917_v31  ;;  %v9039_v51 = vpack.c.bf16 %v6328_v34, %v6327_v21  ;;  %v1851_v57 = vmul.f32 %v8550_v15, %v1784_v16 }
 0x27a   : > { %v1590_v7 = vmul.f32 %v9056_v43, %v8967_v41 }
 0x27b   : > { %6700 = vmatmul.mubr.msk.bf16.gmra.mrb[20].mxu1 %vm2755_vm0, %v2938_v37  ;;  %6835 = vmatprep.mubr.msk.bf16.mxu0 %vm2755_vm0, %v2938_v37  ;;  %v762_v19 = vpop.permute.xlu1 %761 }
 0x27c   : > { %v801_v17 = vmul.f32 %v8716_v33, %v762_v19  ;;  %v757_v6 = vpop.permute.xlu0 %756  ;;  %6745 = vmatprep.subr.bf16.mxu1 %v9039_v51  ;;  %v1884_v19 = vadd.f32 %v1852_v26, %v1620_v2 }
 0x27d   : > { %v800_v8 = vmul.f32 %v8716_v33, %v757_v6 }
 0x27e   : > { %v9006_v1 = vadd.f32 %v801_v17, %v537_v54  ;;  %v1883_v54 = vadd.f32 %v1851_v57, %v1619_v3 }
 0x27f   : > { %v9008_v24 = vadd.f32 %v800_v8, %v536_v35  ;;  %v1799_v5 = vpop.permute.xlu1 %1798  ;;  %v2920_v29 = vld [vmem:[#allocation2 + $0x129] sm:$0xff] }
 0x280   : > { %v1794_v12 = vpop.permute.xlu0 %1793  ;;  %v2919_v46 = vld [vmem:[#allocation2 + $0x121] sm:$0xff] }
 0x281   : > { %v2939_v60 = vpack.c.bf16 %v2920_v29, %v2919_v46  ;;  %v1853_v46 = vmul.f32 %v9065_v39, %v1794_v12 }
 0x283   : > { %6703 = vmatprep.mubr.msk.bf16.mxu1 %vm2755_vm0, %v2939_v60  ;;  %6836 = vmatmul.mubr.msk.bf16.gmra.mrb[20].mxu0 %vm2755_vm0, %v2939_v60  ;;  %v9012_v38 = vpop.permute.xlu1 %1015 }
 0x284   : > { %v9014_v59 = vpop.permute.xlu0 %1010 }
 0x287   : > { %v2054_v48 = vpop.permute.xlu1 %2053 }
 0x288   : > { %v2049_v53 = vpop.permute.xlu0 %2048  ;;  %v2117_v9 = vmul.f32 %v8566_v20, %v2054_v48  ;;  %v9075_v48 = vld [vmem:[%s9731_s1 + $0x6] ss:$0 sm:$0xff] }
 0x289   : > { %v2116_v31 = vmul.f32 %v8566_v20, %v2049_v53  ;;  %v1589_v20 = vmul.f32 %v9056_v43, %v8972_v62  ;;  %v1622_v62 = vadd.f32 %v1590_v7, %v8919_v27 }
 0x28a   : > { %v2149_v16 = vadd.f32 %v2117_v9, %v1884_v19 }
 0x28b   : > { %v9016_v33 = vpop.permute.xlu1 %1025  ;;  %v2148_v17 = vadd.f32 %v2116_v31, %v1883_v54 }
 0x28c   : > { %v9018_v25 = vpop.permute.xlu0 %1020 }
 0x28f   : > { %v2064_v63 = vpop.permute.xlu1 %2063 }
 0x290   : > { %v2059_v13 = vpop.permute.xlu0 %2058  ;;  %v2119_v53 = vmul.f32 %v9075_v48, %v2064_v63 }
 0x293   : > { %v9020_v55 = vpop.permute.xlu1 %1280 }
 0x294   : > { %v9022_v45 = vpop.permute.xlu0 %1275 }
 0x297   : > { %v2318_v32 = vpop.permute.xlu1 %2317 }
 0x298   : > { %v2313_v0 = vpop.permute.xlu0 %2312  ;;  %v2381_v11 = vmul.f32 %v8560_v47, %v2318_v32 }
 0x299   : > { %v2380_v15 = vmul.f32 %v8560_v47, %v2313_v0  ;;  %v1854_v47 = vmul.f32 %v9065_v39, %v1799_v5  ;;  %v1621_v5 = vadd.f32 %v1589_v20, %v8923_v18  ;;  %v2118_v0 = vmul.f32 %v9075_v48, %v2059_v13 }
 0x29a   : > { %v2413_v35 = vadd.f32 %v2381_v11, %v2149_v16 }
 0x29b   : > { %v9024_v36 = vpop.permute.xlu1 %1290  ;;  %v2412_v41 = vadd.f32 %v2380_v15, %v2148_v17  ;;  %v1886_v12 = vadd.f32 %v1854_v47, %v1622_v62  ;;  %v1885_v63 = vadd.f32 %v1853_v46, %v1621_v5  ;;  %v7370_v5 = vld [vmem:[%s9731_s1 + $0x2] ss:$0 sm:$0xff] }
 0x29c   : > { %v9026_v10 = vpop.permute.xlu0 %1285 }
 0x29d   : > { %v2151_v26 = vadd.f32 %v2119_v53, %v1886_v12  ;;  %v2150_v2 = vadd.f32 %v2118_v0, %v1885_v63  ;;  %v1063_v0 = vmul.f32 %v7370_v5, %v9012_v38  ;;  %v1065_v38 = vmul.f32 %v7370_v5, %v9016_v33 }
 0x29f   : > { %v2328_v42 = vpop.permute.xlu1 %2327 }
 0x2a0   : > { %v2323_v23 = vpop.permute.xlu0 %2322 }
 0x2a3   : > { %v9047_v37 = vpop.permute.xlu1 %1544 }
 0x2a4   : > { %v9050_v49 = vpop.permute.xlu0 %1539 }
 0x2a7   : > { %v2582_v6 = vpop.permute.xlu1 %2581 }
 0x2a8   : > { %v2645_v8 = vmul.f32 %v8580_v4, %v2582_v6  ;;  %v2577_v29 = vpop.permute.xlu0 %2576 }
 0x2a9   : > { %v2644_v60 = vmul.f32 %v8580_v4, %v2577_v29  ;;  %v9085_v4 = vld [vmem:[%s9731_s1 + $0x7] ss:$0 sm:$0xff] }
 0x2aa   : > { %v2677_v32 = vadd.f32 %v2645_v8, %v2413_v35  ;;  %v2383_v27 = vmul.f32 %v9085_v4, %v2328_v42  ;;  %v2382_v18 = vmul.f32 %v9085_v4, %v2323_v23  ;;  %v9097_v42 = vld [vmem:[%s9731_s1 + $0x8] ss:$0 sm:$0xff] }
 0x2ab   : > { %v2676_v28 = vadd.f32 %v2644_v60, %v2412_v41  ;;  %v9080_v50 = vpop.permute.xlu1 %1554 }
 0x2ac   : > { %v2716_v21 = vadd.f32 %v8604_v58, %v2677_v32  ;;  %v9089_v34 = vpop.permute.xlu0 %1549  ;;  %v2415_v31 = vadd.f32 %v2383_v27, %v2151_v26  ;;  %v2414_v54 = vadd.f32 %v2382_v18, %v2150_v2  ;;  %v1095_v2 = vadd.f32 %v1063_v0, %v8990_v40 }
 0x2ad   : > { %v2715_v13 = vadd.f32 %v8604_v58, %v2676_v28  ;;  %v1062_v28 = vmul.f32 %v7370_v5, %v9014_v59  ;;  %v1592_v59 = vmul.f32 %v9056_v43, %v9047_v37 }
 0x2ae   : > { %v2748_v57 = vmax.f32 %v2716_v21, 0.0  ;;  %v7371_v21 = vld [vmem:[%s9731_s1 + $0x3] ss:$0 sm:$0xff] }
 0x2af   : > { %v2747_v9 = vmax.f32 %v2715_v13, 0.0  ;;  %v2592_v3 = vpop.permute.xlu1 %2591  ;;  %v1328_v63 = vmul.f32 %v7371_v21, %v9020_v55  ;;  %v1327_v26 = vmul.f32 %v7371_v21, %v9022_v45  ;;  %v1591_v55 = vmul.f32 %v9056_v43, %v9050_v49 }
 0x2b0   : > { %2837 = vst.msk [vmem:[#allocation2 + $0x141] sm:$0xff] %vm2755_vm0, %v2748_v57  ;;  %v2647_v19 = vmul.f32 %v9097_v42, %v2592_v3  ;;  %v2587_v11 = vpop.permute.xlu0 %2586  ;;  %v1064_v3 = vmul.f32 %v7370_v5, %v9018_v25  ;;  %v1330_v33 = vmul.f32 %v7371_v21, %v9024_v36  ;;  %v1097_v49 = vadd.f32 %v1065_v38, %v9006_v1 }
 0x2b1   : > { %2836 = vst.msk [vmem:[#allocation2 + $0x139] sm:$0xff] %vm2755_vm0, %v2747_v9  ;;  %v9101_v23 = vpack.c.bf16 %v2748_v57, %v2747_v9  ;;  %v2646_v15 = vmul.f32 %v9097_v42, %v2587_v11  ;;  %v1094_v9 = vadd.f32 %v1062_v28, %v8992_v14  ;;  %v1360_v40 = vadd.f32 %v1328_v63, %v1095_v2 }
 0x2b2   : > { %v2679_v7 = vadd.f32 %v2647_v19, %v2415_v31  ;;  %v1329_v14 = vmul.f32 %v7371_v21, %v9026_v10  ;;  %v1593_v36 = vmul.f32 %v9056_v43, %v9089_v34  ;;  %v1362_v10 = vadd.f32 %v1330_v33, %v1097_v49 }
 0x2b3   : > { %v2678_v16 = vadd.f32 %v2646_v15, %v2414_v54  ;;  %v1809_v20 = vpop.permute.xlu1 %1808  ;;  %v1359_v19 = vadd.f32 %v1327_v26, %v1094_v9  ;;  %v1624_v11 = vadd.f32 %v1592_v59, %v1360_v40  ;;  %v1594_v54 = vmul.f32 %v9056_v43, %v9080_v50 }
 0x2b4   : > { %v2718_v17 = vadd.f32 %v8604_v58, %v2679_v7  ;;  %v1804_v6 = vpop.permute.xlu0 %1803  ;;  %v1856_v31 = vmul.f32 %v9065_v39, %v1809_v20  ;;  %v1096_v7 = vadd.f32 %v1064_v3, %v9008_v24 }
 0x2b5   : > { %v2717_v47 = vadd.f32 %v8604_v58, %v2678_v16  ;;  %v1855_v25 = vmul.f32 %v9065_v39, %v1804_v6  ;;  %v1623_v16 = vadd.f32 %v1591_v55, %v1359_v19 }
 0x2b6   : > { %v2750_v35 = vmax.f32 %v2718_v17, 0.0 }
 0x2b7   : > { %v2749_v8 = vmax.f32 %v2717_v47, 0.0  ;;  %v1819_v29 = vpop.permute.xlu1 %1818  ;;  %v2922_v46 = vld [vmem:[#allocation2 + $0x141] sm:$0xff]  ;;  %v1888_v47 = vadd.f32 %v1856_v31, %v1624_v11  ;;  %v1887_v50 = vadd.f32 %v1855_v25, %v1623_v16 }
 0x2b8   : > { %2839 = vst.msk [vmem:[#allocation2 + $0x159] sm:$0xff] %vm2755_vm0, %v2750_v35  ;;  %v1814_v41 = vpop.permute.xlu0 %1813  ;;  %v2921_v60 = vld [vmem:[#allocation2 + $0x139] sm:$0xff]  ;;  %v1858_v6 = vmul.f32 %v9065_v39, %v1819_v29  ;;  %v2845_v16 = vld [vmem:[#allocation2 + $0x8] sm:$0xff] }
 0x2b9   : > { %2838 = vst.msk [vmem:[#allocation2 + $0x151] sm:$0xff] %vm2755_vm0, %v2749_v8  ;;  %v9108_v62 = vpack.c.bf16 %v2750_v35, %v2749_v8  ;;  %v9110_v53 = vpack.c.bf16 %v2922_v46, %v2921_v60  ;;  %v1361_v8 = vadd.f32 %v1329_v14, %v1096_v7  ;;  %v1857_v46 = vmul.f32 %v9065_v39, %v1814_v41 }
 0x2ba   : > { %v1626_v60 = vadd.f32 %v1594_v54, %v1362_v10 }
 0x2bb   : > { %6704 = vmatmul.mubr.msk.bf16.gmra.mrb[24].mxu1 %vm2755_vm0, %v9110_v53  ;;  %6839 = vmatprep.mubr.msk.bf16.mxu0 %vm2755_vm0, %v9110_v53  ;;  %v2074_v58 = vpop.permute.xlu1 %2073  ;;  %v1625_v34 = vadd.f32 %v1593_v36, %v1361_v8 }
 0x2bc   : > { %v2069_v32 = vpop.permute.xlu0 %2068  ;;  %v2121_v15 = vmul.f32 %v9075_v48, %v2074_v58  ;;  %v1890_v28 = vadd.f32 %v1858_v6, %v1626_v60  ;;  %v4244_v6 = vld [vmem:[#allocation2 + $0x1a] sm:$0xff]  ;;  %v2848_v60 = vld [vmem:[#allocation2 + $0x30] sm:$0xff] }
 0x2bd   : > { %v2120_v20 = vmul.f32 %v9075_v48, %v2069_v32 }
 0x2be   : > { %v2153_v58 = vadd.f32 %v2121_v15, %v1888_v47 }
 0x2bf   : > { %v2084_v12 = vpop.permute.xlu1 %2083  ;;  %v2924_v27 = vld [vmem:[#allocation2 + $0x159] sm:$0xff]  ;;  %v2152_v32 = vadd.f32 %v2120_v20, %v1887_v50 }
 0x2c0   : > { %v2079_v18 = vpop.permute.xlu0 %2078  ;;  %v2923_v13 = vld [vmem:[#allocation2 + $0x151] sm:$0xff]  ;;  %v2123_v43 = vmul.f32 %v9075_v48, %v2084_v12 }
 0x2c1   : > { %v9126_v57 = vpack.c.bf16 %v2924_v27, %v2923_v13  ;;  %v2122_v5 = vmul.f32 %v9075_v48, %v2079_v18  ;;  %v1889_v13 = vadd.f32 %v1857_v46, %v1625_v34  ;;  %v7372_v18 = vld [vmem:[%s9732_s2] ss:$0 sm:$0xff]  ;;  %v2846_v46 = vld [vmem:[#allocation2 + $0x18] sm:$0xff] }
 0x2c2   : > { %v2155_v2 = vadd.f32 %v2123_v43, %v1890_v28  ;;  %v4246_v34 = vld [vmem:[#allocation2 + $0x32] sm:$0xff] }
 0x2c3   : > { %6707 = vmatprep.mubr.msk.bf16.mxu1 %vm2755_vm0, %v9126_v57  ;;  %6840 = vmatmul.mubr.msk.bf16.gmra.mrb[24].mxu0 %vm2755_vm0, %v9126_v57  ;;  %v2338_v45 = vpop.permute.xlu1 %2337  ;;  %v2154_v38 = vadd.f32 %v2122_v5, %v1889_v13  ;;  %v4247_v5 = vld [vmem:[#allocation2 + $0x3a] sm:$0xff]  ;;  %v9823_v13 = vld [vmem:[#allocation27_spill] sm:$0xff] }
 0x2c4   : > { %v2333_v37 = vpop.permute.xlu0 %2332  ;;  %v2385_v1 = vmul.f32 %v9085_v4, %v2338_v45  ;;  %v6418_v28 = vld [vmem:[%s9733_s3 + $0x78] sm:$0xff] }
 0x2c5   : > { %v2384_v24 = vmul.f32 %v9085_v4, %v2333_v37 }
 0x2c6   : > { %v2417_v29 = vadd.f32 %v2385_v1, %v2153_v58  ;;  %v4245_v1 = vld [vmem:[#allocation2 + $0x22] sm:$0xff]  ;;  %v2849_v58 = vld [vmem:[#allocation2 + $0x38] sm:$0xff] }
 0x2c7   : > { %v2348_v17 = vpop.permute.xlu1 %2347  ;;  %v2416_v39 = vadd.f32 %v2384_v24, %v2152_v32  ;;  %v9184_v50 = vpack.c.bf16 %v4245_v1, %v4244_v6  ;;  %v2847_v24 = vld [vmem:[#allocation2 + $0x20] sm:$0xff]  ;;  %v9190_v32 = vpack.c.bf16 %v2849_v58, %v2848_v60  ;;  %v4259_v6 = vld [vmem:[#allocation2 + $0xca] sm:$0xff]  ;;  %v2862_v60 = vld [vmem:[#allocation2 + $0xd8] sm:$0xff] }
 0x2c8   : > { %v2343_v35 = vpop.permute.xlu0 %2342  ;;  %v2387_v27 = vmul.f32 %v9085_v4, %v2348_v17  ;;  %v2877_v43 = vpack.c.bf16 %v2847_v24, %v2846_v46  ;;  %v4260_v1 = vld [vmem:[#allocation2 + $0xda] sm:$0xff] }
 0x2c9   : > { %v2386_v41 = vmul.f32 %v9085_v4, %v2343_v35  ;;  %v2863_v58 = vld [vmem:[#allocation2 + $0xe0] sm:$0xff] }
 0x2ca   : > { %v2419_v48 = vadd.f32 %v2387_v27, %v2155_v2  ;;  %v4249_v27 = vld [vmem:[#allocation2 + $0x52] sm:$0xff]  ;;  %v2852_v2 = vld [vmem:[#allocation2 + $0x60] sm:$0xff] }
 0x2cb   : > { %v2602_v0 = vpop.permute.xlu1 %2601  ;;  %v2418_v40 = vadd.f32 %v2386_v41, %v2154_v38  ;;  %v2850_v41 = vld [vmem:[#allocation2 + $0x48] sm:$0xff] }
 0x2cc   : > { %v2649_v21 = vmul.f32 %v9097_v42, %v2602_v0  ;;  %v2597_v63 = vpop.permute.xlu0 %2596  ;;  %v6417_v0 = vld [vmem:[%s9733_s3 + $0x70] sm:$0xff] }
 0x2cd   : > { %v2648_v26 = vmul.f32 %v9097_v42, %v2597_v63  ;;  %v9204_v63 = vpack.c.bf16 %v6418_v28, %v6417_v0  ;;  %v4262_v28 = vld [vmem:[#allocation2 + $0xf2] sm:$0xff] }
 0x2ce   : > { %v2681_v12 = vadd.f32 %v2649_v21, %v2417_v29  ;;  %v4248_v29 = vld [vmem:[#allocation2 + $0x4a] sm:$0xff]  ;;  %v9202_v21 = vpack.c.bf16 %v4247_v5, %v4246_v34  ;;  %v2865_v34 = vld [vmem:[#allocation2 + $0xf8] sm:$0xff]  ;;  %v9263_v5 = vpack.c.bf16 %v2863_v58, %v2862_v60 }
 0x2cf   : > { %v2680_v59 = vadd.f32 %v2648_v26, %v2416_v39  ;;  %v2612_v9 = vpop.permute.xlu1 %2611  ;;  %v9207_v39 = vpack.c.bf16 %v4249_v27, %v4248_v29  ;;  %v2851_v26 = vld [vmem:[#allocation2 + $0x50] sm:$0xff]  ;;  %v4263_v29 = vld [vmem:[#allocation2 + $0xfa] sm:$0xff] }
 0x2d0   : > { %v2720_v3 = vadd.f32 %v7372_v18, %v2681_v12  ;;  %v2651_v55 = vmul.f32 %v9097_v42, %v2612_v9  ;;  %v2607_v45 = vpop.permute.xlu0 %2606  ;;  %v2853_v12 = vld [vmem:[#allocation2 + $0x68] sm:$0xff] }
 0x2d1   : > { %v2719_v33 = vadd.f32 %v7372_v18, %v2680_v59  ;;  %v2650_v4 = vmul.f32 %v9097_v42, %v2607_v45  ;;  %v2844_v42 = vld [vmem:[#allocation2] sm:$0xff]  ;;  %v9217_v38 = vpack.c.bf16 %v2853_v12, %v2852_v2  ;;  %v4251_v9 = vld [vmem:[#allocation2 + $0x6a] sm:$0xff] }
 0x2d2   : > { %v2752_v31 = vmax.f32 %v2720_v3, 0.0  ;;  %v2683_v37 = vadd.f32 %v2651_v55, %v2419_v48  ;;  %v2876_v17 = vpack.c.bf16 %v2845_v16, %v2844_v42  ;;  %v4250_v59 = vld [vmem:[#allocation2 + $0x62] sm:$0xff]  ;;  %v4252_v48 = vld [vmem:[#allocation2 + $0x7a] sm:$0xff]  ;;  %v2859_v42 = vld [vmem:[#allocation2 + $0xb0] sm:$0xff] }
 0x2d3   : > { %v2751_v19 = vmax.f32 %v2719_v33, 0.0  ;;  %v2682_v14 = vadd.f32 %v2650_v4, %v2418_v40  ;;  %v2854_v55 = vld [vmem:[#allocation2 + $0x78] sm:$0xff]  ;;  %v2855_v45 = vld [vmem:[#allocation2 + $0x80] sm:$0xff]  ;;  %v2856_v40 = vld [vmem:[#allocation2 + $0x90] sm:$0xff] }
 0x2d4   : > { %2841 = vst.msk [vmem:[#allocation2 + $0x171] sm:$0xff] %vm2755_vm0, %v2752_v31  ;;  %v2722_v25 = vadd.f32 %v7372_v18, %v2683_v37  ;;  %v2857_v33 = vld [vmem:[#allocation2 + $0x98] sm:$0xff]  ;;  %v9231_v4 = vpack.c.bf16 %v2855_v45, %v2854_v55  ;;  %v2860_v16 = vld [vmem:[#allocation2 + $0xc0] sm:$0xff]  ;;  %v4264_v27 = vld [vmem:[#allocation2 + $0x10a] sm:$0xff] }
 0x2d5   : > { %2840 = vst.msk [vmem:[#allocation2 + $0x169] sm:$0xff] %vm2755_vm0, %v2751_v19  ;;  %v9169_v49 = vpack.c.bf16 %v2752_v31, %v2751_v19  ;;  %v2721_v11 = vadd.f32 %v7372_v18, %v2682_v14  ;;  %v4253_v18 = vld [vmem:[#allocation2 + $0x82] sm:$0xff]  ;;  %v9233_v31 = vpack.c.bf16 %v2857_v33, %v2856_v40  ;;  %v4254_v37 = vld [vmem:[#allocation2 + $0x92] sm:$0xff]  ;;  %v4255_v19 = vld [vmem:[#allocation2 + $0x9a] sm:$0xff] }
 0x2d6   : > { %v2754_v54 = vmax.f32 %v2722_v25, 0.0  ;;  %v9225_v3 = vpack.c.bf16 %v4253_v18, %v4252_v48  ;;  %v4256_v14 = vld [vmem:[#allocation2 + $0xaa] sm:$0xff]  ;;  %v4257_v25 = vld [vmem:[#allocation2 + $0xb2] sm:$0xff]  ;;  %v4266_v45 = vld [vmem:[#allocation2 + $0x122] sm:$0xff] }
 0x2d7   : > { %v2753_v15 = vmax.f32 %v2721_v11, 0.0  ;;  %v9239_v11 = vpack.c.bf16 %v4255_v19, %v4254_v37  ;;  %v2866_v12 = vld [vmem:[#allocation2 + $0x108] sm:$0xff]  ;;  %v4268_v33 = vld [vmem:[#allocation2 + $0x13a] sm:$0xff] }
 0x2d8   : > { %2843 = vst.msk [vmem:[#allocation2 + $0x189] sm:$0xff] %vm2755_vm0, %v2754_v54  ;;  %v2869_v48 = vld [vmem:[#allocation2 + $0x128] sm:$0xff] }
 0x2d9   : > { %2842 = vst.msk [vmem:[#allocation2 + $0x181] sm:$0xff] %vm2755_vm0, %v2753_v15  ;;  %v9173_v7 = vpack.c.bf16 %v2754_v54, %v2753_v15  ;;  %v9241_v54 = vpack.c.bf16 %v4257_v25, %v4256_v14  ;;  %v2858_v15 = vld [vmem:[#allocation2 + $0xa8] sm:$0xff]  ;;  %v2870_v25 = vld [vmem:[#allocation2 + $0x138] sm:$0xff] }
 0x2da   : > { %v4267_v40 = vld [vmem:[#allocation2 + $0x12a] sm:$0xff]  ;;  %v4269_v37 = vld [vmem:[#allocation2 + $0x142] sm:$0xff] }
 0x2db   : > { %v2926_v36 = vld [vmem:[#allocation2 + $0x171] sm:$0xff]  ;;  %v9287_v19 = vpack.c.bf16 %v4267_v40, %v4266_v45  ;;  %v9289_v14 = vpack.c.bf16 %v4269_v37, %v4268_v33  ;;  %v6435_v45 = vld [vmem:[%s9733_s3 + $0x80] sm:$0xff]  ;;  %v6436_v40 = vld [vmem:[%s9733_s3 + $0x88] sm:$0xff] }
 0x2dc   : > { %v2925_v20 = vld [vmem:[#allocation2 + $0x169] sm:$0xff]  ;;  %v4273_v60 = vld [vmem:[#allocation2 + $0x172] sm:$0xff]  ;;  %v5175_v33 = vpack.c.bf16 %v6436_v40, %v6435_v45 }
 0x2dd   : > { %v9175_v10 = vpack.c.bf16 %v2926_v36, %v2925_v20  ;;  %v2861_v36 = vld [vmem:[#allocation2 + $0xc8] sm:$0xff]  ;;  %v9247_v20 = vpack.c.bf16 %v2859_v42, %v2858_v15  ;;  %v2871_v15 = vld [vmem:[#allocation2 + $0x140] sm:$0xff]  ;;  %v2872_v42 = vld [vmem:[#allocation2 + $0x150] sm:$0xff] }
 0x2de   : > { %v4834_v37 = vld [vmem:[#allocation2 + $0x51] sm:$0xff] }
 0x2df   : > { %6708 = vmatmul.mubr.msk.bf16.gmra.mrb[28].mxu1 %vm2755_vm0, %v9175_v10  ;;  %6843 = vmatprep.mubr.msk.bf16.mxu0 %vm2755_vm0, %v9175_v10  ;;  %v3982_v47 = vld [vmem:[#allocation2 + $0x189] sm:$0xff] }
 0x2e0   : > { %v3981_v35 = vld [vmem:[#allocation2 + $0x181] sm:$0xff]  ;;  %6713 = vmatprep.mubr.msk.bf16.mxu1 %vm2755_vm0, %v2876_v17  ;;  %v9249_v17 = vpack.c.bf16 %v2861_v36, %v2860_v16  ;;  %v2873_v16 = vld [vmem:[#allocation2 + $0x158] sm:$0xff]  ;;  %v9295_v36 = vpack.c.bf16 %v2871_v15, %v2870_v25  ;;  %v4836_v15 = vld [vmem:[#allocation2 + $0x69] sm:$0xff] }
 0x2e1   : > { %v9182_v8 = vpack.c.bf16 %v3982_v47, %v3981_v35  ;;  %v4258_v47 = vld [vmem:[#allocation2 + $0xc2] sm:$0xff] }
 0x2e2   : > { %v4261_v35 = vld [vmem:[#allocation2 + $0xe2] sm:$0xff]  ;;  %v9255_v46 = vpack.c.bf16 %v4259_v6, %v4258_v47  ;;  %v9297_v47 = vpack.c.bf16 %v2873_v16, %v2872_v42  ;;  %v4270_v6 = vld [vmem:[#allocation2 + $0x152] sm:$0xff] }
 0x2e3   : > { %6844 = vmatmul.mubr.msk.bf16.gmra.mrb[28].mxu0 %vm2755_vm0, %v9182_v8  ;;  %v9257_v24 = vpack.c.bf16 %v4261_v35, %v4260_v1  ;;  %v4271_v1 = vld [vmem:[#allocation2 + $0x15a] sm:$0xff]  ;;  %v4272_v35 = vld [vmem:[#allocation2 + $0x16a] sm:$0xff] }
 0x2e4   : > { %6849 = vmatprep.mubr.msk.bf16.mxu0 %vm2755_vm0, %v9184_v50  ;;  %v9303_v58 = vpack.c.bf16 %v4271_v1, %v4270_v6  ;;  %v4835_v25 = vld [vmem:[#allocation2 + $0x61] sm:$0xff]  ;;  %v4839_v1 = vld [vmem:[#allocation2 + $0x91] sm:$0xff] }
 0x2e5   : > { %v4865_v16 = vpack.c.bf16 %v4836_v15, %v4835_v25  ;;  %v4838_v6 = vld [vmem:[#allocation2 + $0x81] sm:$0xff] }
 0x2e7   : > { %6714 = vmatmul.mubr.msk.bf16.vlgmr.msra.gmra.mrb[0].mxu1 %vm2755_vm0, %v2877_v43  ;;  %v2864_v43 = vld [vmem:[#allocation2 + $0xf0] sm:$0xff] }
 0x2e8   : > { %6717 = vmatprep.mubr.msk.bf16.mxu1 %vm2755_vm0, %v9190_v32  ;;  %6746 = vmatpush3.bf16.msra.mxu1 %v9039_v51  ;;  %v9214_v51 = vpack.c.bf16 %v2851_v26, %v2850_v41  ;;  %v9265_v0 = vpack.c.bf16 %v2865_v34, %v2864_v43  ;;  %v4265_v41 = vld [vmem:[#allocation2 + $0x112] sm:$0xff]  ;;  %v9271_v26 = vpack.c.bf16 %v4263_v29, %v4262_v28  ;;  %v3365_v43 = vld [vmem:[#allocation2 + $0x2] sm:$0xff]  ;;  %v3366_v34 = vld [vmem:[#allocation2 + $0xa] sm:$0xff] }
 0x2e9   : > { %7051 = vmatprep.subr.bf16.mxu1 %v9823_v13  ;;  %v9273_v2 = vpack.c.bf16 %v4265_v41, %v4264_v27  ;;  %v9305_v28 = vpack.c.bf16 %v4273_v60, %v4272_v35  ;;  %v2874_v29 = vld [vmem:[#allocation2 + $0x168] sm:$0xff]  ;;  %v2875_v27 = vld [vmem:[#allocation2 + $0x170] sm:$0xff]  ;;  %v3397_v41 = vpack.c.bf16 %v3366_v34, %v3365_v43  ;;  %v4840_v35 = vld [vmem:[#allocation2 + $0x99] sm:$0xff] }
 0x2ea   : > { %v4867_v60 = vpack.c.bf16 %v4840_v35, %v4839_v1  ;;  %v4842_v43 = vld [vmem:[#allocation2 + $0xb1] sm:$0xff]  ;;  %v4843_v34 = vld [vmem:[#allocation2 + $0xc1] sm:$0xff] }
 0x2eb   : > { %6850 = vmatmul.mubr.msk.bf16.vlgmr.msra.gmra.mrb[0].mxu0 %vm2755_vm0, %v9202_v21 }
 0x2ec   : > { %6882 = vmatpush3.bf16.msra.mxu0 %v8961_v22  ;;  %6853 = vmatprep.mubr.msk.bf16.mxu0 %vm2755_vm0, %v9207_v39  ;;  %v9223_v22 = vpack.c.bf16 %v4251_v9, %v4250_v59  ;;  %v2867_v59 = vld [vmem:[#allocation2 + $0x110] sm:$0xff]  ;;  %v2868_v9 = vld [vmem:[#allocation2 + $0x120] sm:$0xff] }
 0x2ed   : > { %6915 = vmatprep.subr.bf16.mxu0 %v9204_v63  ;;  %v9279_v18 = vpack.c.bf16 %v2867_v59, %v2866_v12  ;;  %v9281_v55 = vpack.c.bf16 %v2869_v48, %v2868_v9  ;;  %v9311_v12 = vpack.c.bf16 %v2875_v27, %v2874_v29  ;;  %v4274_v59 = vld [vmem:[#allocation2 + $0x182] sm:$0xff]  ;;  %v4275_v9 = vld [vmem:[#allocation2 + $0x18a] sm:$0xff] }
 0x2ee   : > { %v9316_v48 = vpack.c.bf16 %v4275_v9, %v4274_v59  ;;  %v4844_v29 = vld [vmem:[#allocation2 + $0xc9] sm:$0xff]  ;;  %v4847_v59 = vld [vmem:[#allocation2 + $0xf1] sm:$0xff]  ;;  %v4848_v9 = vld [vmem:[#allocation2 + $0xf9] sm:$0xff] }
 0x2ef   : > { %6718 = vmatmul.mubr.msk.bf16.gmra.mrb[4].mxu1 %vm2755_vm0, %v9214_v51  ;;  %v4869_v27 = vpack.c.bf16 %v4844_v29, %v4843_v34  ;;  %v4871_v40 = vpack.c.bf16 %v4848_v9, %v4847_v59  ;;  %v9514_v59 = vld [vmem:[%s9734_s4] ss:$0 sm:$0xff] }
 0x2f0   : > { %6721 = vmatprep.mubr.msk.bf16.mxu1 %vm2755_vm0, %v9217_v38 }
 0x2f3   : > { %6854 = vmatmul.mubr.msk.bf16.gmra.mrb[4].mxu0 %vm2755_vm0, %v9223_v22 }
 0x2f4   : > { %6857 = vmatprep.mubr.msk.bf16.mxu0 %vm2755_vm0, %v9225_v3 }
 0x2f7   : > { %6722 = vmatmul.mubr.msk.bf16.gmra.mrb[8].mxu1 %vm2755_vm0, %v9231_v4 }
 0x2f8   : > { %6725 = vmatprep.mubr.msk.bf16.mxu1 %vm2755_vm0, %v9233_v31 }
 0x2fb   : > { %6858 = vmatmul.mubr.msk.bf16.gmra.mrb[8].mxu0 %vm2755_vm0, %v9239_v11 }
 0x2fc   : > { %6861 = vmatprep.mubr.msk.bf16.mxu0 %vm2755_vm0, %v9241_v54 }
 0x2ff   : > { %6726 = vmatmul.mubr.msk.bf16.gmra.mrb[12].mxu1 %vm2755_vm0, %v9247_v20 }
 0x300   : > { %6729 = vmatprep.mubr.msk.bf16.mxu1 %vm2755_vm0, %v9249_v17 }
 0x303   : > { %6862 = vmatmul.mubr.msk.bf16.gmra.mrb[12].mxu0 %vm2755_vm0, %v9255_v46 }
 0x304   : > { %6865 = vmatprep.mubr.msk.bf16.mxu0 %vm2755_vm0, %v9257_v24 }
 0x307   : > { %6730 = vmatmul.mubr.msk.bf16.gmra.mrb[16].mxu1 %vm2755_vm0, %v9263_v5 }
 0x308   : > { %6733 = vmatprep.mubr.msk.bf16.mxu1 %vm2755_vm0, %v9265_v0 }
 0x30b   : > { %6866 = vmatmul.mubr.msk.bf16.gmra.mrb[16].mxu0 %vm2755_vm0, %v9271_v26 }
 0x30c   : > { %6869 = vmatprep.mubr.msk.bf16.mxu0 %vm2755_vm0, %v9273_v2 }
 0x30f   : > { %6734 = vmatmul.mubr.msk.bf16.gmra.mrb[20].mxu1 %vm2755_vm0, %v9279_v18 }
 0x310   : > { %6737 = vmatprep.mubr.msk.bf16.mxu1 %vm2755_vm0, %v9281_v55 }
 0x313   : > { %6870 = vmatmul.mubr.msk.bf16.gmra.mrb[20].mxu0 %vm2755_vm0, %v9287_v19 }
 0x314   : > { %6873 = vmatprep.mubr.msk.bf16.mxu0 %vm2755_vm0, %v9289_v14 }
 0x317   : > { %6738 = vmatmul.mubr.msk.bf16.gmra.mrb[24].mxu1 %vm2755_vm0, %v9295_v36 }
 0x318   : > { %6741 = vmatprep.mubr.msk.bf16.mxu1 %vm2755_vm0, %v9297_v47 }
 0x31b   : > { %6874 = vmatmul.mubr.msk.bf16.gmra.mrb[24].mxu0 %vm2755_vm0, %v9303_v58 }
 0x31c   : > { %6877 = vmatprep.mubr.msk.bf16.mxu0 %vm2755_vm0, %v9305_v28 }
 0x31f   : > { %6742 = vmatmul.mubr.msk.bf16.gmra.mrb[28].mxu1 %vm2755_vm0, %v9311_v12 }
 0x320   : > { %6747 = vmatprep.mubr.msk.bf16.mxu1 %vm2755_vm0, %v3397_v41  ;;  %v4846_v41 = vld [vmem:[#allocation2 + $0xe1] sm:$0xff] }
 0x323   : > { %6878 = vmatmul.mubr.msk.bf16.gmra.mrb[28].mxu0 %vm2755_vm0, %v9316_v48 }
 0x324   : > { %6883 = vmatprep.mubr.msk.bf16.mxu0 %vm2755_vm0, %v9190_v32  ;;  %v4567_v32 = vld [vmem:[#allocation2 + $0x188] sm:$0xff] }
 0x327   : > { %6748 = vmatmul.mubr.msk.bf16.vlgmr.msra.gmra.mrb[0].mxu1 %vm2755_vm0, %v9184_v50  ;;  %v4566_v50 = vld [vmem:[#allocation2 + $0x180] sm:$0xff] }
 0x328   : > { %6751 = vmatprep.mubr.msk.bf16.mxu1 %vm2755_vm0, %v9202_v21  ;;  %7052 = vmatpush3.bf16.msra.mxu1 %v9823_v13  ;;  %v4568_v13 = vld [vmem:[#allocation2 + $0x198] sm:$0xff] }
 0x32b   : > { %6884 = vmatmul.mubr.msk.bf16.vlgmr.msra.gmra.mrb[0].mxu0 %vm2755_vm0, %v9214_v51  ;;  %v4569_v51 = vld [vmem:[#allocation2 + $0x1a0] sm:$0xff] }
 0x32c   : > { %6916 = vmatpush3.bf16.msra.mxu0 %v9204_v63  ;;  %6887 = vmatprep.mubr.msk.bf16.mxu0 %vm2755_vm0, %v9217_v38  ;;  %v4584_v63 = vpack.c.bf16 %v4567_v32, %v4566_v50  ;;  %v4585_v38 = vpack.c.bf16 %v4569_v51, %v4568_v13  ;;  %v4852_v50 = vld [vmem:[#allocation2 + $0x129] sm:$0xff]  ;;  %v4862_v51 = vld [vmem:[#allocation2 + $0x1a1] sm:$0xff] }
 0x32d   : > { %6949 = vmatprep.subr.bf16.mxu0 %v5175_v33 }
 0x32f   : > { %6752 = vmatmul.mubr.msk.bf16.gmra.mrb[4].mxu1 %vm2755_vm0, %v9207_v39 }
 0x330   : > { %6755 = vmatprep.mubr.msk.bf16.mxu1 %vm2755_vm0, %v9223_v22 }
 0x333   : > { %6888 = vmatmul.mubr.msk.bf16.gmra.mrb[4].mxu0 %vm2755_vm0, %v9231_v4  ;;  %v4831_v4 = vld [vmem:[#allocation2 + $0x31] sm:$0xff] }
 0x334   : > { %6891 = vmatprep.mubr.msk.bf16.mxu0 %vm2755_vm0, %v9233_v31  ;;  %v4832_v31 = vld [vmem:[#allocation2 + $0x39] sm:$0xff] }
 0x337   : > { %6756 = vmatmul.mubr.msk.bf16.gmra.mrb[8].mxu1 %vm2755_vm0, %v9225_v3 }
 0x338   : > { %6759 = vmatprep.mubr.msk.bf16.mxu1 %vm2755_vm0, %v9239_v11 }
 0x33b   : > { %6892 = vmatmul.mubr.msk.bf16.gmra.mrb[8].mxu0 %vm2755_vm0, %v9247_v20  ;;  %v4863_v20 = vpack.c.bf16 %v4832_v31, %v4831_v4  ;;  %v5505_v4 = vld [vmem:[%s9735_s5 + $0x8] sm:$0xff] }
 0x33c   : > { %6895 = vmatprep.mubr.msk.bf16.mxu0 %vm2755_vm0, %v9249_v17  ;;  %v4833_v17 = vld [vmem:[#allocation2 + $0x49] sm:$0xff] }
 0x33d   : > { %v4864_v42 = vpack.c.bf16 %v4834_v37, %v4833_v17 }
 0x33f   : > { %6760 = vmatmul.mubr.msk.bf16.gmra.mrb[12].mxu1 %vm2755_vm0, %v9241_v54 }
 0x340   : > { %6763 = vmatprep.mubr.msk.bf16.mxu1 %vm2755_vm0, %v9255_v46 }
 0x343   : > { %6896 = vmatmul.mubr.msk.bf16.gmra.mrb[12].mxu0 %vm2755_vm0, %v9263_v5 }
 0x344   : > { %6899 = vmatprep.mubr.msk.bf16.mxu0 %vm2755_vm0, %v9265_v0 }
 0x347   : > { %6764 = vmatmul.mubr.msk.bf16.gmra.mrb[16].mxu1 %vm2755_vm0, %v9257_v24 }
 0x348   : > { %6767 = vmatprep.mubr.msk.bf16.mxu1 %vm2755_vm0, %v9271_v26 }
 0x34b   : > { %6900 = vmatmul.mubr.msk.bf16.gmra.mrb[16].mxu0 %vm2755_vm0, %v9279_v18 }
 0x34c   : > { %6903 = vmatprep.mubr.msk.bf16.mxu0 %vm2755_vm0, %v9281_v55 }
 0x34f   : > { %6768 = vmatmul.mubr.msk.bf16.gmra.mrb[20].mxu1 %vm2755_vm0, %v9273_v2 }
 0x350   : > { %6771 = vmatprep.mubr.msk.bf16.mxu1 %vm2755_vm0, %v9287_v19 }
 0x353   : > { %6904 = vmatmul.mubr.msk.bf16.gmra.mrb[20].mxu0 %vm2755_vm0, %v9295_v36 }
 0x354   : > { %6907 = vmatprep.mubr.msk.bf16.mxu0 %vm2755_vm0, %v9297_v47 }
 0x357   : > { %6772 = vmatmul.mubr.msk.bf16.gmra.mrb[24].mxu1 %vm2755_vm0, %v9289_v14 }
 0x358   : > { %6775 = vmatprep.mubr.msk.bf16.mxu1 %vm2755_vm0, %v9303_v58 }
 0x35b   : > { %6908 = vmatmul.mubr.msk.bf16.gmra.mrb[24].mxu0 %vm2755_vm0, %v9311_v12 }
 0x35c   : > { %6911 = vmatprep.mubr.msk.bf16.mxu0 %vm2755_vm0, %v4584_v63 }
 0x35f   : > { %6776 = vmatmul.mubr.msk.bf16.gmra.mrb[28].mxu1 %vm2755_vm0, %v9305_v28 }
 0x360   : > { %6797 = vmatprep.mubr.msk.bf16.mxu1 %vm2755_vm0, %v9263_v5  ;;  %v4837_v5 = vld [vmem:[#allocation2 + $0x79] sm:$0xff] }
 0x363   : > { %6912 = vmatmul.mubr.msk.bf16.gmra.mrb[28].mxu0 %vm2755_vm0, %v4585_v38 }
 0x364   : > { %6917 = vmatprep.mubr.msk.bf16.mxu0 %vm2755_vm0, %v4863_v20 }
 0x367   : > { %6798 = vmatmul.mubr.msk.bf16.vlgmr.msra.gmra.mrb[16].mxu1 %vm2755_vm0, %v9265_v0  ;;  %v4866_v0 = vpack.c.bf16 %v4838_v6, %v4837_v5 }
 0x368   : > { %6801 = vmatprep.mubr.msk.bf16.mxu1 %vm2755_vm0, %v9279_v18  ;;  %v4841_v18 = vld [vmem:[#allocation2 + $0xa9] sm:$0xff] }
 0x36b   : > { %6918 = vmatmul.mubr.msk.bf16.vlgmr.msra.gmra.mrb[0].mxu0 %vm2755_vm0, %v4864_v42 }
 0x36c   : > { %6950 = vmatpush3.bf16.msra.mxu0 %v5175_v33  ;;  %6921 = vmatprep.mubr.msk.bf16.mxu0 %vm2755_vm0, %v4865_v16  ;;  %v4851_v33 = vld [vmem:[#allocation2 + $0x121] sm:$0xff] }
 0x36d   : > { %v4873_v13 = vpack.c.bf16 %v4852_v50, %v4851_v33 }
 0x36f   : > { %6802 = vmatmul.mubr.msk.bf16.gmra.mrb[20].mxu1 %vm2755_vm0, %v9281_v55  ;;  %v4868_v55 = vpack.c.bf16 %v4842_v43, %v4841_v18 }
 0x370   : > { %6805 = vmatprep.mubr.msk.bf16.mxu1 %vm2755_vm0, %v9295_v36  ;;  %v4845_v36 = vld [vmem:[#allocation2 + $0xd9] sm:$0xff] }
 0x371   : > { %v4870_v45 = vpack.c.bf16 %v4846_v41, %v4845_v36 }
 0x373   : > { %6922 = vmatmul.mubr.msk.bf16.gmra.mrb[4].mxu0 %vm2755_vm0, %v4866_v0 }
 0x374   : > { %6925 = vmatprep.mubr.msk.bf16.mxu0 %vm2755_vm0, %v4867_v60 }
 0x377   : > { %6806 = vmatmul.mubr.msk.bf16.gmra.mrb[24].mxu1 %vm2755_vm0, %v9297_v47  ;;  %v4849_v47 = vld [vmem:[#allocation2 + $0x109] sm:$0xff] }
 0x378   : > { %6809 = vmatprep.mubr.msk.bf16.mxu1 %vm2755_vm0, %v9311_v12  ;;  %v4850_v12 = vld [vmem:[#allocation2 + $0x111] sm:$0xff] }
 0x379   : > { %v4872_v32 = vpack.c.bf16 %v4850_v12, %v4849_v47 }
 0x37b   : > { %6926 = vmatmul.mubr.msk.bf16.gmra.mrb[8].mxu0 %vm2755_vm0, %v4868_v55 }
 0x37c   : > { %6929 = vmatprep.mubr.msk.bf16.mxu0 %vm2755_vm0, %v4869_v27 }
 0x37f   : > { %6810 = vmatmul.mubr.msk.bf16.gmra.mrb[28].mxu1 %vm2755_vm0, %v4584_v63  ;;  %v4861_v63 = vld [vmem:[#allocation2 + $0x199] sm:$0xff] }
 0x380   : > { %v4878_v38 = vpack.c.bf16 %v4862_v51, %v4861_v63 }
 0x383   : > { %6930 = vmatmul.mubr.msk.bf16.gmra.mrb[12].mxu0 %vm2755_vm0, %v4870_v45 }
 0x384   : > { %6933 = vmatprep.mubr.msk.bf16.mxu0 %vm2755_vm0, %v4871_v40 }
 0x38b   : > { %6934 = vmatmul.mubr.msk.bf16.gmra.mrb[16].mxu0 %vm2755_vm0, %v4872_v32 }
 0x38c   : > { %6937 = vmatprep.mubr.msk.bf16.mxu0 %vm2755_vm0, %v4873_v13 }
 0x393   : > { %6938 = vmatmul.mubr.msk.bf16.gmra.mrb[20].mxu0 %vm2755_vm0, %v9110_v53  ;;  %v5523_v53 = vld [vmem:[%s9736_s6] sm:$0xff] }
 0x394   : > { %6941 = vmatprep.mubr.msk.bf16.mxu0 %vm2755_vm0, %v9126_v57  ;;  %v5524_v57 = vpack.c.bf16 %v5523_v53, %v5523_v53 }
 0x396   : > { %7341 = vmatprep.subr.msk.bf16.mxu1 %vm5574_vm2, %v5524_v57 }
 0x39b   : > { %6942 = vmatmul.mubr.msk.bf16.gmra.mrb[24].mxu0 %vm2755_vm0, %v9175_v10  ;;  %v5576_v10 = vsel %vm5574_vm2, %v5524_v57, 0 }
 0x39c   : > { %6945 = vmatprep.mubr.msk.bf16.mxu0 %vm2755_vm0, %v9182_v8  ;;  %6984 = vmatpush3.bf16.msra.mxu1 %v5576_v10  ;;  %v5154_v8 = vld [vmem:[#allocation2 + $0x19a] sm:$0xff] }
 0x3a3   : > { %6946 = vmatmul.mubr.msk.bf16.gmra.mrb[28].mxu0 %vm2755_vm0, %v4878_v38 }
 0x3a4   : > { %6951 = vmatprep.mubr.msk.bf16.mxu0 %vm2755_vm0, %v9202_v21  ;;  %v5155_v21 = vld [vmem:[#allocation2 + $0x1a2] sm:$0xff] }
 0x3ab   : > { %6952 = vmatmul.mubr.msk.bf16.vlgmr.msra.gmra.mrb[0].mxu0 %vm2755_vm0, %v9207_v39  ;;  %v5171_v39 = vpack.c.bf16 %v5155_v21, %v5154_v8 }
 0x3ac   : > { %6955 = vmatprep.mubr.msk.bf16.mxu0 %vm2755_vm0, %v9223_v22 }
 0x3b3   : > { %6956 = vmatmul.mubr.msk.bf16.gmra.mrb[4].mxu0 %vm2755_vm0, %v9225_v3 }
 0x3b4   : > { %6959 = vmatprep.mubr.msk.bf16.mxu0 %vm2755_vm0, %v9239_v11 }
 0x3bb   : > { %6960 = vmatmul.mubr.msk.bf16.gmra.mrb[8].mxu0 %vm2755_vm0, %v9241_v54 }
 0x3bc   : > { %6963 = vmatprep.mubr.msk.bf16.mxu0 %vm2755_vm0, %v9255_v46 }
 0x3c3   : > { %6964 = vmatmul.mubr.msk.bf16.gmra.mrb[12].mxu0 %vm2755_vm0, %v9257_v24 }
 0x3c4   : > { %6967 = vmatprep.mubr.msk.bf16.mxu0 %vm2755_vm0, %v9271_v26 }
 0x3cb   : > { %6968 = vmatmul.mubr.msk.bf16.gmra.mrb[16].mxu0 %vm2755_vm0, %v9273_v2 }
 0x3cc   : > { %6971 = vmatprep.mubr.msk.bf16.mxu0 %vm2755_vm0, %v9287_v19 }
 0x3d3   : > { %6972 = vmatmul.mubr.msk.bf16.gmra.mrb[20].mxu0 %vm2755_vm0, %v9289_v14 }
 0x3d4   : > { %6975 = vmatprep.mubr.msk.bf16.mxu0 %vm2755_vm0, %v9303_v58 }
 0x3db   : > { %6976 = vmatmul.mubr.msk.bf16.gmra.mrb[24].mxu0 %vm2755_vm0, %v9305_v28 }
 0x3dc   : > { %6979 = vmatprep.mubr.msk.bf16.mxu0 %vm2755_vm0, %v9316_v48  ;;  %v5504_v48 = vld [vmem:[%s9735_s5] sm:$0xff] }
 0x3dd   : > { %v5506_v31 = vpack.c.bf16 %v5505_v4, %v5504_v48 }
 0x3df   : > { %7017 = vmatprep.subr.bf16.mxu1 %v5506_v31 }
 0x3e3   : > { %6980 = vmatmul.mubr.msk.bf16.gmra.mrb[28].mxu0 %vm2755_vm0, %v5171_v39 }
 0x3fa   : > { %v6749_v22 = vpop.f32.mrb[0].mxu1 }
 0x3fb   : > { %v3499_v3 = vpop.f32.mrb[1].mxu1 }
 0x3fc   : > { %v6750_v11 = vpop.f32.mrb[2].mxu1 }
 0x3fd   : > { %v3502_v54 = vpop.f32.mrb[3].mxu1 }
 0x402   : > { %v6753_v46 = vpop.f32.mrb[4].mxu1 }
 0x403   : > { %v3515_v24 = vpop.f32.mrb[5].mxu1 }
 0x404   : > { %v6754_v26 = vpop.f32.mrb[6].mxu1 }
 0x405   : > { %v3518_v2 = vpop.f32.mrb[7].mxu1 }
 0x40a   : > { %v9457_v19 = vpop.f32.mrb[8].mxu1 }
 0x40b   : > { %v9459_v14 = vpop.f32.mrb[9].mxu1 }
 0x40c   : > { %v9461_v58 = vpop.f32.mrb[10].mxu1 }
 0x40d   : > { %v9463_v28 = vpop.f32.mrb[11].mxu1 }
 0x412   : > { %v9471_v20 = vpop.f32.mrb[12].mxu1 }
 0x413   : > { %v9473_v17 = vpop.f32.mrb[13].mxu1 }
 0x414   : > { %v9475_v37 = vpop.f32.mrb[14].mxu1 }
 0x415   : > { %v9477_v25 = vpop.f32.mrb[15].mxu1 }
 0x43a   : > { %v9479_v15 = vpop.f32.mrb[16].mxu1 }
 0x43b   : > { %v9481_v42 = vpop.f32.mrb[17].mxu1 }
 0x43c   : > { %v9483_v16 = vpop.f32.mrb[18].mxu1 }
 0x43d   : > { %v9485_v5 = vpop.f32.mrb[19].mxu1 }
 0x442   : > { %v9487_v6 = vpop.f32.mrb[20].mxu1 }
 0x443   : > { %v9489_v1 = vpop.f32.mrb[21].mxu1 }
 0x444   : > { %v9491_v35 = vpop.f32.mrb[22].mxu1 }
 0x445   : > { %v9493_v0 = vpop.f32.mrb[23].mxu1 }
 0x44a   : > { %v9495_v60 = vpop.f32.mrb[24].mxu1 }
 0x44b   : > { %v9497_v18 = vpop.f32.mrb[25].mxu1 }
 0x44c   : > { %v9499_v43 = vpop.f32.mrb[26].mxu1 }
 0x44d   : > { %v9501_v34 = vpop.f32.mrb[27].mxu1 }
 0x452   : > { %v9503_v29 = vpop.f32.mrb[28].mxu1 }
 0x453   : > { %v9505_v55 = vpop.f32.mrb[29].mxu1 }
 0x454   : > { %v9507_v27 = vpop.f32.mrb[30].mxu1 }
 0x455   : > { %v9509_v36 = vpop.f32.mrb[31].mxu1 }
 0x47e   : > { %v6953_v41 = vpop.f32.mrb[0].mxu0 }
 0x47f   : > { %v7053_v9 = vadd.f32 %v6953_v41, %v6749_v22  ;;  %v5258_v45 = vpop.f32.mrb[1].mxu0 }
 0x480   : > { %v7054_v40 = vadd.f32 %v5258_v45, %v3499_v3  ;;  %v6954_v47 = vpop.f32.mrb[2].mxu0 }
 0x481   : > { %v5426_v12 = vadd.f32 %v7053_v9, %v9514_v59  ;;  %v7055_v33 = vadd.f32 %v6954_v47, %v6750_v11  ;;  %v5261_v50 = vpop.f32.mrb[3].mxu0 }
 0x482   : > { %v5424_v32 = vadd.f32 %v7054_v40, %v9514_v59  ;;  %v7056_v13 = vadd.f32 %v5261_v50, %v3502_v54 }
 0x483   : > { %v5427_v63 = vadd.f32 %v7055_v33, %v9514_v59  ;;  %v5458_v38 = vmax.f32 %v5426_v12, 0.0 }
 0x484   : > { %v5425_v51 = vadd.f32 %v7056_v13, %v9514_v59  ;;  %v5456_v57 = vmax.f32 %v5424_v32, 0.0 }
 0x485   : > { %v5459_v53 = vmax.f32 %v5427_v63, 0.0 }
 0x486   : > { %v5457_v10 = vmax.f32 %v5425_v51, 0.0  ;;  %v6957_v8 = vpop.f32.mrb[4].mxu0 }
 0x487   : > { %v5508_v21 = vpack.c.bf16 %v5459_v53, %v5458_v38  ;;  %v7057_v39 = vadd.f32 %v6957_v8, %v6753_v46  ;;  %v5274_v22 = vpop.f32.mrb[5].mxu0 }
 0x488   : > { %v5507_v3 = vpack.c.bf16 %v5457_v10, %v5456_v57  ;;  %v7058_v48 = vadd.f32 %v5274_v22, %v3515_v24  ;;  %v6958_v11 = vpop.f32.mrb[6].mxu0 }
 0x489   : > { %v5430_v4 = vadd.f32 %v7057_v39, %v9514_v59  ;;  %v7059_v41 = vadd.f32 %v6958_v11, %v6754_v26  ;;  %v5277_v54 = vpop.f32.mrb[7].mxu0 }
 0x48a   : > { %v5428_v9 = vadd.f32 %v7058_v48, %v9514_v59  ;;  %v7060_v45 = vadd.f32 %v5277_v54, %v3518_v2  ;;  %6985 = vmatprep.mubr.msk.bf16.mxu1 %vm5525_vm3, %v5507_v3 }
 0x48b   : > { %v5431_v40 = vadd.f32 %v7059_v41, %v9514_v59  ;;  %6986 = vmatmul.mubr.msk.bf16.vlgmr.msra.gmra.mrb[32].mxu1 %vm5525_vm3, %v5508_v21  ;;  %v5462_v47 = vmax.f32 %v5430_v4, 0.0 }
 0x48c   : > { %v5429_v46 = vadd.f32 %v7060_v45, %v9514_v59  ;;  %7018 = vmatpush3.bf16.msra.mxu1 %v5506_v31  ;;  %v5460_v24 = vmax.f32 %v5428_v9, 0.0 }
 0x48d   : > { %v5463_v12 = vmax.f32 %v5431_v40, 0.0 }
 0x48e   : > { %v5461_v33 = vmax.f32 %v5429_v46, 0.0  ;;  %v6961_v50 = vpop.f32.mrb[8].mxu0 }
 0x48f   : > { %v5510_v32 = vpack.c.bf16 %v5463_v12, %v5462_v47  ;;  %v7061_v26 = vadd.f32 %v6961_v50, %v9457_v19  ;;  %v5290_v13 = vpop.f32.mrb[9].mxu0 }
 0x490   : > { %v5509_v63 = vpack.c.bf16 %v5461_v33, %v5460_v24  ;;  %v7062_v2 = vadd.f32 %v5290_v13, %v9459_v14  ;;  %v6962_v51 = vpop.f32.mrb[10].mxu0 }
 0x491   : > { %v5434_v38 = vadd.f32 %v7061_v26, %v9514_v59  ;;  %v7063_v53 = vadd.f32 %v6962_v51, %v9461_v58  ;;  %v5293_v57 = vpop.f32.mrb[11].mxu0 }
 0x492   : > { %v5432_v31 = vadd.f32 %v7062_v2, %v9514_v59  ;;  %v7064_v10 = vadd.f32 %v5293_v57, %v9463_v28  ;;  %6989 = vmatprep.mubr.msk.bf16.mxu1 %vm5525_vm3, %v5509_v63 }
 0x493   : > { %v5435_v8 = vadd.f32 %v7063_v53, %v9514_v59  ;;  %6990 = vmatmul.mubr.msk.bf16.gmra.mrb[36].mxu1 %vm5525_vm3, %v5510_v32  ;;  %v5466_v21 = vmax.f32 %v5434_v38, 0.0 }
 0x494   : > { %v5433_v19 = vadd.f32 %v7064_v10, %v9514_v59  ;;  %v5464_v39 = vmax.f32 %v5432_v31, 0.0 }
 0x495   : > { %v5467_v14 = vmax.f32 %v5435_v8, 0.0 }
 0x496   : > { %v5465_v22 = vmax.f32 %v5433_v19, 0.0  ;;  %v6965_v3 = vpop.f32.mrb[12].mxu0 }
 0x497   : > { %v5512_v48 = vpack.c.bf16 %v5467_v14, %v5466_v21  ;;  %v7065_v58 = vadd.f32 %v6965_v3, %v9471_v20  ;;  %v5306_v11 = vpop.f32.mrb[13].mxu0 }
 0x498   : > { %v5511_v4 = vpack.c.bf16 %v5465_v22, %v5464_v39  ;;  %v7066_v28 = vadd.f32 %v5306_v11, %v9473_v17  ;;  %v6966_v41 = vpop.f32.mrb[14].mxu0 }
 0x499   : > { %v5438_v54 = vadd.f32 %v7065_v58, %v9514_v59  ;;  %v7067_v9 = vadd.f32 %v6966_v41, %v9475_v37  ;;  %v5309_v45 = vpop.f32.mrb[15].mxu0 }
 0x49a   : > { %v5436_v40 = vadd.f32 %v7066_v28, %v9514_v59  ;;  %v7068_v46 = vadd.f32 %v5309_v45, %v9477_v25  ;;  %6993 = vmatprep.mubr.msk.bf16.mxu1 %vm5525_vm3, %v5511_v4 }
 0x49b   : > { %v5439_v47 = vadd.f32 %v7067_v9, %v9514_v59  ;;  %6994 = vmatmul.mubr.msk.bf16.gmra.mrb[40].mxu1 %vm5525_vm3, %v5512_v48  ;;  %v5470_v12 = vmax.f32 %v5438_v54, 0.0 }
 0x49c   : > { %v5437_v20 = vadd.f32 %v7068_v46, %v9514_v59  ;;  %v5468_v24 = vmax.f32 %v5436_v40, 0.0 }
 0x49d   : > { %v5471_v17 = vmax.f32 %v5439_v47, 0.0 }
 0x49e   : > { %v5469_v33 = vmax.f32 %v5437_v20, 0.0  ;;  %v6969_v50 = vpop.f32.mrb[16].mxu0 }
 0x49f   : > { %v5514_v32 = vpack.c.bf16 %v5471_v17, %v5470_v12  ;;  %v7069_v37 = vadd.f32 %v6969_v50, %v9479_v15  ;;  %v5322_v26 = vpop.f32.mrb[17].mxu0 }
 0x4a0   : > { %v5513_v13 = vpack.c.bf16 %v5469_v33, %v5468_v24  ;;  %v7070_v25 = vadd.f32 %v5322_v26, %v9481_v42  ;;  %v6970_v63 = vpop.f32.mrb[18].mxu0 }
 0x4a1   : > { %v5442_v2 = vadd.f32 %v7069_v37, %v9514_v59  ;;  %v7071_v51 = vadd.f32 %v6970_v63, %v9483_v16  ;;  %v5325_v38 = vpop.f32.mrb[19].mxu0 }
 0x4a2   : > { %v5440_v53 = vadd.f32 %v7070_v25, %v9514_v59  ;;  %v7072_v57 = vadd.f32 %v5325_v38, %v9485_v5  ;;  %6997 = vmatprep.mubr.msk.bf16.mxu1 %vm5525_vm3, %v5513_v13 }
 0x4a3   : > { %v5443_v31 = vadd.f32 %v7071_v51, %v9514_v59  ;;  %6998 = vmatmul.mubr.msk.bf16.gmra.mrb[44].mxu1 %vm5525_vm3, %v5514_v32  ;;  %v5474_v10 = vmax.f32 %v5442_v2, 0.0 }
 0x4a4   : > { %v5441_v15 = vadd.f32 %v7072_v57, %v9514_v59  ;;  %v5472_v8 = vmax.f32 %v5440_v53, 0.0 }
 0x4a5   : > { %v5475_v42 = vmax.f32 %v5443_v31, 0.0 }
 0x4a6   : > { %v5473_v19 = vmax.f32 %v5441_v15, 0.0  ;;  %v6973_v21 = vpop.f32.mrb[20].mxu0 }
 0x4a7   : > { %v5516_v14 = vpack.c.bf16 %v5475_v42, %v5474_v10  ;;  %v7073_v16 = vadd.f32 %v6973_v21, %v9487_v6  ;;  %v5338_v39 = vpop.f32.mrb[21].mxu0 }
 0x4a8   : > { %v5515_v22 = vpack.c.bf16 %v5473_v19, %v5472_v8  ;;  %v7074_v5 = vadd.f32 %v5338_v39, %v9489_v1  ;;  %v6974_v3 = vpop.f32.mrb[22].mxu0 }
 0x4a9   : > { %v5446_v48 = vadd.f32 %v7073_v16, %v9514_v59  ;;  %v7075_v58 = vadd.f32 %v6974_v3, %v9491_v35  ;;  %v5341_v11 = vpop.f32.mrb[23].mxu0  ;;  %v9829_v3 = vld [vmem:[#allocation28_spill] sm:$0xff] }
 0x4aa   : > { %v5444_v4 = vadd.f32 %v7074_v5, %v9514_v59  ;;  %v7076_v28 = vadd.f32 %v5341_v11, %v9493_v0  ;;  %7001 = vmatprep.mubr.msk.bf16.mxu1 %vm5525_vm3, %v5515_v22  ;;  %v9827_v22 = vld [vmem:[#allocation3_spill] sm:$0xff]  ;;  %v9828_v5 = vld [vmem:[#allocation4_spill] sm:$0xff] }
 0x4ab   : > { %v5447_v41 = vadd.f32 %v7075_v58, %v9514_v59  ;;  %7002 = vmatmul.mubr.msk.bf16.gmra.mrb[48].mxu1 %vm5525_vm3, %v5516_v14  ;;  %v5478_v54 = vmax.f32 %v5446_v48, 0.0  ;;  %v9830_v48 = vld [vmem:[#allocation29_spill] sm:$0xff] }
 0x4ac   : > { %v5445_v6 = vadd.f32 %v7076_v28, %v9514_v59  ;;  %v5476_v9 = vmax.f32 %v5444_v4, 0.0 }
 0x4ad   : > { %v5479_v1 = vmax.f32 %v5447_v41, 0.0 }
 0x4ae   : > { %v5477_v45 = vmax.f32 %v5445_v6, 0.0  ;;  %v6977_v40 = vpop.f32.mrb[24].mxu0 }
 0x4af   : > { %v5518_v46 = vpack.c.bf16 %v5479_v1, %v5478_v54  ;;  %v7077_v35 = vadd.f32 %v6977_v40, %v9495_v60  ;;  %v5354_v47 = vpop.f32.mrb[25].mxu0 }
 0x4b0   : > { %v5517_v20 = vpack.c.bf16 %v5477_v45, %v5476_v9  ;;  %v7078_v0 = vadd.f32 %v5354_v47, %v9497_v18  ;;  %v6978_v12 = vpop.f32.mrb[26].mxu0 }
 0x4b1   : > { %v5450_v17 = vadd.f32 %v7077_v35, %v9514_v59  ;;  %v7079_v24 = vadd.f32 %v6978_v12, %v9499_v43  ;;  %v5357_v33 = vpop.f32.mrb[27].mxu0 }
 0x4b2   : > { %v5448_v50 = vadd.f32 %v7078_v0, %v9514_v59  ;;  %v7080_v32 = vadd.f32 %v5357_v33, %v9501_v34  ;;  %7005 = vmatprep.mubr.msk.bf16.mxu1 %vm5525_vm3, %v5517_v20 }
 0x4b3   : > { %v5451_v37 = vadd.f32 %v7079_v24, %v9514_v59  ;;  %7006 = vmatmul.mubr.msk.bf16.gmra.mrb[52].mxu1 %vm5525_vm3, %v5518_v46  ;;  %v5482_v26 = vmax.f32 %v5450_v17, 0.0 }
 0x4b4   : > { %v5449_v60 = vadd.f32 %v7080_v32, %v9514_v59  ;;  %v5480_v13 = vmax.f32 %v5448_v50, 0.0 }
 0x4b5   : > { %v5483_v18 = vmax.f32 %v5451_v37, 0.0 }
 0x4b6   : > { %v5481_v25 = vmax.f32 %v5449_v60, 0.0  ;;  %v6981_v63 = vpop.f32.mrb[28].mxu0 }
 0x4b7   : > { %v5520_v2 = vpack.c.bf16 %v5483_v18, %v5482_v26  ;;  %v7081_v43 = vadd.f32 %v6981_v63, %v9503_v29  ;;  %v5370_v51 = vpop.f32.mrb[29].mxu0 }
 0x4b8   : > { %v5519_v38 = vpack.c.bf16 %v5481_v25, %v5480_v13  ;;  %v7082_v34 = vadd.f32 %v5370_v51, %v9505_v55  ;;  %v6982_v53 = vpop.f32.mrb[30].mxu0 }
 0x4b9   : > { %v5454_v57 = vadd.f32 %v7081_v43, %v9514_v59  ;;  %v7083_v31 = vadd.f32 %v6982_v53, %v9507_v27  ;;  %v5373_v15 = vpop.f32.mrb[31].mxu0  ;;  %v9824_v27 = vld [vmem:[#allocation38_spill] sm:$0xff] }
 0x4ba   : > { %v5452_v10 = vadd.f32 %v7082_v34, %v9514_v59  ;;  %v7084_v42 = vadd.f32 %v5373_v15, %v9509_v36  ;;  %7009 = vmatprep.mubr.msk.bf16.mxu1 %vm5525_vm3, %v5519_v38  ;;  %v9825_v36 = vld [vmem:[#allocation39_spill] sm:$0xff] }
 0x4bb   : > { %v5455_v8 = vadd.f32 %v7083_v31, %v9514_v59  ;;  %7010 = vmatmul.mubr.msk.bf16.gmra.mrb[56].mxu1 %vm5525_vm3, %v5520_v2  ;;  %v5486_v19 = vmax.f32 %v5454_v57, 0.0 }
 0x4bc   : > { %v5453_v29 = vadd.f32 %v7084_v42, %v9514_v59  ;;  %v5484_v21 = vmax.f32 %v5452_v10, 0.0  ;;  %v9826_v59 = vld [vmem:[#allocation42_spill] sm:$0xff] }
 0x4bd   : > { %v5487_v55 = vmax.f32 %v5455_v8, 0.0 }
 0x4be   : > { %v5485_v14 = vmax.f32 %v5453_v29, 0.0 }
 0x4bf   : > { %v5522_v16 = vpack.c.bf16 %v5487_v55, %v5486_v19 }
 0x4c0   : > { %v5521_v39 = vpack.c.bf16 %v5485_v14, %v5484_v21 }
 0x4c2   : > { %7013 = vmatprep.mubr.msk.bf16.mxu1 %vm5525_vm3, %v5521_v39 }
 0x4c3   : > { %7014 = vmatmul.mubr.msk.bf16.gmra.mrb[60].mxu1 %vm5525_vm3, %v5522_v16 }
 0x4c4   : > { %7019 = vmatprep.mubr.msk.bf16.mxu1 %vm2755_vm0, %v9824_v27 }
 0x4cb   : > { %7020 = vmatmul.mubr.msk.bf16.vlgmr.msra.gmra.mrb[32].mxu1 %vm2755_vm0, %v9825_v36 }
 0x4cc   : > { %7023 = vmatprep.mubr.msk.bf16.mxu1 %vm2755_vm0, %v8250_v30  ;;  %v9624_v30 = vld [vmem:[%s9737_s7] ss:$0 sm:$0xff] }
 0x4d3   : > { %7024 = vmatmul.mubr.msk.bf16.gmra.mrb[36].mxu1 %vm2755_vm0, %v9826_v59 }
 0x4d4   : > { %7027 = vmatprep.mubr.msk.bf16.mxu1 %vm2755_vm0, %v9827_v22 }
 0x4db   : > { %7028 = vmatmul.mubr.msk.bf16.gmra.mrb[40].mxu1 %vm2755_vm0, %v9828_v5 }
 0x4dc   : > { %7031 = vmatprep.mubr.msk.bf16.mxu1 %vm2755_vm0, %v9829_v3 }
 0x4e3   : > { %7032 = vmatmul.mubr.msk.bf16.gmra.mrb[44].mxu1 %vm2755_vm0, %v9830_v48 }
 0x4e4   : > { %7035 = vmatprep.mubr.msk.bf16.mxu1 %vm2755_vm0, %v8851_v44 }
 0x4eb   : > { %7036 = vmatmul.mubr.msk.bf16.gmra.mrb[48].mxu1 %vm2755_vm0, %v8879_v56 }
 0x4ec   : > { %7039 = vmatprep.mubr.msk.bf16.mxu1 %vm2755_vm0, %v8979_v52 }
 0x4f3   : > { %7040 = vmatmul.mubr.msk.bf16.gmra.mrb[52].mxu1 %vm2755_vm0, %v8996_v61 }
 0x4f4   : > { %7043 = vmatprep.mubr.msk.bf16.mxu1 %vm2755_vm0, %v9101_v23 }
 0x4fb   : > { %7044 = vmatmul.mubr.msk.bf16.gmra.mrb[56].mxu1 %vm2755_vm0, %v9108_v62 }
 0x4fc   : > { %7047 = vmatprep.mubr.msk.bf16.mxu1 %vm2755_vm0, %v9169_v49 }
 0x503   : > { %7048 = vmatmul.mubr.msk.bf16.gmra.mrb[60].mxu1 %vm2755_vm0, %v9173_v7 }
 0x59e   : > { %v7021_v44 = vpop.f32.mrb[32].mxu1 }
 0x59f   : > { %v5957_v56 = vadd.f32 %v7021_v44, %v9624_v30  ;;  %v5821_v52 = vpop.f32.mrb[33].mxu1 }
 0x5a0   : > { %v5955_v61 = vadd.f32 %v9624_v30, %v5821_v52  ;;  %v7022_v23 = vpop.f32.mrb[34].mxu1 }
 0x5a1   : > { %5990 = vst.msk [vmem:[%s9629_s18 + $0x10] sm:$0xff] %vm5987_vm4, %v5957_v56  ;;  %v5958_v62 = vadd.f32 %v7022_v23, %v9624_v30  ;;  %v5824_v49 = vpop.f32.mrb[35].mxu1 }
 0x5a2   : > { %5988 = vst.msk [vmem:[%s9629_s18] sm:$0xff] %vm5987_vm4, %v5955_v61  ;;  %v5956_v7 = vadd.f32 %v9624_v30, %v5824_v49 }
 0x5a3   : > { %5991 = vst.msk [vmem:[%s9629_s18 + $0x18] sm:$0xff] %vm5987_vm4, %v5958_v62 }
 0x5a4   : > { %5989 = vst.msk [vmem:[%s9629_s18 + $0x8] sm:$0xff] %vm5987_vm4, %v5956_v7 }
 0x5a6   : > { %v7025_v58 = vpop.f32.mrb[36].mxu1 }
 0x5a7   : > { %v5961_v11 = vadd.f32 %v7025_v58, %v9624_v30  ;;  %v5837_v4 = vpop.f32.mrb[37].mxu1 }
 0x5a8   : > { %v5959_v28 = vadd.f32 %v9624_v30, %v5837_v4  ;;  %v7026_v41 = vpop.f32.mrb[38].mxu1 }
 0x5a9   : > { %5994 = vst.msk [vmem:[%s9629_s18 + $0x30] sm:$0xff] %vm5987_vm4, %v5961_v11  ;;  %v5962_v6 = vadd.f32 %v7026_v41, %v9624_v30  ;;  %v5840_v54 = vpop.f32.mrb[39].mxu1 }
 0x5aa   : > { %5992 = vst.msk [vmem:[%s9629_s18 + $0x20] sm:$0xff] %vm5987_vm4, %v5959_v28  ;;  %v5960_v1 = vadd.f32 %v9624_v30, %v5840_v54 }
 0x5ab   : > { %5995 = vst.msk [vmem:[%s9629_s18 + $0x38] sm:$0xff] %vm5987_vm4, %v5962_v6 }
 0x5ac   : > { %5993 = vst.msk [vmem:[%s9629_s18 + $0x28] sm:$0xff] %vm5987_vm4, %v5960_v1 }
 0x5ae   : > { %v7029_v9 = vpop.f32.mrb[40].mxu1 }
 0x5af   : > { %v5965_v45 = vadd.f32 %v7029_v9, %v9624_v30  ;;  %v5853_v40 = vpop.f32.mrb[41].mxu1 }
 0x5b0   : > { %v5963_v46 = vadd.f32 %v9624_v30, %v5853_v40  ;;  %v7030_v35 = vpop.f32.mrb[42].mxu1 }
 0x5b1   : > { %5998 = vst.msk [vmem:[%s9629_s18 + $0x50] sm:$0xff] %vm5987_vm4, %v5965_v45  ;;  %v5966_v47 = vadd.f32 %v7030_v35, %v9624_v30  ;;  %v5856_v20 = vpop.f32.mrb[43].mxu1 }
 0x5b2   : > { %5996 = vst.msk [vmem:[%s9629_s18 + $0x40] sm:$0xff] %vm5987_vm4, %v5963_v46  ;;  %v5964_v0 = vadd.f32 %v9624_v30, %v5856_v20 }
 0x5b3   : > { %5999 = vst.msk [vmem:[%s9629_s18 + $0x58] sm:$0xff] %vm5987_vm4, %v5966_v47 }
 0x5b4   : > { %5997 = vst.msk [vmem:[%s9629_s18 + $0x48] sm:$0xff] %vm5987_vm4, %v5964_v0 }
 0x5b6   : > { %v7033_v12 = vpop.f32.mrb[44].mxu1 }
 0x5b7   : > { %v5969_v17 = vadd.f32 %v7033_v12, %v9624_v30  ;;  %v5869_v24 = vpop.f32.mrb[45].mxu1 }
 0x5b8   : > { %v5967_v33 = vadd.f32 %v9624_v30, %v5869_v24  ;;  %v7034_v50 = vpop.f32.mrb[46].mxu1 }
 0x5b9   : > { %6002 = vst.msk [vmem:[%s9629_s18 + $0x70] sm:$0xff] %vm5987_vm4, %v5969_v17  ;;  %v5970_v32 = vadd.f32 %v7034_v50, %v9624_v30  ;;  %v5872_v37 = vpop.f32.mrb[47].mxu1 }
 0x5ba   : > { %6000 = vst.msk [vmem:[%s9629_s18 + $0x60] sm:$0xff] %vm5987_vm4, %v5967_v33  ;;  %v5968_v60 = vadd.f32 %v9624_v30, %v5872_v37 }
 0x5bb   : > { %6003 = vst.msk [vmem:[%s9629_s18 + $0x78] sm:$0xff] %vm5987_vm4, %v5970_v32 }
 0x5bc   : > { %6001 = vst.msk [vmem:[%s9629_s18 + $0x68] sm:$0xff] %vm5987_vm4, %v5968_v60 }
 0x5be   : > { %v7037_v26 = vpop.f32.mrb[48].mxu1 }
 0x5bf   : > { %v5973_v18 = vadd.f32 %v7037_v26, %v9624_v30  ;;  %v5885_v13 = vpop.f32.mrb[49].mxu1 }
 0x5c0   : > { %v5971_v25 = vadd.f32 %v9624_v30, %v5885_v13  ;;  %v7038_v63 = vpop.f32.mrb[50].mxu1 }
 0x5c1   : > { %6006 = vst.msk [vmem:[%s9629_s18 + $0x90] sm:$0xff] %vm5987_vm4, %v5973_v18  ;;  %v5974_v2 = vadd.f32 %v7038_v63, %v9624_v30  ;;  %v5888_v43 = vpop.f32.mrb[51].mxu1 }
 0x5c2   : > { %6004 = vst.msk [vmem:[%s9629_s18 + $0x80] sm:$0xff] %vm5987_vm4, %v5971_v25  ;;  %v5972_v51 = vadd.f32 %v9624_v30, %v5888_v43 }
 0x5c3   : > { %6007 = vst.msk [vmem:[%s9629_s18 + $0x98] sm:$0xff] %vm5987_vm4, %v5974_v2 }
 0x5c4   : > { %6005 = vst.msk [vmem:[%s9629_s18 + $0x88] sm:$0xff] %vm5987_vm4, %v5972_v51 }
 0x5c6   : > { %v7041_v38 = vpop.f32.mrb[52].mxu1 }
 0x5c7   : > { %v5977_v34 = vadd.f32 %v7041_v38, %v9624_v30  ;;  %v5901_v53 = vpop.f32.mrb[53].mxu1 }
 0x5c8   : > { %v5975_v57 = vadd.f32 %v9624_v30, %v5901_v53  ;;  %v7042_v31 = vpop.f32.mrb[54].mxu1 }
 0x5c9   : > { %6010 = vst.msk [vmem:[%s9629_s18 + $0xb0] sm:$0xff] %vm5987_vm4, %v5977_v34  ;;  %v5978_v15 = vadd.f32 %v7042_v31, %v9624_v30  ;;  %v5904_v10 = vpop.f32.mrb[55].mxu1 }
 0x5ca   : > { %6008 = vst.msk [vmem:[%s9629_s18 + $0xa0] sm:$0xff] %vm5987_vm4, %v5975_v57  ;;  %v5976_v42 = vadd.f32 %v9624_v30, %v5904_v10 }
 0x5cb   : > { %6011 = vst.msk [vmem:[%s9629_s18 + $0xb8] sm:$0xff] %vm5987_vm4, %v5978_v15 }
 0x5cc   : > { %6009 = vst.msk [vmem:[%s9629_s18 + $0xa8] sm:$0xff] %vm5987_vm4, %v5976_v42 }
 0x5ce   : > { %v7045_v8 = vpop.f32.mrb[56].mxu1 }
 0x5cf   : > { %v5981_v29 = vadd.f32 %v7045_v8, %v9624_v30  ;;  %v5917_v19 = vpop.f32.mrb[57].mxu1 }
 0x5d0   : > { %v5979_v55 = vadd.f32 %v9624_v30, %v5917_v19  ;;  %v7046_v21 = vpop.f32.mrb[58].mxu1 }
 0x5d1   : > { %6014 = vst.msk [vmem:[%s9629_s18 + $0xd0] sm:$0xff] %vm5987_vm4, %v5981_v29  ;;  %v5982_v14 = vadd.f32 %v7046_v21, %v9624_v30  ;;  %v5920_v16 = vpop.f32.mrb[59].mxu1 }
 0x5d2   : > { %6012 = vst.msk [vmem:[%s9629_s18 + $0xc0] sm:$0xff] %vm5987_vm4, %v5979_v55  ;;  %v5980_v39 = vadd.f32 %v9624_v30, %v5920_v16 }
 0x5d3   : > { %6015 = vst.msk [vmem:[%s9629_s18 + $0xd8] sm:$0xff] %vm5987_vm4, %v5982_v14 }
 0x5d4   : > { %6013 = vst.msk [vmem:[%s9629_s18 + $0xc8] sm:$0xff] %vm5987_vm4, %v5980_v39 }
 0x5d6   : > { %v7049_v27 = vpop.f32.mrb[60].mxu1 }
 0x5d7   : > { %v5985_v36 = vadd.f32 %v7049_v27, %v9624_v30  ;;  %v5933_v59 = vpop.f32.mrb[61].mxu1 }
 0x5d8   : > { %v5983_v22 = vadd.f32 %v9624_v30, %v5933_v59  ;;  %v7050_v5 = vpop.f32.mrb[62].mxu1 }
 0x5d9   : > { %6018 = vst.msk [vmem:[%s9629_s18 + $0xf0] sm:$0xff] %vm5987_vm4, %v5985_v36  ;;  %v5986_v3 = vadd.f32 %v7050_v5, %v9624_v30  ;;  %v5936_v48 = vpop.f32.mrb[63].mxu1 }
 0x5da   : > { %6016 = vst.msk [vmem:[%s9629_s18 + $0xe0] sm:$0xff] %vm5987_vm4, %v5983_v22  ;;  %v5984_v44 = vadd.f32 %v9624_v30, %v5936_v48 }
 0x5db   : > { %6019 = vst.msk [vmem:[%s9629_s18 + $0xf8] sm:$0xff] %vm5987_vm4, %v5986_v3 }
 0x5dc   : > { %6017 = vst.msk [vmem:[%s9629_s18 + $0xe8] sm:$0xff] %vm5987_vm4, %v5984_v44 }
 0x5dd PF: > { %s18_s27 = sadd.s32 1, %s7379_s27  }
 0x5de   : > { %p15_p4 = scmp.ge.s32.totalorder %s18_s27, 4  }
 0x5e0   :  { %17 = sbr.rel (!%p15_p4) target bundleno = 1 (0x1), region = 102 }

</bundles_post_ra>
